<compile_context>
chip_gen: v5e
topology: v5e:2x2
jax: 0.10.0
libtpu: 0.0.40
codegen_flags: <defaults>
</compile_context>

<pallas_src>
import jax
import jax.numpy as jnp
from jax import lax
from jax.experimental import pallas as pl
from jax.experimental.pallas import tpu as pltpu

_VMEM_LIMIT = 32 * 1024 * 1024


def _round_up(v, m):
    return (v + m - 1) // m * m


# ----------------------------- Pallas kernels ------------------------------

def conv_relu_pool_kernel(p_ref, w_ref, b_ref, o_ref):
    # p_ref: (8, K, TM) bf16 im2col patches, one slab per 2x2x2 pool offset.
    # w_ref: (Cp, K) bf16 conv weights (channels zero-padded to multiple of 8).
    # b_ref: (Cp, 1) f32 bias.  o_ref: (Cp, TM) f32, lane-dense.
    w = w_ref[...]
    # Max over the 8 pool offsets; bias and ReLU commute with max -> hoisted.
    acc = jnp.dot(w, p_ref[0], preferred_element_type=jnp.float32)
    for e in range(1, 8):
        acc = jnp.maximum(
            acc, jnp.dot(w, p_ref[e], preferred_element_type=jnp.float32))
    o_ref[...] = jnp.maximum(acc + b_ref[...], 0.0)


def conv_relu_pool(patches, w, b, *, tm):
    _, kdim, m_pad = patches.shape
    cp = w.shape[0]
    return pl.pallas_call(
        conv_relu_pool_kernel,
        out_shape=jax.ShapeDtypeStruct((cp, m_pad), jnp.float32),
        grid_spec=pltpu.PrefetchScalarGridSpec(
            num_scalar_prefetch=0,
            grid=(m_pad // tm,),
            in_specs=[
                pl.BlockSpec((8, kdim, tm), lambda i: (0, 0, i)),
                pl.BlockSpec((cp, kdim), lambda i: (0, 0)),
                pl.BlockSpec((cp, 1), lambda i: (0, 0)),
            ],
            out_specs=pl.BlockSpec((cp, tm), lambda i: (0, i)),
        ),
        compiler_params=pltpu.CompilerParams(
            dimension_semantics=("parallel",),
            vmem_limit_bytes=_VMEM_LIMIT),
    )(patches, w, b)


def mlp_kernel(x_ref, w1_ref, b1_ref, w2_ref, o_ref, h_acc):
    # Grid = (hidden tiles [parallel], K tiles [arbitrary]).
    k = pl.program_id(1)

    @pl.when(k == 0)
    def _():
        h_acc[...] = jnp.zeros_like(h_acc)

    h_acc[...] += jnp.dot(x_ref[...], w1_ref[...],
                          preferred_element_type=jnp.float32)

    @pl.when(k == pl.num_programs(1) - 1)
    def _():
        # TODO(synk): nn.Dropout(p=0.5) treated as identity (inference mode).
        h = jnp.maximum(h_acc[...] + b1_ref[...], 0.0).astype(jnp.bfloat16)
        o_ref[0] = jnp.dot(h, w2_ref[...], preferred_element_type=jnp.float32)


def mlp_head(x, w1t, b1, w2t, *, tk=1024, nt=2):
    bsz, kdim = x.shape
    hdim = w1t.shape[1]
    assert kdim % tk == 0 and hdim % (nt * 128) == 0
    hn = hdim // nt
    partial = pl.pallas_call(
        mlp_kernel,
        out_shape=jax.ShapeDtypeStruct((nt, bsz, 1), jnp.float32),
        grid_spec=pltpu.PrefetchScalarGridSpec(
            num_scalar_prefetch=0,
            grid=(nt, kdim // tk),
            in_specs=[
                pl.BlockSpec((bsz, tk), lambda n, k: (0, k)),
                pl.BlockSpec((tk, hn), lambda n, k: (k, n)),
                pl.BlockSpec((1, hn), lambda n, k: (0, n)),
                pl.BlockSpec((hn, 1), lambda n, k: (n, 0)),
            ],
            out_specs=pl.BlockSpec((1, bsz, 1), lambda n, k: (n, 0, 0)),
            scratch_shapes=[pltpu.VMEM((bsz, hn), jnp.float32)],
        ),
        compiler_params=pltpu.CompilerParams(
            dimension_semantics=("parallel", "arbitrary"),
            vmem_limit_bytes=_VMEM_LIMIT),
    )(x, w1t, b1, w2t)
    return partial.sum(axis=0)        # (B, 1); linear2 bias added by caller


# ------------------------------ JAX glue code -------------------------------

def _pooled_patches(x, ksize):
    """x: (B, D1, D2, D3) -> ((8, K, B*P1*P2*P3) patches, (P1, P2, P3)).

    Axis 0 is the 2x2x2 pool offset (e-major), axis 1 the flattened conv tap
    (k-major, matching PyTorch weight flatten), axis 2 the flattened
    (batch, pooled z, pooled y, pooled x) position.  Built purely from strided
    static slices so the slab is written once (no big transpose through HBM).
    """
    bsz, d1, d2, d3 = x.shape
    k1, k2, k3 = ksize
    p1, p2, p3 = (d1 - k1 + 1) // 2, (d2 - k2 + 1) // 2, (d3 - k3 + 1) // 2
    slabs = []
    for e1 in range(2):
        for e2 in range(2):
            for e3 in range(2):
                for t1 in range(k1):
                    for t2 in range(k2):
                        for t3 in range(k3):
                            s = (e1 + t1, e2 + t2, e3 + t3)
                            lim = (s[0] + 2 * (p1 - 1) + 1,
                                   s[1] + 2 * (p2 - 1) + 1,
                                   s[2] + 2 * (p3 - 1) + 1)
                            slabs.append(lax.slice(
                                x, (0,) + s, (bsz,) + lim, (1, 2, 2, 2)))
    pat = jnp.stack(slabs, axis=0)            # (8*K, B, P1, P2, P3)
    kflat = k1 * k2 * k3
    return pat.reshape(8, kflat, bsz * p1 * p2 * p3), (p1, p2, p3)


def conv3d_relu_pool_branch(x, w, b, ksize, *, tm_target=1408):
    """Conv3d(1->C, ksize, valid) -> ReLU -> MaxPool3d(2) -> NCDHW flatten."""
    bsz = x.shape[0]
    c = w.shape[0]
    kflat = ksize[0] * ksize[1] * ksize[2]
    cp = _round_up(c, 8)                      # pad channels to sublane multiple

    patches, (p1, p2, p3) = _pooled_patches(x.astype(jnp.bfloat16), ksize)
    m = patches.shape[2]
    n_tiles = max(1, -(-m // tm_target))      # keeps VMEM bounded as B grows
    tm = _round_up(-(-m // n_tiles), 128)
    m_pad = n_tiles * tm
    patches = jnp.pad(patches, ((0, 0), (0, 0), (0, m_pad - m)))

    wmat = jnp.pad(w.reshape(c, kflat),
                   ((0, cp - c), (0, 0))).astype(jnp.bfloat16)
    bcol = jnp.pad(b, (0, cp - c)).reshape(cp, 1).astype(jnp.float32)

    out = conv_relu_pool(patches, wmat, bcol, tm=tm)       # (cp, m_pad)
    pooled = out[:c, :m].reshape(c, bsz, p1 * p2 * p3)
    # PyTorch NCDHW flatten order: per batch, channel-major.
    return pooled.transpose(1, 0, 2).reshape(bsz, c * p1 * p2 * p3)


def prepare_params(params):
    """One-time packing: transpose, zero-pad and bf16-cast the MLP weights."""
    hdim, kdim = params["lin1_w"].shape       # (1000, 5073)
    kpad = _round_up(kdim, 1024)              # 5120
    hpad = _round_up(hdim, 256)               # 1024 (divisible by nt * 128)
    w1t = jnp.pad(params["lin1_w"].T, ((0, kpad - kdim), (0, hpad - hdim)))
    w2t = jnp.pad(params["lin2_w"].T, ((0, hpad - hdim), (0, 0)))
    return {
        "conv1_w": params["conv1_w"],
        "conv1_b": params["conv1_b"],
        "conv2_w": params["conv2_w"],
        "conv2_b": params["conv2_b"],
        "lin1_wt": w1t.astype(jnp.bfloat16),  # bf16 streaming weight (10 MB)
        "lin1_b": jnp.pad(params["lin1_b"], (0, hpad - hdim)).reshape(1, hpad),
        "lin2_wt": w2t.astype(jnp.bfloat16),
        "lin2_b": params["lin2_b"].reshape(1, 1),
    }


@jax.jit
def regressor_net_forward(packed, ecals, hcals):
    bsz = ecals.shape[0]
    x1 = ecals.reshape(bsz, 25, 25, 25)
    x2 = hcals.reshape(bsz, 5, 5, 60)
    m1 = conv3d_relu_pool_branch(x1, packed["conv1_w"], packed["conv1_b"],
                                 (4, 4, 4))
    m2 = conv3d_relu_pool_branch(x2, packed["conv2_w"], packed["conv2_b"],
                                 (2, 2, 6))
    feats = jnp.concatenate([m1, m2], axis=1)               # (B, 5073)
    kpad = packed["lin1_wt"].shape[0]
    feats = jnp.pad(feats, ((0, 0), (0, kpad - feats.shape[1])))
    feats = feats.astype(jnp.bfloat16)
    out = mlp_head(feats, packed["lin1_wt"], packed["lin1_b"],
                   packed["lin2_wt"], tk=1024, nt=2)
    return out + packed["lin2_b"]


def init_params(key):
    ks = jax.random.split(key, 8)

    def u(k, shape, fan_in):
        bound = 1.0 / float(fan_in) ** 0.5
        return jax.random.uniform(k, shape, jnp.float32, -bound, bound)

    return {
        "conv1_w": u(ks[0], (3, 1, 4, 4, 4), 64),
        "conv1_b": u(ks[1], (3,), 64),
        "conv2_w": u(ks[2], (10, 1, 2, 2, 6), 24),
        "conv2_b": u(ks[3], (10,), 24),
        "lin1_w": u(ks[4], (1000, 5073), 5073),
        "lin1_b": u(ks[5], (1000,), 5073),
        "lin2_w": u(ks[6], (1, 1000), 1000),
        "lin2_b": u(ks[7], (1,), 1000),
    }


def reference_forward(params, ecals, hcals):
    # Pure-JAX f32 reference mirroring the PyTorch forward (eval-mode dropout).
    bsz = ecals.shape[0]

    def branch(x, w, b):
        y = lax.conv_general_dilated(
            x[:, None], w, window_strides=(1, 1, 1), padding="VALID",
            dimension_numbers=("NCDHW", "OIDHW", "NCDHW"))
        y = jnp.maximum(y + b.reshape(1, -1, 1, 1, 1), 0.0)
        c, o1, o2, o3 = y.shape[1:]
        p1, p2, p3 = o1 // 2, o2 // 2, o3 // 2
        y = y[:, :, :2 * p1, :2 * p2, :2 * p3]
        y = y.reshape(bsz, c, p1, 2, p2, 2, p3, 2).max(axis=(3, 5, 7))
        return y.reshape(bsz, -1)

    m1 = branch(ecals.reshape(bsz, 25, 25, 25),
                params["conv1_w"], params["conv1_b"])
    m2 = branch(hcals.reshape(bsz, 5, 5, 60),
                params["conv2_w"], params["conv2_b"])
    feats = jnp.concatenate([m1, m2], axis=1)
    h = jnp.maximum(feats @ params["lin1_w"].T + params["lin1_b"], 0.0)
    return h @ params["lin2_w"].T + params["lin2_b"]


if __name__ == "__main__":
    key = jax.random.PRNGKey(0)
    kp, ke, kh = jax.random.split(key, 3)
    params = init_params(kp)
    packed = prepare_params(params)

    B = 2
    ecals = jax.random.normal(ke, (B, 25, 25, 25), jnp.float32)
    hcals = jax.random.normal(kh, (B, 5, 5, 60), jnp.float32)

    out = jax.block_until_ready(regressor_net_forward(packed, ecals, hcals))
    assert out.shape == (B, 1), out.shape
    assert bool(jnp.all(jnp.isfinite(out)))

    ref = jax.block_until_ready(reference_forward(params, ecals, hcals))
    assert jnp.allclose(out, ref, rtol=2e-2, atol=2e-2), (out, ref)

    print("KERNEL_OK")
</pallas_src>

<mosaic_0001>
module attributes {stable_mosaic.version = 11 : i64} {
  func.func @conv_relu_pool_kernel(%arg0: i32, %arg1: memref<8x64x1408xbf16, #tpu.memory_space<vmem>>, %arg2: memref<8x64xbf16, #tpu.memory_space<vmem>>, %arg3: memref<8x1xf32, #tpu.memory_space<vmem>>, %arg4: memref<8x1408xf32, #tpu.memory_space<vmem>>) attributes {dimension_semantics = [#tpu.dimension_semantics<parallel>], iteration_bounds = array<i64: 2>, scalar_prefetch = 0 : i64, scratch_operands = 0 : i64, tpu.core_type = #tpu.core_type<tc>, window_params = [{transform_indices = @transform_0, window_bounds = array<i64: 8, 64, 1408>}, {pipeline_mode = #tpu.pipeline_mode<synchronous>, transform_indices = @transform_1, window_bounds = array<i64: 8, 64>}, {pipeline_mode = #tpu.pipeline_mode<synchronous>, transform_indices = @transform_2, window_bounds = array<i64: 8, 1>}, {transform_indices = @transform_3, window_bounds = array<i64: 8, 1408>}]} {
    %c0 = arith.constant 0 : index
    %c0_0 = arith.constant 0 : index
    %0 = vector.load %arg2[%c0, %c0_0] : memref<8x64xbf16, #tpu.memory_space<vmem>>, vector<8x64xbf16>
    %c0_1 = arith.constant 0 : index
    %c0_2 = arith.constant 0 : index
    %c0_3 = arith.constant 0 : index
    %1 = vector.load %arg1[%c0_1, %c0_2, %c0_3] : memref<8x64x1408xbf16, #tpu.memory_space<vmem>>, vector<1x64x1408xbf16>
    %2 = vector.shape_cast %1 : vector<1x64x1408xbf16> to vector<64x1408xbf16>
    %cst = arith.constant dense<0.000000e+00> : vector<8x1408xf32>
    %3 = tpu.matmul %0, %2, %cst {dimension_numbers = #tpu.dot_dimension_numbers<[1], [0], [0], [1], [0, 0, 1, 1], [], []>} : vector<8x64xbf16>, vector<64x1408xbf16>, vector<8x1408xf32> -> vector<8x1408xf32>
    %c1 = arith.constant 1 : index
    %c0_4 = arith.constant 0 : index
    %c0_5 = arith.constant 0 : index
    %4 = vector.load %arg1[%c1, %c0_4, %c0_5] : memref<8x64x1408xbf16, #tpu.memory_space<vmem>>, vector<1x64x1408xbf16>
    %5 = vector.shape_cast %4 : vector<1x64x1408xbf16> to vector<64x1408xbf16>
    %cst_6 = arith.constant dense<0.000000e+00> : vector<8x1408xf32>
    %6 = tpu.matmul %0, %5, %cst_6 {dimension_numbers = #tpu.dot_dimension_numbers<[1], [0], [0], [1], [0, 0, 1, 1], [], []>} : vector<8x64xbf16>, vector<64x1408xbf16>, vector<8x1408xf32> -> vector<8x1408xf32>
    %7 = arith.maximumf %3, %6 : vector<8x1408xf32>
    %c2 = arith.constant 2 : index
    %c0_7 = arith.constant 0 : index
    %c0_8 = arith.constant 0 : index
    %8 = vector.load %arg1[%c2, %c0_7, %c0_8] : memref<8x64x1408xbf16, #tpu.memory_space<vmem>>, vector<1x64x1408xbf16>
    %9 = vector.shape_cast %8 : vector<1x64x1408xbf16> to vector<64x1408xbf16>
    %cst_9 = arith.constant dense<0.000000e+00> : vector<8x1408xf32>
    %10 = tpu.matmul %0, %9, %cst_9 {dimension_numbers = #tpu.dot_dimension_numbers<[1], [0], [0], [1], [0, 0, 1, 1], [], []>} : vector<8x64xbf16>, vector<64x1408xbf16>, vector<8x1408xf32> -> vector<8x1408xf32>
    %11 = arith.maximumf %7, %10 : vector<8x1408xf32>
    %c3 = arith.constant 3 : index
    %c0_10 = arith.constant 0 : index
    %c0_11 = arith.constant 0 : index
    %12 = vector.load %arg1[%c3, %c0_10, %c0_11] : memref<8x64x1408xbf16, #tpu.memory_space<vmem>>, vector<1x64x1408xbf16>
    %13 = vector.shape_cast %12 : vector<1x64x1408xbf16> to vector<64x1408xbf16>
    %cst_12 = arith.constant dense<0.000000e+00> : vector<8x1408xf32>
    %14 = tpu.matmul %0, %13, %cst_12 {dimension_numbers = #tpu.dot_dimension_numbers<[1], [0], [0], [1], [0, 0, 1, 1], [], []>} : vector<8x64xbf16>, vector<64x1408xbf16>, vector<8x1408xf32> -> vector<8x1408xf32>
    %15 = arith.maximumf %11, %14 : vector<8x1408xf32>
    %c4 = arith.constant 4 : index
    %c0_13 = arith.constant 0 : index
    %c0_14 = arith.constant 0 : index
    %16 = vector.load %arg1[%c4, %c0_13, %c0_14] : memref<8x64x1408xbf16, #tpu.memory_space<vmem>>, vector<1x64x1408xbf16>
    %17 = vector.shape_cast %16 : vector<1x64x1408xbf16> to vector<64x1408xbf16>
    %cst_15 = arith.constant dense<0.000000e+00> : vector<8x1408xf32>
    %18 = tpu.matmul %0, %17, %cst_15 {dimension_numbers = #tpu.dot_dimension_numbers<[1], [0], [0], [1], [0, 0, 1, 1], [], []>} : vector<8x64xbf16>, vector<64x1408xbf16>, vector<8x1408xf32> -> vector<8x1408xf32>
    %19 = arith.maximumf %15, %18 : vector<8x1408xf32>
    %c5 = arith.constant 5 : index
    %c0_16 = arith.constant 0 : index
    %c0_17 = arith.constant 0 : index
    %20 = vector.load %arg1[%c5, %c0_16, %c0_17] : memref<8x64x1408xbf16, #tpu.memory_space<vmem>>, vector<1x64x1408xbf16>
    %21 = vector.shape_cast %20 : vector<1x64x1408xbf16> to vector<64x1408xbf16>
    %cst_18 = arith.constant dense<0.000000e+00> : vector<8x1408xf32>
    %22 = tpu.matmul %0, %21, %cst_18 {dimension_numbers = #tpu.dot_dimension_numbers<[1], [0], [0], [1], [0, 0, 1, 1], [], []>} : vector<8x64xbf16>, vector<64x1408xbf16>, vector<8x1408xf32> -> vector<8x1408xf32>
    %23 = arith.maximumf %19, %22 : vector<8x1408xf32>
    %c6 = arith.constant 6 : index
    %c0_19 = arith.constant 0 : index
    %c0_20 = arith.constant 0 : index
    %24 = vector.load %arg1[%c6, %c0_19, %c0_20] : memref<8x64x1408xbf16, #tpu.memory_space<vmem>>, vector<1x64x1408xbf16>
    %25 = vector.shape_cast %24 : vector<1x64x1408xbf16> to vector<64x1408xbf16>
    %cst_21 = arith.constant dense<0.000000e+00> : vector<8x1408xf32>
    %26 = tpu.matmul %0, %25, %cst_21 {dimension_numbers = #tpu.dot_dimension_numbers<[1], [0], [0], [1], [0, 0, 1, 1], [], []>} : vector<8x64xbf16>, vector<64x1408xbf16>, vector<8x1408xf32> -> vector<8x1408xf32>
    %27 = arith.maximumf %23, %26 : vector<8x1408xf32>
    %c7 = arith.constant 7 : index
    %c0_22 = arith.constant 0 : index
    %c0_23 = arith.constant 0 : index
    %28 = vector.load %arg1[%c7, %c0_22, %c0_23] : memref<8x64x1408xbf16, #tpu.memory_space<vmem>>, vector<1x64x1408xbf16>
    %29 = vector.shape_cast %28 : vector<1x64x1408xbf16> to vector<64x1408xbf16>
    %cst_24 = arith.constant dense<0.000000e+00> : vector<8x1408xf32>
    %30 = tpu.matmul %0, %29, %cst_24 {dimension_numbers = #tpu.dot_dimension_numbers<[1], [0], [0], [1], [0, 0, 1, 1], [], []>} : vector<8x64xbf16>, vector<64x1408xbf16>, vector<8x1408xf32> -> vector<8x1408xf32>
    %31 = arith.maximumf %27, %30 : vector<8x1408xf32>
    %c0_25 = arith.constant 0 : index
    %c0_26 = arith.constant 0 : index
    %32 = vector.load %arg3[%c0_25, %c0_26] : memref<8x1xf32, #tpu.memory_space<vmem>>, vector<8x1xf32>
    %33 = vector.broadcast %32 : vector<8x1xf32> to vector<8x1408xf32>
    %34 = arith.addf %31, %33 : vector<8x1408xf32>
    %cst_27 = arith.constant 0.000000e+00 : f32
    %35 = vector.broadcast %cst_27 : f32 to vector<8x1408xf32>
    %36 = arith.maximumf %34, %35 : vector<8x1408xf32>
    %c0_28 = arith.constant 0 : index
    %c0_29 = arith.constant 0 : index
    %37 = vector.load %arg4[%c0_28, %c0_29] : memref<8x1408xf32, #tpu.memory_space<vmem>>, vector<8x1408xf32>
    tpu.vector_store %arg4[%c0_28, %c0_29], %36 {strides = array<i32>} : memref<8x1408xf32, #tpu.memory_space<vmem>>, vector<8x1408xf32>,
    return
  }
  func.func @transform_0(%arg0: i32) -> (i32, i32, i32) {
    %c0_i32 = arith.constant 0 : i32
    %c0_i32_0 = arith.constant 0 : i32
    %c0_i32_1 = arith.constant 0 : i32
    return %c0_i32, %c0_i32_0, %arg0 : i32, i32, i32
  }
  func.func @transform_1(%arg0: i32) -> (i32, i32) {
    %c0_i32 = arith.constant 0 : i32
    %c0_i32_0 = arith.constant 0 : i32
    %c0_i32_1 = arith.constant 0 : i32
    return %c0_i32, %c0_i32_0 : i32, i32
  }
  func.func @transform_2(%arg0: i32) -> (i32, i32) {
    %c0_i32 = arith.constant 0 : i32
    %c0_i32_0 = arith.constant 0 : i32
    %c0_i32_1 = arith.constant 0 : i32
    return %c0_i32, %c0_i32_0 : i32, i32
  }
  func.func @transform_3(%arg0: i32) -> (i32, i32) {
    %c0_i32 = arith.constant 0 : i32
    %c0_i32_0 = arith.constant 0 : i32
    return %c0_i32, %arg0 : i32, i32
  }
}

module attributes {stable_mosaic.version = 11 : i64} {
  func.func @mlp_kernel(%arg0: i32, %arg1: i32, %arg2: memref<2x1024xbf16, #tpu.memory_space<vmem>>, %arg3: memref<1024x512xbf16, #tpu.memory_space<vmem>>, %arg4: memref<1x512xf32, #tpu.memory_space<vmem>>, %arg5: memref<512x1xbf16, #tpu.memory_space<vmem>>, %arg6: memref<1x2x1xf32, #tpu.memory_space<vmem>>, %arg7: memref<2x512xf32, #tpu.memory_space<vmem>>) attributes {dimension_semantics = [#tpu.dimension_semantics<parallel>, #tpu.dimension_semantics<arbitrary>], iteration_bounds = array<i64: 2, 5>, scalar_prefetch = 0 : i64, scratch_operands = 1 : i64, tpu.core_type = #tpu.core_type<tc>, window_params = [{transform_indices = @transform_0, window_bounds = array<i64: 2, 1024>}, {transform_indices = @transform_1, window_bounds = array<i64: 1024, 512>}, {transform_indices = @transform_2, window_bounds = array<i64: 1, 512>}, {transform_indices = @transform_3, window_bounds = array<i64: 512, 1>}, {transform_indices = @transform_4, window_bounds = array<i64: 1, 2, 1>}]} {
    %c0_i32 = arith.constant 0 : i32
    %0 = arith.cmpi eq, %arg1, %c0_i32 : i32
    %1 = arith.extui %0 : i1 to i32
    %c0_i32_0 = arith.constant 0 : i32
    %2 = arith.cmpi ne, %1, %c0_i32_0 : i32
    scf.if %2 {
      %cst_9 = arith.constant 0.000000e+00 : f32
      %12 = vector.broadcast %cst_9 : f32 to vector<2x512xf32>
      %c0_10 = arith.constant 0 : index
      %c0_11 = arith.constant 0 : index
      %13 = vector.load %arg7[%c0_10, %c0_11] : memref<2x512xf32, #tpu.memory_space<vmem>>, vector<2x512xf32>
      tpu.vector_store %arg7[%c0_10, %c0_11], %12 {strides = array<i32>} : memref<2x512xf32, #tpu.memory_space<vmem>>, vector<2x512xf32>,
    } else {
    }
    %c0 = arith.constant 0 : index
    %c0_1 = arith.constant 0 : index
    %3 = vector.load %arg7[%c0, %c0_1] : memref<2x512xf32, #tpu.memory_space<vmem>>, vector<2x512xf32>
    %c0_2 = arith.constant 0 : index
    %c0_3 = arith.constant 0 : index
    %4 = vector.load %arg2[%c0_2, %c0_3] : memref<2x1024xbf16, #tpu.memory_space<vmem>>, vector<2x1024xbf16>
    %c0_4 = arith.constant 0 : index
    %c0_5 = arith.constant 0 : index
    %5 = vector.load %arg3[%c0_4, %c0_5] : memref<1024x512xbf16, #tpu.memory_space<vmem>>, vector<1024x512xbf16>
    %cst = arith.constant dense<0.000000e+00> : vector<2x512xf32>
    %6 = tpu.matmul %4, %5, %cst {dimension_numbers = #tpu.dot_dimension_numbers<[1], [0], [0], [1], [0, 0, 1, 1], [], []>} : vector<2x1024xbf16>, vector<1024x512xbf16>, vector<2x512xf32> -> vector<2x512xf32>
    %7 = arith.addf %3, %6 : vector<2x512xf32>
    %c0_6 = arith.constant 0 : index
    %c0_7 = arith.constant 0 : index
    %8 = vector.load %arg7[%c0_6, %c0_7] : memref<2x512xf32, #tpu.memory_space<vmem>>, vector<2x512xf32>
    tpu.vector_store %arg7[%c0_6, %c0_7], %7 {strides = array<i32>} : memref<2x512xf32, #tpu.memory_space<vmem>>, vector<2x512xf32>,
    %c4_i32 = arith.constant 4 : i32
    %9 = arith.cmpi eq, %arg1, %c4_i32 : i32
    %10 = arith.extui %9 : i1 to i32
    %c0_i32_8 = arith.constant 0 : i32
    %11 = arith.cmpi ne, %10, %c0_i32_8 : i32
    scf.if %11 {
      %c0_9 = arith.constant 0 : index
      %c0_10 = arith.constant 0 : index
      %12 = vector.load %arg7[%c0_9, %c0_10] : memref<2x512xf32, #tpu.memory_space<vmem>>, vector<2x512xf32>
      %c0_11 = arith.constant 0 : index
      %c0_12 = arith.constant 0 : index
      %13 = vector.load %arg4[%c0_11, %c0_12] : memref<1x512xf32, #tpu.memory_space<vmem>>, vector<1x512xf32>
      %14 = vector.broadcast %13 : vector<1x512xf32> to vector<2x512xf32>
      %15 = arith.addf %12, %14 : vector<2x512xf32>
      %cst_13 = arith.constant 0.000000e+00 : f32
      %16 = vector.broadcast %cst_13 : f32 to vector<2x512xf32>
      %17 = arith.maximumf %15, %16 : vector<2x512xf32>
      %18 = arith.truncf %17 : vector<2x512xf32> to vector<2x512xbf16>
      %c0_14 = arith.constant 0 : index
      %c0_15 = arith.constant 0 : index
      %19 = vector.load %arg5[%c0_14, %c0_15] : memref<512x1xbf16, #tpu.memory_space<vmem>>, vector<512x1xbf16>
      %cst_16 = arith.constant dense<0.000000e+00> : vector<2x1xf32>
      %20 = tpu.matmul %18, %19, %cst_16 {dimension_numbers = #tpu.dot_dimension_numbers<[1], [0], [0], [1], [0, 0, 1, 1], [], []>} : vector<2x512xbf16>, vector<512x1xbf16>, vector<2x1xf32> -> vector<2x1xf32>
      %c0_17 = arith.constant 0 : index
      %c0_18 = arith.constant 0 : index
      %c0_19 = arith.constant 0 : index
      %21 = vector.load %arg6[%c0_17, %c0_18, %c0_19] : memref<1x2x1xf32, #tpu.memory_space<vmem>>, vector<1x2x1xf32>
      %22 = vector.shape_cast %21 : vector<1x2x1xf32> to vector<2x1xf32>
      %23 = vector.shape_cast %20 : vector<2x1xf32> to vector<1x2x1xf32>
      tpu.vector_store %arg6[%c0_17, %c0_18, %c0_19], %23 {strides = array<i32>} : memref<1x2x1xf32, #tpu.memory_space<vmem>>, vector<1x2x1xf32>,
    } else {
    }
    return
  }
  func.func @transform_0(%arg0: i32, %arg1: i32) -> (i32, i32) {
    %c0_i32 = arith.constant 0 : i32
    %c0_i32_0 = arith.constant 0 : i32
    return %c0_i32, %arg1 : i32, i32
  }
  func.func @transform_1(%arg0: i32, %arg1: i32) -> (i32, i32) {
    %c0_i32 = arith.constant 0 : i32
    return %arg1, %arg0 : i32, i32
  }
  func.func @transform_2(%arg0: i32, %arg1: i32) -> (i32, i32) {
    %c0_i32 = arith.constant 0 : i32
    %c0_i32_0 = arith.constant 0 : i32
    return %c0_i32, %arg0 : i32, i32
  }
  func.func @transform_3(%arg0: i32, %arg1: i32) -> (i32, i32) {
    %c0_i32 = arith.constant 0 : i32
    %c0_i32_0 = arith.constant 0 : i32
    return %arg0, %c0_i32 : i32, i32
  }
  func.func @transform_4(%arg0: i32, %arg1: i32) -> (i32, i32, i32) {
    %c0_i32 = arith.constant 0 : i32
    %c0_i32_0 = arith.constant 0 : i32
    %c0_i32_1 = arith.constant 0 : i32
    return %arg0, %c0_i32, %c0_i32_0 : i32, i32, i32
  }
}

module attributes {stable_mosaic.version = 11 : i64} {
  func.func @conv_relu_pool_kernel(%arg0: i32, %arg1: memref<8x24x256xbf16, #tpu.memory_space<vmem>>, %arg2: memref<16x24xbf16, #tpu.memory_space<vmem>>, %arg3: memref<16x1xf32, #tpu.memory_space<vmem>>, %arg4: memref<16x256xf32, #tpu.memory_space<vmem>>) attributes {dimension_semantics = [#tpu.dimension_semantics<parallel>], iteration_bounds = array<i64: 1>, scalar_prefetch = 0 : i64, scratch_operands = 0 : i64, tpu.core_type = #tpu.core_type<tc>, window_params = [{transform_indices = @transform_0, window_bounds = array<i64: 8, 24, 256>}, {pipeline_mode = #tpu.pipeline_mode<synchronous>, transform_indices = @transform_1, window_bounds = array<i64: 16, 24>}, {pipeline_mode = #tpu.pipeline_mode<synchronous>, transform_indices = @transform_2, window_bounds = array<i64: 16, 1>}, {transform_indices = @transform_3, window_bounds = array<i64: 16, 256>}]} {
    %c0 = arith.constant 0 : index
    %c0_0 = arith.constant 0 : index
    %0 = vector.load %arg2[%c0, %c0_0] : memref<16x24xbf16, #tpu.memory_space<vmem>>, vector<16x24xbf16>
    %c0_1 = arith.constant 0 : index
    %c0_2 = arith.constant 0 : index
    %c0_3 = arith.constant 0 : index
    %1 = vector.load %arg1[%c0_1, %c0_2, %c0_3] : memref<8x24x256xbf16, #tpu.memory_space<vmem>>, vector<1x24x256xbf16>
    %2 = vector.shape_cast %1 : vector<1x24x256xbf16> to vector<24x256xbf16>
    %cst = arith.constant dense<0.000000e+00> : vector<16x256xf32>
    %3 = tpu.matmul %0, %2, %cst {dimension_numbers = #tpu.dot_dimension_numbers<[1], [0], [0], [1], [0, 0, 1, 1], [], []>} : vector<16x24xbf16>, vector<24x256xbf16>, vector<16x256xf32> -> vector<16x256xf32>
    %c1 = arith.constant 1 : index
    %c0_4 = arith.constant 0 : index
    %c0_5 = arith.constant 0 : index
    %4 = vector.load %arg1[%c1, %c0_4, %c0_5] : memref<8x24x256xbf16, #tpu.memory_space<vmem>>, vector<1x24x256xbf16>
    %5 = vector.shape_cast %4 : vector<1x24x256xbf16> to vector<24x256xbf16>
    %cst_6 = arith.constant dense<0.000000e+00> : vector<16x256xf32>
    %6 = tpu.matmul %0, %5, %cst_6 {dimension_numbers = #tpu.dot_dimension_numbers<[1], [0], [0], [1], [0, 0, 1, 1], [], []>} : vector<16x24xbf16>, vector<24x256xbf16>, vector<16x256xf32> -> vector<16x256xf32>
    %7 = arith.maximumf %3, %6 : vector<16x256xf32>
    %c2 = arith.constant 2 : index
    %c0_7 = arith.constant 0 : index
    %c0_8 = arith.constant 0 : index
    %8 = vector.load %arg1[%c2, %c0_7, %c0_8] : memref<8x24x256xbf16, #tpu.memory_space<vmem>>, vector<1x24x256xbf16>
    %9 = vector.shape_cast %8 : vector<1x24x256xbf16> to vector<24x256xbf16>
    %cst_9 = arith.constant dense<0.000000e+00> : vector<16x256xf32>
    %10 = tpu.matmul %0, %9, %cst_9 {dimension_numbers = #tpu.dot_dimension_numbers<[1], [0], [0], [1], [0, 0, 1, 1], [], []>} : vector<16x24xbf16>, vector<24x256xbf16>, vector<16x256xf32> -> vector<16x256xf32>
    %11 = arith.maximumf %7, %10 : vector<16x256xf32>
    %c3 = arith.constant 3 : index
    %c0_10 = arith.constant 0 : index
    %c0_11 = arith.constant 0 : index
    %12 = vector.load %arg1[%c3, %c0_10, %c0_11] : memref<8x24x256xbf16, #tpu.memory_space<vmem>>, vector<1x24x256xbf16>
    %13 = vector.shape_cast %12 : vector<1x24x256xbf16> to vector<24x256xbf16>
    %cst_12 = arith.constant dense<0.000000e+00> : vector<16x256xf32>
    %14 = tpu.matmul %0, %13, %cst_12 {dimension_numbers = #tpu.dot_dimension_numbers<[1], [0], [0], [1], [0, 0, 1, 1], [], []>} : vector<16x24xbf16>, vector<24x256xbf16>, vector<16x256xf32> -> vector<16x256xf32>
    %15 = arith.maximumf %11, %14 : vector<16x256xf32>
    %c4 = arith.constant 4 : index
    %c0_13 = arith.constant 0 : index
    %c0_14 = arith.constant 0 : index
    %16 = vector.load %arg1[%c4, %c0_13, %c0_14] : memref<8x24x256xbf16, #tpu.memory_space<vmem>>, vector<1x24x256xbf16>
    %17 = vector.shape_cast %16 : vector<1x24x256xbf16> to vector<24x256xbf16>
    %cst_15 = arith.constant dense<0.000000e+00> : vector<16x256xf32>
    %18 = tpu.matmul %0, %17, %cst_15 {dimension_numbers = #tpu.dot_dimension_numbers<[1], [0], [0], [1], [0, 0, 1, 1], [], []>} : vector<16x24xbf16>, vector<24x256xbf16>, vector<16x256xf32> -> vector<16x256xf32>
    %19 = arith.maximumf %15, %18 : vector<16x256xf32>
    %c5 = arith.constant 5 : index
    %c0_16 = arith.constant 0 : index
    %c0_17 = arith.constant 0 : index
    %20 = vector.load %arg1[%c5, %c0_16, %c0_17] : memref<8x24x256xbf16, #tpu.memory_space<vmem>>, vector<1x24x256xbf16>
    %21 = vector.shape_cast %20 : vector<1x24x256xbf16> to vector<24x256xbf16>
    %cst_18 = arith.constant dense<0.000000e+00> : vector<16x256xf32>
    %22 = tpu.matmul %0, %21, %cst_18 {dimension_numbers = #tpu.dot_dimension_numbers<[1], [0], [0], [1], [0, 0, 1, 1], [], []>} : vector<16x24xbf16>, vector<24x256xbf16>, vector<16x256xf32> -> vector<16x256xf32>
    %23 = arith.maximumf %19, %22 : vector<16x256xf32>
    %c6 = arith.constant 6 : index
    %c0_19 = arith.constant 0 : index
    %c0_20 = arith.constant 0 : index
    %24 = vector.load %arg1[%c6, %c0_19, %c0_20] : memref<8x24x256xbf16, #tpu.memory_space<vmem>>, vector<1x24x256xbf16>
    %25 = vector.shape_cast %24 : vector<1x24x256xbf16> to vector<24x256xbf16>
    %cst_21 = arith.constant dense<0.000000e+00> : vector<16x256xf32>
    %26 = tpu.matmul %0, %25, %cst_21 {dimension_numbers = #tpu.dot_dimension_numbers<[1], [0], [0], [1], [0, 0, 1, 1], [], []>} : vector<16x24xbf16>, vector<24x256xbf16>, vector<16x256xf32> -> vector<16x256xf32>
    %27 = arith.maximumf %23, %26 : vector<16x256xf32>
    %c7 = arith.constant 7 : index
    %c0_22 = arith.constant 0 : index
    %c0_23 = arith.constant 0 : index
    %28 = vector.load %arg1[%c7, %c0_22, %c0_23] : memref<8x24x256xbf16, #tpu.memory_space<vmem>>, vector<1x24x256xbf16>
    %29 = vector.shape_cast %28 : vector<1x24x256xbf16> to vector<24x256xbf16>
    %cst_24 = arith.constant dense<0.000000e+00> : vector<16x256xf32>
    %30 = tpu.matmul %0, %29, %cst_24 {dimension_numbers = #tpu.dot_dimension_numbers<[1], [0], [0], [1], [0, 0, 1, 1], [], []>} : vector<16x24xbf16>, vector<24x256xbf16>, vector<16x256xf32> -> vector<16x256xf32>
    %31 = arith.maximumf %27, %30 : vector<16x256xf32>
    %c0_25 = arith.constant 0 : index
    %c0_26 = arith.constant 0 : index
    %32 = vector.load %arg3[%c0_25, %c0_26] : memref<16x1xf32, #tpu.memory_space<vmem>>, vector<16x1xf32>
    %33 = vector.broadcast %32 : vector<16x1xf32> to vector<16x256xf32>
    %34 = arith.addf %31, %33 : vector<16x256xf32>
    %cst_27 = arith.constant 0.000000e+00 : f32
    %35 = vector.broadcast %cst_27 : f32 to vector<16x256xf32>
    %36 = arith.maximumf %34, %35 : vector<16x256xf32>
    %c0_28 = arith.constant 0 : index
    %c0_29 = arith.constant 0 : index
    %37 = vector.load %arg4[%c0_28, %c0_29] : memref<16x256xf32, #tpu.memory_space<vmem>>, vector<16x256xf32>
    tpu.vector_store %arg4[%c0_28, %c0_29], %36 {strides = array<i32>} : memref<16x256xf32, #tpu.memory_space<vmem>>, vector<16x256xf32>,
    return
  }
  func.func @transform_0(%arg0: i32) -> (i32, i32, i32) {
    %c0_i32 = arith.constant 0 : i32
    %c0_i32_0 = arith.constant 0 : i32
    %c0_i32_1 = arith.constant 0 : i32
    return %c0_i32, %c0_i32_0, %arg0 : i32, i32, i32
  }
  func.func @transform_1(%arg0: i32) -> (i32, i32) {
    %c0_i32 = arith.constant 0 : i32
    %c0_i32_0 = arith.constant 0 : i32
    %c0_i32_1 = arith.constant 0 : i32
    return %c0_i32, %c0_i32_0 : i32, i32
  }
  func.func @transform_2(%arg0: i32) -> (i32, i32) {
    %c0_i32 = arith.constant 0 : i32
    %c0_i32_0 = arith.constant 0 : i32
    %c0_i32_1 = arith.constant 0 : i32
    return %c0_i32, %c0_i32_0 : i32, i32
  }
  func.func @transform_3(%arg0: i32) -> (i32, i32) {
    %c0_i32 = arith.constant 0 : i32
    %c0_i32_0 = arith.constant 0 : i32
    return %c0_i32, %arg0 : i32, i32
  }
}

</mosaic_0001>

<bundles_post_ra>
// kernel: regressor_net_forward.3
= control target key start
LH: loop header
LB: loop body
LE: loop exit
PB: predicated region body
PF: predicated region fallthrough
CT: control target
= control target key end

     0   :  { %s6882_s12 = smov 0   ;;  %s6884_s13 = smov 0   ;;  %s8922_s0 = inlined_call_operand.vmem [shape: bf16[8,64,2816], index: 0, kind: input, shape index: {}]   ;;  %s8923_s1 = inlined_call_operand.vmem [shape: bf16[8,64], index: 1, kind: input, shape index: {}]   ;;  %s8924_s2 = inlined_call_operand.vmem [shape: f32[8,1], index: 2, kind: input, shape index: {}]   ;;  %s8925_s3 = inlined_call_operand.vmem [shape: f32[8,2816], index: 3, kind: output, shape index: {}]  }
   0x1   :  { %s6886_s14 = smov 0  }
   0x2 LB: > { %s4484_s15 = sadd.s32 4294967295, %s6859_s14   ;;  %s6899_s16 = sadd.s32 1, %s6859_s14   ;;  %s6859_s14 = sphi %s6886_s14, %s8928_s14   ;;  %s6855_s13 = sphi %s6884_s13, %s8927_s13   ;;  %s6851_s12 = sphi %s6882_s12, %s8926_s12  }
   0x3   : > { %s17_s17 = ssub.s32 %s6859_s14, %s6899_s16  ;;  %s20_s18 = sadd.s32 1, %s6855_s13 }
   0x4   : > { %p18_p0 = scmp.eq.s32.totalorder %s17_s17, 0  ;;  %p27_p1 = scmp.ne.s32.totalorder %s6855_s13, %s6851_s12 }
   0x5   : > { %p28_p2 = scmp.eq.s32.totalorder %s6859_s14, 0  ;;  %p4487_p4 = scmp.ge.s32.totalorder %s6859_s14, 2 }
   0x6   : > { %s6908_s19 = scalar_select %p18_p0, %s6855_s13, %s20_s18  }
   0x7   : > { %p29_p3 = por %p28_p2, %p27_p1  ;;  %127 = sbr.rel (%p4487_p4) target bundleno = 401 (0x191), region = 24 }
   0xc   : > { %130 = sbr.rel (!%p29_p3) target bundleno = 401 (0x191), region = 28  ;;  %s132_s20 = sand.u32 (%p29_p3), 1, %s6855_s13  }
   0xd   : > { %s6453_s21 = smul.u32 (%p29_p3), 44, %s6859_s14 }
   0xe   : > { %s6806_s22 = smul.u32 (%p29_p3), 2816, %s132_s20 }
   0xf   : > { %s6916_s25 = scalar_lea.vmem (%p29_p3), %s8922_s0, %s6453_s21 }
  0x10   : > { %v152_v0 = vld [vmem:[%s6916_s25] sm:$0xff] (%p29_p3)  ;;  %v154_v1 = vld [vmem:[%s6916_s25 + $0x8] sm:$0xff] (%p29_p3)  ;;  %v156_v2 = vld [vmem:[%s6916_s25 + $0x10] sm:$0xff] (%p29_p3)  ;;  %s6921_s26 = scalar_lea.vmem (%p29_p3), [#allocation2], %s6806_s22 }
  0x11   : > { %153 = vst [vmem:[%s6921_s26] sm:$0xff] %v152_v0  ;;  %v158_v3 = vld [vmem:[%s6916_s25 + $0x18] sm:$0xff]  ;;  %v160_v4 = vld [vmem:[%s6916_s25 + $0x20] sm:$0xff]  ;;  %v166_v7 = vld [vmem:[%s6916_s25 + $0x68] sm:$0xff] }
  0x12   : > { %155 = vst [vmem:[%s6921_s26 + $0x8] sm:$0xff] %v154_v1  ;;  %v162_v5 = vld [vmem:[%s6916_s25 + $0x58] sm:$0xff]  ;;  %v164_v6 = vld [vmem:[%s6916_s25 + $0x60] sm:$0xff]  ;;  %v168_v8 = vld [vmem:[%s6916_s25 + $0x70] sm:$0xff] }
  0x13   : > { %157 = vst [vmem:[%s6921_s26 + $0x10] sm:$0xff] %v156_v2  ;;  %v170_v9 = vld [vmem:[%s6916_s25 + $0x78] sm:$0xff]  ;;  %v172_v10 = vld [vmem:[%s6916_s25 + $0xb0] sm:$0xff]  ;;  %v176_v12 = vld [vmem:[%s6916_s25 + $0xc0] sm:$0xff] }
  0x14   : > { %159 = vst [vmem:[%s6921_s26 + $0x18] sm:$0xff] %v158_v3  ;;  %v174_v11 = vld [vmem:[%s6916_s25 + $0xb8] sm:$0xff]  ;;  %v178_v13 = vld [vmem:[%s6916_s25 + $0xc8] sm:$0xff]  ;;  %v180_v14 = vld [vmem:[%s6916_s25 + $0xd0] sm:$0xff] }
  0x15   : > { %161 = vst [vmem:[%s6921_s26 + $0x20] sm:$0xff] %v160_v4  ;;  %v182_v15 = vld [vmem:[%s6916_s25 + $0x108] sm:$0xff]  ;;  %v184_v16 = vld [vmem:[%s6916_s25 + $0x110] sm:$0xff]  ;;  %v186_v17 = vld [vmem:[%s6916_s25 + $0x118] sm:$0xff] }
  0x16   : > { %163 = vst [vmem:[%s6921_s26 + $0x2c] sm:$0xff] %v162_v5  ;;  %v188_v18 = vld [vmem:[%s6916_s25 + $0x120] sm:$0xff]  ;;  %v190_v19 = vld [vmem:[%s6916_s25 + $0x128] sm:$0xff]  ;;  %v196_v22 = vld [vmem:[%s6916_s25 + $0x170] sm:$0xff] }
  0x17   : > { %165 = vst [vmem:[%s6921_s26 + $0x34] sm:$0xff] %v164_v6  ;;  %v192_v20 = vld [vmem:[%s6916_s25 + $0x160] sm:$0xff]  ;;  %v194_v21 = vld [vmem:[%s6916_s25 + $0x168] sm:$0xff]  ;;  %v198_v23 = vld [vmem:[%s6916_s25 + $0x178] sm:$0xff] }
  0x18   : > { %167 = vst [vmem:[%s6921_s26 + $0x3c] sm:$0xff] %v166_v7  ;;  %v200_v24 = vld [vmem:[%s6916_s25 + $0x180] sm:$0xff]  ;;  %v202_v25 = vld [vmem:[%s6916_s25 + $0x1b8] sm:$0xff]  ;;  %v206_v27 = vld [vmem:[%s6916_s25 + $0x1c8] sm:$0xff] }
  0x19   : > { %169 = vst [vmem:[%s6921_s26 + $0x44] sm:$0xff] %v168_v8  ;;  %v204_v26 = vld [vmem:[%s6916_s25 + $0x1c0] sm:$0xff]  ;;  %v208_v28 = vld [vmem:[%s6916_s25 + $0x1d0] sm:$0xff]  ;;  %v210_v29 = vld [vmem:[%s6916_s25 + $0x1d8] sm:$0xff] }
  0x1a   : > { %171 = vst [vmem:[%s6921_s26 + $0x4c] sm:$0xff] %v170_v9  ;;  %v212_v30 = vld [vmem:[%s6916_s25 + $0x210] sm:$0xff]  ;;  %v214_v31 = vld [vmem:[%s6916_s25 + $0x218] sm:$0xff]  ;;  %v216_v32 = vld [vmem:[%s6916_s25 + $0x220] sm:$0xff] }
  0x1b   : > { %173 = vst [vmem:[%s6921_s26 + $0x58] sm:$0xff] %v172_v10  ;;  %v218_v33 = vld [vmem:[%s6916_s25 + $0x228] sm:$0xff]  ;;  %v220_v34 = vld [vmem:[%s6916_s25 + $0x230] sm:$0xff]  ;;  %v226_v37 = vld [vmem:[%s6916_s25 + $0x278] sm:$0xff] }
  0x1c   : > { %175 = vst [vmem:[%s6921_s26 + $0x60] sm:$0xff] %v174_v11  ;;  %v222_v35 = vld [vmem:[%s6916_s25 + $0x268] sm:$0xff]  ;;  %v224_v36 = vld [vmem:[%s6916_s25 + $0x270] sm:$0xff]  ;;  %v228_v38 = vld [vmem:[%s6916_s25 + $0x280] sm:$0xff] }
  0x1d   : > { %177 = vst [vmem:[%s6921_s26 + $0x68] sm:$0xff] %v176_v12  ;;  %v230_v39 = vld [vmem:[%s6916_s25 + $0x288] sm:$0xff]  ;;  %v232_v40 = vld [vmem:[%s6916_s25 + $0x2c0] sm:$0xff]  ;;  %v236_v42 = vld [vmem:[%s6916_s25 + $0x2d0] sm:$0xff] }
  0x1e   : > { %179 = vst [vmem:[%s6921_s26 + $0x70] sm:$0xff] %v178_v13  ;;  %v234_v41 = vld [vmem:[%s6916_s25 + $0x2c8] sm:$0xff]  ;;  %v238_v43 = vld [vmem:[%s6916_s25 + $0x2d8] sm:$0xff]  ;;  %v240_v44 = vld [vmem:[%s6916_s25 + $0x2e0] sm:$0xff] }
  0x1f   : > { %181 = vst [vmem:[%s6921_s26 + $0x78] sm:$0xff] %v180_v14  ;;  %v242_v45 = vld [vmem:[%s6916_s25 + $0x318] sm:$0xff]  ;;  %v244_v46 = vld [vmem:[%s6916_s25 + $0x320] sm:$0xff]  ;;  %v246_v47 = vld [vmem:[%s6916_s25 + $0x328] sm:$0xff] }
  0x20   : > { %183 = vst [vmem:[%s6921_s26 + $0x84] sm:$0xff] %v182_v15  ;;  %v248_v48 = vld [vmem:[%s6916_s25 + $0x330] sm:$0xff]  ;;  %v250_v49 = vld [vmem:[%s6916_s25 + $0x338] sm:$0xff]  ;;  %v256_v52 = vld [vmem:[%s6916_s25 + $0x380] sm:$0xff] }
  0x21   : > { %185 = vst [vmem:[%s6921_s26 + $0x8c] sm:$0xff] %v184_v16  ;;  %v252_v50 = vld [vmem:[%s6916_s25 + $0x370] sm:$0xff]  ;;  %v254_v51 = vld [vmem:[%s6916_s25 + $0x378] sm:$0xff]  ;;  %v258_v53 = vld [vmem:[%s6916_s25 + $0x388] sm:$0xff] }
  0x22   : > { %187 = vst [vmem:[%s6921_s26 + $0x94] sm:$0xff] %v186_v17  ;;  %v260_v54 = vld [vmem:[%s6916_s25 + $0x390] sm:$0xff]  ;;  %v262_v55 = vld [vmem:[%s6916_s25 + $0x3c8] sm:$0xff]  ;;  %v266_v57 = vld [vmem:[%s6916_s25 + $0x3d8] sm:$0xff] }
  0x23   : > { %189 = vst [vmem:[%s6921_s26 + $0x9c] sm:$0xff] %v188_v18  ;;  %v264_v56 = vld [vmem:[%s6916_s25 + $0x3d0] sm:$0xff]  ;;  %v268_v58 = vld [vmem:[%s6916_s25 + $0x3e0] sm:$0xff]  ;;  %v270_v59 = vld [vmem:[%s6916_s25 + $0x3e8] sm:$0xff] }
  0x24   : > { %191 = vst [vmem:[%s6921_s26 + $0xa4] sm:$0xff] %v190_v19  ;;  %v272_v60 = vld [vmem:[%s6916_s25 + $0x420] sm:$0xff]  ;;  %v274_v61 = vld [vmem:[%s6916_s25 + $0x428] sm:$0xff]  ;;  %v276_v62 = vld [vmem:[%s6916_s25 + $0x430] sm:$0xff] }
  0x25   : > { %193 = vst [vmem:[%s6921_s26 + $0xb0] sm:$0xff] %v192_v20  ;;  %v278_v63 = vld [vmem:[%s6916_s25 + $0x438] sm:$0xff]  ;;  %v280_v0 = vld [vmem:[%s6916_s25 + $0x440] sm:$0xff]  ;;  %v286_v3 = vld [vmem:[%s6916_s25 + $0x488] sm:$0xff] }
  0x26   : > { %195 = vst [vmem:[%s6921_s26 + $0xb8] sm:$0xff] %v194_v21  ;;  %v282_v1 = vld [vmem:[%s6916_s25 + $0x478] sm:$0xff]  ;;  %v284_v2 = vld [vmem:[%s6916_s25 + $0x480] sm:$0xff]  ;;  %v288_v4 = vld [vmem:[%s6916_s25 + $0x490] sm:$0xff] }
  0x27   : > { %197 = vst [vmem:[%s6921_s26 + $0xc0] sm:$0xff] %v196_v22  ;;  %v290_v5 = vld [vmem:[%s6916_s25 + $0x498] sm:$0xff]  ;;  %v292_v6 = vld [vmem:[%s6916_s25 + $0x4d0] sm:$0xff]  ;;  %v296_v8 = vld [vmem:[%s6916_s25 + $0x4e0] sm:$0xff] }
  0x28   : > { %199 = vst [vmem:[%s6921_s26 + $0xc8] sm:$0xff] %v198_v23  ;;  %v294_v7 = vld [vmem:[%s6916_s25 + $0x4d8] sm:$0xff]  ;;  %v298_v9 = vld [vmem:[%s6916_s25 + $0x4e8] sm:$0xff]  ;;  %v300_v10 = vld [vmem:[%s6916_s25 + $0x4f0] sm:$0xff] }
  0x29   : > { %201 = vst [vmem:[%s6921_s26 + $0xd0] sm:$0xff] %v200_v24  ;;  %v302_v11 = vld [vmem:[%s6916_s25 + $0x528] sm:$0xff]  ;;  %v304_v12 = vld [vmem:[%s6916_s25 + $0x530] sm:$0xff]  ;;  %v306_v13 = vld [vmem:[%s6916_s25 + $0x538] sm:$0xff] }
  0x2a   : > { %203 = vst [vmem:[%s6921_s26 + $0xdc] sm:$0xff] %v202_v25  ;;  %v308_v14 = vld [vmem:[%s6916_s25 + $0x540] sm:$0xff]  ;;  %v310_v15 = vld [vmem:[%s6916_s25 + $0x548] sm:$0xff]  ;;  %v316_v18 = vld [vmem:[%s6916_s25 + $0x590] sm:$0xff] }
  0x2b   : > { %205 = vst [vmem:[%s6921_s26 + $0xe4] sm:$0xff] %v204_v26  ;;  %v312_v16 = vld [vmem:[%s6916_s25 + $0x580] sm:$0xff]  ;;  %v314_v17 = vld [vmem:[%s6916_s25 + $0x588] sm:$0xff]  ;;  %v318_v19 = vld [vmem:[%s6916_s25 + $0x598] sm:$0xff] }
  0x2c   : > { %207 = vst [vmem:[%s6921_s26 + $0xec] sm:$0xff] %v206_v27  ;;  %v320_v20 = vld [vmem:[%s6916_s25 + $0x5a0] sm:$0xff]  ;;  %v322_v21 = vld [vmem:[%s6916_s25 + $0x5d8] sm:$0xff]  ;;  %v326_v23 = vld [vmem:[%s6916_s25 + $0x5e8] sm:$0xff] }
  0x2d   : > { %209 = vst [vmem:[%s6921_s26 + $0xf4] sm:$0xff] %v208_v28  ;;  %v324_v22 = vld [vmem:[%s6916_s25 + $0x5e0] sm:$0xff]  ;;  %v328_v24 = vld [vmem:[%s6916_s25 + $0x5f0] sm:$0xff]  ;;  %v330_v25 = vld [vmem:[%s6916_s25 + $0x5f8] sm:$0xff] }
  0x2e   : > { %211 = vst [vmem:[%s6921_s26 + $0xfc] sm:$0xff] %v210_v29  ;;  %v332_v26 = vld [vmem:[%s6916_s25 + $0x630] sm:$0xff]  ;;  %v334_v27 = vld [vmem:[%s6916_s25 + $0x638] sm:$0xff]  ;;  %v336_v28 = vld [vmem:[%s6916_s25 + $0x640] sm:$0xff] }
  0x2f   : > { %213 = vst [vmem:[%s6921_s26 + $0x108] sm:$0xff] %v212_v30  ;;  %v338_v29 = vld [vmem:[%s6916_s25 + $0x648] sm:$0xff]  ;;  %v340_v30 = vld [vmem:[%s6916_s25 + $0x650] sm:$0xff] }
  0x30   : > { %215 = vst [vmem:[%s6921_s26 + $0x110] sm:$0xff] %v214_v31  ;;  %v342_v31 = vld [vmem:[%s6916_s25 + $0x688] sm:$0xff] }
  0x31   : > { %217 = vst [vmem:[%s6921_s26 + $0x118] sm:$0xff] %v216_v32  ;;  %v344_v32 = vld [vmem:[%s6916_s25 + $0x690] sm:$0xff] }
  0x32   : > { %219 = vst [vmem:[%s6921_s26 + $0x120] sm:$0xff] %v218_v33  ;;  %v346_v33 = vld [vmem:[%s6916_s25 + $0x698] sm:$0xff] }
  0x33   : > { %221 = vst [vmem:[%s6921_s26 + $0x128] sm:$0xff] %v220_v34  ;;  %v348_v34 = vld [vmem:[%s6916_s25 + $0x6a0] sm:$0xff] }
  0x34   : > { %223 = vst [vmem:[%s6921_s26 + $0x134] sm:$0xff] %v222_v35  ;;  %v350_v35 = vld [vmem:[%s6916_s25 + $0x6a8] sm:$0xff] }
  0x35   : > { %225 = vst [vmem:[%s6921_s26 + $0x13c] sm:$0xff] %v224_v36  ;;  %v352_v36 = vld [vmem:[%s6916_s25 + $0x6e0] sm:$0xff] }
  0x36   : > { %227 = vst [vmem:[%s6921_s26 + $0x144] sm:$0xff] %v226_v37  ;;  %v354_v37 = vld [vmem:[%s6916_s25 + $0x6e8] sm:$0xff] }
  0x37   : > { %229 = vst [vmem:[%s6921_s26 + $0x14c] sm:$0xff] %v228_v38  ;;  %v356_v38 = vld [vmem:[%s6916_s25 + $0x6f0] sm:$0xff] }
  0x38   : > { %231 = vst [vmem:[%s6921_s26 + $0x154] sm:$0xff] %v230_v39  ;;  %v358_v39 = vld [vmem:[%s6916_s25 + $0x6f8] sm:$0xff] }
  0x39   : > { %233 = vst [vmem:[%s6921_s26 + $0x160] sm:$0xff] %v232_v40  ;;  %v360_v40 = vld [vmem:[%s6916_s25 + $0x700] sm:$0xff] }
  0x3a   : > { %235 = vst [vmem:[%s6921_s26 + $0x168] sm:$0xff] %v234_v41  ;;  %v362_v41 = vld [vmem:[%s6916_s25 + $0x738] sm:$0xff] }
  0x3b   : > { %237 = vst [vmem:[%s6921_s26 + $0x170] sm:$0xff] %v236_v42  ;;  %v364_v42 = vld [vmem:[%s6916_s25 + $0x740] sm:$0xff] }
  0x3c   : > { %239 = vst [vmem:[%s6921_s26 + $0x178] sm:$0xff] %v238_v43  ;;  %v366_v43 = vld [vmem:[%s6916_s25 + $0x748] sm:$0xff] }
  0x3d   : > { %241 = vst [vmem:[%s6921_s26 + $0x180] sm:$0xff] %v240_v44  ;;  %v368_v44 = vld [vmem:[%s6916_s25 + $0x750] sm:$0xff] }
  0x3e   : > { %243 = vst [vmem:[%s6921_s26 + $0x18c] sm:$0xff] %v242_v45  ;;  %v370_v45 = vld [vmem:[%s6916_s25 + $0x758] sm:$0xff] }
  0x3f   : > { %245 = vst [vmem:[%s6921_s26 + $0x194] sm:$0xff] %v244_v46  ;;  %v372_v46 = vld [vmem:[%s6916_s25 + $0x790] sm:$0xff] }
  0x40   : > { %247 = vst [vmem:[%s6921_s26 + $0x19c] sm:$0xff] %v246_v47  ;;  %v374_v47 = vld [vmem:[%s6916_s25 + $0x798] sm:$0xff] }
  0x41   : > { %249 = vst [vmem:[%s6921_s26 + $0x1a4] sm:$0xff] %v248_v48  ;;  %v376_v48 = vld [vmem:[%s6916_s25 + $0x7a0] sm:$0xff] }
  0x42   : > { %251 = vst [vmem:[%s6921_s26 + $0x1ac] sm:$0xff] %v250_v49  ;;  %v378_v49 = vld [vmem:[%s6916_s25 + $0x7a8] sm:$0xff] }
  0x43   : > { %253 = vst [vmem:[%s6921_s26 + $0x1b8] sm:$0xff] %v252_v50  ;;  %v380_v50 = vld [vmem:[%s6916_s25 + $0x7b0] sm:$0xff] }
  0x44   : > { %255 = vst [vmem:[%s6921_s26 + $0x1c0] sm:$0xff] %v254_v51  ;;  %v382_v51 = vld [vmem:[%s6916_s25 + $0x7e8] sm:$0xff] }
  0x45   : > { %257 = vst [vmem:[%s6921_s26 + $0x1c8] sm:$0xff] %v256_v52  ;;  %v384_v52 = vld [vmem:[%s6916_s25 + $0x7f0] sm:$0xff] }
  0x46   : > { %259 = vst [vmem:[%s6921_s26 + $0x1d0] sm:$0xff] %v258_v53  ;;  %v386_v53 = vld [vmem:[%s6916_s25 + $0x7f8] sm:$0xff] }
  0x47   : > { %261 = vst [vmem:[%s6921_s26 + $0x1d8] sm:$0xff] %v260_v54  ;;  %v388_v54 = vld [vmem:[%s6916_s25 + $0x800] sm:$0xff] }
  0x48   : > { %263 = vst [vmem:[%s6921_s26 + $0x1e4] sm:$0xff] %v262_v55  ;;  %v390_v55 = vld [vmem:[%s6916_s25 + $0x808] sm:$0xff] }
  0x49   : > { %265 = vst [vmem:[%s6921_s26 + $0x1ec] sm:$0xff] %v264_v56  ;;  %v392_v56 = vld [vmem:[%s6916_s25 + $0x840] sm:$0xff] }
  0x4a   : > { %267 = vst [vmem:[%s6921_s26 + $0x1f4] sm:$0xff] %v266_v57  ;;  %v394_v57 = vld [vmem:[%s6916_s25 + $0x848] sm:$0xff] }
  0x4b   : > { %269 = vst [vmem:[%s6921_s26 + $0x1fc] sm:$0xff] %v268_v58  ;;  %v396_v58 = vld [vmem:[%s6916_s25 + $0x850] sm:$0xff] }
  0x4c   : > { %271 = vst [vmem:[%s6921_s26 + $0x204] sm:$0xff] %v270_v59  ;;  %v398_v59 = vld [vmem:[%s6916_s25 + $0x858] sm:$0xff] }
  0x4d   : > { %273 = vst [vmem:[%s6921_s26 + $0x210] sm:$0xff] %v272_v60  ;;  %v400_v60 = vld [vmem:[%s6916_s25 + $0x860] sm:$0xff] }
  0x4e   : > { %275 = vst [vmem:[%s6921_s26 + $0x218] sm:$0xff] %v274_v61  ;;  %v402_v61 = vld [vmem:[%s6916_s25 + $0x898] sm:$0xff] }
  0x4f   : > { %277 = vst [vmem:[%s6921_s26 + $0x220] sm:$0xff] %v276_v62  ;;  %v404_v62 = vld [vmem:[%s6916_s25 + $0x8a0] sm:$0xff] }
  0x50   : > { %279 = vst [vmem:[%s6921_s26 + $0x228] sm:$0xff] %v278_v63  ;;  %v406_v63 = vld [vmem:[%s6916_s25 + $0x8a8] sm:$0xff] }
  0x51   : > { %281 = vst [vmem:[%s6921_s26 + $0x230] sm:$0xff] %v280_v0  ;;  %v408_v0 = vld [vmem:[%s6916_s25 + $0x8b0] sm:$0xff] }
  0x52   : > { %283 = vst [vmem:[%s6921_s26 + $0x23c] sm:$0xff] %v282_v1  ;;  %v410_v1 = vld [vmem:[%s6916_s25 + $0x8b8] sm:$0xff] }
  0x53   : > { %285 = vst [vmem:[%s6921_s26 + $0x244] sm:$0xff] %v284_v2  ;;  %v412_v2 = vld [vmem:[%s6916_s25 + $0x8f0] sm:$0xff] }
  0x54   : > { %287 = vst [vmem:[%s6921_s26 + $0x24c] sm:$0xff] %v286_v3  ;;  %v414_v3 = vld [vmem:[%s6916_s25 + $0x8f8] sm:$0xff] }
  0x55   : > { %289 = vst [vmem:[%s6921_s26 + $0x254] sm:$0xff] %v288_v4  ;;  %v416_v4 = vld [vmem:[%s6916_s25 + $0x900] sm:$0xff] }
  0x56   : > { %291 = vst [vmem:[%s6921_s26 + $0x25c] sm:$0xff] %v290_v5  ;;  %v418_v5 = vld [vmem:[%s6916_s25 + $0x908] sm:$0xff] }
  0x57   : > { %293 = vst [vmem:[%s6921_s26 + $0x268] sm:$0xff] %v292_v6  ;;  %v420_v6 = vld [vmem:[%s6916_s25 + $0x910] sm:$0xff] }
  0x58   : > { %295 = vst [vmem:[%s6921_s26 + $0x270] sm:$0xff] %v294_v7  ;;  %v422_v7 = vld [vmem:[%s6916_s25 + $0x948] sm:$0xff] }
  0x59   : > { %297 = vst [vmem:[%s6921_s26 + $0x278] sm:$0xff] %v296_v8  ;;  %v424_v8 = vld [vmem:[%s6916_s25 + $0x950] sm:$0xff] }
  0x5a   : > { %299 = vst [vmem:[%s6921_s26 + $0x280] sm:$0xff] %v298_v9  ;;  %v426_v9 = vld [vmem:[%s6916_s25 + $0x958] sm:$0xff] }
  0x5b   : > { %301 = vst [vmem:[%s6921_s26 + $0x288] sm:$0xff] %v300_v10  ;;  %v428_v10 = vld [vmem:[%s6916_s25 + $0x960] sm:$0xff] }
  0x5c   : > { %303 = vst [vmem:[%s6921_s26 + $0x294] sm:$0xff] %v302_v11  ;;  %v430_v11 = vld [vmem:[%s6916_s25 + $0x968] sm:$0xff] }
  0x5d   : > { %305 = vst [vmem:[%s6921_s26 + $0x29c] sm:$0xff] %v304_v12  ;;  %v432_v12 = vld [vmem:[%s6916_s25 + $0x9a0] sm:$0xff] }
  0x5e   : > { %307 = vst [vmem:[%s6921_s26 + $0x2a4] sm:$0xff] %v306_v13  ;;  %v434_v13 = vld [vmem:[%s6916_s25 + $0x9a8] sm:$0xff] }
  0x5f   : > { %309 = vst [vmem:[%s6921_s26 + $0x2ac] sm:$0xff] %v308_v14  ;;  %v436_v14 = vld [vmem:[%s6916_s25 + $0x9b0] sm:$0xff] }
  0x60   : > { %311 = vst [vmem:[%s6921_s26 + $0x2b4] sm:$0xff] %v310_v15  ;;  %v438_v15 = vld [vmem:[%s6916_s25 + $0x9b8] sm:$0xff] }
  0x61   : > { %313 = vst [vmem:[%s6921_s26 + $0x2c0] sm:$0xff] %v312_v16  ;;  %v440_v16 = vld [vmem:[%s6916_s25 + $0x9c0] sm:$0xff] }
  0x62   : > { %315 = vst [vmem:[%s6921_s26 + $0x2c8] sm:$0xff] %v314_v17  ;;  %v442_v17 = vld [vmem:[%s6916_s25 + $0x9f8] sm:$0xff] }
  0x63   : > { %317 = vst [vmem:[%s6921_s26 + $0x2d0] sm:$0xff] %v316_v18  ;;  %v444_v18 = vld [vmem:[%s6916_s25 + $0xa00] sm:$0xff] }
  0x64   : > { %319 = vst [vmem:[%s6921_s26 + $0x2d8] sm:$0xff] %v318_v19  ;;  %v446_v19 = vld [vmem:[%s6916_s25 + $0xa08] sm:$0xff] }
  0x65   : > { %321 = vst [vmem:[%s6921_s26 + $0x2e0] sm:$0xff] %v320_v20  ;;  %v448_v20 = vld [vmem:[%s6916_s25 + $0xa10] sm:$0xff] }
  0x66   : > { %323 = vst [vmem:[%s6921_s26 + $0x2ec] sm:$0xff] %v322_v21  ;;  %v450_v21 = vld [vmem:[%s6916_s25 + $0xa18] sm:$0xff] }
  0x67   : > { %325 = vst [vmem:[%s6921_s26 + $0x2f4] sm:$0xff] %v324_v22  ;;  %v452_v22 = vld [vmem:[%s6916_s25 + $0xa50] sm:$0xff] }
  0x68   : > { %327 = vst [vmem:[%s6921_s26 + $0x2fc] sm:$0xff] %v326_v23  ;;  %v454_v23 = vld [vmem:[%s6916_s25 + $0xa58] sm:$0xff] }
  0x69   : > { %329 = vst [vmem:[%s6921_s26 + $0x304] sm:$0xff] %v328_v24  ;;  %v456_v24 = vld [vmem:[%s6916_s25 + $0xa60] sm:$0xff] }
  0x6a   : > { %331 = vst [vmem:[%s6921_s26 + $0x30c] sm:$0xff] %v330_v25  ;;  %v458_v25 = vld [vmem:[%s6916_s25 + $0xa68] sm:$0xff] }
  0x6b   : > { %333 = vst [vmem:[%s6921_s26 + $0x318] sm:$0xff] %v332_v26  ;;  %v460_v26 = vld [vmem:[%s6916_s25 + $0xa70] sm:$0xff] }
  0x6c   : > { %335 = vst [vmem:[%s6921_s26 + $0x320] sm:$0xff] %v334_v27  ;;  %v462_v27 = vld [vmem:[%s6916_s25 + $0xaa8] sm:$0xff] }
  0x6d   : > { %337 = vst [vmem:[%s6921_s26 + $0x328] sm:$0xff] %v336_v28  ;;  %v464_v28 = vld [vmem:[%s6916_s25 + $0xab0] sm:$0xff] }
  0x6e   : > { %339 = vst [vmem:[%s6921_s26 + $0x330] sm:$0xff] %v338_v29  ;;  %v466_v29 = vld [vmem:[%s6916_s25 + $0xab8] sm:$0xff] }
  0x6f   : > { %341 = vst [vmem:[%s6921_s26 + $0x338] sm:$0xff] %v340_v30  ;;  %v468_v30 = vld [vmem:[%s6916_s25 + $0xac0] sm:$0xff] }
  0x70   : > { %343 = vst [vmem:[%s6921_s26 + $0x344] sm:$0xff] %v342_v31  ;;  %v470_v31 = vld [vmem:[%s6916_s25 + $0xac8] sm:$0xff] }
  0x71   : > { %345 = vst [vmem:[%s6921_s26 + $0x34c] sm:$0xff] %v344_v32  ;;  %v472_v32 = vld [vmem:[%s6916_s25 + $0xb00] sm:$0xff] }
  0x72   : > { %347 = vst [vmem:[%s6921_s26 + $0x354] sm:$0xff] %v346_v33  ;;  %v474_v33 = vld [vmem:[%s6916_s25 + $0xb08] sm:$0xff] }
  0x73   : > { %349 = vst [vmem:[%s6921_s26 + $0x35c] sm:$0xff] %v348_v34  ;;  %v476_v34 = vld [vmem:[%s6916_s25 + $0xb10] sm:$0xff] }
  0x74   : > { %351 = vst [vmem:[%s6921_s26 + $0x364] sm:$0xff] %v350_v35  ;;  %v478_v35 = vld [vmem:[%s6916_s25 + $0xb18] sm:$0xff] }
  0x75   : > { %353 = vst [vmem:[%s6921_s26 + $0x370] sm:$0xff] %v352_v36  ;;  %v480_v36 = vld [vmem:[%s6916_s25 + $0xb20] sm:$0xff] }
  0x76   : > { %355 = vst [vmem:[%s6921_s26 + $0x378] sm:$0xff] %v354_v37  ;;  %v482_v37 = vld [vmem:[%s6916_s25 + $0xb58] sm:$0xff] }
  0x77   : > { %357 = vst [vmem:[%s6921_s26 + $0x380] sm:$0xff] %v356_v38  ;;  %v484_v38 = vld [vmem:[%s6916_s25 + $0xb60] sm:$0xff] }
  0x78   : > { %359 = vst [vmem:[%s6921_s26 + $0x388] sm:$0xff] %v358_v39  ;;  %v486_v39 = vld [vmem:[%s6916_s25 + $0xb68] sm:$0xff] }
  0x79   : > { %361 = vst [vmem:[%s6921_s26 + $0x390] sm:$0xff] %v360_v40  ;;  %v488_v40 = vld [vmem:[%s6916_s25 + $0xb70] sm:$0xff] }
  0x7a   : > { %363 = vst [vmem:[%s6921_s26 + $0x39c] sm:$0xff] %v362_v41  ;;  %v490_v41 = vld [vmem:[%s6916_s25 + $0xb78] sm:$0xff] }
  0x7b   : > { %365 = vst [vmem:[%s6921_s26 + $0x3a4] sm:$0xff] %v364_v42  ;;  %v492_v42 = vld [vmem:[%s6916_s25 + $0xbb0] sm:$0xff] }
  0x7c   : > { %367 = vst [vmem:[%s6921_s26 + $0x3ac] sm:$0xff] %v366_v43  ;;  %v494_v43 = vld [vmem:[%s6916_s25 + $0xbb8] sm:$0xff] }
  0x7d   : > { %369 = vst [vmem:[%s6921_s26 + $0x3b4] sm:$0xff] %v368_v44  ;;  %v496_v44 = vld [vmem:[%s6916_s25 + $0xbc0] sm:$0xff] }
  0x7e   : > { %371 = vst [vmem:[%s6921_s26 + $0x3bc] sm:$0xff] %v370_v45  ;;  %v498_v45 = vld [vmem:[%s6916_s25 + $0xbc8] sm:$0xff] }
  0x7f   : > { %373 = vst [vmem:[%s6921_s26 + $0x3c8] sm:$0xff] %v372_v46  ;;  %v500_v46 = vld [vmem:[%s6916_s25 + $0xbd0] sm:$0xff] }
  0x80   : > { %375 = vst [vmem:[%s6921_s26 + $0x3d0] sm:$0xff] %v374_v47  ;;  %v502_v47 = vld [vmem:[%s6916_s25 + $0xc08] sm:$0xff] }
  0x81   : > { %377 = vst [vmem:[%s6921_s26 + $0x3d8] sm:$0xff] %v376_v48  ;;  %v504_v48 = vld [vmem:[%s6916_s25 + $0xc10] sm:$0xff] }
  0x82   : > { %379 = vst [vmem:[%s6921_s26 + $0x3e0] sm:$0xff] %v378_v49  ;;  %v506_v49 = vld [vmem:[%s6916_s25 + $0xc18] sm:$0xff] }
  0x83   : > { %381 = vst [vmem:[%s6921_s26 + $0x3e8] sm:$0xff] %v380_v50  ;;  %v508_v50 = vld [vmem:[%s6916_s25 + $0xc20] sm:$0xff] }
  0x84   : > { %383 = vst [vmem:[%s6921_s26 + $0x3f4] sm:$0xff] %v382_v51  ;;  %v510_v51 = vld [vmem:[%s6916_s25 + $0xc28] sm:$0xff] }
  0x85   : > { %385 = vst [vmem:[%s6921_s26 + $0x3fc] sm:$0xff] %v384_v52  ;;  %v512_v52 = vld [vmem:[%s6916_s25 + $0xc60] sm:$0xff] }
  0x86   : > { %387 = vst [vmem:[%s6921_s26 + $0x404] sm:$0xff] %v386_v53  ;;  %v514_v53 = vld [vmem:[%s6916_s25 + $0xc68] sm:$0xff] }
  0x87   : > { %389 = vst [vmem:[%s6921_s26 + $0x40c] sm:$0xff] %v388_v54  ;;  %v516_v54 = vld [vmem:[%s6916_s25 + $0xc70] sm:$0xff] }
  0x88   : > { %391 = vst [vmem:[%s6921_s26 + $0x414] sm:$0xff] %v390_v55  ;;  %v518_v55 = vld [vmem:[%s6916_s25 + $0xc78] sm:$0xff] }
  0x89   : > { %393 = vst [vmem:[%s6921_s26 + $0x420] sm:$0xff] %v392_v56  ;;  %v520_v56 = vld [vmem:[%s6916_s25 + $0xc80] sm:$0xff] }
  0x8a   : > { %395 = vst [vmem:[%s6921_s26 + $0x428] sm:$0xff] %v394_v57  ;;  %v522_v57 = vld [vmem:[%s6916_s25 + $0xcb8] sm:$0xff] }
  0x8b   : > { %397 = vst [vmem:[%s6921_s26 + $0x430] sm:$0xff] %v396_v58  ;;  %v524_v58 = vld [vmem:[%s6916_s25 + $0xcc0] sm:$0xff] }
  0x8c   : > { %399 = vst [vmem:[%s6921_s26 + $0x438] sm:$0xff] %v398_v59  ;;  %v526_v59 = vld [vmem:[%s6916_s25 + $0xcc8] sm:$0xff] }
  0x8d   : > { %401 = vst [vmem:[%s6921_s26 + $0x440] sm:$0xff] %v400_v60  ;;  %v528_v60 = vld [vmem:[%s6916_s25 + $0xcd0] sm:$0xff] }
  0x8e   : > { %403 = vst [vmem:[%s6921_s26 + $0x44c] sm:$0xff] %v402_v61  ;;  %v530_v61 = vld [vmem:[%s6916_s25 + $0xcd8] sm:$0xff] }
  0x8f   : > { %405 = vst [vmem:[%s6921_s26 + $0x454] sm:$0xff] %v404_v62  ;;  %v532_v62 = vld [vmem:[%s6916_s25 + $0xd10] sm:$0xff] }
  0x90   : > { %407 = vst [vmem:[%s6921_s26 + $0x45c] sm:$0xff] %v406_v63  ;;  %v534_v63 = vld [vmem:[%s6916_s25 + $0xd18] sm:$0xff] }
  0x91   : > { %409 = vst [vmem:[%s6921_s26 + $0x464] sm:$0xff] %v408_v0  ;;  %v536_v0 = vld [vmem:[%s6916_s25 + $0xd20] sm:$0xff] }
  0x92   : > { %411 = vst [vmem:[%s6921_s26 + $0x46c] sm:$0xff] %v410_v1  ;;  %v538_v1 = vld [vmem:[%s6916_s25 + $0xd28] sm:$0xff] }
  0x93   : > { %413 = vst [vmem:[%s6921_s26 + $0x478] sm:$0xff] %v412_v2  ;;  %v540_v2 = vld [vmem:[%s6916_s25 + $0xd30] sm:$0xff] }
  0x94   : > { %415 = vst [vmem:[%s6921_s26 + $0x480] sm:$0xff] %v414_v3  ;;  %v542_v3 = vld [vmem:[%s6916_s25 + $0xd68] sm:$0xff] }
  0x95   : > { %417 = vst [vmem:[%s6921_s26 + $0x488] sm:$0xff] %v416_v4  ;;  %v544_v4 = vld [vmem:[%s6916_s25 + $0xd70] sm:$0xff] }
  0x96   : > { %419 = vst [vmem:[%s6921_s26 + $0x490] sm:$0xff] %v418_v5  ;;  %v546_v5 = vld [vmem:[%s6916_s25 + $0xd78] sm:$0xff] }
  0x97   : > { %421 = vst [vmem:[%s6921_s26 + $0x498] sm:$0xff] %v420_v6  ;;  %v548_v6 = vld [vmem:[%s6916_s25 + $0xd80] sm:$0xff] }
  0x98   : > { %423 = vst [vmem:[%s6921_s26 + $0x4a4] sm:$0xff] %v422_v7  ;;  %v550_v7 = vld [vmem:[%s6916_s25 + $0xd88] sm:$0xff] }
  0x99   : > { %425 = vst [vmem:[%s6921_s26 + $0x4ac] sm:$0xff] %v424_v8  ;;  %v552_v8 = vld [vmem:[%s6916_s25 + $0xdc0] sm:$0xff] }
  0x9a   : > { %427 = vst [vmem:[%s6921_s26 + $0x4b4] sm:$0xff] %v426_v9  ;;  %v554_v9 = vld [vmem:[%s6916_s25 + $0xdc8] sm:$0xff] }
  0x9b   : > { %429 = vst [vmem:[%s6921_s26 + $0x4bc] sm:$0xff] %v428_v10  ;;  %v556_v10 = vld [vmem:[%s6916_s25 + $0xdd0] sm:$0xff] }
  0x9c   : > { %431 = vst [vmem:[%s6921_s26 + $0x4c4] sm:$0xff] %v430_v11  ;;  %v558_v11 = vld [vmem:[%s6916_s25 + $0xdd8] sm:$0xff] }
  0x9d   : > { %433 = vst [vmem:[%s6921_s26 + $0x4d0] sm:$0xff] %v432_v12  ;;  %v560_v12 = vld [vmem:[%s6916_s25 + $0xde0] sm:$0xff] }
  0x9e   : > { %435 = vst [vmem:[%s6921_s26 + $0x4d8] sm:$0xff] %v434_v13  ;;  %v562_v13 = vld [vmem:[%s6916_s25 + $0xe18] sm:$0xff] }
  0x9f   : > { %437 = vst [vmem:[%s6921_s26 + $0x4e0] sm:$0xff] %v436_v14  ;;  %v564_v14 = vld [vmem:[%s6916_s25 + $0xe20] sm:$0xff] }
  0xa0   : > { %439 = vst [vmem:[%s6921_s26 + $0x4e8] sm:$0xff] %v438_v15  ;;  %v566_v15 = vld [vmem:[%s6916_s25 + $0xe28] sm:$0xff] }
  0xa1   : > { %441 = vst [vmem:[%s6921_s26 + $0x4f0] sm:$0xff] %v440_v16  ;;  %v568_v16 = vld [vmem:[%s6916_s25 + $0xe30] sm:$0xff] }
  0xa2   : > { %443 = vst [vmem:[%s6921_s26 + $0x4fc] sm:$0xff] %v442_v17  ;;  %v570_v17 = vld [vmem:[%s6916_s25 + $0xe38] sm:$0xff] }
  0xa3   : > { %445 = vst [vmem:[%s6921_s26 + $0x504] sm:$0xff] %v444_v18  ;;  %v572_v18 = vld [vmem:[%s6916_s25 + $0xe70] sm:$0xff] }
  0xa4   : > { %447 = vst [vmem:[%s6921_s26 + $0x50c] sm:$0xff] %v446_v19  ;;  %v574_v19 = vld [vmem:[%s6916_s25 + $0xe78] sm:$0xff] }
  0xa5   : > { %449 = vst [vmem:[%s6921_s26 + $0x514] sm:$0xff] %v448_v20  ;;  %v576_v20 = vld [vmem:[%s6916_s25 + $0xe80] sm:$0xff] }
  0xa6   : > { %451 = vst [vmem:[%s6921_s26 + $0x51c] sm:$0xff] %v450_v21  ;;  %v578_v21 = vld [vmem:[%s6916_s25 + $0xe88] sm:$0xff] }
  0xa7   : > { %453 = vst [vmem:[%s6921_s26 + $0x528] sm:$0xff] %v452_v22  ;;  %v580_v22 = vld [vmem:[%s6916_s25 + $0xe90] sm:$0xff] }
  0xa8   : > { %455 = vst [vmem:[%s6921_s26 + $0x530] sm:$0xff] %v454_v23  ;;  %v582_v23 = vld [vmem:[%s6916_s25 + $0xec8] sm:$0xff] }
  0xa9   : > { %457 = vst [vmem:[%s6921_s26 + $0x538] sm:$0xff] %v456_v24  ;;  %v584_v24 = vld [vmem:[%s6916_s25 + $0xed0] sm:$0xff] }
  0xaa   : > { %459 = vst [vmem:[%s6921_s26 + $0x540] sm:$0xff] %v458_v25  ;;  %v586_v25 = vld [vmem:[%s6916_s25 + $0xed8] sm:$0xff] }
  0xab   : > { %461 = vst [vmem:[%s6921_s26 + $0x548] sm:$0xff] %v460_v26  ;;  %v588_v26 = vld [vmem:[%s6916_s25 + $0xee0] sm:$0xff] }
  0xac   : > { %463 = vst [vmem:[%s6921_s26 + $0x554] sm:$0xff] %v462_v27  ;;  %v590_v27 = vld [vmem:[%s6916_s25 + $0xee8] sm:$0xff] }
  0xad   : > { %465 = vst [vmem:[%s6921_s26 + $0x55c] sm:$0xff] %v464_v28  ;;  %v592_v28 = vld [vmem:[%s6916_s25 + $0xf20] sm:$0xff] }
  0xae   : > { %467 = vst [vmem:[%s6921_s26 + $0x564] sm:$0xff] %v466_v29  ;;  %v594_v29 = vld [vmem:[%s6916_s25 + $0xf28] sm:$0xff] }
  0xaf   : > { %469 = vst [vmem:[%s6921_s26 + $0x56c] sm:$0xff] %v468_v30  ;;  %v596_v30 = vld [vmem:[%s6916_s25 + $0xf30] sm:$0xff] }
  0xb0   : > { %471 = vst [vmem:[%s6921_s26 + $0x574] sm:$0xff] %v470_v31  ;;  %v598_v31 = vld [vmem:[%s6916_s25 + $0xf38] sm:$0xff] }
  0xb1   : > { %473 = vst [vmem:[%s6921_s26 + $0x580] sm:$0xff] %v472_v32  ;;  %v600_v32 = vld [vmem:[%s6916_s25 + $0xf40] sm:$0xff] }
  0xb2   : > { %475 = vst [vmem:[%s6921_s26 + $0x588] sm:$0xff] %v474_v33  ;;  %v602_v33 = vld [vmem:[%s6916_s25 + $0xf78] sm:$0xff] }
  0xb3   : > { %477 = vst [vmem:[%s6921_s26 + $0x590] sm:$0xff] %v476_v34  ;;  %v604_v34 = vld [vmem:[%s6916_s25 + $0xf80] sm:$0xff] }
  0xb4   : > { %479 = vst [vmem:[%s6921_s26 + $0x598] sm:$0xff] %v478_v35  ;;  %v606_v35 = vld [vmem:[%s6916_s25 + $0xf88] sm:$0xff] }
  0xb5   : > { %481 = vst [vmem:[%s6921_s26 + $0x5a0] sm:$0xff] %v480_v36  ;;  %v608_v36 = vld [vmem:[%s6916_s25 + $0xf90] sm:$0xff] }
  0xb6   : > { %483 = vst [vmem:[%s6921_s26 + $0x5ac] sm:$0xff] %v482_v37  ;;  %v610_v37 = vld [vmem:[%s6916_s25 + $0xf98] sm:$0xff] }
  0xb7   : > { %485 = vst [vmem:[%s6921_s26 + $0x5b4] sm:$0xff] %v484_v38  ;;  %v612_v38 = vld [vmem:[%s6916_s25 + $0xfd0] sm:$0xff] }
  0xb8   : > { %487 = vst [vmem:[%s6921_s26 + $0x5bc] sm:$0xff] %v486_v39  ;;  %v614_v39 = vld [vmem:[%s6916_s25 + $0xfd8] sm:$0xff] }
  0xb9   : > { %489 = vst [vmem:[%s6921_s26 + $0x5c4] sm:$0xff] %v488_v40  ;;  %v616_v40 = vld [vmem:[%s6916_s25 + $0xfe0] sm:$0xff] }
  0xba   : > { %491 = vst [vmem:[%s6921_s26 + $0x5cc] sm:$0xff] %v490_v41  ;;  %v618_v41 = vld [vmem:[%s6916_s25 + $0xfe8] sm:$0xff] }
  0xbb   : > { %493 = vst [vmem:[%s6921_s26 + $0x5d8] sm:$0xff] %v492_v42  ;;  %v620_v42 = vld [vmem:[%s6916_s25 + $0xff0] sm:$0xff] }
  0xbc   : > { %495 = vst [vmem:[%s6921_s26 + $0x5e0] sm:$0xff] %v494_v43  ;;  %v622_v43 = vld [vmem:[%s6916_s25 + $0x1028] sm:$0xff] }
  0xbd   : > { %497 = vst [vmem:[%s6921_s26 + $0x5e8] sm:$0xff] %v496_v44  ;;  %v624_v44 = vld [vmem:[%s6916_s25 + $0x1030] sm:$0xff] }
  0xbe   : > { %499 = vst [vmem:[%s6921_s26 + $0x5f0] sm:$0xff] %v498_v45  ;;  %v626_v45 = vld [vmem:[%s6916_s25 + $0x1038] sm:$0xff] }
  0xbf   : > { %501 = vst [vmem:[%s6921_s26 + $0x5f8] sm:$0xff] %v500_v46  ;;  %v628_v46 = vld [vmem:[%s6916_s25 + $0x1040] sm:$0xff] }
  0xc0   : > { %503 = vst [vmem:[%s6921_s26 + $0x604] sm:$0xff] %v502_v47  ;;  %v630_v47 = vld [vmem:[%s6916_s25 + $0x1048] sm:$0xff] }
  0xc1   : > { %505 = vst [vmem:[%s6921_s26 + $0x60c] sm:$0xff] %v504_v48  ;;  %v632_v48 = vld [vmem:[%s6916_s25 + $0x1080] sm:$0xff] }
  0xc2   : > { %507 = vst [vmem:[%s6921_s26 + $0x614] sm:$0xff] %v506_v49  ;;  %v634_v49 = vld [vmem:[%s6916_s25 + $0x1088] sm:$0xff] }
  0xc3   : > { %509 = vst [vmem:[%s6921_s26 + $0x61c] sm:$0xff] %v508_v50  ;;  %v636_v50 = vld [vmem:[%s6916_s25 + $0x1090] sm:$0xff] }
  0xc4   : > { %511 = vst [vmem:[%s6921_s26 + $0x624] sm:$0xff] %v510_v51  ;;  %v638_v51 = vld [vmem:[%s6916_s25 + $0x1098] sm:$0xff] }
  0xc5   : > { %513 = vst [vmem:[%s6921_s26 + $0x630] sm:$0xff] %v512_v52  ;;  %v640_v52 = vld [vmem:[%s6916_s25 + $0x10a0] sm:$0xff] }
  0xc6   : > { %515 = vst [vmem:[%s6921_s26 + $0x638] sm:$0xff] %v514_v53  ;;  %v642_v53 = vld [vmem:[%s6916_s25 + $0x10d8] sm:$0xff] }
  0xc7   : > { %517 = vst [vmem:[%s6921_s26 + $0x640] sm:$0xff] %v516_v54  ;;  %v644_v54 = vld [vmem:[%s6916_s25 + $0x10e0] sm:$0xff] }
  0xc8   : > { %519 = vst [vmem:[%s6921_s26 + $0x648] sm:$0xff] %v518_v55  ;;  %v646_v55 = vld [vmem:[%s6916_s25 + $0x10e8] sm:$0xff] }
  0xc9   : > { %521 = vst [vmem:[%s6921_s26 + $0x650] sm:$0xff] %v520_v56  ;;  %v648_v56 = vld [vmem:[%s6916_s25 + $0x10f0] sm:$0xff] }
  0xca   : > { %523 = vst [vmem:[%s6921_s26 + $0x65c] sm:$0xff] %v522_v57  ;;  %v650_v57 = vld [vmem:[%s6916_s25 + $0x10f8] sm:$0xff] }
  0xcb   : > { %525 = vst [vmem:[%s6921_s26 + $0x664] sm:$0xff] %v524_v58  ;;  %v652_v58 = vld [vmem:[%s6916_s25 + $0x1130] sm:$0xff] }
  0xcc   : > { %527 = vst [vmem:[%s6921_s26 + $0x66c] sm:$0xff] %v526_v59  ;;  %v654_v59 = vld [vmem:[%s6916_s25 + $0x1138] sm:$0xff] }
  0xcd   : > { %529 = vst [vmem:[%s6921_s26 + $0x674] sm:$0xff] %v528_v60  ;;  %v656_v60 = vld [vmem:[%s6916_s25 + $0x1140] sm:$0xff] }
  0xce   : > { %531 = vst [vmem:[%s6921_s26 + $0x67c] sm:$0xff] %v530_v61  ;;  %v658_v61 = vld [vmem:[%s6916_s25 + $0x1148] sm:$0xff] }
  0xcf   : > { %533 = vst [vmem:[%s6921_s26 + $0x688] sm:$0xff] %v532_v62  ;;  %v660_v62 = vld [vmem:[%s6916_s25 + $0x1150] sm:$0xff] }
  0xd0   : > { %535 = vst [vmem:[%s6921_s26 + $0x690] sm:$0xff] %v534_v63  ;;  %v662_v63 = vld [vmem:[%s6916_s25 + $0x1188] sm:$0xff] }
  0xd1   : > { %537 = vst [vmem:[%s6921_s26 + $0x698] sm:$0xff] %v536_v0  ;;  %v664_v0 = vld [vmem:[%s6916_s25 + $0x1190] sm:$0xff] }
  0xd2   : > { %539 = vst [vmem:[%s6921_s26 + $0x6a0] sm:$0xff] %v538_v1  ;;  %v666_v1 = vld [vmem:[%s6916_s25 + $0x1198] sm:$0xff] }
  0xd3   : > { %541 = vst [vmem:[%s6921_s26 + $0x6a8] sm:$0xff] %v540_v2  ;;  %v668_v2 = vld [vmem:[%s6916_s25 + $0x11a0] sm:$0xff] }
  0xd4   : > { %543 = vst [vmem:[%s6921_s26 + $0x6b4] sm:$0xff] %v542_v3  ;;  %v670_v3 = vld [vmem:[%s6916_s25 + $0x11a8] sm:$0xff] }
  0xd5   : > { %545 = vst [vmem:[%s6921_s26 + $0x6bc] sm:$0xff] %v544_v4  ;;  %v672_v4 = vld [vmem:[%s6916_s25 + $0x11e0] sm:$0xff] }
  0xd6   : > { %547 = vst [vmem:[%s6921_s26 + $0x6c4] sm:$0xff] %v546_v5  ;;  %v674_v5 = vld [vmem:[%s6916_s25 + $0x11e8] sm:$0xff] }
  0xd7   : > { %549 = vst [vmem:[%s6921_s26 + $0x6cc] sm:$0xff] %v548_v6  ;;  %v676_v6 = vld [vmem:[%s6916_s25 + $0x11f0] sm:$0xff] }
  0xd8   : > { %551 = vst [vmem:[%s6921_s26 + $0x6d4] sm:$0xff] %v550_v7  ;;  %v678_v7 = vld [vmem:[%s6916_s25 + $0x11f8] sm:$0xff] }
  0xd9   : > { %553 = vst [vmem:[%s6921_s26 + $0x6e0] sm:$0xff] %v552_v8  ;;  %v680_v8 = vld [vmem:[%s6916_s25 + $0x1200] sm:$0xff] }
  0xda   : > { %555 = vst [vmem:[%s6921_s26 + $0x6e8] sm:$0xff] %v554_v9  ;;  %v682_v9 = vld [vmem:[%s6916_s25 + $0x1238] sm:$0xff] }
  0xdb   : > { %557 = vst [vmem:[%s6921_s26 + $0x6f0] sm:$0xff] %v556_v10  ;;  %v684_v10 = vld [vmem:[%s6916_s25 + $0x1240] sm:$0xff] }
  0xdc   : > { %559 = vst [vmem:[%s6921_s26 + $0x6f8] sm:$0xff] %v558_v11  ;;  %v686_v11 = vld [vmem:[%s6916_s25 + $0x1248] sm:$0xff] }
  0xdd   : > { %561 = vst [vmem:[%s6921_s26 + $0x700] sm:$0xff] %v560_v12  ;;  %v688_v12 = vld [vmem:[%s6916_s25 + $0x1250] sm:$0xff] }
  0xde   : > { %563 = vst [vmem:[%s6921_s26 + $0x70c] sm:$0xff] %v562_v13  ;;  %v690_v13 = vld [vmem:[%s6916_s25 + $0x1258] sm:$0xff] }
  0xdf   : > { %565 = vst [vmem:[%s6921_s26 + $0x714] sm:$0xff] %v564_v14  ;;  %v692_v14 = vld [vmem:[%s6916_s25 + $0x1290] sm:$0xff] }
  0xe0   : > { %567 = vst [vmem:[%s6921_s26 + $0x71c] sm:$0xff] %v566_v15  ;;  %v694_v15 = vld [vmem:[%s6916_s25 + $0x1298] sm:$0xff] }
  0xe1   : > { %569 = vst [vmem:[%s6921_s26 + $0x724] sm:$0xff] %v568_v16  ;;  %v696_v16 = vld [vmem:[%s6916_s25 + $0x12a0] sm:$0xff] }
  0xe2   : > { %571 = vst [vmem:[%s6921_s26 + $0x72c] sm:$0xff] %v570_v17  ;;  %v698_v17 = vld [vmem:[%s6916_s25 + $0x12a8] sm:$0xff] }
  0xe3   : > { %573 = vst [vmem:[%s6921_s26 + $0x738] sm:$0xff] %v572_v18  ;;  %v700_v18 = vld [vmem:[%s6916_s25 + $0x12b0] sm:$0xff] }
  0xe4   : > { %575 = vst [vmem:[%s6921_s26 + $0x740] sm:$0xff] %v574_v19  ;;  %v702_v19 = vld [vmem:[%s6916_s25 + $0x12e8] sm:$0xff] }
  0xe5   : > { %577 = vst [vmem:[%s6921_s26 + $0x748] sm:$0xff] %v576_v20  ;;  %v704_v20 = vld [vmem:[%s6916_s25 + $0x12f0] sm:$0xff] }
  0xe6   : > { %579 = vst [vmem:[%s6921_s26 + $0x750] sm:$0xff] %v578_v21  ;;  %v706_v21 = vld [vmem:[%s6916_s25 + $0x12f8] sm:$0xff] }
  0xe7   : > { %581 = vst [vmem:[%s6921_s26 + $0x758] sm:$0xff] %v580_v22  ;;  %v708_v22 = vld [vmem:[%s6916_s25 + $0x1300] sm:$0xff] }
  0xe8   : > { %583 = vst [vmem:[%s6921_s26 + $0x764] sm:$0xff] %v582_v23  ;;  %v710_v23 = vld [vmem:[%s6916_s25 + $0x1308] sm:$0xff] }
  0xe9   : > { %585 = vst [vmem:[%s6921_s26 + $0x76c] sm:$0xff] %v584_v24  ;;  %v712_v24 = vld [vmem:[%s6916_s25 + $0x1340] sm:$0xff] }
  0xea   : > { %587 = vst [vmem:[%s6921_s26 + $0x774] sm:$0xff] %v586_v25  ;;  %v714_v25 = vld [vmem:[%s6916_s25 + $0x1348] sm:$0xff] }
  0xeb   : > { %589 = vst [vmem:[%s6921_s26 + $0x77c] sm:$0xff] %v588_v26  ;;  %v716_v26 = vld [vmem:[%s6916_s25 + $0x1350] sm:$0xff] }
  0xec   : > { %591 = vst [vmem:[%s6921_s26 + $0x784] sm:$0xff] %v590_v27  ;;  %v718_v27 = vld [vmem:[%s6916_s25 + $0x1358] sm:$0xff] }
  0xed   : > { %593 = vst [vmem:[%s6921_s26 + $0x790] sm:$0xff] %v592_v28  ;;  %v720_v28 = vld [vmem:[%s6916_s25 + $0x1360] sm:$0xff] }
  0xee   : > { %595 = vst [vmem:[%s6921_s26 + $0x798] sm:$0xff] %v594_v29  ;;  %v722_v29 = vld [vmem:[%s6916_s25 + $0x1398] sm:$0xff] }
  0xef   : > { %597 = vst [vmem:[%s6921_s26 + $0x7a0] sm:$0xff] %v596_v30  ;;  %v724_v30 = vld [vmem:[%s6916_s25 + $0x13a0] sm:$0xff] }
  0xf0   : > { %599 = vst [vmem:[%s6921_s26 + $0x7a8] sm:$0xff] %v598_v31  ;;  %v726_v31 = vld [vmem:[%s6916_s25 + $0x13a8] sm:$0xff] }
  0xf1   : > { %601 = vst [vmem:[%s6921_s26 + $0x7b0] sm:$0xff] %v600_v32  ;;  %v728_v32 = vld [vmem:[%s6916_s25 + $0x13b0] sm:$0xff] }
  0xf2   : > { %603 = vst [vmem:[%s6921_s26 + $0x7bc] sm:$0xff] %v602_v33  ;;  %v730_v33 = vld [vmem:[%s6916_s25 + $0x13b8] sm:$0xff] }
  0xf3   : > { %605 = vst [vmem:[%s6921_s26 + $0x7c4] sm:$0xff] %v604_v34  ;;  %v732_v34 = vld [vmem:[%s6916_s25 + $0x13f0] sm:$0xff] }
  0xf4   : > { %607 = vst [vmem:[%s6921_s26 + $0x7cc] sm:$0xff] %v606_v35  ;;  %v734_v35 = vld [vmem:[%s6916_s25 + $0x13f8] sm:$0xff] }
  0xf5   : > { %609 = vst [vmem:[%s6921_s26 + $0x7d4] sm:$0xff] %v608_v36  ;;  %v736_v36 = vld [vmem:[%s6916_s25 + $0x1400] sm:$0xff] }
  0xf6   : > { %611 = vst [vmem:[%s6921_s26 + $0x7dc] sm:$0xff] %v610_v37  ;;  %v738_v37 = vld [vmem:[%s6916_s25 + $0x1408] sm:$0xff] }
  0xf7   : > { %613 = vst [vmem:[%s6921_s26 + $0x7e8] sm:$0xff] %v612_v38  ;;  %v740_v38 = vld [vmem:[%s6916_s25 + $0x1410] sm:$0xff] }
  0xf8   : > { %615 = vst [vmem:[%s6921_s26 + $0x7f0] sm:$0xff] %v614_v39  ;;  %v742_v39 = vld [vmem:[%s6916_s25 + $0x1448] sm:$0xff] }
  0xf9   : > { %617 = vst [vmem:[%s6921_s26 + $0x7f8] sm:$0xff] %v616_v40  ;;  %v744_v40 = vld [vmem:[%s6916_s25 + $0x1450] sm:$0xff] }
  0xfa   : > { %619 = vst [vmem:[%s6921_s26 + $0x800] sm:$0xff] %v618_v41  ;;  %v746_v41 = vld [vmem:[%s6916_s25 + $0x1458] sm:$0xff] }
  0xfb   : > { %621 = vst [vmem:[%s6921_s26 + $0x808] sm:$0xff] %v620_v42  ;;  %v748_v42 = vld [vmem:[%s6916_s25 + $0x1460] sm:$0xff] }
  0xfc   : > { %623 = vst [vmem:[%s6921_s26 + $0x814] sm:$0xff] %v622_v43  ;;  %v750_v43 = vld [vmem:[%s6916_s25 + $0x1468] sm:$0xff] }
  0xfd   : > { %625 = vst [vmem:[%s6921_s26 + $0x81c] sm:$0xff] %v624_v44  ;;  %v752_v44 = vld [vmem:[%s6916_s25 + $0x14a0] sm:$0xff] }
  0xfe   : > { %627 = vst [vmem:[%s6921_s26 + $0x824] sm:$0xff] %v626_v45  ;;  %v754_v45 = vld [vmem:[%s6916_s25 + $0x14a8] sm:$0xff] }
  0xff   : > { %629 = vst [vmem:[%s6921_s26 + $0x82c] sm:$0xff] %v628_v46  ;;  %v756_v46 = vld [vmem:[%s6916_s25 + $0x14b0] sm:$0xff] }
 0x100   : > { %631 = vst [vmem:[%s6921_s26 + $0x834] sm:$0xff] %v630_v47  ;;  %v758_v47 = vld [vmem:[%s6916_s25 + $0x14b8] sm:$0xff] }
 0x101   : > { %633 = vst [vmem:[%s6921_s26 + $0x840] sm:$0xff] %v632_v48  ;;  %v760_v48 = vld [vmem:[%s6916_s25 + $0x14c0] sm:$0xff] }
 0x102   : > { %635 = vst [vmem:[%s6921_s26 + $0x848] sm:$0xff] %v634_v49  ;;  %v762_v49 = vld [vmem:[%s6916_s25 + $0x14f8] sm:$0xff] }
 0x103   : > { %637 = vst [vmem:[%s6921_s26 + $0x850] sm:$0xff] %v636_v50  ;;  %v764_v50 = vld [vmem:[%s6916_s25 + $0x1500] sm:$0xff] }
 0x104   : > { %639 = vst [vmem:[%s6921_s26 + $0x858] sm:$0xff] %v638_v51  ;;  %v766_v51 = vld [vmem:[%s6916_s25 + $0x1508] sm:$0xff] }
 0x105   : > { %641 = vst [vmem:[%s6921_s26 + $0x860] sm:$0xff] %v640_v52  ;;  %v768_v52 = vld [vmem:[%s6916_s25 + $0x1510] sm:$0xff] }
 0x106   : > { %643 = vst [vmem:[%s6921_s26 + $0x86c] sm:$0xff] %v642_v53  ;;  %v770_v53 = vld [vmem:[%s6916_s25 + $0x1518] sm:$0xff] }
 0x107   : > { %645 = vst [vmem:[%s6921_s26 + $0x874] sm:$0xff] %v644_v54  ;;  %v772_v54 = vld [vmem:[%s6916_s25 + $0x1550] sm:$0xff] }
 0x108   : > { %647 = vst [vmem:[%s6921_s26 + $0x87c] sm:$0xff] %v646_v55  ;;  %v774_v55 = vld [vmem:[%s6916_s25 + $0x1558] sm:$0xff] }
 0x109   : > { %649 = vst [vmem:[%s6921_s26 + $0x884] sm:$0xff] %v648_v56  ;;  %v776_v56 = vld [vmem:[%s6916_s25 + $0x1560] sm:$0xff] }
 0x10a   : > { %651 = vst [vmem:[%s6921_s26 + $0x88c] sm:$0xff] %v650_v57  ;;  %v778_v57 = vld [vmem:[%s6916_s25 + $0x1568] sm:$0xff] }
 0x10b   : > { %653 = vst [vmem:[%s6921_s26 + $0x898] sm:$0xff] %v652_v58  ;;  %v780_v58 = vld [vmem:[%s6916_s25 + $0x1570] sm:$0xff] }
 0x10c   : > { %655 = vst [vmem:[%s6921_s26 + $0x8a0] sm:$0xff] %v654_v59  ;;  %v782_v59 = vld [vmem:[%s6916_s25 + $0x15a8] sm:$0xff] }
 0x10d   : > { %657 = vst [vmem:[%s6921_s26 + $0x8a8] sm:$0xff] %v656_v60  ;;  %v784_v60 = vld [vmem:[%s6916_s25 + $0x15b0] sm:$0xff] }
 0x10e   : > { %659 = vst [vmem:[%s6921_s26 + $0x8b0] sm:$0xff] %v658_v61  ;;  %v786_v61 = vld [vmem:[%s6916_s25 + $0x15b8] sm:$0xff] }
 0x10f   : > { %661 = vst [vmem:[%s6921_s26 + $0x8b8] sm:$0xff] %v660_v62  ;;  %v788_v62 = vld [vmem:[%s6916_s25 + $0x15c0] sm:$0xff] }
 0x110   : > { %663 = vst [vmem:[%s6921_s26 + $0x8c4] sm:$0xff] %v662_v63  ;;  %v790_v63 = vld [vmem:[%s6916_s25 + $0x15c8] sm:$0xff] }
 0x111   : > { %665 = vst [vmem:[%s6921_s26 + $0x8cc] sm:$0xff] %v664_v0  ;;  %v4489_v0 = vld [vmem:[%s6916_s25 + $0x28] sm:$0xf] }
 0x112   : > { %667 = vst [vmem:[%s6921_s26 + $0x8d4] sm:$0xff] %v666_v1  ;;  %v4491_v1 = vld [vmem:[%s6916_s25 + $0x80] sm:$0xf] }
 0x113   : > { %669 = vst [vmem:[%s6921_s26 + $0x8dc] sm:$0xff] %v668_v2  ;;  %v4493_v2 = vld [vmem:[%s6916_s25 + $0xd8] sm:$0xf] }
 0x114   : > { %671 = vst [vmem:[%s6921_s26 + $0x8e4] sm:$0xff] %v670_v3  ;;  %v4495_v3 = vld [vmem:[%s6916_s25 + $0x130] sm:$0xf] }
 0x115   : > { %673 = vst [vmem:[%s6921_s26 + $0x8f0] sm:$0xff] %v672_v4  ;;  %v4497_v4 = vld [vmem:[%s6916_s25 + $0x188] sm:$0xf] }
 0x116   : > { %675 = vst [vmem:[%s6921_s26 + $0x8f8] sm:$0xff] %v674_v5  ;;  %v4499_v5 = vld [vmem:[%s6916_s25 + $0x1e0] sm:$0xf] }
 0x117   : > { %677 = vst [vmem:[%s6921_s26 + $0x900] sm:$0xff] %v676_v6  ;;  %v4501_v6 = vld [vmem:[%s6916_s25 + $0x238] sm:$0xf] }
 0x118   : > { %679 = vst [vmem:[%s6921_s26 + $0x908] sm:$0xff] %v678_v7  ;;  %v4503_v7 = vld [vmem:[%s6916_s25 + $0x290] sm:$0xf] }
 0x119   : > { %681 = vst [vmem:[%s6921_s26 + $0x910] sm:$0xff] %v680_v8  ;;  %v4505_v8 = vld [vmem:[%s6916_s25 + $0x2e8] sm:$0xf] }
 0x11a   : > { %683 = vst [vmem:[%s6921_s26 + $0x91c] sm:$0xff] %v682_v9  ;;  %v4507_v9 = vld [vmem:[%s6916_s25 + $0x340] sm:$0xf] }
 0x11b   : > { %685 = vst [vmem:[%s6921_s26 + $0x924] sm:$0xff] %v684_v10  ;;  %v4509_v10 = vld [vmem:[%s6916_s25 + $0x398] sm:$0xf] }
 0x11c   : > { %687 = vst [vmem:[%s6921_s26 + $0x92c] sm:$0xff] %v686_v11  ;;  %v4511_v11 = vld [vmem:[%s6916_s25 + $0x3f0] sm:$0xf] }
 0x11d   : > { %689 = vst [vmem:[%s6921_s26 + $0x934] sm:$0xff] %v688_v12  ;;  %v4513_v12 = vld [vmem:[%s6916_s25 + $0x448] sm:$0xf] }
 0x11e   : > { %691 = vst [vmem:[%s6921_s26 + $0x93c] sm:$0xff] %v690_v13  ;;  %v4515_v13 = vld [vmem:[%s6916_s25 + $0x4a0] sm:$0xf] }
 0x11f   : > { %693 = vst [vmem:[%s6921_s26 + $0x948] sm:$0xff] %v692_v14  ;;  %v4517_v14 = vld [vmem:[%s6916_s25 + $0x4f8] sm:$0xf] }
 0x120   : > { %695 = vst [vmem:[%s6921_s26 + $0x950] sm:$0xff] %v694_v15  ;;  %v4519_v15 = vld [vmem:[%s6916_s25 + $0x550] sm:$0xf] }
 0x121   : > { %697 = vst [vmem:[%s6921_s26 + $0x958] sm:$0xff] %v696_v16  ;;  %v4521_v16 = vld [vmem:[%s6916_s25 + $0x5a8] sm:$0xf] }
 0x122   : > { %699 = vst [vmem:[%s6921_s26 + $0x960] sm:$0xff] %v698_v17  ;;  %v4523_v17 = vld [vmem:[%s6916_s25 + $0x600] sm:$0xf] }
 0x123   : > { %701 = vst [vmem:[%s6921_s26 + $0x968] sm:$0xff] %v700_v18  ;;  %v4525_v18 = vld [vmem:[%s6916_s25 + $0x658] sm:$0xf] }
 0x124   : > { %703 = vst [vmem:[%s6921_s26 + $0x974] sm:$0xff] %v702_v19  ;;  %v4527_v19 = vld [vmem:[%s6916_s25 + $0x6b0] sm:$0xf] }
 0x125   : > { %705 = vst [vmem:[%s6921_s26 + $0x97c] sm:$0xff] %v704_v20  ;;  %v4529_v20 = vld [vmem:[%s6916_s25 + $0x708] sm:$0xf] }
 0x126   : > { %707 = vst [vmem:[%s6921_s26 + $0x984] sm:$0xff] %v706_v21  ;;  %v4531_v21 = vld [vmem:[%s6916_s25 + $0x760] sm:$0xf] }
 0x127   : > { %709 = vst [vmem:[%s6921_s26 + $0x98c] sm:$0xff] %v708_v22  ;;  %v4533_v22 = vld [vmem:[%s6916_s25 + $0x7b8] sm:$0xf] }
 0x128   : > { %711 = vst [vmem:[%s6921_s26 + $0x994] sm:$0xff] %v710_v23  ;;  %v4535_v23 = vld [vmem:[%s6916_s25 + $0x810] sm:$0xf] }
 0x129   : > { %713 = vst [vmem:[%s6921_s26 + $0x9a0] sm:$0xff] %v712_v24  ;;  %v4537_v24 = vld [vmem:[%s6916_s25 + $0x868] sm:$0xf] }
 0x12a   : > { %715 = vst [vmem:[%s6921_s26 + $0x9a8] sm:$0xff] %v714_v25  ;;  %v4539_v25 = vld [vmem:[%s6916_s25 + $0x8c0] sm:$0xf] }
 0x12b   : > { %717 = vst [vmem:[%s6921_s26 + $0x9b0] sm:$0xff] %v716_v26  ;;  %v4541_v26 = vld [vmem:[%s6916_s25 + $0x918] sm:$0xf] }
 0x12c   : > { %719 = vst [vmem:[%s6921_s26 + $0x9b8] sm:$0xff] %v718_v27  ;;  %v4543_v27 = vld [vmem:[%s6916_s25 + $0x970] sm:$0xf] }
 0x12d   : > { %721 = vst [vmem:[%s6921_s26 + $0x9c0] sm:$0xff] %v720_v28  ;;  %v4545_v28 = vld [vmem:[%s6916_s25 + $0x9c8] sm:$0xf] }
 0x12e   : > { %723 = vst [vmem:[%s6921_s26 + $0x9cc] sm:$0xff] %v722_v29  ;;  %v4547_v29 = vld [vmem:[%s6916_s25 + $0xa20] sm:$0xf] }
 0x12f   : > { %725 = vst [vmem:[%s6921_s26 + $0x9d4] sm:$0xff] %v724_v30  ;;  %v4549_v30 = vld [vmem:[%s6916_s25 + $0xa78] sm:$0xf] }
 0x130   : > { %727 = vst [vmem:[%s6921_s26 + $0x9dc] sm:$0xff] %v726_v31  ;;  %v4551_v31 = vld [vmem:[%s6916_s25 + $0xad0] sm:$0xf] }
 0x131   : > { %729 = vst [vmem:[%s6921_s26 + $0x9e4] sm:$0xff] %v728_v32  ;;  %v4553_v32 = vld [vmem:[%s6916_s25 + $0xb28] sm:$0xf] }
 0x132   : > { %731 = vst [vmem:[%s6921_s26 + $0x9ec] sm:$0xff] %v730_v33  ;;  %v4555_v33 = vld [vmem:[%s6916_s25 + $0xb80] sm:$0xf] }
 0x133   : > { %733 = vst [vmem:[%s6921_s26 + $0x9f8] sm:$0xff] %v732_v34  ;;  %v4557_v34 = vld [vmem:[%s6916_s25 + $0xbd8] sm:$0xf] }
 0x134   : > { %735 = vst [vmem:[%s6921_s26 + $0xa00] sm:$0xff] %v734_v35  ;;  %v4559_v35 = vld [vmem:[%s6916_s25 + $0xc30] sm:$0xf] }
 0x135   : > { %737 = vst [vmem:[%s6921_s26 + $0xa08] sm:$0xff] %v736_v36  ;;  %v4561_v36 = vld [vmem:[%s6916_s25 + $0xc88] sm:$0xf] }
 0x136   : > { %739 = vst [vmem:[%s6921_s26 + $0xa10] sm:$0xff] %v738_v37  ;;  %v4563_v37 = vld [vmem:[%s6916_s25 + $0xce0] sm:$0xf] }
 0x137   : > { %741 = vst [vmem:[%s6921_s26 + $0xa18] sm:$0xff] %v740_v38  ;;  %v4565_v38 = vld [vmem:[%s6916_s25 + $0xd38] sm:$0xf] }
 0x138   : > { %743 = vst [vmem:[%s6921_s26 + $0xa24] sm:$0xff] %v742_v39  ;;  %v4567_v39 = vld [vmem:[%s6916_s25 + $0xd90] sm:$0xf] }
 0x139   : > { %745 = vst [vmem:[%s6921_s26 + $0xa2c] sm:$0xff] %v744_v40  ;;  %v4569_v40 = vld [vmem:[%s6916_s25 + $0xde8] sm:$0xf] }
 0x13a   : > { %747 = vst [vmem:[%s6921_s26 + $0xa34] sm:$0xff] %v746_v41  ;;  %v4571_v41 = vld [vmem:[%s6916_s25 + $0xe40] sm:$0xf] }
 0x13b   : > { %749 = vst [vmem:[%s6921_s26 + $0xa3c] sm:$0xff] %v748_v42  ;;  %v4573_v42 = vld [vmem:[%s6916_s25 + $0xe98] sm:$0xf] }
 0x13c   : > { %751 = vst [vmem:[%s6921_s26 + $0xa44] sm:$0xff] %v750_v43  ;;  %v4575_v43 = vld [vmem:[%s6916_s25 + $0xef0] sm:$0xf] }
 0x13d   : > { %753 = vst [vmem:[%s6921_s26 + $0xa50] sm:$0xff] %v752_v44  ;;  %v4577_v44 = vld [vmem:[%s6916_s25 + $0xf48] sm:$0xf] }
 0x13e   : > { %755 = vst [vmem:[%s6921_s26 + $0xa58] sm:$0xff] %v754_v45  ;;  %v4579_v45 = vld [vmem:[%s6916_s25 + $0xfa0] sm:$0xf] }
 0x13f   : > { %757 = vst [vmem:[%s6921_s26 + $0xa60] sm:$0xff] %v756_v46  ;;  %v4581_v46 = vld [vmem:[%s6916_s25 + $0xff8] sm:$0xf] }
 0x140   : > { %759 = vst [vmem:[%s6921_s26 + $0xa68] sm:$0xff] %v758_v47  ;;  %v4583_v47 = vld [vmem:[%s6916_s25 + $0x1050] sm:$0xf] }
 0x141   : > { %761 = vst [vmem:[%s6921_s26 + $0xa70] sm:$0xff] %v760_v48  ;;  %v4585_v48 = vld [vmem:[%s6916_s25 + $0x10a8] sm:$0xf] }
 0x142   : > { %763 = vst [vmem:[%s6921_s26 + $0xa7c] sm:$0xff] %v762_v49  ;;  %v4587_v49 = vld [vmem:[%s6916_s25 + $0x1100] sm:$0xf] }
 0x143   : > { %765 = vst [vmem:[%s6921_s26 + $0xa84] sm:$0xff] %v764_v50  ;;  %v4589_v50 = vld [vmem:[%s6916_s25 + $0x1158] sm:$0xf] }
 0x144   : > { %767 = vst [vmem:[%s6921_s26 + $0xa8c] sm:$0xff] %v766_v51  ;;  %v4591_v51 = vld [vmem:[%s6916_s25 + $0x11b0] sm:$0xf] }
 0x145   : > { %769 = vst [vmem:[%s6921_s26 + $0xa94] sm:$0xff] %v768_v52  ;;  %v4593_v52 = vld [vmem:[%s6916_s25 + $0x1208] sm:$0xf] }
 0x146   : > { %771 = vst [vmem:[%s6921_s26 + $0xa9c] sm:$0xff] %v770_v53  ;;  %v4595_v53 = vld [vmem:[%s6916_s25 + $0x1260] sm:$0xf] }
 0x147   : > { %773 = vst [vmem:[%s6921_s26 + $0xaa8] sm:$0xff] %v772_v54  ;;  %v4597_v54 = vld [vmem:[%s6916_s25 + $0x12b8] sm:$0xf] }
 0x148   : > { %775 = vst [vmem:[%s6921_s26 + $0xab0] sm:$0xff] %v774_v55  ;;  %v4599_v55 = vld [vmem:[%s6916_s25 + $0x1310] sm:$0xf] }
 0x149   : > { %777 = vst [vmem:[%s6921_s26 + $0xab8] sm:$0xff] %v776_v56  ;;  %v4601_v56 = vld [vmem:[%s6916_s25 + $0x1368] sm:$0xf] }
 0x14a   : > { %779 = vst [vmem:[%s6921_s26 + $0xac0] sm:$0xff] %v778_v57  ;;  %v4603_v57 = vld [vmem:[%s6916_s25 + $0x13c0] sm:$0xf] }
 0x14b   : > { %781 = vst [vmem:[%s6921_s26 + $0xac8] sm:$0xff] %v780_v58  ;;  %v4605_v58 = vld [vmem:[%s6916_s25 + $0x1418] sm:$0xf] }
 0x14c   : > { %783 = vst [vmem:[%s6921_s26 + $0xad4] sm:$0xff] %v782_v59  ;;  %v4607_v59 = vld [vmem:[%s6916_s25 + $0x1470] sm:$0xf] }
 0x14d   : > { %785 = vst [vmem:[%s6921_s26 + $0xadc] sm:$0xff] %v784_v60  ;;  %v4609_v60 = vld [vmem:[%s6916_s25 + $0x14c8] sm:$0xf] }
 0x14e   : > { %787 = vst [vmem:[%s6921_s26 + $0xae4] sm:$0xff] %v786_v61  ;;  %v4611_v61 = vld [vmem:[%s6916_s25 + $0x1520] sm:$0xf] }
 0x14f   : > { %789 = vst [vmem:[%s6921_s26 + $0xaec] sm:$0xff] %v788_v62  ;;  %v4613_v62 = vld [vmem:[%s6916_s25 + $0x1578] sm:$0xf] }
 0x150   : > { %791 = vst [vmem:[%s6921_s26 + $0xaf4] sm:$0xff] %v790_v63  ;;  %v4615_v63 = vld [vmem:[%s6916_s25 + $0x15d0] sm:$0xf] }
 0x151   : > { %4490 = vst [vmem:[%s6921_s26 + $0x28] sm:$0xf] %v4489_v0 }
 0x152   : > { %4492 = vst [vmem:[%s6921_s26 + $0x54] sm:$0xf] %v4491_v1 }
 0x153   : > { %4494 = vst [vmem:[%s6921_s26 + $0x80] sm:$0xf] %v4493_v2 }
 0x154   : > { %4496 = vst [vmem:[%s6921_s26 + $0xac] sm:$0xf] %v4495_v3 }
 0x155   : > { %4498 = vst [vmem:[%s6921_s26 + $0xd8] sm:$0xf] %v4497_v4 }
 0x156   : > { %4500 = vst [vmem:[%s6921_s26 + $0x104] sm:$0xf] %v4499_v5 }
 0x157   : > { %4502 = vst [vmem:[%s6921_s26 + $0x130] sm:$0xf] %v4501_v6 }
 0x158   : > { %4504 = vst [vmem:[%s6921_s26 + $0x15c] sm:$0xf] %v4503_v7 }
 0x159   : > { %4506 = vst [vmem:[%s6921_s26 + $0x188] sm:$0xf] %v4505_v8 }
 0x15a   : > { %4508 = vst [vmem:[%s6921_s26 + $0x1b4] sm:$0xf] %v4507_v9 }
 0x15b   : > { %4510 = vst [vmem:[%s6921_s26 + $0x1e0] sm:$0xf] %v4509_v10 }
 0x15c   : > { %4512 = vst [vmem:[%s6921_s26 + $0x20c] sm:$0xf] %v4511_v11 }
 0x15d   : > { %4514 = vst [vmem:[%s6921_s26 + $0x238] sm:$0xf] %v4513_v12 }
 0x15e   : > { %4516 = vst [vmem:[%s6921_s26 + $0x264] sm:$0xf] %v4515_v13 }
 0x15f   : > { %4518 = vst [vmem:[%s6921_s26 + $0x290] sm:$0xf] %v4517_v14 }
 0x160   : > { %4520 = vst [vmem:[%s6921_s26 + $0x2bc] sm:$0xf] %v4519_v15 }
 0x161   : > { %4522 = vst [vmem:[%s6921_s26 + $0x2e8] sm:$0xf] %v4521_v16 }
 0x162   : > { %4524 = vst [vmem:[%s6921_s26 + $0x314] sm:$0xf] %v4523_v17 }
 0x163   : > { %4526 = vst [vmem:[%s6921_s26 + $0x340] sm:$0xf] %v4525_v18 }
 0x164   : > { %4528 = vst [vmem:[%s6921_s26 + $0x36c] sm:$0xf] %v4527_v19 }
 0x165   : > { %4530 = vst [vmem:[%s6921_s26 + $0x398] sm:$0xf] %v4529_v20 }
 0x166   : > { %4532 = vst [vmem:[%s6921_s26 + $0x3c4] sm:$0xf] %v4531_v21 }
 0x167   : > { %4534 = vst [vmem:[%s6921_s26 + $0x3f0] sm:$0xf] %v4533_v22 }
 0x168   : > { %4536 = vst [vmem:[%s6921_s26 + $0x41c] sm:$0xf] %v4535_v23 }
 0x169   : > { %4538 = vst [vmem:[%s6921_s26 + $0x448] sm:$0xf] %v4537_v24 }
 0x16a   : > { %4540 = vst [vmem:[%s6921_s26 + $0x474] sm:$0xf] %v4539_v25 }
 0x16b   : > { %4542 = vst [vmem:[%s6921_s26 + $0x4a0] sm:$0xf] %v4541_v26 }
 0x16c   : > { %4544 = vst [vmem:[%s6921_s26 + $0x4cc] sm:$0xf] %v4543_v27 }
 0x16d   : > { %4546 = vst [vmem:[%s6921_s26 + $0x4f8] sm:$0xf] %v4545_v28 }
 0x16e   : > { %4548 = vst [vmem:[%s6921_s26 + $0x524] sm:$0xf] %v4547_v29 }
 0x16f   : > { %4550 = vst [vmem:[%s6921_s26 + $0x550] sm:$0xf] %v4549_v30 }
 0x170   : > { %4552 = vst [vmem:[%s6921_s26 + $0x57c] sm:$0xf] %v4551_v31 }
 0x171   : > { %4554 = vst [vmem:[%s6921_s26 + $0x5a8] sm:$0xf] %v4553_v32 }
 0x172   : > { %4556 = vst [vmem:[%s6921_s26 + $0x5d4] sm:$0xf] %v4555_v33 }
 0x173   : > { %4558 = vst [vmem:[%s6921_s26 + $0x600] sm:$0xf] %v4557_v34 }
 0x174   : > { %4560 = vst [vmem:[%s6921_s26 + $0x62c] sm:$0xf] %v4559_v35 }
 0x175   : > { %4562 = vst [vmem:[%s6921_s26 + $0x658] sm:$0xf] %v4561_v36 }
 0x176   : > { %4564 = vst [vmem:[%s6921_s26 + $0x684] sm:$0xf] %v4563_v37 }
 0x177   : > { %4566 = vst [vmem:[%s6921_s26 + $0x6b0] sm:$0xf] %v4565_v38 }
 0x178   : > { %4568 = vst [vmem:[%s6921_s26 + $0x6dc] sm:$0xf] %v4567_v39 }
 0x179   : > { %4570 = vst [vmem:[%s6921_s26 + $0x708] sm:$0xf] %v4569_v40 }
 0x17a   : > { %4572 = vst [vmem:[%s6921_s26 + $0x734] sm:$0xf] %v4571_v41 }
 0x17b   : > { %4574 = vst [vmem:[%s6921_s26 + $0x760] sm:$0xf] %v4573_v42 }
 0x17c   : > { %4576 = vst [vmem:[%s6921_s26 + $0x78c] sm:$0xf] %v4575_v43 }
 0x17d   : > { %4578 = vst [vmem:[%s6921_s26 + $0x7b8] sm:$0xf] %v4577_v44 }
 0x17e   : > { %4580 = vst [vmem:[%s6921_s26 + $0x7e4] sm:$0xf] %v4579_v45 }
 0x17f   : > { %4582 = vst [vmem:[%s6921_s26 + $0x810] sm:$0xf] %v4581_v46 }
 0x180   : > { %4584 = vst [vmem:[%s6921_s26 + $0x83c] sm:$0xf] %v4583_v47 }
 0x181   : > { %4586 = vst [vmem:[%s6921_s26 + $0x868] sm:$0xf] %v4585_v48 }
 0x182   : > { %4588 = vst [vmem:[%s6921_s26 + $0x894] sm:$0xf] %v4587_v49 }
 0x183   : > { %4590 = vst [vmem:[%s6921_s26 + $0x8c0] sm:$0xf] %v4589_v50 }
 0x184   : > { %4592 = vst [vmem:[%s6921_s26 + $0x8ec] sm:$0xf] %v4591_v51 }
 0x185   : > { %4594 = vst [vmem:[%s6921_s26 + $0x918] sm:$0xf] %v4593_v52 }
 0x186   : > { %4596 = vst [vmem:[%s6921_s26 + $0x944] sm:$0xf] %v4595_v53 }
 0x187   : > { %4598 = vst [vmem:[%s6921_s26 + $0x970] sm:$0xf] %v4597_v54 }
 0x188   : > { %4600 = vst [vmem:[%s6921_s26 + $0x99c] sm:$0xf] %v4599_v55 }
 0x189   : > { %4602 = vst [vmem:[%s6921_s26 + $0x9c8] sm:$0xf] %v4601_v56 }
 0x18a   : > { %4604 = vst [vmem:[%s6921_s26 + $0x9f4] sm:$0xf] %v4603_v57 }
 0x18b   : > { %4606 = vst [vmem:[%s6921_s26 + $0xa20] sm:$0xf] %v4605_v58 }
 0x18c   : > { %4608 = vst [vmem:[%s6921_s26 + $0xa4c] sm:$0xf] %v4607_v59 }
 0x18d   : > { %4610 = vst [vmem:[%s6921_s26 + $0xa78] sm:$0xf] %v4609_v60 }
 0x18e   : > { %4612 = vst [vmem:[%s6921_s26 + $0xaa4] sm:$0xf] %v4611_v61 }
 0x18f   : > { %4614 = vst [vmem:[%s6921_s26 + $0xad0] sm:$0xf] %v4613_v62 }
 0x190   : > { %4616 = vst [vmem:[%s6921_s26 + $0xafc] sm:$0xf] %v4615_v63 }
 0x191 PF: > { %p4617_p5 = scmp.ge.s32.totalorder %s6859_s14, 1  ;;  %p932_p6 = scmp.lt.s32.totalorder %s6859_s14, 3 }
 0x193   : > { %p933_p7 = pnand %p4617_p5, %p932_p6 }
 0x194   : > { %s939_s27 = sand.u32 (!%p933_p7), 1, %s6851_s12   ;;  %s963_s17 = smul.u32 (!%p933_p7), 11, %s4484_s15 }
 0x195   : > { %936 = sbr.rel (%p933_p7) target bundleno = 913 (0x391), region = 54 }
 0x196   : > { %s6807_s28 = smul.u32 (!%p933_p7), 2816, %s939_s27  ;;  %p964_p8 = scmp.lt.s32.totalorder (!%p933_p7), %s963_s17, 21 }
 0x198   : > { %s7691_s29 = scalar_lea.vmem (!%p933_p7), [#allocation2], %s6807_s28 }
 0x19a   : > { %v4753_v0 = vld [vmem:[%s7691_s29 + $0x108] sm:$0xf]  ;;  %v6492_v1 = vld [vmem:[%s7691_s29 + $0x130] sm:$0xf0]  ;;  %v6487_v2 = vld [vmem:[%s7691_s29 + $0x10c] sm:$0xf] }
 0x19b   : > { %v4754_v3 = vor.u32 %v6492_v1, %v4753_v0  ;;  %v4755_v4 = vld [vmem:[%s7691_s29 + $0x134] sm:$0xf0]  ;;  %v4761_v5 = vld [vmem:[%s7691_s29 + $0x110] sm:$0xf]  ;;  %v6493_v6 = vld [vmem:[%s7691_s29 + $0x138] sm:$0xf0] }
 0x19c   : > { %v4758_v7 = vor.u32 %v6487_v2, %v4755_v4  ;;  %v4762_v8 = vor.u32 %v6493_v6, %v4761_v5  ;;  %v6488_v9 = vld [vmem:[%s7691_s29 + $0x114] sm:$0xf]  ;;  %v4763_v10 = vld [vmem:[%s7691_s29 + $0x13c] sm:$0xf0]  ;;  %v4709_v11 = vld [vmem:[%s7691_s29 + $0xb0] sm:$0xf] }
 0x19d   : > { %1251 = vmatpush.bf16.msra.mxu0 %v4754_v3  ;;  %v4766_v12 = vor.u32 %v6488_v9, %v4763_v10  ;;  %v6481_v13 = vld [vmem:[%s7691_s29 + $0xd8] sm:$0xf0]  ;;  %v6476_v14 = vld [vmem:[%s7691_s29 + $0xb4] sm:$0xf]  ;;  %v4711_v15 = vld [vmem:[%s7691_s29 + $0xdc] sm:$0xf0] }
 0x19e   : > { %1264 = vmatpush.bf16.msra.mxu1 %v4758_v7  ;;  %1277 = vmatpush.bf16.msra.mxu2 %v4762_v8  ;;  %v4710_v16 = vor.u32 %v6481_v13, %v4709_v11  ;;  %v4714_v17 = vor.u32 %v6476_v14, %v4711_v15  ;;  %v4717_v18 = vld [vmem:[%s7691_s29 + $0xb8] sm:$0xf]  ;;  %v6482_v19 = vld [vmem:[%s7691_s29 + $0xe0] sm:$0xf0]  ;;  %v6477_v20 = vld [vmem:[%s7691_s29 + $0xbc] sm:$0xf] }
 0x19f   : > { %1290 = vmatpush.bf16.msra.mxu3 %v4766_v12  ;;  %v4718_v21 = vor.u32 %v6482_v19, %v4717_v18  ;;  %v4719_v22 = vld [vmem:[%s7691_s29 + $0xe4] sm:$0xf0]  ;;  %v4665_v23 = vld [vmem:[%s7691_s29 + $0x58] sm:$0xf]  ;;  %v6470_v24 = vld [vmem:[%s7691_s29 + $0x80] sm:$0xf0] }
 0x1a0   : > { %v4722_v25 = vor.u32 %v6477_v20, %v4719_v22  ;;  %v6465_v26 = vld [vmem:[%s7691_s29 + $0x5c] sm:$0xf]  ;;  %v4667_v27 = vld [vmem:[%s7691_s29 + $0x84] sm:$0xf0]  ;;  %v4673_v28 = vld [vmem:[%s7691_s29 + $0x60] sm:$0xf]  ;;  %v4666_v29 = vor.u32 %v6470_v24, %v4665_v23 }
 0x1a1   : > { %1252 = vmatpush.bf16.msra.mxu0 %v4710_v16  ;;  %v6471_v30 = vld [vmem:[%s7691_s29 + $0x88] sm:$0xf0]  ;;  %v6466_v31 = vld [vmem:[%s7691_s29 + $0x64] sm:$0xf]  ;;  %v4675_v32 = vld [vmem:[%s7691_s29 + $0x8c] sm:$0xf0]  ;;  %v4670_v33 = vor.u32 %v6465_v26, %v4667_v27 }
 0x1a2   : > { %1265 = vmatpush.bf16.msra.mxu1 %v4714_v17  ;;  %1278 = vmatpush.bf16.msra.mxu2 %v4718_v21  ;;  %v4674_v34 = vor.u32 %v6471_v30, %v4673_v28  ;;  %v4621_v35 = vld [vmem:[%s7691_s29] sm:$0xf]  ;;  %v6459_v36 = vld [vmem:[%s7691_s29 + $0x28] sm:$0xf0]  ;;  %v6454_v37 = vld [vmem:[%s7691_s29 + $0x4] sm:$0xf]  ;;  %v4678_v38 = vor.u32 %v6466_v31, %v4675_v32 }
 0x1a3   : > { %1291 = vmatpush.bf16.msra.mxu3 %v4722_v25  ;;  %v4623_v39 = vld [vmem:[%s7691_s29 + $0x2c] sm:$0xf0]  ;;  %v4629_v40 = vld [vmem:[%s7691_s29 + $0x8] sm:$0xf]  ;;  %v6460_v41 = vld [vmem:[%s7691_s29 + $0x30] sm:$0xf0]  ;;  %v4622_v45 = vor.u32 %v6459_v36, %v4621_v35 }
 0x1a4   : > { %v6455_v42 = vld [vmem:[%s7691_s29 + $0xc] sm:$0xf]  ;;  %v4631_v43 = vld [vmem:[%s7691_s29 + $0x34] sm:$0xf0]  ;;  %v4777_v44 = vld [vmem:[%s7691_s29 + $0x120] sm:$0xf]  ;;  %v4626_v49 = vor.u32 %v6454_v37, %v4623_v39  ;;  %v4630_v50 = vor.u32 %v6460_v41, %v4629_v40 }
 0x1a5   : > { %1253 = vmatpush.bf16.msra.mxu0 %v4666_v29  ;;  %v6495_v46 = vld [vmem:[%s7691_s29 + $0x148] sm:$0xf0]  ;;  %v6490_v47 = vld [vmem:[%s7691_s29 + $0x124] sm:$0xf]  ;;  %v4779_v48 = vld [vmem:[%s7691_s29 + $0x14c] sm:$0xf0]  ;;  %v4634_v51 = vor.u32 %v6455_v42, %v4631_v43 }
 0x1a6   : > { %1266 = vmatpush.bf16.msra.mxu1 %v4670_v33  ;;  %1279 = vmatpush.bf16.msra.mxu2 %v4674_v34  ;;  %v7732_v52 = vld [vmem:[%s8923_s1] sm:$0xf]  ;;  %v4778_v53 = vor.u32 %v6495_v46, %v4777_v44  ;;  %v4769_v54 = vld [vmem:[%s7691_s29 + $0x118] sm:$0xf]  ;;  %v6494_v55 = vld [vmem:[%s7691_s29 + $0x140] sm:$0xf0]  ;;  %v4782_v57 = vor.u32 %v6490_v47, %v4779_v48 }
 0x1a7   : > { %1292 = vmatpush.bf16.msra.mxu3 %v4678_v38  ;;  %v6489_v56 = vld [vmem:[%s7691_s29 + $0x11c] sm:$0xf]  ;;  %v4771_v58 = vld [vmem:[%s7691_s29 + $0x144] sm:$0xf0]  ;;  %v6484_v60 = vld [vmem:[%s7691_s29 + $0xf0] sm:$0xf0]  ;;  %v4770_v63 = vor.u32 %v6494_v55, %v4769_v54 }
 0x1a8   : > { %v4733_v59 = vld [vmem:[%s7691_s29 + $0xc8] sm:$0xf]  ;;  %vm1243_vm0 = vcmask 523264   ;;  %v6479_v61 = vld [vmem:[%s7691_s29 + $0xcc] sm:$0xf]  ;;  %v4774_v0 = vor.u32 %v6489_v56, %v4771_v58  ;;  %s8930_s17 = smov (!%p964_p8, %s963_s17), 21 }
 0x1a9   : > { %1254 = vmatpush.bf16.msra.mxu0 %v4622_v45  ;;  %v4735_v62 = vld [vmem:[%s7691_s29 + $0xf4] sm:$0xf0]  ;;  %v4734_v1 = vor.u32 %v6484_v60, %v4733_v59  ;;  %v4725_v2 = vld [vmem:[%s7691_s29 + $0xc0] sm:$0xf]  ;;  %v6483_v3 = vld [vmem:[%s7691_s29 + $0xe8] sm:$0xf0] }
 0x1aa   : > { %1267 = vmatpush.bf16.msra.mxu1 %v4626_v49  ;;  %1280 = vmatpush.bf16.msra.mxu2 %v4630_v50  ;;  %v6478_v4 = vld [vmem:[%s7691_s29 + $0xc4] sm:$0xf]  ;;  %v4738_v5 = vor.u32 %v6479_v61, %v4735_v62  ;;  %v4727_v6 = vld [vmem:[%s7691_s29 + $0xec] sm:$0xf0]  ;;  %v6473_v8 = vld [vmem:[%s7691_s29 + $0x98] sm:$0xf0]  ;;  %v4726_v11 = vor.u32 %v6483_v3, %v4725_v2 }
 0x1ab   : > { %1293 = vmatpush.bf16.msra.mxu3 %v4634_v51  ;;  %v4689_v7 = vld [vmem:[%s7691_s29 + $0x70] sm:$0xf]  ;;  %v6468_v9 = vld [vmem:[%s7691_s29 + $0x74] sm:$0xf]  ;;  %v4691_v10 = vld [vmem:[%s7691_s29 + $0x9c] sm:$0xf0]  ;;  %v4730_v13 = vor.u32 %v6478_v4, %v4727_v6 }
 0x1ac   : > { %4795 = vmatmul.msk.bf16.vlgmr.msra.gmra.mxu0 %vm1243_vm0, %v7732_v52  ;;  %v4681_v12 = vld [vmem:[%s7691_s29 + $0x68] sm:$0xf]  ;;  %v4690_v14 = vor.u32 %v6473_v8, %v4689_v7  ;;  %v6472_v15 = vld [vmem:[%s7691_s29 + $0x90] sm:$0xf0]  ;;  %v6467_v16 = vld [vmem:[%s7691_s29 + $0x6c] sm:$0xf]  ;;  %v4694_v18 = vor.u32 %v6468_v9, %v4691_v10 }
 0x1ad   : > { %4796 = vmatmul.msk.bf16.vlgmr.msra.gmra.mxu1 %vm1243_vm0, %v7732_v52  ;;  %4797 = vmatmul.msk.bf16.vlgmr.msra.gmra.mxu2 %vm1243_vm0, %v7732_v52  ;;  %v4683_v17 = vld [vmem:[%s7691_s29 + $0x94] sm:$0xf0]  ;;  %v6462_v20 = vld [vmem:[%s7691_s29 + $0x40] sm:$0xf0]  ;;  %v6457_v21 = vld [vmem:[%s7691_s29 + $0x1c] sm:$0xf]  ;;  %v4682_v25 = vor.u32 %v6472_v15, %v4681_v12 }
 0x1ae   : > { %1329 = vmatpush.bf16.msrb.mxu2 %v4778_v53  ;;  %4798 = vmatmul.msk.bf16.vlgmr.msra.gmra.mxu3 %vm1243_vm0, %v7732_v52  ;;  %v4645_v19 = vld [vmem:[%s7691_s29 + $0x18] sm:$0xf]  ;;  %v4647_v22 = vld [vmem:[%s7691_s29 + $0x44] sm:$0xf0]  ;;  %v4793_v23 = vld [vmem:[%s7691_s29 + $0x130] sm:$0xf]  ;;  %v4686_v29 = vor.u32 %v6467_v16, %v4683_v17 }
 0x1af   : > { %1342 = vmatpush.bf16.msrb.mxu3 %v4782_v57  ;;  %1303 = vmatpush.bf16.msrb.mxu0 %v4770_v63  ;;  %v6497_v24 = vld [vmem:[%s7691_s29 + $0x158] sm:$0xf0]  ;;  %v4637_v26 = vld [vmem:[%s7691_s29 + $0x10] sm:$0xf]  ;;  %v4988_v27 = vld [vmem:[%s7691_s29 + $0x268] sm:$0xf]  ;;  %v4646_v30 = vor.u32 %v6462_v20, %v4645_v19  ;;  %v4650_v34 = vor.u32 %v6457_v21, %v4647_v22 }
 0x1b0   : > { %1316 = vmatpush.bf16.msrb.mxu1 %v4774_v0  ;;  %v6536_v28 = vld [vmem:[%s7691_s29 + $0x290] sm:$0xf0]  ;;  %v6461_v31 = vld [vmem:[%s7691_s29 + $0x38] sm:$0xf0]  ;;  %v4639_v33 = vld [vmem:[%s7691_s29 + $0x3c] sm:$0xf0]  ;;  %v4794_v35 = vor.u32 %v6497_v24, %v4793_v23 }
 0x1b1   : > { %v6456_v32 = vld [vmem:[%s7691_s29 + $0x14] sm:$0xf]  ;;  %v4785_v36 = vld [vmem:[%s7691_s29 + $0x128] sm:$0xf]  ;;  %v6491_v38 = vld [vmem:[%s7691_s29 + $0x12c] sm:$0xf]  ;;  %v4989_v39 = vor.u32 %v6536_v28, %v4988_v27  ;;  %v4638_v43 = vor.u32 %v6461_v31, %v4637_v26 }
 0x1b2   : > { %1330 = vmatpush.bf16.msrb.mxu2 %v4734_v1  ;;  %v6496_v37 = vld [vmem:[%s7691_s29 + $0x150] sm:$0xf0]  ;;  %v4787_v40 = vld [vmem:[%s7691_s29 + $0x154] sm:$0xf0]  ;;  %v6486_v42 = vld [vmem:[%s7691_s29 + $0x100] sm:$0xf0]  ;;  %v4642_v44 = vor.u32 %v6456_v32, %v4639_v33 }
 0x1b3   : > { %1343 = vmatpush.bf16.msrb.mxu3 %v4738_v5  ;;  %1304 = vmatpush.bf16.msrb.mxu0 %v4726_v11  ;;  %v4749_v41 = vld [vmem:[%s7691_s29 + $0xd8] sm:$0xf]  ;;  %v4786_v45 = vor.u32 %v6496_v37, %v4785_v36  ;;  %v4944_v46 = vld [vmem:[%s7691_s29 + $0x210] sm:$0xf]  ;;  %v6525_v47 = vld [vmem:[%s7691_s29 + $0x238] sm:$0xf0]  ;;  %v4790_v48 = vor.u32 %v6491_v38, %v4787_v40 }
 0x1b4   : > { %1317 = vmatpush.bf16.msrb.mxu1 %v4730_v13  ;;  %v4750_v49 = vor.u32 %v6486_v42, %v4749_v41  ;;  %v4741_v50 = vld [vmem:[%s7691_s29 + $0xd0] sm:$0xf]  ;;  %v6485_v51 = vld [vmem:[%s7691_s29 + $0xf8] sm:$0xf0]  ;;  %v6480_v53 = vld [vmem:[%s7691_s29 + $0xd4] sm:$0xf]  ;;  %v4945_v57 = vor.u32 %v6525_v47, %v4944_v46 }
 0x1b5   : > { %v4743_v54 = vld [vmem:[%s7691_s29 + $0xfc] sm:$0xf0]  ;;  %v6475_v56 = vld [vmem:[%s7691_s29 + $0xa8] sm:$0xf0]  ;;  %v4742_v58 = vor.u32 %v6485_v51, %v4741_v50  ;;  %v4900_v59 = vld [vmem:[%s7691_s29 + $0x1b8] sm:$0xf] }
 0x1b6   : > { %1331 = vmatpush.bf16.msrb.mxu2 %v4690_v14  ;;  %v4705_v55 = vld [vmem:[%s7691_s29 + $0x80] sm:$0xf]  ;;  %v6514_v60 = vld [vmem:[%s7691_s29 + $0x1e0] sm:$0xf0]  ;;  %v4746_v61 = vor.u32 %v6480_v53, %v4743_v54  ;;  %v4697_v63 = vld [vmem:[%s7691_s29 + $0x78] sm:$0xf] }
 0x1b7   : > { %1344 = vmatpush.bf16.msrb.mxu3 %v4694_v18  ;;  %1305 = vmatpush.bf16.msrb.mxu0 %v4682_v25  ;;  %v4706_v62 = vor.u32 %v6475_v56, %v4705_v55  ;;  %v6474_v0 = vld [vmem:[%s7691_s29 + $0xa0] sm:$0xf0]  ;;  %v6469_v1 = vld [vmem:[%s7691_s29 + $0x7c] sm:$0xf]  ;;  %v4699_v2 = vld [vmem:[%s7691_s29 + $0xa4] sm:$0xf0]  ;;  %v4901_v7 = vor.u32 %v6514_v60, %v4900_v59 }
 0x1b8   : > { %1318 = vmatpush.bf16.msrb.mxu1 %v4686_v29  ;;  %v4661_v3 = vld [vmem:[%s7691_s29 + $0x28] sm:$0xf]  ;;  %v6464_v4 = vld [vmem:[%s7691_s29 + $0x50] sm:$0xf0]  ;;  %v4998_v6 = vld [vmem:[%s7691_s29 + $0x29c] sm:$0xf0]  ;;  %v4698_v8 = vor.u32 %v6474_v0, %v4697_v63  ;;  %v4702_v12 = vor.u32 %v6469_v1, %v4699_v2 }
 0x1b9   : > { %v6532_v5 = vld [vmem:[%s7691_s29 + $0x274] sm:$0xf]  ;;  %v4856_v9 = vld [vmem:[%s7691_s29 + $0x160] sm:$0xf]  ;;  %v6503_v10 = vld [vmem:[%s7691_s29 + $0x188] sm:$0xf0]  ;;  %v4662_v13 = vor.u32 %v6464_v4, %v4661_v3 }
 0x1ba   : > { %1332 = vmatpush.bf16.msrb.mxu2 %v4646_v30  ;;  %v4653_v11 = vld [vmem:[%s7691_s29 + $0x20] sm:$0xf]  ;;  %v6463_v14 = vld [vmem:[%s7691_s29 + $0x48] sm:$0xf0]  ;;  %v6458_v15 = vld [vmem:[%s7691_s29 + $0x24] sm:$0xf]  ;;  %v5001_v17 = vor.u32 %v6532_v5, %v4998_v6  ;;  %v4857_v24 = vor.u32 %v6503_v10, %v4856_v9 }
 0x1bb   : > { %1345 = vmatpush.bf16.msrb.mxu3 %v4650_v34  ;;  %1306 = vmatpush.bf16.msrb.mxu0 %v4638_v43  ;;  %v4655_v16 = vld [vmem:[%s7691_s29 + $0x4c] sm:$0xf0]  ;;  %v5004_v18 = vld [vmem:[%s7691_s29 + $0x278] sm:$0xf]  ;;  %v6538_v19 = vld [vmem:[%s7691_s29 + $0x2a0] sm:$0xf0]  ;;  %v4654_v25 = vor.u32 %v6463_v14, %v4653_v11 }
 0x1bc   : > { %1319 = vmatpush.bf16.msrb.mxu1 %v4642_v44  ;;  %v6531_v20 = vld [vmem:[%s7691_s29 + $0x26c] sm:$0xf]  ;;  %v4990_v21 = vld [vmem:[%s7691_s29 + $0x294] sm:$0xf0]  ;;  %v4996_v22 = vld [vmem:[%s7691_s29 + $0x270] sm:$0xf]  ;;  %v4658_v28 = vor.u32 %v6458_v15, %v4655_v16  ;;  %v5005_v29 = vor.u32 %v6538_v19, %v5004_v18 }
 0x1bd   : > { %4801 = vmatmul.msk.bf16.vlgmr.msrb.gmra.mxu2 %vm1243_vm0, %v7732_v52  ;;  %v6537_v23 = vld [vmem:[%s7691_s29 + $0x298] sm:$0xf0]  ;;  %v4954_v27 = vld [vmem:[%s7691_s29 + $0x244] sm:$0xf0]  ;;  %v4993_v30 = vor.u32 %v6531_v20, %v4990_v21  ;;  %v4960_v32 = vld [vmem:[%s7691_s29 + $0x220] sm:$0xf] }
 0x1be   : > { %1381 = vmatpush.bf16.msra.mxu2 %v4794_v35  ;;  %4799 = vmatmul.msk.bf16.vlgmr.msrb.gmra.mxu0 %vm1243_vm0, %v7732_v52  ;;  %v6521_v26 = vld [vmem:[%s7691_s29 + $0x21c] sm:$0xf]  ;;  %v4997_v31 = vor.u32 %v6537_v23, %v4996_v22  ;;  %v6527_v33 = vld [vmem:[%s7691_s29 + $0x248] sm:$0xf0]  ;;  %v6520_v35 = vld [vmem:[%s7691_s29 + $0x214] sm:$0xf] }
 0x1bf   : > { %1667 = vmatpush.bf16.msra.mxu3 %v4989_v39  ;;  %1355 = vmatpush.bf16.msra.mxu0 %v4786_v45  ;;  %v4957_v34 = vor.u32 %v6521_v26, %v4954_v27  ;;  %v4946_v36 = vld [vmem:[%s7691_s29 + $0x23c] sm:$0xf0]  ;;  %v4961_v37 = vor.u32 %v6527_v33, %v4960_v32  ;;  %v4952_v38 = vld [vmem:[%s7691_s29 + $0x218] sm:$0xf]  ;;  %v6526_v39 = vld [vmem:[%s7691_s29 + $0x240] sm:$0xf0] }
 0x1c0   : > { %1368 = vmatpush.bf16.msra.mxu1 %v4790_v48  ;;  %4802 = vmatmul.msk.bf16.vlgmr.msrb.gmra.mxu3 %vm1243_vm0, %v7732_v52  ;;  %v6510_v40 = vld [vmem:[%s7691_s29 + $0x1c4] sm:$0xf]  ;;  %v4910_v41 = vld [vmem:[%s7691_s29 + $0x1ec] sm:$0xf0]  ;;  %v4916_v42 = vld [vmem:[%s7691_s29 + $0x1c8] sm:$0xf]  ;;  %v4949_v44 = vor.u32 %v6520_v35, %v4946_v36  ;;  %v4953_v45 = vor.u32 %v6526_v39, %v4952_v38 }
 0x1c1   : > { %4800 = vmatmul.msk.bf16.vlgmr.msrb.gmra.mxu1 %vm1243_vm0, %v7732_v52  ;;  %v6516_v43 = vld [vmem:[%s7691_s29 + $0x1f0] sm:$0xf0]  ;;  %v6509_v46 = vld [vmem:[%s7691_s29 + $0x1bc] sm:$0xf]  ;;  %v4902_v47 = vld [vmem:[%s7691_s29 + $0x1e4] sm:$0xf0] }
 0x1c2   : > { %1382 = vmatpush.bf16.msra.mxu2 %v4750_v49  ;;  %v4908_v48 = vld [vmem:[%s7691_s29 + $0x1c0] sm:$0xf]  ;;  %v4913_v49 = vor.u32 %v6510_v40, %v4910_v41  ;;  %v4917_v50 = vor.u32 %v6516_v43, %v4916_v42  ;;  %v6515_v51 = vld [vmem:[%s7691_s29 + $0x1e8] sm:$0xf0]  ;;  %v4866_v54 = vld [vmem:[%s7691_s29 + $0x194] sm:$0xf0] }
 0x1c3   : > { %1668 = vmatpush.bf16.msra.mxu3 %v4945_v57  ;;  %1356 = vmatpush.bf16.msra.mxu0 %v4742_v58  ;;  %v6499_v53 = vld [vmem:[%s7691_s29 + $0x16c] sm:$0xf]  ;;  %v4872_v55 = vld [vmem:[%s7691_s29 + $0x170] sm:$0xf]  ;;  %v6505_v56 = vld [vmem:[%s7691_s29 + $0x198] sm:$0xf0] }
 0x1c4   : > { %1369 = vmatpush.bf16.msra.mxu1 %v4746_v61  ;;  %v6534_v57 = vld [vmem:[%s7691_s29 + $0x284] sm:$0xf]  ;;  %v5014_v58 = vld [vmem:[%s7691_s29 + $0x2ac] sm:$0xf0]  ;;  %v5020_v59 = vld [vmem:[%s7691_s29 + $0x288] sm:$0xf]  ;;  %v4905_v61 = vor.u32 %v6509_v46, %v4902_v47  ;;  %v4869_v2 = vor.u32 %v6499_v53, %v4866_v54  ;;  %v4873_v3 = vor.u32 %v6505_v56, %v4872_v55 }
 0x1c5   : > { %v6540_v60 = vld [vmem:[%s7691_s29 + $0x2b0] sm:$0xf0]  ;;  %v6498_v63 = vld [vmem:[%s7691_s29 + $0x164] sm:$0xf]  ;;  %v4858_v0 = vld [vmem:[%s7691_s29 + $0x18c] sm:$0xf0] }
 0x1c6   : > { %1383 = vmatpush.bf16.msra.mxu2 %v4706_v62  ;;  %v4909_v62 = vor.u32 %v6515_v51, %v4908_v48  ;;  %v4864_v1 = vld [vmem:[%s7691_s29 + $0x168] sm:$0xf]  ;;  %v6504_v4 = vld [vmem:[%s7691_s29 + $0x190] sm:$0xf0]  ;;  %v6533_v5 = vld [vmem:[%s7691_s29 + $0x27c] sm:$0xf]  ;;  %v4861_v15 = vor.u32 %v6498_v63, %v4858_v0 }
 0x1c7   : > { %1669 = vmatpush.bf16.msra.mxu3 %v4901_v7  ;;  %1357 = vmatpush.bf16.msra.mxu0 %v4698_v8  ;;  %v5006_v6 = vld [vmem:[%s7691_s29 + $0x2a4] sm:$0xf0]  ;;  %v5017_v7 = vor.u32 %v6534_v57, %v5014_v58  ;;  %v5021_v8 = vor.u32 %v6540_v60, %v5020_v59  ;;  %v5012_v9 = vld [vmem:[%s7691_s29 + $0x280] sm:$0xf]  ;;  %v6539_v10 = vld [vmem:[%s7691_s29 + $0x2a8] sm:$0xf0]  ;;  %v4865_v16 = vor.u32 %v6504_v4, %v4864_v1 }
 0x1c8   : > { %1370 = vmatpush.bf16.msra.mxu1 %v4702_v12  ;;  %v6523_v11 = vld [vmem:[%s7691_s29 + $0x22c] sm:$0xf]  ;;  %v4970_v12 = vld [vmem:[%s7691_s29 + $0x254] sm:$0xf0]  ;;  %v6529_v14 = vld [vmem:[%s7691_s29 + $0x258] sm:$0xf0]  ;;  %v5013_v18 = vor.u32 %v6539_v10, %v5012_v9 }
 0x1c9   : > { %v6522_v19 = vld [vmem:[%s7691_s29 + $0x224] sm:$0xf]  ;;  %v4973_v20 = vor.u32 %v6523_v11, %v4970_v12  ;;  %v4962_v22 = vld [vmem:[%s7691_s29 + $0x24c] sm:$0xf0]  ;;  %v4968_v23 = vld [vmem:[%s7691_s29 + $0x228] sm:$0xf] }
 0x1ca   : > { %1384 = vmatpush.bf16.msra.mxu2 %v4662_v13  ;;  %v4976_v13 = vld [vmem:[%s7691_s29 + $0x230] sm:$0xf]  ;;  %v4926_v26 = vld [vmem:[%s7691_s29 + $0x1fc] sm:$0xf0]  ;;  %v4965_v27 = vor.u32 %v6522_v19, %v4962_v22  ;;  %v4918_v32 = vld [vmem:[%s7691_s29 + $0x1f4] sm:$0xf0] }
 0x1cb   : > { %1670 = vmatpush.bf16.msra.mxu3 %v4857_v24  ;;  %1358 = vmatpush.bf16.msra.mxu0 %v4654_v25  ;;  %v4977_v21 = vor.u32 %v6529_v14, %v4976_v13  ;;  %v6528_v24 = vld [vmem:[%s7691_s29 + $0x250] sm:$0xf0]  ;;  %v4924_v33 = vld [vmem:[%s7691_s29 + $0x1d0] sm:$0xf]  ;;  %v6501_v35 = vld [vmem:[%s7691_s29 + $0x17c] sm:$0xf] }
 0x1cc   : > { %1371 = vmatpush.bf16.msra.mxu1 %v4658_v28  ;;  %v6512_v25 = vld [vmem:[%s7691_s29 + $0x1d4] sm:$0xf]  ;;  %v4969_v28 = vor.u32 %v6528_v24, %v4968_v23  ;;  %v4882_v38 = vld [vmem:[%s7691_s29 + $0x1a4] sm:$0xf0]  ;;  %v4888_v39 = vld [vmem:[%s7691_s29 + $0x180] sm:$0xf] }
 0x1cd   : > { %4805 = vmatmul.msk.bf16.vlgmr.msra.gmra.mxu2 %vm1243_vm0, %v7732_v52  ;;  %v4929_v36 = vor.u32 %v6512_v25, %v4926_v26  ;;  %v6507_v40 = vld [vmem:[%s7691_s29 + $0x1a8] sm:$0xf0]  ;;  %v6500_v43 = vld [vmem:[%s7691_s29 + $0x174] sm:$0xf]  ;;  %v6506_v46 = vld [vmem:[%s7691_s29 + $0x1a0] sm:$0xf0]  ;;  %v4885_v53 = vor.u32 %v6501_v35, %v4882_v38 }
 0x1ce   : > { %1706 = vmatpush.bf16.msrb.mxu2 %v5001_v17  ;;  %4803 = vmatmul.msk.bf16.vlgmr.msra.gmra.mxu0 %vm1243_vm0, %v7732_v52  ;;  %v5009_v17 = vor.u32 %v6533_v5, %v5006_v6  ;;  %v5223_v47 = vld [vmem:[%s7691_s29 + $0x3c8] sm:$0xf]  ;;  %v6580_v48 = vld [vmem:[%s7691_s29 + $0x3f0] sm:$0xf0]  ;;  %v6535_v51 = vld [vmem:[%s7691_s29 + $0x28c] sm:$0xf]  ;;  %v4889_v54 = vor.u32 %v6507_v40, %v4888_v39 }
 0x1cf   : > { %1719 = vmatpush.bf16.msrb.mxu3 %v5005_v29  ;;  %1680 = vmatpush.bf16.msrb.mxu0 %v4993_v30  ;;  %v4932_v29 = vld [vmem:[%s7691_s29 + $0x1d8] sm:$0xf]  ;;  %v6518_v30 = vld [vmem:[%s7691_s29 + $0x200] sm:$0xf0]  ;;  %v5028_v56 = vld [vmem:[%s7691_s29 + $0x290] sm:$0xf]  ;;  %v5224_v60 = vor.u32 %v6580_v48, %v5223_v47 }
 0x1d0   : > { %1693 = vmatpush.bf16.msrb.mxu1 %v4997_v31  ;;  %5030 = vmatmul.msk.bf16.vlgmr.msra.gmra.mxu3 %vm1243_vm0, %v7732_v52  ;;  %v6511_v31 = vld [vmem:[%s7691_s29 + $0x1cc] sm:$0xf]  ;;  %v5022_v55 = vld [vmem:[%s7691_s29 + $0x2b4] sm:$0xf0]  ;;  %v6541_v57 = vld [vmem:[%s7691_s29 + $0x2b8] sm:$0xf0] }
 0x1d1   : > { %4804 = vmatmul.msk.bf16.vlgmr.msra.gmra.mxu1 %vm1243_vm0, %v7732_v52  ;;  %v4921_v41 = vor.u32 %v6511_v31, %v4918_v32  ;;  %v6569_v63 = vld [vmem:[%s7691_s29 + $0x398] sm:$0xf0]  ;;  %v5025_v0 = vor.u32 %v6535_v51, %v5022_v55  ;;  %v5029_v1 = vor.u32 %v6541_v57, %v5028_v56  ;;  %v6524_v4 = vld [vmem:[%s7691_s29 + $0x234] sm:$0xf]  ;;  %v4978_v5 = vld [vmem:[%s7691_s29 + $0x25c] sm:$0xf0] }
 0x1d2   : > { %1707 = vmatpush.bf16.msrb.mxu2 %v4957_v34  ;;  %v6517_v34 = vld [vmem:[%s7691_s29 + $0x1f8] sm:$0xf0]  ;;  %v4984_v6 = vld [vmem:[%s7691_s29 + $0x238] sm:$0xf]  ;;  %v4981_v10 = vor.u32 %v6524_v4, %v4978_v5  ;;  %v6558_v13 = vld [vmem:[%s7691_s29 + $0x340] sm:$0xf0] }
 0x1d3   : > { %1720 = vmatpush.bf16.msrb.mxu3 %v4961_v37  ;;  %1681 = vmatpush.bf16.msrb.mxu0 %v4949_v44  ;;  %v4933_v37 = vor.u32 %v6518_v30, %v4932_v29  ;;  %v4925_v42 = vor.u32 %v6517_v34, %v4924_v33  ;;  %v4874_v44 = vld [vmem:[%s7691_s29 + $0x19c] sm:$0xf0]  ;;  %v5135_v12 = vld [vmem:[%s7691_s29 + $0x318] sm:$0xf]  ;;  %v6553_v14 = vld [vmem:[%s7691_s29 + $0x31c] sm:$0xf] }
 0x1d4   : > { %1694 = vmatpush.bf16.msrb.mxu1 %v4953_v45  ;;  %v4880_v45 = vld [vmem:[%s7691_s29 + $0x178] sm:$0xf]  ;;  %v4877_v58 = vor.u32 %v6500_v43, %v4874_v44  ;;  %v6519_v19 = vld [vmem:[%s7691_s29 + $0x208] sm:$0xf0]  ;;  %v6542_v24 = vld [vmem:[%s7691_s29 + $0x2c4] sm:$0xf] }
 0x1d5   : > { %v4881_v59 = vor.u32 %v6506_v46, %v4880_v45  ;;  %v6547_v23 = vld [vmem:[%s7691_s29 + $0x2e8] sm:$0xf0]  ;;  %v5093_v25 = vld [vmem:[%s7691_s29 + $0x2ec] sm:$0xf0]  ;;  %v4896_v30 = vld [vmem:[%s7691_s29 + $0x188] sm:$0xf] }
 0x1d6   : > { %1708 = vmatpush.bf16.msrb.mxu2 %v4913_v49  ;;  %v6575_v49 = vld [vmem:[%s7691_s29 + $0x3cc] sm:$0xf]  ;;  %v4890_v29 = vld [vmem:[%s7691_s29 + $0x1ac] sm:$0xf0]  ;;  %v6508_v31 = vld [vmem:[%s7691_s29 + $0x1b0] sm:$0xf0]  ;;  %v5096_v38 = vor.u32 %v6542_v24, %v5093_v25 }
 0x1d7   : > { %1721 = vmatpush.bf16.msrb.mxu3 %v4917_v50  ;;  %1682 = vmatpush.bf16.msrb.mxu0 %v4905_v61  ;;  %v5225_v50 = vld [vmem:[%s7691_s29 + $0x3f4] sm:$0xf0]  ;;  %v6582_v33 = vld [vmem:[%s7691_s29 + $0x400] sm:$0xf0]  ;;  %v6577_v34 = vld [vmem:[%s7691_s29 + $0x3dc] sm:$0xf]  ;;  %v4897_v43 = vor.u32 %v6508_v31, %v4896_v30 }
 0x1d8   : > { %1695 = vmatpush.bf16.msrb.mxu1 %v4909_v62  ;;  %v5228_v61 = vor.u32 %v6575_v49, %v5225_v50  ;;  %v5179_v62 = vld [vmem:[%s7691_s29 + $0x370] sm:$0xf]  ;;  %v5239_v32 = vld [vmem:[%s7691_s29 + $0x3d8] sm:$0xf]  ;;  %v5241_v35 = vld [vmem:[%s7691_s29 + $0x404] sm:$0xf0] }
 0x1d9   : > { %v6581_v39 = vld [vmem:[%s7691_s29 + $0x3f8] sm:$0xf0]  ;;  %v6576_v40 = vld [vmem:[%s7691_s29 + $0x3d4] sm:$0xf]  ;;  %v5240_v44 = vor.u32 %v6582_v33, %v5239_v32  ;;  %v5244_v45 = vor.u32 %v6577_v34, %v5241_v35  ;;  %v5195_v46 = vld [vmem:[%s7691_s29 + $0x380] sm:$0xf] }
 0x1da   : > { %1709 = vmatpush.bf16.msrb.mxu2 %v4869_v2  ;;  %v6564_v2 = vld [vmem:[%s7691_s29 + $0x374] sm:$0xf]  ;;  %v6571_v47 = vld [vmem:[%s7691_s29 + $0x3a8] sm:$0xf0]  ;;  %v6566_v50 = vld [vmem:[%s7691_s29 + $0x384] sm:$0xf] }
 0x1db   : > { %1722 = vmatpush.bf16.msrb.mxu3 %v4873_v3  ;;  %1683 = vmatpush.bf16.msrb.mxu0 %v4861_v15  ;;  %v5181_v3 = vld [vmem:[%s7691_s29 + $0x39c] sm:$0xf0]  ;;  %v5137_v15 = vld [vmem:[%s7691_s29 + $0x344] sm:$0xf0]  ;;  %v5197_v51 = vld [vmem:[%s7691_s29 + $0x3ac] sm:$0xf0]  ;;  %v5196_v57 = vor.u32 %v6571_v47, %v5195_v46 }
 0x1dc   : > { %1696 = vmatpush.bf16.msrb.mxu1 %v4865_v16  ;;  %v5184_v9 = vor.u32 %v6564_v2, %v5181_v3  ;;  %v6513_v16 = vld [vmem:[%s7691_s29 + $0x1dc] sm:$0xf]  ;;  %v5140_v22 = vor.u32 %v6553_v14, %v5137_v15  ;;  %v5189_v56 = vld [vmem:[%s7691_s29 + $0x3a4] sm:$0xf0]  ;;  %v6559_v2 = vld [vmem:[%s7691_s29 + $0x348] sm:$0xf0] }
 0x1dd   : > { %5033 = vmatmul.msk.bf16.vlgmr.msrb.gmra.mxu2 %vm1243_vm0, %v7732_v52  ;;  %v6565_v55 = vld [vmem:[%s7691_s29 + $0x37c] sm:$0xf]  ;;  %v6554_v3 = vld [vmem:[%s7691_s29 + $0x324] sm:$0xf]  ;;  %v5145_v4 = vld [vmem:[%s7691_s29 + $0x34c] sm:$0xf0] }
 0x1de   : > { %1758 = vmatpush.bf16.msra.mxu2 %v5017_v7  ;;  %5031 = vmatmul.msk.bf16.vlgmr.msrb.gmra.mxu0 %vm1243_vm0, %v7732_v52  ;;  %v6530_v7 = vld [vmem:[%s7691_s29 + $0x260] sm:$0xf0]  ;;  %v5107_v5 = vld [vmem:[%s7691_s29 + $0x2d0] sm:$0xf]  ;;  %v6548_v14 = vld [vmem:[%s7691_s29 + $0x2f0] sm:$0xf0] }
 0x1df   : > { %1771 = vmatpush.bf16.msra.mxu3 %v5021_v8  ;;  %1732 = vmatpush.bf16.msra.mxu0 %v5009_v17  ;;  %v5180_v8 = vor.u32 %v6569_v63, %v5179_v62  ;;  %v4985_v11 = vor.u32 %v6530_v7, %v4984_v6  ;;  %v4934_v17 = vld [vmem:[%s7691_s29 + $0x204] sm:$0xf0]  ;;  %v6560_v62 = vld [vmem:[%s7691_s29 + $0x350] sm:$0xf0]  ;;  %v6555_v63 = vld [vmem:[%s7691_s29 + $0x32c] sm:$0xf] }
 0x1e0   : > { %1745 = vmatpush.bf16.msra.mxu1 %v5013_v18  ;;  %5034 = vmatmul.msk.bf16.vlgmr.msrb.gmra.mxu3 %vm1243_vm0, %v7732_v52  ;;  %v4940_v18 = vld [vmem:[%s7691_s29 + $0x1e0] sm:$0xf]  ;;  %v4937_v26 = vor.u32 %v6513_v16, %v4934_v17  ;;  %v6543_v15 = vld [vmem:[%s7691_s29 + $0x2cc] sm:$0xf]  ;;  %v5101_v16 = vld [vmem:[%s7691_s29 + $0x2f4] sm:$0xf0] }
 0x1e1   : > { %5032 = vmatmul.msk.bf16.vlgmr.msrb.gmra.mxu1 %vm1243_vm0, %v7732_v52  ;;  %v5255_v17 = vld [vmem:[%s7691_s29 + $0x3e8] sm:$0xf]  ;;  %v6583_v24 = vld [vmem:[%s7691_s29 + $0x408] sm:$0xf0]  ;;  %v6578_v25 = vld [vmem:[%s7691_s29 + $0x3e4] sm:$0xf] }
 0x1e2   : > { %1759 = vmatpush.bf16.msra.mxu2 %v4973_v20  ;;  %v5091_v20 = vld [vmem:[%s7691_s29 + $0x2c0] sm:$0xf]  ;;  %v5211_v31 = vld [vmem:[%s7691_s29 + $0x390] sm:$0xf]  ;;  %v6573_v32 = vld [vmem:[%s7691_s29 + $0x3b8] sm:$0xf0] }
 0x1e3   : > { %1772 = vmatpush.bf16.msra.mxu3 %v4977_v21  ;;  %1733 = vmatpush.bf16.msra.mxu0 %v4965_v27  ;;  %v5136_v21 = vor.u32 %v6558_v13, %v5135_v12  ;;  %v4941_v27 = vor.u32 %v6519_v19, %v4940_v18  ;;  %v5148_v12 = vor.u32 %v6554_v3, %v5145_v4  ;;  %v5099_v13 = vld [vmem:[%s7691_s29 + $0x2c8] sm:$0xf]  ;;  %v6584_v18 = vld [vmem:[%s7691_s29 + $0x410] sm:$0xf0]  ;;  %v6579_v19 = vld [vmem:[%s7691_s29 + $0x3ec] sm:$0xf] }
 0x1e4   : > { %1746 = vmatpush.bf16.msra.mxu1 %v4969_v28  ;;  %v6502_v28 = vld [vmem:[%s7691_s29 + $0x184] sm:$0xf]  ;;  %v6568_v35 = vld [vmem:[%s7691_s29 + $0x394] sm:$0xf]  ;;  %v6557_v47 = vld [vmem:[%s7691_s29 + $0x33c] sm:$0xf] }
 0x1e5   : > { %v6562_v46 = vld [vmem:[%s7691_s29 + $0x360] sm:$0xf0]  ;;  %v5460_v3 = vld [vmem:[%s7691_s29 + $0x554] sm:$0xf0]  ;;  %v5466_v4 = vld [vmem:[%s7691_s29 + $0x530] sm:$0xf] }
 0x1e6   : > { %1760 = vmatpush.bf16.msra.mxu2 %v4929_v36  ;;  %v5231_v36 = vld [vmem:[%s7691_s29 + $0x3d0] sm:$0xf]  ;;  %s4618_s18 = sshll.u32 %s8930_s17, 3 }
 0x1e7   : > { %1773 = vmatpush.bf16.msra.mxu3 %v4933_v37  ;;  %1734 = vmatpush.bf16.msra.mxu0 %v4921_v41  ;;  %v5092_v37 = vor.u32 %v6547_v23, %v5091_v20  ;;  %v5233_v41 = vld [vmem:[%s7691_s29 + $0x3fc] sm:$0xf0]  ;;  %v5232_v48 = vor.u32 %v6581_v39, %v5231_v36  ;;  %v5257_v20 = vld [vmem:[%s7691_s29 + $0x414] sm:$0xf0]  ;;  %v6567_v39 = vld [vmem:[%s7691_s29 + $0x38c] sm:$0xf]  ;;  %s8861_s20 = scalar_lea.vmem %s8925_s3, %s4618_s18 }
 0x1e8   : > { %1747 = vmatpush.bf16.msra.mxu1 %v4925_v42  ;;  %v4893_v42 = vor.u32 %v6502_v28, %v4890_v29  ;;  %v5236_v49 = vor.u32 %v6576_v40, %v5233_v41  ;;  %v5104_v28 = vor.u32 %v6543_v15, %v5101_v16  ;;  %v5256_v29 = vor.u32 %v6584_v18, %v5255_v17  ;;  %v5213_v36 = vld [vmem:[%s7691_s29 + $0x3bc] sm:$0xf0]  ;;  %v5205_v40 = vld [vmem:[%s7691_s29 + $0x3b4] sm:$0xf0]  ;;  %v6608_v15 = vld [vmem:[%s7691_s29 + $0x4d4] sm:$0xf] }
 0x1e9   : > { %v5260_v30 = vor.u32 %v6579_v19, %v5257_v20  ;;  %v5212_v41 = vor.u32 %v6573_v32, %v5211_v31  ;;  %v5416_v16 = vld [vmem:[%s7691_s29 + $0x4fc] sm:$0xf0]  ;;  %v5422_v19 = vld [vmem:[%s7691_s29 + $0x4d8] sm:$0xf]  ;;  %v6614_v20 = vld [vmem:[%s7691_s29 + $0x500] sm:$0xf0] }
 0x1ea   : > { %1761 = vmatpush.bf16.msra.mxu2 %v4885_v53  ;;  %v5187_v53 = vld [vmem:[%s7691_s29 + $0x378] sm:$0xf]  ;;  %v5378_v31 = vld [vmem:[%s7691_s29 + $0x480] sm:$0xf]  ;;  %v6603_v32 = vld [vmem:[%s7691_s29 + $0x4a8] sm:$0xf0] }
 0x1eb   : > { %1774 = vmatpush.bf16.msra.mxu3 %v4889_v54  ;;  %1735 = vmatpush.bf16.msra.mxu0 %v4877_v58  ;;  %v6570_v54 = vld [vmem:[%s7691_s29 + $0x3a0] sm:$0xf0]  ;;  %v5200_v58 = vor.u32 %v6566_v50, %v5197_v51  ;;  %v6561_v50 = vld [vmem:[%s7691_s29 + $0x358] sm:$0xf0]  ;;  %v6556_v51 = vld [vmem:[%s7691_s29 + $0x334] sm:$0xf] }
 0x1ec   : > { %1748 = vmatpush.bf16.msra.mxu1 %v4881_v59  ;;  %v5188_v59 = vor.u32 %v6570_v54, %v5187_v53  ;;  %v5161_v53 = vld [vmem:[%s7691_s29 + $0x35c] sm:$0xf0] }
 0x1ed   : > { %5037 = vmatmul.msk.bf16.vlgmr.msra.gmra.mxu2 %vm1243_vm0, %v7732_v52  ;;  %v5123_v54 = vld [vmem:[%s7691_s29 + $0x2e0] sm:$0xf] }
 0x1ee   : > { %2094 = vmatpush.bf16.msrb.mxu2 %v5224_v60  ;;  %5035 = vmatmul.msk.bf16.vlgmr.msra.gmra.mxu0 %vm1243_vm0, %v7732_v52  ;;  %v5192_v60 = vor.u32 %v6565_v55, %v5189_v56 }
 0x1ef   : > { %2107 = vmatpush.bf16.msrb.mxu3 %v5228_v61  ;;  %1784 = vmatpush.bf16.msrb.mxu0 %v5025_v0  ;;  %v5151_v61 = vld [vmem:[%s7691_s29 + $0x328] sm:$0xf]  ;;  %v5153_v0 = vld [vmem:[%s7691_s29 + $0x354] sm:$0xf0] }
 0x1f0   : > { %1797 = vmatpush.bf16.msrb.mxu1 %v5029_v1  ;;  %5038 = vmatmul.msk.bf16.vlgmr.msra.gmra.mxu3 %vm1243_vm0, %v7732_v52  ;;  %v5143_v1 = vld [vmem:[%s7691_s29 + $0x320] sm:$0xf]  ;;  %v5152_v6 = vor.u32 %v6560_v62, %v5151_v61  ;;  %v5156_v7 = vor.u32 %v6555_v63, %v5153_v0  ;;  %v5164_v61 = vor.u32 %v6556_v51, %v5161_v53  ;;  %v5115_v62 = vld [vmem:[%s7691_s29 + $0x2d8] sm:$0xf]  ;;  %v6550_v63 = vld [vmem:[%s7691_s29 + $0x300] sm:$0xf0] }
 0x1f1   : > { %5036 = vmatmul.msk.bf16.vlgmr.msra.gmra.mxu1 %vm1243_vm0, %v7732_v52  ;;  %v6545_v0 = vld [vmem:[%s7691_s29 + $0x2dc] sm:$0xf]  ;;  %v5476_v51 = vld [vmem:[%s7691_s29 + $0x564] sm:$0xf0]  ;;  %v5482_v53 = vld [vmem:[%s7691_s29 + $0x540] sm:$0xf] }
 0x1f2   : > { %2095 = vmatpush.bf16.msrb.mxu2 %v5180_v8  ;;  %v6549_v8 = vld [vmem:[%s7691_s29 + $0x2f8] sm:$0xf0] }
 0x1f3   : > { %2108 = vmatpush.bf16.msrb.mxu3 %v5184_v9  ;;  %1785 = vmatpush.bf16.msrb.mxu0 %v4981_v10  ;;  %v6544_v9 = vld [vmem:[%s7691_s29 + $0x2d4] sm:$0xf]  ;;  %v5109_v10 = vld [vmem:[%s7691_s29 + $0x2fc] sm:$0xf0] }
 0x1f4   : > { %1798 = vmatpush.bf16.msrb.mxu1 %v4985_v11  ;;  %v5144_v11 = vor.u32 %v6559_v2, %v5143_v1  ;;  %v5112_v23 = vor.u32 %v6544_v9, %v5109_v10  ;;  %v5117_v1 = vld [vmem:[%s7691_s29 + $0x304] sm:$0xf0]  ;;  %v6619_v2 = vld [vmem:[%s7691_s29 + $0x52c] sm:$0xf]  ;;  %v6585_v9 = vld [vmem:[%s7691_s29 + $0x418] sm:$0xf0] }
 0x1f5   : > { %v5458_v10 = vld [vmem:[%s7691_s29 + $0x528] sm:$0xf] }
 0x1f6   : > { %2096 = vmatpush.bf16.msrb.mxu2 %v5136_v21  ;;  %v5247_v21 = vld [vmem:[%s7691_s29 + $0x3e0] sm:$0xf] }
 0x1f7   : > { %2109 = vmatpush.bf16.msrb.mxu3 %v5140_v22  ;;  %1786 = vmatpush.bf16.msrb.mxu0 %v4937_v26  ;;  %v5108_v22 = vor.u32 %v6549_v8, %v5107_v5  ;;  %v5249_v26 = vld [vmem:[%s7691_s29 + $0x40c] sm:$0xf0]  ;;  %v5248_v33 = vor.u32 %v6583_v24, %v5247_v21  ;;  %v6625_v5 = vld [vmem:[%s7691_s29 + $0x558] sm:$0xf0]  ;;  %v5219_v21 = vld [vmem:[%s7691_s29 + $0x398] sm:$0xf] }
 0x1f8   : > { %1799 = vmatpush.bf16.msrb.mxu1 %v4941_v27  ;;  %v5100_v27 = vor.u32 %v6548_v14, %v5099_v13  ;;  %v5252_v34 = vor.u32 %v6578_v25, %v5249_v26  ;;  %v5463_v13 = vor.u32 %v6619_v2, %v5460_v3  ;;  %v5467_v14 = vor.u32 %v6625_v5, %v5466_v4  ;;  %v6613_v24 = vld [vmem:[%s7691_s29 + $0x4f8] sm:$0xf0]  ;;  %v5432_v2 = vld [vmem:[%s7691_s29 + $0x50c] sm:$0xf0]  ;;  %v5438_v5 = vld [vmem:[%s7691_s29 + $0x4e8] sm:$0xf] }
 0x1f9   : > { %v5419_v25 = vor.u32 %v6608_v15, %v5416_v16  ;;  %v5423_v26 = vor.u32 %v6614_v20, %v5422_v19  ;;  %v5388_v15 = vld [vmem:[%s7691_s29 + $0x4b4] sm:$0xf0]  ;;  %v5394_v16 = vld [vmem:[%s7691_s29 + $0x490] sm:$0xf] }
 0x1fa   : > { %2097 = vmatpush.bf16.msrb.mxu2 %v5092_v37  ;;  %v5203_v37 = vld [vmem:[%s7691_s29 + $0x388] sm:$0xf]  ;;  %v5380_v20 = vld [vmem:[%s7691_s29 + $0x4ac] sm:$0xf0] }
 0x1fb   : > { %2110 = vmatpush.bf16.msrb.mxu3 %v5096_v38  ;;  %1787 = vmatpush.bf16.msrb.mxu0 %v4893_v42  ;;  %v6572_v38 = vld [vmem:[%s7691_s29 + $0x3b0] sm:$0xf0]  ;;  %v5216_v42 = vor.u32 %v6568_v35, %v5213_v36  ;;  %v5370_v35 = vld [vmem:[%s7691_s29 + $0x478] sm:$0xf]  ;;  %v6602_v36 = vld [vmem:[%s7691_s29 + $0x4a0] sm:$0xf0] }
 0x1fc   : > { %1800 = vmatpush.bf16.msrb.mxu1 %v4897_v43  ;;  %v5204_v43 = vor.u32 %v6572_v38, %v5203_v37  ;;  %v6586_v37 = vld [vmem:[%s7691_s29 + $0x424] sm:$0xf] }
 0x1fd   : > { %5265 = vmatmul.msk.bf16.vlgmr.msrb.gmra.mxu2 %vm1243_vm0, %v7732_v52 }
 0x1fe   : > { %2146 = vmatpush.bf16.msra.mxu2 %v5240_v44  ;;  %5039 = vmatmul.msk.bf16.vlgmr.msrb.gmra.mxu0 %vm1243_vm0, %v7732_v52  ;;  %v5208_v44 = vor.u32 %v6567_v39, %v5205_v40  ;;  %v5379_v39 = vor.u32 %v6603_v32, %v5378_v31  ;;  %v5328_v40 = vld [vmem:[%s7691_s29 + $0x44c] sm:$0xf0]  ;;  %v6587_v32 = vld [vmem:[%s7691_s29 + $0x42c] sm:$0xf] }
 0x1ff   : > { %2159 = vmatpush.bf16.msra.mxu3 %v5244_v45  ;;  %2120 = vmatpush.bf16.msra.mxu0 %v5232_v48  ;;  %v5167_v45 = vld [vmem:[%s7691_s29 + $0x338] sm:$0xf]  ;;  %v5169_v48 = vld [vmem:[%s7691_s29 + $0x364] sm:$0xf0] }
 0x200   : > { %2133 = vmatpush.bf16.msra.mxu1 %v5236_v49  ;;  %5266 = vmatmul.msk.bf16.vlgmr.msrb.gmra.mxu3 %vm1243_vm0, %v7732_v52  ;;  %v5159_v49 = vld [vmem:[%s7691_s29 + $0x330] sm:$0xf]  ;;  %v5168_v55 = vor.u32 %v6562_v46, %v5167_v45  ;;  %v5172_v56 = vor.u32 %v6557_v47, %v5169_v48  ;;  %v5131_v45 = vld [vmem:[%s7691_s29 + $0x2e8] sm:$0xf]  ;;  %v6552_v46 = vld [vmem:[%s7691_s29 + $0x310] sm:$0xf0] }
 0x201   : > { %5040 = vmatmul.msk.bf16.vlgmr.msrb.gmra.mxu1 %vm1243_vm0, %v7732_v52  ;;  %v5326_v47 = vld [vmem:[%s7691_s29 + $0x420] sm:$0xf] }
 0x202   : > { %2147 = vmatpush.bf16.msra.mxu2 %v5196_v57  ;;  %v6551_v57 = vld [vmem:[%s7691_s29 + $0x308] sm:$0xf0]  ;;  %v8044_v48 = vld [vmem:[%s8923_s1] sm:$0xf] }
 0x203   : > { %2160 = vmatpush.bf16.msra.mxu3 %v5200_v58  ;;  %2121 = vmatpush.bf16.msra.mxu0 %v5188_v59  ;;  %v6546_v58 = vld [vmem:[%s7691_s29 + $0x2e4] sm:$0xf]  ;;  %v5125_v59 = vld [vmem:[%s7691_s29 + $0x30c] sm:$0xf0] }
 0x204   : > { %2134 = vmatpush.bf16.msra.mxu1 %v5192_v60  ;;  %v5160_v60 = vor.u32 %v6561_v50, %v5159_v49  ;;  %v5128_v8 = vor.u32 %v6546_v58, %v5125_v59  ;;  %v6591_v49 = vld [vmem:[%s7691_s29 + $0x448] sm:$0xf0]  ;;  %v6621_v50 = vld [vmem:[%s7691_s29 + $0x53c] sm:$0xf]  ;;  %v5468_v58 = vld [vmem:[%s7691_s29 + $0x55c] sm:$0xf0] }
 0x205   : > { %v5474_v59 = vld [vmem:[%s7691_s29 + $0x538] sm:$0xf] }
 0x206   : > { %2148 = vmatpush.bf16.msra.mxu2 %v5152_v6  ;;  %v5263_v6 = vld [vmem:[%s7691_s29 + $0x3f0] sm:$0xf] }
 0x207   : > { %2161 = vmatpush.bf16.msra.mxu3 %v5156_v7  ;;  %2122 = vmatpush.bf16.msra.mxu0 %v5144_v11  ;;  %v5124_v7 = vor.u32 %v6551_v57, %v5123_v54  ;;  %v6624_v11 = vld [vmem:[%s7691_s29 + $0x550] sm:$0xf0]  ;;  %v5264_v17 = vor.u32 %v6585_v9, %v5263_v6  ;;  %v6627_v54 = vld [vmem:[%s7691_s29 + $0x568] sm:$0xf0]  ;;  %v5430_v9 = vld [vmem:[%s7691_s29 + $0x4e0] sm:$0xf] }
 0x208   : > { %2135 = vmatpush.bf16.msra.mxu1 %v5148_v12  ;;  %v5120_v12 = vor.u32 %v6545_v0, %v5117_v1  ;;  %v5459_v18 = vor.u32 %v6624_v11, %v5458_v10  ;;  %v5483_v0 = vor.u32 %v6627_v54, %v5482_v53  ;;  %v6610_v1 = vld [vmem:[%s7691_s29 + $0x4e4] sm:$0xf]  ;;  %v6616_v6 = vld [vmem:[%s7691_s29 + $0x510] sm:$0xf0]  ;;  %v6615_v10 = vld [vmem:[%s7691_s29 + $0x508] sm:$0xf0] }
 0x209   : > { %v5435_v11 = vor.u32 %v6610_v1, %v5432_v2  ;;  %v6617_v1 = vld [vmem:[%s7691_s29 + $0x518] sm:$0xf0] }
 0x20a   : > { %2149 = vmatpush.bf16.msra.mxu2 %v5108_v22  ;;  %v6574_v22 = vld [vmem:[%s7691_s29 + $0x3c0] sm:$0xf0] }
 0x20b   : > { %2162 = vmatpush.bf16.msra.mxu3 %v5112_v23  ;;  %2123 = vmatpush.bf16.msra.mxu0 %v5100_v27  ;;  %v5414_v23 = vld [vmem:[%s7691_s29 + $0x4d0] sm:$0xf]  ;;  %v5220_v27 = vor.u32 %v6574_v22, %v5219_v21  ;;  %v5386_v21 = vld [vmem:[%s7691_s29 + $0x488] sm:$0xf]  ;;  %v6604_v22 = vld [vmem:[%s7691_s29 + $0x4b0] sm:$0xf0] }
 0x20c   : > { %2136 = vmatpush.bf16.msra.mxu1 %v5104_v28  ;;  %v5415_v28 = vor.u32 %v6613_v24, %v5414_v23  ;;  %v6588_v24 = vld [vmem:[%s7691_s29 + $0x434] sm:$0xf]  ;;  %v5387_v31 = vor.u32 %v6604_v22, %v5386_v21  ;;  %v5360_v21 = vld [vmem:[%s7691_s29 + $0x46c] sm:$0xf0]  ;;  %v5366_v22 = vld [vmem:[%s7691_s29 + $0x448] sm:$0xf] }
 0x20d   : > { %5269 = vmatmul.msk.bf16.vlgmr.msra.gmra.mxu2 %vm1243_vm0, %v7732_v52 }
 0x20e   : > { %2198 = vmatpush.bf16.msrb.mxu2 %v5256_v29  ;;  %5267 = vmatmul.msk.bf16.vlgmr.msra.gmra.mxu0 %vm1243_vm0, %v7732_v52  ;;  %v6597_v29 = vld [vmem:[%s7691_s29 + $0x47c] sm:$0xf] }
 0x20f   : > { %2211 = vmatpush.bf16.msrb.mxu3 %v5260_v30  ;;  %2172 = vmatpush.bf16.msrb.mxu0 %v5248_v33  ;;  %v5372_v30 = vld [vmem:[%s7691_s29 + $0x4a4] sm:$0xf0]  ;;  %v5175_v33 = vld [vmem:[%s7691_s29 + $0x340] sm:$0xf] }
 0x210   : > { %2185 = vmatpush.bf16.msrb.mxu1 %v5252_v34  ;;  %5270 = vmatmul.msk.bf16.vlgmr.msra.gmra.mxu3 %vm1243_vm0, %v7732_v52  ;;  %v6563_v34 = vld [vmem:[%s7691_s29 + $0x368] sm:$0xf0]  ;;  %v5375_v38 = vor.u32 %v6597_v29, %v5372_v30  ;;  %v6594_v29 = vld [vmem:[%s7691_s29 + $0x460] sm:$0xf0] }
 0x211   : > { %5268 = vmatmul.msk.bf16.vlgmr.msra.gmra.mxu1 %vm1243_vm0, %v7732_v52  ;;  %v5116_v52 = vor.u32 %v6550_v63, %v5115_v62  ;;  %v5327_v62 = vor.u32 %v6591_v49, %v5326_v47  ;;  %v5479_v63 = vor.u32 %v6621_v50, %v5476_v51 }
 0x212   : > { %2199 = vmatpush.bf16.msrb.mxu2 %v5212_v41  ;;  %v5334_v41 = vld [vmem:[%s7691_s29 + $0x428] sm:$0xf] }
 0x213   : > { %2212 = vmatpush.bf16.msrb.mxu3 %v5216_v42  ;;  %2173 = vmatpush.bf16.msrb.mxu0 %v5204_v43  ;;  %v6592_v42 = vld [vmem:[%s7691_s29 + $0x450] sm:$0xf0]  ;;  %v5176_v43 = vor.u32 %v6563_v34, %v5175_v33  ;;  %v5336_v33 = vld [vmem:[%s7691_s29 + $0x454] sm:$0xf0]  ;;  %v5342_v34 = vld [vmem:[%s7691_s29 + $0x430] sm:$0xf] }
 0x214   : > { %2186 = vmatpush.bf16.msrb.mxu1 %v5208_v44  ;;  %v5371_v44 = vor.u32 %v6602_v36, %v5370_v35  ;;  %v5335_v57 = vor.u32 %v6592_v42, %v5334_v41  ;;  %v6593_v35 = vld [vmem:[%s7691_s29 + $0x458] sm:$0xf0]  ;;  %v6623_v36 = vld [vmem:[%s7691_s29 + $0x54c] sm:$0xf]  ;;  %v5339_v47 = vor.u32 %v6587_v32, %v5336_v33  ;;  %v6664_v33 = vld [vmem:[%s7691_s29 + $0x694] sm:$0xf] }
 0x215   : > { %v5343_v49 = vor.u32 %v6593_v35, %v5342_v34  ;;  %v6669_v32 = vld [vmem:[%s7691_s29 + $0x6b8] sm:$0xf0]  ;;  %v5703_v34 = vld [vmem:[%s7691_s29 + $0x6bc] sm:$0xf0]  ;;  %v5693_v35 = vld [vmem:[%s7691_s29 + $0x688] sm:$0xf] }
 0x216   : > { %2200 = vmatpush.bf16.msrb.mxu2 %v5168_v55  ;;  %v6620_v55 = vld [vmem:[%s7691_s29 + $0x534] sm:$0xf] }
 0x217   : > { %2213 = vmatpush.bf16.msrb.mxu3 %v5172_v56  ;;  %2174 = vmatpush.bf16.msrb.mxu0 %v5160_v60  ;;  %v5331_v56 = vor.u32 %v6586_v37, %v5328_v40  ;;  %v6626_v60 = vld [vmem:[%s7691_s29 + $0x560] sm:$0xf0]  ;;  %v5471_v3 = vor.u32 %v6620_v55, %v5468_v58  ;;  %v5492_v37 = vld [vmem:[%s7691_s29 + $0x574] sm:$0xf0]  ;;  %v6612_v55 = vld [vmem:[%s7691_s29 + $0x4f4] sm:$0xf] }
 0x218   : > { %2187 = vmatpush.bf16.msrb.mxu1 %v5164_v61  ;;  %v5132_v61 = vor.u32 %v6552_v46, %v5131_v45  ;;  %v5475_v4 = vor.u32 %v6626_v60, %v5474_v59  ;;  %v6622_v40 = vld [vmem:[%s7691_s29 + $0x544] sm:$0xf]  ;;  %v6628_v45 = vld [vmem:[%s7691_s29 + $0x570] sm:$0xf0]  ;;  %v5495_v53 = vor.u32 %v6623_v36, %v5492_v37  ;;  %v5454_v60 = vld [vmem:[%s7691_s29 + $0x4f8] sm:$0xf] }
 0x21a   : > { %2201 = vmatpush.bf16.msrb.mxu2 %v5124_v7  ;;  %v6609_v7 = vld [vmem:[%s7691_s29 + $0x4dc] sm:$0xf] }
 0x21b   : > { %2214 = vmatpush.bf16.msrb.mxu3 %v5128_v8  ;;  %2175 = vmatpush.bf16.msrb.mxu0 %v5116_v52  ;;  %v5424_v8 = vld [vmem:[%s7691_s29 + $0x504] sm:$0xf0]  ;;  %v5439_v52 = vor.u32 %v6616_v6, %v5438_v5  ;;  %v6601_v6 = vld [vmem:[%s7691_s29 + $0x49c] sm:$0xf] }
 0x21c   : > { %2188 = vmatpush.bf16.msrb.mxu1 %v5120_v12  ;;  %v5427_v12 = vor.u32 %v6609_v7, %v5424_v8  ;;  %v5404_v7 = vld [vmem:[%s7691_s29 + $0x4c4] sm:$0xf0] }
 0x21d   : > { %5273 = vmatmul.msk.bf16.vlgmr.msrb.gmra.mxu2 %vm1243_vm0, %v8044_v48 }
 0x21e   : > { %2534 = vmatpush.bf16.msra.mxu2 %v5463_v13  ;;  %5271 = vmatmul.msk.bf16.vlgmr.msrb.gmra.mxu0 %vm1243_vm0, %v8044_v48  ;;  %v5431_v13 = vor.u32 %v6615_v10, %v5430_v9  ;;  %v5410_v9 = vld [vmem:[%s7691_s29 + $0x4a0] sm:$0xf]  ;;  %v6607_v10 = vld [vmem:[%s7691_s29 + $0x4c8] sm:$0xf0] }
 0x21f   : > { %2547 = vmatpush.bf16.msra.mxu3 %v5467_v14  ;;  %2224 = vmatpush.bf16.msra.mxu0 %v5264_v17  ;;  %v6599_v14 = vld [vmem:[%s7691_s29 + $0x48c] sm:$0xf]  ;;  %v6605_v17 = vld [vmem:[%s7691_s29 + $0x4b8] sm:$0xf0] }
 0x220   : > { %2521 = vmatpush.bf16.msra.mxu1 %v5459_v18  ;;  %5274 = vmatmul.msk.bf16.vlgmr.msrb.gmra.mxu3 %vm1243_vm0, %v8044_v48  ;;  %v6598_v18 = vld [vmem:[%s7691_s29 + $0x484] sm:$0xf] }
 0x221   : > { %5272 = vmatmul.msk.bf16.vlgmr.msrb.gmra.mxu1 %vm1243_vm0, %v8044_v48  ;;  %v5383_v30 = vor.u32 %v6598_v18, %v5380_v20  ;;  %v5407_v18 = vor.u32 %v6601_v6, %v5404_v7  ;;  %v5411_v20 = vor.u32 %v6607_v10, %v5410_v9  ;;  %v6642_v6 = vld [vmem:[%s7691_s29 + $0x5e4] sm:$0xf]  ;;  %v5615_v7 = vld [vmem:[%s7691_s29 + $0x60c] sm:$0xf0] }
 0x222   : > { %2535 = vmatpush.bf16.msra.mxu2 %v5419_v25  ;;  %v5391_v25 = vor.u32 %v6599_v14, %v5388_v15  ;;  %v6606_v14 = vld [vmem:[%s7691_s29 + $0x4c0] sm:$0xf0] }
 0x223   : > { %2548 = vmatpush.bf16.msra.mxu3 %v5423_v26  ;;  %2225 = vmatpush.bf16.msra.mxu0 %v5220_v27  ;;  %v5395_v26 = vor.u32 %v6605_v17, %v5394_v16  ;;  %v5344_v27 = vld [vmem:[%s7691_s29 + $0x45c] sm:$0xf0]  ;;  %v6590_v16 = vld [vmem:[%s7691_s29 + $0x444] sm:$0xf] }
 0x224   : > { %2522 = vmatpush.bf16.msra.mxu1 %v5415_v28  ;;  %v5350_v28 = vld [vmem:[%s7691_s29 + $0x438] sm:$0xf]  ;;  %v5347_v41 = vor.u32 %v6588_v24, %v5344_v27  ;;  %v6596_v24 = vld [vmem:[%s7691_s29 + $0x470] sm:$0xf0]  ;;  %v6589_v27 = vld [vmem:[%s7691_s29 + $0x43c] sm:$0xf]  ;;  %v5363_v36 = vor.u32 %v6590_v16, %v5360_v21 }
 0x225   : > { %v5351_v42 = vor.u32 %v6594_v29, %v5350_v28  ;;  %v5352_v28 = vld [vmem:[%s7691_s29 + $0x464] sm:$0xf0]  ;;  %v5358_v29 = vld [vmem:[%s7691_s29 + $0x440] sm:$0xf]  ;;  %v5367_v37 = vor.u32 %v6596_v24, %v5366_v22  ;;  %v6646_v10 = vld [vmem:[%s7691_s29 + $0x600] sm:$0xf0] }
 0x226   : > { %2536 = vmatpush.bf16.msra.mxu2 %v5375_v38  ;;  %v5498_v38 = vld [vmem:[%s7691_s29 + $0x550] sm:$0xf]  ;;  %v6631_v21 = vld [vmem:[%s7691_s29 + $0x58c] sm:$0xf]  ;;  %v5571_v22 = vld [vmem:[%s7691_s29 + $0x5b4] sm:$0xf0] }
 0x227   : > { %2549 = vmatpush.bf16.msra.mxu3 %v5379_v39  ;;  %2226 = vmatpush.bf16.msra.mxu0 %v5176_v43  ;;  %v6629_v39 = vld [vmem:[%s7691_s29 + $0x578] sm:$0xf0]  ;;  %v5484_v43 = vld [vmem:[%s7691_s29 + $0x56c] sm:$0xf0] }
 0x228   : > { %2523 = vmatpush.bf16.msra.mxu1 %v5371_v44  ;;  %v5490_v44 = vld [vmem:[%s7691_s29 + $0x548] sm:$0xf]  ;;  %v5499_v54 = vor.u32 %v6629_v39, %v5498_v38  ;;  %v5487_v58 = vor.u32 %v6622_v40, %v5484_v43  ;;  %v6668_v38 = vld [vmem:[%s7691_s29 + $0x6b0] sm:$0xf0]  ;;  %v6663_v39 = vld [vmem:[%s7691_s29 + $0x68c] sm:$0xf] }
 0x229   : > { %v8076_v19 = vpop.f32.mrf.mxu0  ;;  %v5491_v59 = vor.u32 %v6628_v45, %v5490_v44  ;;  %v5695_v40 = vld [vmem:[%s7691_s29 + $0x6b4] sm:$0xf0] }
 0x22a   : > { %2537 = vmatpush.bf16.msra.mxu2 %v5331_v56  ;;  %v8081_v23 = vpop.f32.mrf.mxu1  ;;  %v5448_v56 = vld [vmem:[%s7691_s29 + $0x51c] sm:$0xf0] }
 0x22b   : > { %2550 = vmatpush.bf16.msra.mxu3 %v5335_v57  ;;  %2227 = vmatpush.bf16.msra.mxu0 %v5132_v61  ;;  %v6618_v61 = vld [vmem:[%s7691_s29 + $0x520] sm:$0xf0]  ;;  %v5451_v2 = vor.u32 %v6612_v55, %v5448_v56  ;;  %v5698_v55 = vor.u32 %v6663_v39, %v5695_v40  ;;  %v6653_v56 = vld [vmem:[%s7691_s29 + $0x63c] sm:$0xf]  ;;  %v5711_v39 = vld [vmem:[%s7691_s29 + $0x6c4] sm:$0xf0] }
 0x22c   : > { %2524 = vmatpush.bf16.msra.mxu1 %v5327_v62  ;;  %v6611_v62 = vld [vmem:[%s7691_s29 + $0x4ec] sm:$0xf] }
 0x22d   : > { %5501 = vmatmul.msk.bf16.vlgmr.msra.gmra.mxu2 %vm1243_vm0, %v8044_v48 }
 0x22e   : > { %2586 = vmatpush.bf16.msrb.mxu2 %v5479_v63  ;;  %5275 = vmatmul.msk.bf16.vlgmr.msra.gmra.mxu0 %vm1243_vm0, %v8044_v48  ;;  %v5440_v63 = vld [vmem:[%s7691_s29 + $0x514] sm:$0xf0] }
 0x22f   : > { %2599 = vmatpush.bf16.msrb.mxu3 %v5483_v0  ;;  %2560 = vmatpush.bf16.msrb.mxu0 %v5471_v3  ;;  %v5446_v0 = vld [vmem:[%s7691_s29 + $0x4f0] sm:$0xf]  ;;  %v5455_v3 = vor.u32 %v6618_v61, %v5454_v60  ;;  %v6657_v60 = vld [vmem:[%s7691_s29 + $0x658] sm:$0xf0]  ;;  %v6652_v61 = vld [vmem:[%s7691_s29 + $0x634] sm:$0xf] }
 0x230   : > { %2573 = vmatpush.bf16.msrb.mxu1 %v5475_v4  ;;  %5502 = vmatmul.msk.bf16.vlgmr.msra.gmra.mxu3 %vm1243_vm0, %v8044_v48  ;;  %v8107_v46 = vpop.f32.mrf.mxu2  ;;  %v5443_v4 = vor.u32 %v6611_v62, %v5440_v63  ;;  %v5447_v5 = vor.u32 %v6617_v1, %v5446_v0  ;;  %v5651_v62 = vld [vmem:[%s7691_s29 + $0x65c] sm:$0xf0] }
 0x231   : > { %5500 = vmatmul.msk.bf16.vlgmr.msra.gmra.mxu1 %vm1243_vm0, %v8044_v48  ;;  %v8109_v50 = vpop.f32.mrf.mxu3  ;;  %v1258_v51 = vpop.f32.mrf.mxu0 }
 0x232   : > { %2587 = vmatpush.bf16.msrb.mxu2 %v5435_v11  ;;  %v1271_v57 = vpop.f32.mrf.mxu1  ;;  %v6600_v11 = vld [vmem:[%s7691_s29 + $0x494] sm:$0xf]  ;;  %v6658_v51 = vld [vmem:[%s7691_s29 + $0x660] sm:$0xf0] }
 0x233   : > { %2600 = vmatpush.bf16.msrb.mxu3 %v5439_v52  ;;  %2561 = vmatpush.bf16.msrb.mxu0 %v5427_v12  ;;  %v5396_v12 = vld [vmem:[%s7691_s29 + $0x4bc] sm:$0xf0]  ;;  %v5659_v57 = vld [vmem:[%s7691_s29 + $0x664] sm:$0xf0] }
 0x234   : > { %2574 = vmatpush.bf16.msrb.mxu1 %v5431_v13  ;;  %v5402_v13 = vld [vmem:[%s7691_s29 + $0x498] sm:$0xf]  ;;  %v5662_v0 = vor.u32 %v6653_v56, %v5659_v57 }
 0x236   : > { %2588 = vmatpush.bf16.msrb.mxu2 %v5391_v25  ;;  %v5399_v25 = vor.u32 %v6600_v11, %v5396_v12  ;;  %v6641_v11 = vld [vmem:[%s7691_s29 + $0x5dc] sm:$0xf] }
 0x237   : > { %2601 = vmatpush.bf16.msrb.mxu3 %v5395_v26  ;;  %2562 = vmatpush.bf16.msrb.mxu0 %v5383_v30  ;;  %v5403_v26 = vor.u32 %v6606_v14, %v5402_v13  ;;  %v6595_v30 = vld [vmem:[%s7691_s29 + $0x468] sm:$0xf0]  ;;  %v5569_v13 = vld [vmem:[%s7691_s29 + $0x588] sm:$0xf] }
 0x238   : > { %2575 = vmatpush.bf16.msrb.mxu1 %v5387_v31  ;;  %v1284_v8 = vpop.f32.mrf.mxu2  ;;  %v5701_v31 = vld [vmem:[%s7691_s29 + $0x690] sm:$0xf]  ;;  %v5359_v43 = vor.u32 %v6595_v30, %v5358_v29  ;;  %v5717_v30 = vld [vmem:[%s7691_s29 + $0x6a0] sm:$0xf] }
 0x239   : > { %v1297_v52 = vpop.f32.mrf.mxu3  ;;  %v5702_v45 = vor.u32 %v6669_v32, %v5701_v31  ;;  %v5605_v8 = vld [vmem:[%s7691_s29 + $0x5d8] sm:$0xf]  ;;  %v5563_v29 = vld [vmem:[%s7691_s29 + $0x5ac] sm:$0xf0]  ;;  %v6671_v31 = vld [vmem:[%s7691_s29 + $0x6c8] sm:$0xf0] }
 0x23a   : > { %2589 = vmatpush.bf16.msrb.mxu2 %v5347_v41  ;;  %v5607_v52 = vld [vmem:[%s7691_s29 + $0x604] sm:$0xf0]  ;;  %v5606_v24 = vor.u32 %v6646_v10, %v5605_v8  ;;  %v6666_v32 = vld [vmem:[%s7691_s29 + $0x6a4] sm:$0xf]  ;;  %v6644_v8 = vld [vmem:[%s7691_s29 + $0x5f4] sm:$0xf] }
 0x23b   : > { %2602 = vmatpush.bf16.msrb.mxu3 %v5351_v42  ;;  %2563 = vmatpush.bf16.msrb.mxu0 %v5339_v47  ;;  %v8127_v15 = vpop.f32.mrf.mxu0  ;;  %v5355_v42 = vor.u32 %v6589_v27, %v5352_v28  ;;  %v5706_v47 = vor.u32 %v6664_v33, %v5703_v34  ;;  %v6635_v27 = vld [vmem:[%s7691_s29 + $0x5a8] sm:$0xf0]  ;;  %v6630_v28 = vld [vmem:[%s7691_s29 + $0x584] sm:$0xf]  ;;  %v5719_v33 = vld [vmem:[%s7691_s29 + $0x6cc] sm:$0xf0] }
 0x23c   : > { %2576 = vmatpush.bf16.msrb.mxu1 %v5343_v49  ;;  %v5657_v49 = vld [vmem:[%s7691_s29 + $0x638] sm:$0xf]  ;;  %v5621_v10 = vld [vmem:[%s7691_s29 + $0x5e8] sm:$0xf] }
 0x23d   : > { %5505 = vmatmul.msk.bf16.vlgmr.msrb.gmra.mxu2 %vm1243_vm0, %v8044_v48  ;;  %v5658_v63 = vor.u32 %v6658_v51, %v5657_v49  ;;  %v5709_v34 = vld [vmem:[%s7691_s29 + $0x698] sm:$0xf]  ;;  %v5722_v49 = vor.u32 %v6666_v32, %v5719_v33  ;;  %v5673_v51 = vld [vmem:[%s7691_s29 + $0x648] sm:$0xf]  ;;  %v5577_v32 = vld [vmem:[%s7691_s29 + $0x590] sm:$0xf] }
 0x23e   : > { %2638 = vmatpush.bf16.msra.mxu2 %v5495_v53  ;;  %v8130_v17 = vpop.f32.mrf.mxu1  ;;  %5503 = vmatmul.msk.bf16.vlgmr.msrb.gmra.mxu0 %vm1243_vm0, %v8044_v48  ;;  %v6637_v33 = vld [vmem:[%s7691_s29 + $0x5b8] sm:$0xf0] }
 0x23f   : > { %2651 = vmatpush.bf16.msra.mxu3 %v5499_v54  ;;  %2612 = vmatpush.bf16.msra.mxu0 %v5487_v58  ;;  %v5694_v54 = vor.u32 %v6668_v38, %v5693_v35  ;;  %v5649_v58 = vld [vmem:[%s7691_s29 + $0x630] sm:$0xf]  ;;  %v6665_v38 = vld [vmem:[%s7691_s29 + $0x69c] sm:$0xf] }
 0x240   : > { %2625 = vmatpush.bf16.msra.mxu1 %v5491_v59  ;;  %5506 = vmatmul.msk.bf16.vlgmr.msrb.gmra.mxu3 %vm1243_vm0, %v8044_v48  ;;  %v8155_v41 = vpop.f32.mrf.mxu2  ;;  %v5650_v1 = vor.u32 %v6657_v60, %v5649_v58  ;;  %v5714_v57 = vor.u32 %v6665_v38, %v5711_v39  ;;  %v6655_v58 = vld [vmem:[%s7691_s29 + $0x64c] sm:$0xf]  ;;  %v5665_v60 = vld [vmem:[%s7691_s29 + $0x640] sm:$0xf]  ;;  %v5928_v38 = vld [vmem:[%s7691_s29 + $0x7e8] sm:$0xf] }
 0x241   : > { %5504 = vmatmul.msk.bf16.vlgmr.msrb.gmra.mxu1 %vm1243_vm0, %v8044_v48  ;;  %v6712_v39 = vld [vmem:[%s7691_s29 + $0x810] sm:$0xf0] }
 0x242   : > { %2639 = vmatpush.bf16.msra.mxu2 %v5451_v2  ;;  %v5654_v2 = vor.u32 %v6652_v61, %v5651_v62  ;;  %v6659_v62 = vld [vmem:[%s7691_s29 + $0x668] sm:$0xf0] }
 0x243   : > { %2652 = vmatpush.bf16.msra.mxu3 %v5455_v3  ;;  %2613 = vmatpush.bf16.msra.mxu0 %v5443_v4  ;;  %v8157_v44 = vpop.f32.mrf.mxu3  ;;  %v1310_v53 = vpop.f32.mrf.mxu0  ;;  %v5613_v3 = vld [vmem:[%s7691_s29 + $0x5e0] sm:$0xf]  ;;  %v6647_v4 = vld [vmem:[%s7691_s29 + $0x608] sm:$0xf0] }
 0x244   : > { %2626 = vmatpush.bf16.msra.mxu1 %v5447_v5  ;;  %v5614_v16 = vor.u32 %v6647_v4, %v5613_v3  ;;  %v6660_v53 = vld [vmem:[%s7691_s29 + $0x670] sm:$0xf0]  ;;  %v5666_v3 = vor.u32 %v6659_v62, %v5665_v60  ;;  %v5689_v62 = vld [vmem:[%s7691_s29 + $0x658] sm:$0xf] }
 0x246   : > { %2640 = vmatpush.bf16.msra.mxu2 %v5407_v18  ;;  %v1323_v59 = vpop.f32.mrf.mxu1  ;;  %v5618_v18 = vor.u32 %v6642_v6, %v5615_v7  ;;  %v6649_v6 = vld [vmem:[%s7691_s29 + $0x618] sm:$0xf0] }
 0x247   : > { %2653 = vmatpush.bf16.msra.mxu3 %v5411_v20  ;;  %2614 = vmatpush.bf16.msra.mxu0 %v5399_v25  ;;  %v6636_v20 = vld [vmem:[%s7691_s29 + $0x5b0] sm:$0xf0]  ;;  %v5610_v25 = vor.u32 %v6641_v11, %v5607_v52  ;;  %v5675_v59 = vld [vmem:[%s7691_s29 + $0x674] sm:$0xf0] }
 0x248   : > { %2627 = vmatpush.bf16.msra.mxu1 %v5403_v26  ;;  %v1336_v5 = vpop.f32.mrf.mxu2  ;;  %v5561_v26 = vld [vmem:[%s7691_s29 + $0x580] sm:$0xf]  ;;  %v5570_v35 = vor.u32 %v6636_v20, %v5569_v13  ;;  %v6648_v52 = vld [vmem:[%s7691_s29 + $0x610] sm:$0xf0]  ;;  %v6643_v13 = vld [vmem:[%s7691_s29 + $0x5ec] sm:$0xf] }
 0x249   : > { %v5629_v5 = vld [vmem:[%s7691_s29 + $0x5f0] sm:$0xf]  ;;  %v5585_v20 = vld [vmem:[%s7691_s29 + $0x598] sm:$0xf] }
 0x24a   : > { %2641 = vmatpush.bf16.msra.mxu2 %v5363_v36  ;;  %v5574_v36 = vor.u32 %v6631_v21, %v5571_v22 }
 0x24b   : > { %2654 = vmatpush.bf16.msra.mxu3 %v5367_v37  ;;  %2615 = vmatpush.bf16.msra.mxu0 %v5355_v42  ;;  %v1349_v9 = vpop.f32.mrf.mxu3  ;;  %v8175_v12 = vpop.f32.mrf.mxu0  ;;  %v6670_v37 = vld [vmem:[%s7691_s29 + $0x6c0] sm:$0xf0]  ;;  %v5562_v42 = vor.u32 %v6635_v27, %v5561_v26  ;;  %v6633_v27 = vld [vmem:[%s7691_s29 + $0x59c] sm:$0xf] }
 0x24c   : > { %2628 = vmatpush.bf16.msra.mxu1 %v5359_v43  ;;  %v5566_v43 = vor.u32 %v6630_v28, %v5563_v29  ;;  %v5710_v56 = vor.u32 %v6670_v37, %v5709_v34  ;;  %v5631_v9 = vld [vmem:[%s7691_s29 + $0x61c] sm:$0xf0]  ;;  %v6638_v26 = vld [vmem:[%s7691_s29 + $0x5c0] sm:$0xf0]  ;;  %v5587_v28 = vld [vmem:[%s7691_s29 + $0x5c4] sm:$0xf0] }
 0x24d   : > { %5509 = vmatmul.msk.bf16.vlgmr.msra.gmra.mxu2 %vm1243_vm0, %v8044_v48  ;;  %v6632_v34 = vld [vmem:[%s7691_s29 + $0x594] sm:$0xf]  ;;  %v6673_v37 = vld [vmem:[%s7691_s29 + $0x6d8] sm:$0xf0] }
 0x24e   : > { %2974 = vmatpush.bf16.msrb.mxu2 %v5702_v45  ;;  %v8178_v14 = vpop.f32.mrf.mxu1  ;;  %5507 = vmatmul.msk.bf16.vlgmr.msra.gmra.mxu0 %vm1243_vm0, %v8044_v48 }
 0x24f   : > { %2987 = vmatpush.bf16.msrb.mxu3 %v5706_v47  ;;  %2948 = vmatpush.bf16.msrb.mxu0 %v5694_v54  ;;  %v5718_v47 = vor.u32 %v6671_v31, %v5717_v30  ;;  %v5622_v30 = vor.u32 %v6648_v52, %v5621_v10  ;;  %v5683_v10 = vld [vmem:[%s7691_s29 + $0x67c] sm:$0xf0] }
 0x250   : > { %2961 = vmatpush.bf16.msrb.mxu1 %v5698_v55  ;;  %5510 = vmatmul.msk.bf16.vlgmr.msra.gmra.mxu3 %vm1243_vm0, %v8044_v48  ;;  %v8203_v40 = vpop.f32.mrf.mxu2 }
 0x251   : > { %5508 = vmatmul.msk.bf16.vlgmr.msra.gmra.mxu1 %vm1243_vm0, %v8044_v48 }
 0x252   : > { %2975 = vmatpush.bf16.msrb.mxu2 %v5658_v63  ;;  %v6654_v63 = vld [vmem:[%s7691_s29 + $0x644] sm:$0xf] }
 0x253   : > { %2988 = vmatpush.bf16.msrb.mxu3 %v5662_v0  ;;  %2949 = vmatpush.bf16.msrb.mxu0 %v5650_v1  ;;  %v8205_v45 = vpop.f32.mrf.mxu3  ;;  %v1362_v55 = vpop.f32.mrf.mxu0  ;;  %v5667_v0 = vld [vmem:[%s7691_s29 + $0x66c] sm:$0xf0]  ;;  %v5674_v1 = vor.u32 %v6660_v53, %v5673_v51  ;;  %v6667_v51 = vld [vmem:[%s7691_s29 + $0x6ac] sm:$0xf]  ;;  %v5727_v53 = vld [vmem:[%s7691_s29 + $0x6d4] sm:$0xf0] }
 0x254   : > { %2962 = vmatpush.bf16.msrb.mxu1 %v5654_v2  ;;  %v1806_v54 = vmax.f32 %v8076_v19, %v8205_v45  ;;  %v5678_v2 = vor.u32 %v6655_v58, %v5675_v59  ;;  %v5670_v4 = vor.u32 %v6654_v63, %v5667_v0  ;;  %v6662_v63 = vld [vmem:[%s7691_s29 + $0x680] sm:$0xf0]  ;;  %v6705_v19 = vld [vmem:[%s7691_s29 + $0x7d8] sm:$0xf0] }
 0x255   : > { %v6698_v45 = vld [vmem:[%s7691_s29 + $0x7a4] sm:$0xf] }
 0x256   : > { %2976 = vmatpush.bf16.msrb.mxu2 %v5614_v16  ;;  %v1375_v61 = vpop.f32.mrf.mxu1  ;;  %v5623_v16 = vld [vmem:[%s7691_s29 + $0x614] sm:$0xf0] }
 0x257   : > { %2989 = vmatpush.bf16.msrb.mxu3 %v5618_v18  ;;  %2950 = vmatpush.bf16.msrb.mxu0 %v5606_v24  ;;  %v5630_v24 = vor.u32 %v6649_v6, %v5629_v5  ;;  %v5626_v31 = vor.u32 %v6643_v13, %v5623_v16  ;;  %v5929_v61 = vor.u32 %v6712_v39, %v5928_v38  ;;  %v6701_v5 = vld [vmem:[%s7691_s29 + $0x7b8] sm:$0xf0]  ;;  %v5681_v6 = vld [vmem:[%s7691_s29 + $0x650] sm:$0xf] }
 0x258   : > { %2963 = vmatpush.bf16.msrb.mxu1 %v5610_v25  ;;  %v1388_v7 = vpop.f32.mrf.mxu2  ;;  %v5634_v25 = vor.u32 %v6644_v8, %v5631_v9  ;;  %v6661_v8 = vld [vmem:[%s7691_s29 + $0x678] sm:$0xf0]  ;;  %v6656_v9 = vld [vmem:[%s7691_s29 + $0x654] sm:$0xf] }
 0x259   : > { %v5682_v13 = vor.u32 %v6661_v8, %v5681_v6  ;;  %v5686_v16 = vor.u32 %v6656_v9, %v5683_v10  ;;  %v5930_v6 = vld [vmem:[%s7691_s29 + $0x814] sm:$0xf0]  ;;  %v6713_v8 = vld [vmem:[%s7691_s29 + $0x818] sm:$0xf0] }
 0x25a   : > { %2977 = vmatpush.bf16.msrb.mxu2 %v5570_v35  ;;  %v5579_v35 = vld [vmem:[%s7691_s29 + $0x5bc] sm:$0xf0] }
 0x25b   : > { %2990 = vmatpush.bf16.msrb.mxu3 %v5574_v36  ;;  %2951 = vmatpush.bf16.msrb.mxu0 %v5562_v42  ;;  %v1674_v11 = vpop.f32.mrf.mxu3  ;;  %v8225_v18 = vpop.f32.mrf.mxu0  ;;  %v5733_v36 = vld [vmem:[%s7691_s29 + $0x6b0] sm:$0xf]  ;;  %v5725_v42 = vld [vmem:[%s7691_s29 + $0x6a8] sm:$0xf] }
 0x25c   : > { %2964 = vmatpush.bf16.msrb.mxu1 %v5566_v43  ;;  %v1807_v21 = vmax.f32 %v8081_v23, %v8225_v18  ;;  %v5586_v43 = vor.u32 %v6638_v26, %v5585_v20  ;;  %v5734_v60 = vor.u32 %v6673_v37, %v5733_v36  ;;  %v5690_v11 = vor.u32 %v6662_v63, %v5689_v62  ;;  %v5645_v20 = vld [vmem:[%s7691_s29 + $0x600] sm:$0xf]  ;;  %v5840_v26 = vld [vmem:[%s7691_s29 + $0x738] sm:$0xf]  ;;  %v6708_v62 = vld [vmem:[%s7691_s29 + $0x7f4] sm:$0xf] }
 0x25d   : > { %5737 = vmatmul.msk.bf16.vlgmr.msrb.gmra.mxu2 %vm1243_vm0, %v8044_v48  ;;  %v5938_v63 = vld [vmem:[%s7691_s29 + $0x81c] sm:$0xf0] }
 0x25e   : > { %3026 = vmatpush.bf16.msra.mxu2 %v5718_v47  ;;  %v8230_v22 = vpop.f32.mrf.mxu1  ;;  %5735 = vmatmul.msk.bf16.vlgmr.msrb.gmra.mxu0 %vm1243_vm0, %v8044_v48  ;;  %v5590_v47 = vor.u32 %v6633_v27, %v5587_v28  ;;  %v6690_v27 = vld [vmem:[%s7691_s29 + $0x760] sm:$0xf0]  ;;  %v5637_v28 = vld [vmem:[%s7691_s29 + $0x5f8] sm:$0xf] }
 0x25f   : > { %3039 = vmatpush.bf16.msra.mxu3 %v5722_v49  ;;  %3000 = vmatpush.bf16.msra.mxu0 %v5710_v56  ;;  %v1808_v29 = vmax.f32 %v8107_v46, %v8230_v22  ;;  %v6672_v49 = vld [vmem:[%s7691_s29 + $0x6d0] sm:$0xf0]  ;;  %v5578_v56 = vor.u32 %v6637_v33, %v5577_v32  ;;  %v6645_v32 = vld [vmem:[%s7691_s29 + $0x5fc] sm:$0xf]  ;;  %v5639_v33 = vld [vmem:[%s7691_s29 + $0x624] sm:$0xf0]  ;;  %v5841_v39 = vor.u32 %v6690_v27, %v5840_v26 }
 0x260   : > { %3013 = vmatpush.bf16.msra.mxu1 %v5714_v57  ;;  %5738 = vmatmul.msk.bf16.vlgmr.msrb.gmra.mxu3 %vm1243_vm0, %v8044_v48  ;;  %v8257_v55 = vpop.f32.mrf.mxu2  ;;  %v5582_v57 = vor.u32 %v6632_v34, %v5579_v35  ;;  %v5601_v35 = vld [vmem:[%s7691_s29 + $0x5a8] sm:$0xf] }
 0x261   : > { %5736 = vmatmul.msk.bf16.vlgmr.msrb.gmra.mxu1 %vm1243_vm0, %v8044_v48  ;;  %v1809_v58 = vmax.f32 %v8109_v50, %v8257_v55  ;;  %v6682_v50 = vld [vmem:[%s7691_s29 + $0x720] sm:$0xf0]  ;;  %v6163_v55 = vld [vmem:[%s7691_s29 + $0x948] sm:$0xf] }
 0x262   : > { %3027 = vmatpush.bf16.msra.mxu2 %v5674_v1 }
 0x263   : > { %3040 = vmatpush.bf16.msra.mxu3 %v5678_v2  ;;  %3001 = vmatpush.bf16.msra.mxu0 %v5666_v3  ;;  %v8261_v59 = vpop.f32.mrf.mxu3  ;;  %v1687_v1 = vpop.f32.mrf.mxu0  ;;  %v5726_v2 = vor.u32 %v6672_v49, %v5725_v42  ;;  %v5730_v3 = vor.u32 %v6667_v51, %v5727_v53  ;;  %v6640_v42 = vld [vmem:[%s7691_s29 + $0x5d0] sm:$0xf0]  ;;  %v5642_v53 = vor.u32 %v6645_v32, %v5639_v33  ;;  %v6703_v32 = vld [vmem:[%s7691_s29 + $0x7c8] sm:$0xf0] }
 0x264   : > { %3014 = vmatpush.bf16.msra.mxu1 %v5670_v4  ;;  %v1810_v0 = vmax.f32 %v8127_v15, %v8261_v59  ;;  %v5884_v4 = vld [vmem:[%s7691_s29 + $0x790] sm:$0xf]  ;;  %v5944_v1 = vld [vmem:[%s7691_s29 + $0x7f8] sm:$0xf]  ;;  %v6696_v33 = vld [vmem:[%s7691_s29 + $0x794] sm:$0xf] }
 0x265   : > { %v5885_v52 = vor.u32 %v6701_v5, %v5884_v4  ;;  %v5602_v4 = vor.u32 %v6640_v42, %v5601_v35  ;;  %v6702_v42 = vld [vmem:[%s7691_s29 + $0x7c0] sm:$0xf0]  ;;  %v6121_v15 = vld [vmem:[%s7691_s29 + $0x91c] sm:$0xf0]  ;;  %v6700_v59 = vld [vmem:[%s7691_s29 + $0x7b4] sm:$0xf] }
 0x266   : > { %3028 = vmatpush.bf16.msra.mxu2 %v5630_v24  ;;  %v1700_v7 = vpop.f32.mrf.mxu1  ;;  %v6651_v24 = vld [vmem:[%s7691_s29 + $0x628] sm:$0xf0] }
 0x267   : > { %3041 = vmatpush.bf16.msra.mxu3 %v5634_v25  ;;  %3002 = vmatpush.bf16.msra.mxu0 %v5622_v30  ;;  %v5646_v38 = vor.u32 %v6651_v24, %v5645_v20  ;;  %v5936_v7 = vld [vmem:[%s7691_s29 + $0x7f0] sm:$0xf]  ;;  %v6697_v24 = vld [vmem:[%s7691_s29 + $0x79c] sm:$0xf] }
 0x268   : > { %3015 = vmatpush.bf16.msra.mxu1 %v5626_v31  ;;  %v1713_v25 = vpop.f32.mrf.mxu2  ;;  %v6650_v31 = vld [vmem:[%s7691_s29 + $0x620] sm:$0xf0] }
 0x269   : > { %v5638_v51 = vor.u32 %v6650_v31, %v5637_v28  ;;  %v5894_v25 = vld [vmem:[%s7691_s29 + $0x7c4] sm:$0xf0]  ;;  %v5900_v31 = vld [vmem:[%s7691_s29 + $0x7a0] sm:$0xf] }
 0x26a   : > { %3029 = vmatpush.bf16.msra.mxu2 %v5586_v43  ;;  %v5796_v43 = vld [vmem:[%s7691_s29 + $0x6e0] sm:$0xf] }
 0x26b   : > { %3042 = vmatpush.bf16.msra.mxu3 %v5590_v47  ;;  %3003 = vmatpush.bf16.msra.mxu0 %v5578_v56  ;;  %v1726_v30 = vpop.f32.mrf.mxu3  ;;  %v8281_v34 = vpop.f32.mrf.mxu0  ;;  %v6679_v47 = vld [vmem:[%s7691_s29 + $0x708] sm:$0xf0]  ;;  %v5593_v56 = vld [vmem:[%s7691_s29 + $0x5a0] sm:$0xf] }
 0x26c   : > { %3016 = vmatpush.bf16.msra.mxu1 %v5582_v57  ;;  %v1811_v36 = vmax.f32 %v8130_v17, %v8281_v34  ;;  %v6639_v57 = vld [vmem:[%s7691_s29 + $0x5c8] sm:$0xf0]  ;;  %v5797_v5 = vor.u32 %v6679_v47, %v5796_v43  ;;  %v5937_v30 = vor.u32 %v6713_v8, %v5936_v7  ;;  %v5897_v43 = vor.u32 %v6697_v24, %v5894_v25  ;;  %v6681_v24 = vld [vmem:[%s7691_s29 + $0x718] sm:$0xf0] }
 0x26d   : > { %5741 = vmatmul.msk.bf16.vlgmr.msra.gmra.mxu2 %vm1243_vm0, %v8044_v48  ;;  %v5594_v10 = vor.u32 %v6639_v57, %v5593_v56  ;;  %v5901_v47 = vor.u32 %v6703_v32, %v5900_v31  ;;  %v6686_v56 = vld [vmem:[%s7691_s29 + $0x744] sm:$0xf]  ;;  %v5850_v57 = vld [vmem:[%s7691_s29 + $0x76c] sm:$0xf0]  ;;  %v5804_v32 = vld [vmem:[%s7691_s29 + $0x6e8] sm:$0xf] }
 0x26e   : > { %3078 = vmatpush.bf16.msrb.mxu2 %v5734_v60  ;;  %v8286_v37 = vpop.f32.mrf.mxu1  ;;  %v6634_v60 = vld [vmem:[%s7691_s29 + $0x5a4] sm:$0xf]  ;;  %5739 = vmatmul.msk.bf16.vlgmr.msra.gmra.mxu0 %vm1243_vm0, %v8044_v48  ;;  %v5798_v31 = vld [vmem:[%s7691_s29 + $0x70c] sm:$0xf0] }
 0x26f   : > { %3375 = vmatpush.bf16.msrb.mxu3 %v5929_v61  ;;  %3052 = vmatpush.bf16.msrb.mxu0 %v5726_v2  ;;  %v1812_v49 = vmax.f32 %v8155_v41, %v8286_v37  ;;  %v5595_v61 = vld [vmem:[%s7691_s29 + $0x5cc] sm:$0xf0]  ;;  %v6714_v2 = vld [vmem:[%s7691_s29 + $0x820] sm:$0xf0] }
 0x270   : > { %3065 = vmatpush.bf16.msrb.mxu1 %v5730_v3  ;;  %5742 = vmatmul.msk.bf16.vlgmr.msra.gmra.mxu3 %vm1243_vm0, %v8044_v48  ;;  %v6707_v3 = vld [vmem:[%s7691_s29 + $0x7ec] sm:$0xf]  ;;  %v8313_v9 = vpop.f32.mrf.mxu2  ;;  %v5945_v20 = vor.u32 %v6714_v2, %v5944_v1  ;;  %v5842_v2 = vld [vmem:[%s7691_s29 + $0x764] sm:$0xf0] }
 0x271   : > { %5740 = vmatmul.msk.bf16.vlgmr.msra.gmra.mxu1 %vm1243_vm0, %v8044_v48  ;;  %v5933_v28 = vor.u32 %v6707_v3, %v5930_v6  ;;  %v5848_v3 = vld [vmem:[%s7691_s29 + $0x740] sm:$0xf]  ;;  %v6675_v6 = vld [vmem:[%s7691_s29 + $0x6ec] sm:$0xf] }
 0x272   : > { %3079 = vmatpush.bf16.msrb.mxu2 %v5690_v11  ;;  %v5598_v11 = vor.u32 %v6634_v60, %v5595_v61  ;;  %v5856_v61 = vld [vmem:[%s7691_s29 + $0x748] sm:$0xf] }
 0x273   : > { %3376 = vmatpush.bf16.msrb.mxu3 %v5885_v52  ;;  %3053 = vmatpush.bf16.msrb.mxu0 %v5682_v13  ;;  %v1813_v52 = vmax.f32 %v8157_v44, %v8313_v9  ;;  %v8317_v13 = vpop.f32.mrf.mxu3  ;;  %v1739_v27 = vpop.f32.mrf.mxu0  ;;  %v6758_v44 = vld [vmem:[%s7691_s29 + $0x980] sm:$0xf0]  ;;  %v6753_v9 = vld [vmem:[%s7691_s29 + $0x95c] sm:$0xf] }
 0x274   : > { %3066 = vmatpush.bf16.msrb.mxu1 %v5686_v16  ;;  %v5941_v16 = vor.u32 %v6708_v62, %v5938_v63  ;;  %v1814_v26 = vmax.f32 %v8175_v12, %v8317_v13  ;;  %v6692_v62 = vld [vmem:[%s7691_s29 + $0x770] sm:$0xf0]  ;;  %v6685_v63 = vld [vmem:[%s7691_s29 + $0x73c] sm:$0xf]  ;;  %v6137_v12 = vld [vmem:[%s7691_s29 + $0x92c] sm:$0xf0] }
 0x275   : > { %v5845_v27 = vor.u32 %v6685_v63, %v5842_v2  ;;  %v6127_v13 = vld [vmem:[%s7691_s29 + $0x8f8] sm:$0xf] }
 0x276   : > { %3080 = vmatpush.bf16.msrb.mxu2 %v5646_v38  ;;  %v1752_v35 = vpop.f32.mrf.mxu1  ;;  %v5886_v38 = vld [vmem:[%s7691_s29 + $0x7bc] sm:$0xf0] }
 0x277   : > { %3377 = vmatpush.bf16.msrb.mxu3 %v5841_v39  ;;  %3054 = vmatpush.bf16.msrb.mxu0 %v5638_v51  ;;  %v5892_v39 = vld [vmem:[%s7691_s29 + $0x798] sm:$0xf]  ;;  %v5889_v51 = vor.u32 %v6696_v33, %v5886_v38  ;;  %v6680_v33 = vld [vmem:[%s7691_s29 + $0x710] sm:$0xf0]  ;;  %v6710_v35 = vld [vmem:[%s7691_s29 + $0x804] sm:$0xf] }
 0x278   : > { %3067 = vmatpush.bf16.msrb.mxu1 %v5642_v53  ;;  %v5893_v53 = vor.u32 %v6702_v42, %v5892_v39  ;;  %v1765_v60 = vpop.f32.mrf.mxu2  ;;  %v5954_v38 = vld [vmem:[%s7691_s29 + $0x82c] sm:$0xf0]  ;;  %v5960_v39 = vld [vmem:[%s7691_s29 + $0x808] sm:$0xf]  ;;  %v6716_v42 = vld [vmem:[%s7691_s29 + $0x830] sm:$0xf0] }
 0x279   : > { %v5961_v2 = vor.u32 %v6716_v42, %v5960_v39  ;;  %v6687_v39 = vld [vmem:[%s7691_s29 + $0x74c] sm:$0xf] }
 0x27a   : > { %3081 = vmatpush.bf16.msrb.mxu2 %v5602_v4  ;;  %v6691_v4 = vld [vmem:[%s7691_s29 + $0x768] sm:$0xf0] }
 0x27b   : > { %3378 = vmatpush.bf16.msrb.mxu3 %v5797_v5  ;;  %3055 = vmatpush.bf16.msrb.mxu0 %v5594_v10  ;;  %v1778_v1 = vpop.f32.mrf.mxu3  ;;  %v8337_v5 = vpop.f32.mrf.mxu0  ;;  %v5853_v10 = vor.u32 %v6686_v56, %v5850_v57  ;;  %v5952_v56 = vld [vmem:[%s7691_s29 + $0x800] sm:$0xf]  ;;  %v6715_v57 = vld [vmem:[%s7691_s29 + $0x828] sm:$0xf0] }
 0x27c   : > { %3068 = vmatpush.bf16.msrb.mxu1 %v5598_v11  ;;  %v1815_v7 = vmax.f32 %v8178_v14, %v8337_v5  ;;  %v5857_v11 = vor.u32 %v6692_v62, %v5856_v61  ;;  %v5957_v1 = vor.u32 %v6710_v35, %v5954_v38  ;;  %v5872_v35 = vld [vmem:[%s7691_s29 + $0x758] sm:$0xf]  ;;  %v6694_v38 = vld [vmem:[%s7691_s29 + $0x780] sm:$0xf0] }
 0x27d   : > { %5745 = vmatmul.msk.bf16.vlgmr.msrb.gmra.mxu2 %vm1243_vm0, %v8044_v48 }
 0x27e   : > { %3414 = vmatpush.bf16.msra.mxu2 %v5941_v16  ;;  %v8342_v8 = vpop.f32.mrf.mxu1  ;;  %v5806_v16 = vld [vmem:[%s7691_s29 + $0x714] sm:$0xf0]  ;;  %5743 = vmatmul.msk.bf16.vlgmr.msrb.gmra.mxu0 %vm1243_vm0, %v8044_v48 }
 0x27f   : > { %3427 = vmatpush.bf16.msra.mxu3 %v5945_v20  ;;  %3388 = vmatpush.bf16.msra.mxu0 %v5933_v28  ;;  %v5812_v20 = vld [vmem:[%s7691_s29 + $0x6f0] sm:$0xf]  ;;  %v1816_v25 = vmax.f32 %v8203_v40, %v8342_v8  ;;  %v5849_v28 = vor.u32 %v6691_v4, %v5848_v3  ;;  %v6699_v3 = vld [vmem:[%s7691_s29 + $0x7ac] sm:$0xf]  ;;  %v5910_v4 = vld [vmem:[%s7691_s29 + $0x7d4] sm:$0xf0] }
 0x280   : > { %3401 = vmatpush.bf16.msra.mxu1 %v5937_v30  ;;  %v6674_v30 = vld [vmem:[%s7691_s29 + $0x6e4] sm:$0xf]  ;;  %5970 = vmatmul.msk.bf16.vlgmr.msrb.gmra.mxu3 %vm1243_vm0, %v8044_v48  ;;  %v2099_v60 = vpop.f32.mrf.mxu2  ;;  %v5913_v23 = vor.u32 %v6699_v3, %v5910_v4  ;;  %v5814_v4 = vld [vmem:[%s7691_s29 + $0x71c] sm:$0xf0]  ;;  %v6039_v8 = vld [vmem:[%s7691_s29 + $0x848] sm:$0xf] }
 0x281   : > { %5744 = vmatmul.msk.bf16.vlgmr.msrb.gmra.mxu1 %vm1243_vm0, %v8044_v48  ;;  %v5801_v61 = vor.u32 %v6674_v30, %v5798_v31  ;;  %v5805_v48 = vor.u32 %v6680_v33, %v5804_v32  ;;  %v8372_v62 = vmax.f32 %v1806_v54, %v2099_v60  ;;  %v6688_v31 = vld [vmem:[%s7691_s29 + $0x754] sm:$0xf]  ;;  %v5866_v32 = vld [vmem:[%s7691_s29 + $0x77c] sm:$0xf0] }
 0x282   : > { %3415 = vmatpush.bf16.msra.mxu2 %v5897_v43  ;;  %v6709_v43 = vld [vmem:[%s7691_s29 + $0x7fc] sm:$0xf] }
 0x283   : > { %3428 = vmatpush.bf16.msra.mxu3 %v5901_v47  ;;  %3389 = vmatpush.bf16.msra.mxu0 %v5889_v51  ;;  %v5809_v47 = vor.u32 %v6675_v6, %v5806_v16  ;;  %v5813_v51 = vor.u32 %v6681_v24, %v5812_v20  ;;  %v2112_v63 = vpop.f32.mrf.mxu3  ;;  %v5953_v16 = vor.u32 %v6715_v57, %v5952_v56  ;;  %v5916_v20 = vld [vmem:[%s7691_s29 + $0x7b0] sm:$0xf]  ;;  %v6677_v56 = vld [vmem:[%s7691_s29 + $0x6fc] sm:$0xf] }
 0x284   : > { %3402 = vmatpush.bf16.msra.mxu1 %v5893_v53  ;;  %v5946_v53 = vld [vmem:[%s7691_s29 + $0x824] sm:$0xf0]  ;;  %v8379_v6 = vmax.f32 %v1807_v21, %v2112_v63  ;;  %v5902_v24 = vld [vmem:[%s7691_s29 + $0x7cc] sm:$0xf0]  ;;  %v5917_v18 = vor.u32 %v6705_v19, %v5916_v20  ;;  %v6165_v20 = vld [vmem:[%s7691_s29 + $0x974] sm:$0xf0] }
 0x285   : > { %v5905_v21 = vor.u32 %v6698_v45, %v5902_v24  ;;  %v5822_v63 = vld [vmem:[%s7691_s29 + $0x724] sm:$0xf0]  ;;  %v6711_v19 = vld [vmem:[%s7691_s29 + $0x80c] sm:$0xf]  ;;  %v5962_v24 = vld [vmem:[%s7691_s29 + $0x834] sm:$0xf0] }
 0x286   : > { %3416 = vmatpush.bf16.msra.mxu2 %v5853_v10  ;;  %v1791_v10 = vpop.f32.mrf.mxu0  ;;  %v1804_v54 = vpop.f32.mrf.mxu1  ;;  %v5825_v45 = vor.u32 %v6677_v56, %v5822_v63  ;;  %v5924_v56 = vld [vmem:[%s7691_s29 + $0x7b8] sm:$0xf]  ;;  %v6734_v63 = vld [vmem:[%s7691_s29 + $0x8c0] sm:$0xf0] }
 0x287   : > { %3429 = vmatpush.bf16.msra.mxu3 %v5857_v11  ;;  %3390 = vmatpush.bf16.msra.mxu0 %v5845_v27  ;;  %v5949_v11 = vor.u32 %v6709_v43, %v5946_v53  ;;  %v5908_v27 = vld [vmem:[%s7691_s29 + $0x7a8] sm:$0xf]  ;;  %v5858_v43 = vld [vmem:[%s7691_s29 + $0x774] sm:$0xf0] }
 0x288   : > { %3403 = vmatpush.bf16.msra.mxu1 %v5849_v28  ;;  %v6704_v28 = vld [vmem:[%s7691_s29 + $0x7d0] sm:$0xf0]  ;;  %v2101_v33 = vpop.f32.mrf.mxu2  ;;  %v5861_v46 = vor.u32 %v6687_v39, %v5858_v43  ;;  %v5820_v10 = vld [vmem:[%s7691_s29 + $0x6f8] sm:$0xf]  ;;  %v5965_v43 = vor.u32 %v6711_v19, %v5962_v24  ;;  %v6718_v24 = vld [vmem:[%s7691_s29 + $0x844] sm:$0xf] }
 0x289   : > { %v5909_v30 = vor.u32 %v6704_v28, %v5908_v27  ;;  %v5968_v27 = vld [vmem:[%s7691_s29 + $0x810] sm:$0xf]  ;;  %v6717_v28 = vld [vmem:[%s7691_s29 + $0x838] sm:$0xf0] }
 0x28a   : > { %3417 = vmatpush.bf16.msra.mxu2 %v5809_v47  ;;  %v5864_v47 = vld [vmem:[%s7691_s29 + $0x750] sm:$0xf] }
 0x28b   : > { %3430 = vmatpush.bf16.msra.mxu3 %v5813_v51  ;;  %3391 = vmatpush.bf16.msra.mxu0 %v5801_v61  ;;  %v2114_v42 = vpop.f32.mrf.mxu3  ;;  %v6693_v51 = vld [vmem:[%s7691_s29 + $0x778] sm:$0xf0]  ;;  %v5869_v61 = vor.u32 %v6688_v31, %v5866_v32 }
 0x28c   : > { %3404 = vmatpush.bf16.msra.mxu1 %v5805_v48  ;;  %v5873_v48 = vor.u32 %v6694_v38, %v5872_v35  ;;  %v5865_v22 = vor.u32 %v6693_v51, %v5864_v47  ;;  %v6119_v35 = vld [vmem:[%s7691_s29 + $0x8f0] sm:$0xf]  ;;  %v6745_v38 = vld [vmem:[%s7691_s29 + $0x918] sm:$0xf0]  ;;  %v5969_v47 = vor.u32 %v6717_v28, %v5968_v27  ;;  %v6740_v51 = vld [vmem:[%s7691_s29 + $0x8f4] sm:$0xf] }
 0x28d   : > { %v6120_v17 = vor.u32 %v6745_v38, %v6119_v35  ;;  %v6124_v34 = vor.u32 %v6740_v51, %v6121_v15  ;;  %v6033_v27 = vld [vmem:[%s7691_s29 + $0x86c] sm:$0xf0]  ;;  %v6757_v38 = vld [vmem:[%s7691_s29 + $0x978] sm:$0xf0] }
 0x28e   : > { %3466 = vmatpush.bf16.msrb.mxu2 %v5957_v1  ;;  %v2125_v53 = vpop.f32.mrf.mxu0  ;;  %v2138_v60 = vpop.f32.mrf.mxu1  ;;  %v5828_v1 = vld [vmem:[%s7691_s29 + $0x700] sm:$0xf]  ;;  %v6036_v35 = vor.u32 %v6718_v24, %v6033_v27  ;;  %v6047_v27 = vld [vmem:[%s7691_s29 + $0x850] sm:$0xf] }
 0x28f   : > { %3479 = vmatpush.bf16.msrb.mxu3 %v5961_v2  ;;  %3440 = vmatpush.bf16.msrb.mxu0 %v5949_v11  ;;  %v8399_v57 = vmax.f32 %v1808_v29, %v2125_v53  ;;  %v6683_v2 = vld [vmem:[%s7691_s29 + $0x728] sm:$0xf0]  ;;  %v8407_v3 = vmax.f32 %v1809_v58, %v2138_v60  ;;  %v6676_v29 = vld [vmem:[%s7691_s29 + $0x6f4] sm:$0xf]  ;;  %v8415_v11 = vld [vmem:[%s8923_s1] sm:$0xf] }
 0x290   : > { %3453 = vmatpush.bf16.msrb.mxu1 %v5953_v16  ;;  %5971 = vmatmul.msk.bf16.vlgmr.msra.gmra.mxu0 %vm1243_vm0, %v8415_v11  ;;  %v6756_v58 = vld [vmem:[%s7691_s29 + $0x970] sm:$0xf0]  ;;  %v6751_v16 = vld [vmem:[%s7691_s29 + $0x94c] sm:$0xf]  ;;  %v5829_v54 = vor.u32 %v6683_v2, %v5828_v1  ;;  %v5918_v53 = vld [vmem:[%s7691_s29 + $0x7dc] sm:$0xf0] }
 0x291   : > { %5973 = vmatmul.msk.bf16.vlgmr.msra.gmra.mxu2 %vm1243_vm0, %v8415_v11  ;;  %5972 = vmatmul.msk.bf16.vlgmr.msra.gmra.mxu1 %vm1243_vm0, %v8415_v11  ;;  %v6164_v32 = vor.u32 %v6756_v58, %v6163_v55  ;;  %v6168_v33 = vor.u32 %v6751_v16, %v6165_v20  ;;  %v6706_v60 = vld [vmem:[%s7691_s29 + $0x7e0] sm:$0xf0]  ;;  %v6729_v2 = vld [vmem:[%s7691_s29 + $0x89c] sm:$0xf]  ;;  %v6031_v58 = vld [vmem:[%s7691_s29 + $0x840] sm:$0xf] }
 0x292   : > { %3467 = vmatpush.bf16.msrb.mxu2 %v5913_v23  ;;  %5974 = vmatmul.msk.bf16.vlgmr.msra.gmra.mxu3 %vm1243_vm0, %v8415_v11  ;;  %v2151_v23 = vpop.f32.mrf.mxu2 }
 0x293   : > { %3480 = vmatpush.bf16.msrb.mxu3 %v5917_v18  ;;  %3441 = vmatpush.bf16.msrb.mxu0 %v5905_v21  ;;  %v5817_v18 = vor.u32 %v6676_v29, %v5814_v4  ;;  %v5821_v21 = vor.u32 %v6682_v50, %v5820_v10  ;;  %v2164_v31 = vpop.f32.mrf.mxu3  ;;  %v5874_v4 = vld [vmem:[%s7691_s29 + $0x784] sm:$0xf0]  ;;  %v5880_v10 = vld [vmem:[%s7691_s29 + $0x760] sm:$0xf]  ;;  %v6695_v50 = vld [vmem:[%s7691_s29 + $0x788] sm:$0xf0] }
 0x294   : > { %3454 = vmatpush.bf16.msrb.mxu1 %v5909_v30  ;;  %v8437_v30 = vmax.f32 %v1810_v0, %v2151_v23  ;;  %v8444_v39 = vmax.f32 %v1811_v36, %v2164_v31  ;;  %v5921_v36 = vor.u32 %v6700_v59, %v5918_v53  ;;  %v5881_v37 = vor.u32 %v6695_v50, %v5880_v10  ;;  %v5830_v23 = vld [vmem:[%s7691_s29 + $0x72c] sm:$0xf0]  ;;  %v6179_v31 = vld [vmem:[%s7691_s29 + $0x958] sm:$0xf]  ;;  %v6731_v50 = vld [vmem:[%s7691_s29 + $0x8ac] sm:$0xf] }
 0x295   : > { %v6180_v53 = vor.u32 %v6758_v44, %v6179_v31  ;;  %v6049_v31 = vld [vmem:[%s7691_s29 + $0x87c] sm:$0xf0] }
 0x296   : > { %3468 = vmatpush.bf16.msrb.mxu2 %v5869_v61  ;;  %v2127_v42 = vpop.f32.mrf.mxu0  ;;  %v2140_v0 = vpop.f32.mrf.mxu1  ;;  %v5925_v61 = vor.u32 %v6706_v60, %v5924_v56  ;;  %v6135_v60 = vld [vmem:[%s7691_s29 + $0x900] sm:$0xf] }
 0x297   : > { %3481 = vmatpush.bf16.msrb.mxu3 %v5873_v48  ;;  %3442 = vmatpush.bf16.msrb.mxu0 %v5861_v46  ;;  %v6075_v48 = vld [vmem:[%s7691_s29 + $0x898] sm:$0xf]  ;;  %v6077_v46 = vld [vmem:[%s7691_s29 + $0x8c4] sm:$0xf0]  ;;  %v6752_v42 = vld [vmem:[%s7691_s29 + $0x954] sm:$0xf] }
 0x298   : > { %3455 = vmatpush.bf16.msrb.mxu1 %v5865_v22  ;;  %v6689_v22 = vld [vmem:[%s7691_s29 + $0x75c] sm:$0xf]  ;;  %v6076_v19 = vor.u32 %v6734_v63, %v6075_v48  ;;  %v6742_v63 = vld [vmem:[%s7691_s29 + $0x904] sm:$0xf] }
 0x299   : > { %v5877_v41 = vor.u32 %v6689_v22, %v5874_v4  ;;  %v6140_v5 = vor.u32 %v6742_v63, %v6137_v12  ;;  %v6736_v4 = vld [vmem:[%s7691_s29 + $0x8d0] sm:$0xf0]  ;;  %v6151_v12 = vld [vmem:[%s7691_s29 + $0x910] sm:$0xf] }
 0x29a   : > { %3469 = vmatpush.bf16.msrb.mxu2 %v5825_v45  ;;  %v2153_v1 = vpop.f32.mrf.mxu2  ;;  %v6080_v45 = vor.u32 %v6729_v2, %v6077_v46  ;;  %v6741_v2 = vld [vmem:[%s7691_s29 + $0x8fc] sm:$0xf]  ;;  %v6129_v46 = vld [vmem:[%s7691_s29 + $0x924] sm:$0xf0] }
 0x29b   : > { %3482 = vmatpush.bf16.msrb.mxu3 %v5829_v54  ;;  %3443 = vmatpush.bf16.msrb.mxu0 %v5817_v18  ;;  %v2166_v29 = vpop.f32.mrf.mxu3  ;;  %v6723_v54 = vld [vmem:[%s7691_s29 + $0x868] sm:$0xf0]  ;;  %v5836_v18 = vld [vmem:[%s7691_s29 + $0x708] sm:$0xf]  ;;  %v6746_v1 = vld [vmem:[%s7691_s29 + $0x920] sm:$0xf0]  ;;  %v6132_v22 = vor.u32 %v6741_v2, %v6129_v46 }
 0x29c   : > { %3456 = vmatpush.bf16.msrb.mxu1 %v5821_v21  ;;  %v6684_v21 = vld [vmem:[%s7691_s29 + $0x730] sm:$0xf0]  ;;  %v6091_v29 = vld [vmem:[%s7691_s29 + $0x8a8] sm:$0xf] }
 0x29d   : > { %v5837_v15 = vor.u32 %v6684_v21, %v5836_v18  ;;  %v6725_v18 = vld [vmem:[%s7691_s29 + $0x878] sm:$0xf0]  ;;  %v6720_v21 = vld [vmem:[%s7691_s29 + $0x854] sm:$0xf] }
 0x29e   : > { %3802 = vmatpush.bf16.msra.mxu2 %v6164_v32  ;;  %v2177_v55 = vpop.f32.mrf.mxu0  ;;  %v2190_v20 = vpop.f32.mrf.mxu1  ;;  %v6171_v32 = vld [vmem:[%s7691_s29 + $0x950] sm:$0xf] }
 0x29f   : > { %3815 = vmatpush.bf16.msra.mxu3 %v6168_v33  ;;  %3492 = vmatpush.bf16.msra.mxu0 %v5965_v43  ;;  %v8464_v16 = vmax.f32 %v1812_v49, %v2177_v55  ;;  %v8472_v28 = vmax.f32 %v1813_v52, %v2190_v20  ;;  %v6678_v49 = vld [vmem:[%s7691_s29 + $0x704] sm:$0xf]  ;;  %v6181_v52 = vld [vmem:[%s7691_s29 + $0x984] sm:$0xf0]  ;;  %v6032_v33 = vor.u32 %v6723_v54, %v6031_v58  ;;  %v6173_v43 = vld [vmem:[%s7691_s29 + $0x97c] sm:$0xf0] }
 0x2a0   : > { %3505 = vmatpush.bf16.msra.mxu1 %v5969_v47  ;;  %5975 = vmatmul.msk.bf16.vlgmr.msrb.gmra.mxu0 %vm1243_vm0, %v8415_v11  ;;  %v5833_v51 = vor.u32 %v6678_v49, %v5830_v23  ;;  %v6184_v56 = vor.u32 %v6753_v9, %v6181_v52  ;;  %v6176_v48 = vor.u32 %v6752_v42, %v6173_v43  ;;  %v6093_v55 = vld [vmem:[%s7691_s29 + $0x8d4] sm:$0xf0]  ;;  %v6083_v58 = vld [vmem:[%s7691_s29 + $0x8a0] sm:$0xf]  ;;  %v6085_v54 = vld [vmem:[%s7691_s29 + $0x8cc] sm:$0xf0] }
 0x2a1   : > { %5977 = vmatmul.msk.bf16.vlgmr.msrb.gmra.mxu2 %vm1243_vm0, %v8415_v11  ;;  %5976 = vmatmul.msk.bf16.vlgmr.msrb.gmra.mxu1 %vm1243_vm0, %v8415_v11  ;;  %v6092_v49 = vor.u32 %v6736_v4, %v6091_v29  ;;  %v6096_v23 = vor.u32 %v6731_v50, %v6093_v55  ;;  %v6719_v52 = vld [vmem:[%s7691_s29 + $0x84c] sm:$0xf]  ;;  %v6197_v42 = vld [vmem:[%s7691_s29 + $0x994] sm:$0xf0]  ;;  %v6187_v43 = vld [vmem:[%s7691_s29 + $0x960] sm:$0xf] }
 0x2a2   : > { %3803 = vmatpush.bf16.msra.mxu2 %v6120_v17  ;;  %5978 = vmatmul.msk.bf16.vlgmr.msrb.gmra.mxu3 %vm1243_vm0, %v8415_v11  ;;  %v2203_v47 = vpop.f32.mrf.mxu2  ;;  %v6747_v17 = vld [vmem:[%s7691_s29 + $0x928] sm:$0xf0]  ;;  %v6748_v29 = vld [vmem:[%s7691_s29 + $0x930] sm:$0xf0] }
 0x2a3   : > { %3816 = vmatpush.bf16.msra.mxu3 %v6124_v34  ;;  %3493 = vmatpush.bf16.msra.mxu0 %v5921_v36  ;;  %v8497_v59 = vmax.f32 %v1814_v26, %v2203_v47  ;;  %v2216_v0 = vpop.f32.mrf.mxu3  ;;  %v6136_v14 = vor.u32 %v6747_v17, %v6135_v60  ;;  %v6048_v47 = vor.u32 %v6725_v18, %v6047_v27  ;;  %v6743_v4 = vld [vmem:[%s7691_s29 + $0x90c] sm:$0xf]  ;;  %v6109_v27 = vld [vmem:[%s7691_s29 + $0x8e4] sm:$0xf0]  ;;  %v6737_v18 = vld [vmem:[%s7691_s29 + $0x8d8] sm:$0xf0] }
 0x2a4   : > { %3506 = vmatpush.bf16.msra.mxu1 %v5925_v61  ;;  %v8504_v34 = vmax.f32 %v1815_v7, %v2216_v0  ;;  %v6172_v61 = vor.u32 %v6757_v38, %v6171_v32  ;;  %v6128_v7 = vor.u32 %v6746_v1, %v6127_v13  ;;  %v6041_v32 = vld [vmem:[%s7691_s29 + $0x874] sm:$0xf0]  ;;  %v6755_v38 = vld [vmem:[%s7691_s29 + $0x96c] sm:$0xf]  ;;  %v6754_v0 = vld [vmem:[%s7691_s29 + $0x964] sm:$0xf] }
 0x2a5   : > { %v6044_v17 = vor.u32 %v6719_v52, %v6041_v32  ;;  %v6200_v63 = vor.u32 %v6755_v38, %v6197_v42  ;;  %v6749_v13 = vld [vmem:[%s7691_s29 + $0x938] sm:$0xf0]  ;;  %v6065_v38 = vld [vmem:[%s7691_s29 + $0x88c] sm:$0xf0] }
 0x2a6   : > { %3804 = vmatpush.bf16.msra.mxu2 %v6076_v19  ;;  %v2179_v36 = vpop.f32.mrf.mxu0  ;;  %v2192_v26 = vpop.f32.mrf.mxu1  ;;  %v6735_v19 = vld [vmem:[%s7691_s29 + $0x8c8] sm:$0xf0]  ;;  %v6152_v50 = vor.u32 %v6749_v13, %v6151_v12  ;;  %v6203_v12 = vld [vmem:[%s7691_s29 + $0x970] sm:$0xf] }
 0x2a7   : > { %3817 = vmatpush.bf16.msra.mxu3 %v6080_v45  ;;  %3494 = vmatpush.bf16.msra.mxu0 %v5877_v41  ;;  %v6730_v45 = vld [vmem:[%s7691_s29 + $0x8a4] sm:$0xf]  ;;  %v6084_v9 = vor.u32 %v6735_v19, %v6083_v58  ;;  %v6107_v19 = vld [vmem:[%s7691_s29 + $0x8b8] sm:$0xf] }
 0x2a8   : > { %3507 = vmatpush.bf16.msra.mxu1 %v5881_v37  ;;  %v6088_v40 = vor.u32 %v6730_v45, %v6085_v54  ;;  %v6738_v45 = vld [vmem:[%s7691_s29 + $0x8e0] sm:$0xf0] }
 0x2a9   : > { %v6108_v52 = vor.u32 %v6738_v45, %v6107_v19 }
 0x2aa   : > { %3805 = vmatpush.bf16.msra.mxu2 %v6032_v33  ;;  %v2205_v10 = vpop.f32.mrf.mxu2  ;;  %v6195_v33 = vld [vmem:[%s7691_s29 + $0x968] sm:$0xf] }
 0x2ab   : > { %3818 = vmatpush.bf16.msra.mxu3 %v6036_v35  ;;  %3495 = vmatpush.bf16.msra.mxu0 %v5833_v51  ;;  %v2218_v20 = vpop.f32.mrf.mxu3  ;;  %v6760_v35 = vld [vmem:[%s7691_s29 + $0x990] sm:$0xf0]  ;;  %v6052_v51 = vor.u32 %v6720_v21, %v6049_v31  ;;  %v6145_v10 = vld [vmem:[%s7691_s29 + $0x934] sm:$0xf0]  ;;  %v6101_v31 = vld [vmem:[%s7691_s29 + $0x8dc] sm:$0xf0] }
 0x2ac   : > { %3508 = vmatpush.bf16.msra.mxu1 %v5837_v15  ;;  %v6759_v15 = vld [vmem:[%s7691_s29 + $0x988] sm:$0xf0]  ;;  %v6148_v20 = vor.u32 %v6743_v4, %v6145_v10  ;;  %v6732_v21 = vld [vmem:[%s7691_s29 + $0x8b4] sm:$0xf] }
 0x2ad   : > { %v6188_v2 = vor.u32 %v6759_v15, %v6187_v43  ;;  %v6726_v15 = vld [vmem:[%s7691_s29 + $0x880] sm:$0xf0] }
 0x2ae   : > { %3854 = vmatpush.bf16.msrb.mxu2 %v6180_v53  ;;  %v2229_v24 = vpop.f32.mrf.mxu0  ;;  %v8526_v37 = vpop.f32.mrf.mxu1  ;;  %v6189_v53 = vld [vmem:[%s7691_s29 + $0x98c] sm:$0xf0] }
 0x2af   : > { %3867 = vmatpush.bf16.msrb.mxu3 %v6184_v56  ;;  %3828 = vmatpush.bf16.msrb.mxu0 %v6172_v61  ;;  %v8524_v41 = vmax.f32 %v1816_v25, %v2229_v24  ;;  %v2660_v44 = vmax.f32 %v8372_v62, %v8526_v37  ;;  %v6724_v25 = vld [vmem:[%s7691_s29 + $0x870] sm:$0xf0]  ;;  %v6192_v46 = vor.u32 %v6754_v0, %v6189_v53  ;;  %v6733_v24 = vld [vmem:[%s7691_s29 + $0x8bc] sm:$0xf]  ;;  %v6057_v53 = vld [vmem:[%s7691_s29 + $0x884] sm:$0xf0] }
 0x2b0   : > { %3841 = vmatpush.bf16.msrb.mxu1 %v6176_v48  ;;  %5979 = vmatmul.msk.bf16.vlgmr.msra.gmra.mxu0 %vm1243_vm0, %v8415_v11  ;;  %v6040_v60 = vor.u32 %v6724_v25, %v6039_v8  ;;  %v6196_v48 = vor.u32 %v6760_v35, %v6195_v33  ;;  %v6112_v32 = vor.u32 %v6733_v24, %v6109_v27  ;;  %v6727_v33 = vld [vmem:[%s7691_s29 + $0x888] sm:$0xf0]  ;;  %v6722_v35 = vld [vmem:[%s7691_s29 + $0x864] sm:$0xf]  ;;  %v6721_v0 = vld [vmem:[%s7691_s29 + $0x85c] sm:$0xf] }
 0x2b1   : > { %6205 = vmatmul.msk.bf16.vlgmr.msra.gmra.mxu2 %vm1243_vm0, %v8415_v11  ;;  %5980 = vmatmul.msk.bf16.vlgmr.msra.gmra.mxu1 %vm1243_vm0, %v8415_v11  ;;  %v6362_v24 = vld [vmem:[%s7691_s29 + $0xa58] sm:$0xf]  ;;  %v6790_v27 = vld [vmem:[%s7691_s29 + $0xa80] sm:$0xf0] }
 0x2b2   : > { %3855 = vmatpush.bf16.msrb.mxu2 %v6136_v14  ;;  %6206 = vmatmul.msk.bf16.vlgmr.msra.gmra.mxu3 %vm1243_vm0, %v8415_v11  ;;  %v8553_v56 = vpop.f32.mrf.mxu2  ;;  %v6744_v14 = vld [vmem:[%s7691_s29 + $0x914] sm:$0xf] }
 0x2b3   : > { %3868 = vmatpush.bf16.msrb.mxu3 %v6140_v5  ;;  %3829 = vmatpush.bf16.msrb.mxu0 %v6128_v7  ;;  %v2661_v36 = vmax.f32 %v8379_v6, %v8553_v56  ;;  %v8557_v61 = vpop.f32.mrf.mxu3  ;;  %v6153_v5 = vld [vmem:[%s7691_s29 + $0x93c] sm:$0xf0]  ;;  %v6143_v7 = vld [vmem:[%s7691_s29 + $0x908] sm:$0xf]  ;;  %v6432_v6 = vld [vmem:[%s7691_s29 + $0xaf4] sm:$0xf0] }
 0x2b4   : > { %3842 = vmatpush.bf16.msrb.mxu1 %v6132_v22  ;;  %v2662_v26 = vmax.f32 %v8399_v57, %v8557_v61  ;;  %v6156_v55 = vor.u32 %v6744_v14, %v6153_v5  ;;  %v6144_v58 = vor.u32 %v6748_v29, %v6143_v7  ;;  %v6800_v14 = vld [vmem:[%s7691_s29 + $0xad0] sm:$0xf0]  ;;  %v6438_v56 = vld [vmem:[%s7691_s29 + $0xad0] sm:$0xf]  ;;  %v6794_v57 = vld [vmem:[%s7691_s29 + $0xaa0] sm:$0xf0] }
 0x2b5   : > { %v6787_v61 = vld [vmem:[%s7691_s29 + $0xa6c] sm:$0xf] }
 0x2b6   : > { %3856 = vmatpush.bf16.msrb.mxu2 %v6092_v49  ;;  %v2231_v1 = vpop.f32.mrf.mxu0  ;;  %v2528_v22 = vpop.f32.mrf.mxu1  ;;  %v6099_v49 = vld [vmem:[%s7691_s29 + $0x8b0] sm:$0xf] }
 0x2b7   : > { %3869 = vmatpush.bf16.msrb.mxu3 %v6096_v23  ;;  %3830 = vmatpush.bf16.msrb.mxu0 %v6084_v9  ;;  %v6100_v43 = vor.u32 %v6737_v18, %v6099_v49  ;;  %v6068_v1 = vor.u32 %v6722_v35, %v6065_v38  ;;  %v6060_v22 = vor.u32 %v6721_v0, %v6057_v53  ;;  %v6159_v49 = vld [vmem:[%s7691_s29 + $0x918] sm:$0xf]  ;;  %v6750_v18 = vld [vmem:[%s7691_s29 + $0x940] sm:$0xf0]  ;;  %v6773_v35 = vld [vmem:[%s7691_s29 + $0x9fc] sm:$0xf] }
 0x2b8   : > { %3843 = vmatpush.bf16.msrb.mxu1 %v6088_v40  ;;  %v6063_v40 = vld [vmem:[%s7691_s29 + $0x860] sm:$0xf]  ;;  %v6312_v38 = vld [vmem:[%s7691_s29 + $0xa24] sm:$0xf0]  ;;  %v6739_v0 = vld [vmem:[%s7691_s29 + $0x8e8] sm:$0xf0] }
 0x2b9   : > { %v6064_v13 = vor.u32 %v6727_v33, %v6063_v40 }
 0x2ba   : > { %3857 = vmatpush.bf16.msrb.mxu2 %v6048_v47  ;;  %v2541_v54 = vpop.f32.mrf.mxu2  ;;  %v6104_v47 = vor.u32 %v6732_v21, %v6101_v31  ;;  %v6354_v21 = vld [vmem:[%s7691_s29 + $0xa50] sm:$0xf]  ;;  %v6789_v31 = vld [vmem:[%s7691_s29 + $0xa78] sm:$0xf0] }
 0x2bb   : > { %3870 = vmatpush.bf16.msrb.mxu3 %v6052_v51  ;;  %3831 = vmatpush.bf16.msrb.mxu0 %v6040_v60  ;;  %v2554_v23 = vpop.f32.mrf.mxu3  ;;  %v6055_v51 = vld [vmem:[%s7691_s29 + $0x858] sm:$0xf]  ;;  %v6795_v60 = vld [vmem:[%s7691_s29 + $0xaac] sm:$0xf]  ;;  %v6355_v33 = vor.u32 %v6789_v31, %v6354_v21  ;;  %v6796_v21 = vld [vmem:[%s7691_s29 + $0xab4] sm:$0xf] }
 0x2bc   : > { %3844 = vmatpush.bf16.msrb.mxu1 %v6044_v17  ;;  %v6400_v17 = vld [vmem:[%s7691_s29 + $0xad4] sm:$0xf0]  ;;  %v6056_v7 = vor.u32 %v6726_v15, %v6055_v51  ;;  %v6779_v51 = vld [vmem:[%s7691_s29 + $0xa28] sm:$0xf0]  ;;  %v6115_v15 = vld [vmem:[%s7691_s29 + $0x8c0] sm:$0xf] }
 0x2bd   : > { %v6403_v10 = vor.u32 %v6795_v60, %v6400_v17  ;;  %v6310_v60 = vld [vmem:[%s7691_s29 + $0x9f8] sm:$0xf]  ;;  %v6778_v17 = vld [vmem:[%s7691_s29 + $0xa20] sm:$0xf0] }
 0x2be   : > { %3906 = vmatpush.bf16.msra.mxu2 %v6196_v48  ;;  %v8577_v9 = vpop.f32.mrf.mxu0  ;;  %v8582_v25 = vpop.f32.mrf.mxu1  ;;  %v6406_v48 = vld [vmem:[%s7691_s29 + $0xab0] sm:$0xf] }
 0x2bf   : > { %3919 = vmatpush.bf16.msra.mxu3 %v6200_v63  ;;  %3880 = vmatpush.bf16.msra.mxu0 %v6188_v2  ;;  %v2663_v8 = vmax.f32 %v8407_v3, %v8577_v9  ;;  %v2664_v42 = vmax.f32 %v8437_v30, %v8582_v25  ;;  %v6801_v63 = vld [vmem:[%s7691_s29 + $0xad8] sm:$0xf0]  ;;  %v6292_v30 = vld [vmem:[%s7691_s29 + $0x9e4] sm:$0xf0]  ;;  %v6298_v25 = vld [vmem:[%s7691_s29 + $0x9c0] sm:$0xf] }
 0x2c0   : > { %3893 = vmatpush.bf16.msra.mxu1 %v6192_v46  ;;  %6207 = vmatmul.msk.bf16.vlgmr.msrb.gmra.mxu0 %vm1243_vm0, %v8415_v11  ;;  %v6761_v2 = vld [vmem:[%s7691_s29 + $0x998] sm:$0xf0]  ;;  %v6398_v46 = vld [vmem:[%s7691_s29 + $0xaa8] sm:$0xf] }
 0x2c1   : > { %6209 = vmatmul.msk.bf16.vlgmr.msrb.gmra.mxu2 %vm1243_vm0, %v8415_v11  ;;  %6208 = vmatmul.msk.bf16.vlgmr.msrb.gmra.mxu1 %vm1243_vm0, %v8415_v11  ;;  %v6204_v45 = vor.u32 %v6761_v2, %v6203_v12  ;;  %v6399_v54 = vor.u32 %v6800_v14, %v6398_v46  ;;  %v6762_v12 = vld [vmem:[%s7691_s29 + $0x9a4] sm:$0xf]  ;;  %v6315_v2 = vor.u32 %v6773_v35, %v6312_v38  ;;  %v6268_v14 = vld [vmem:[%s7691_s29 + $0x9cc] sm:$0xf0] }
 0x2c2   : > { %3907 = vmatpush.bf16.msra.mxu2 %v6152_v50  ;;  %6210 = vmatmul.msk.bf16.vlgmr.msrb.gmra.mxu3 %vm1243_vm0, %v8415_v11  ;;  %v8609_v5 = vpop.f32.mrf.mxu2  ;;  %v6407_v50 = vor.u32 %v6801_v63, %v6406_v48  ;;  %v4379_v48 = vld [vmem:[%s8924_s2] sm:$0xff]  ;;  %v6271_v31 = vor.u32 %v6762_v12, %v6268_v14  ;;  %v6792_v14 = vld [vmem:[%s7691_s29 + $0xa90] sm:$0xf0] }
 0x2c3   : > { %3920 = vmatpush.bf16.msra.mxu3 %v6156_v55  ;;  %3881 = vmatpush.bf16.msra.mxu0 %v6144_v58  ;;  %v2665_v29 = vmax.f32 %v8444_v39, %v8609_v5  ;;  %v8613_v4 = vpop.f32.mrf.mxu3  ;;  %v6784_v55 = vld [vmem:[%s7691_s29 + $0xa54] sm:$0xf]  ;;  %v6356_v58 = vld [vmem:[%s7691_s29 + $0xa7c] sm:$0xf0] }
 0x2c4   : > { %3894 = vmatpush.bf16.msra.mxu1 %v6148_v20  ;;  %v2666_v20 = vmax.f32 %v8464_v16, %v8613_v4  ;;  %v6359_v40 = vor.u32 %v6784_v55, %v6356_v58  ;;  %v6116_v55 = vor.u32 %v6739_v0, %v6115_v15  ;;  %v6311_v58 = vor.u32 %v6778_v17, %v6310_v60  ;;  %v6372_v60 = vld [vmem:[%s7691_s29 + $0xa8c] sm:$0xf0] }
 0x2c6   : > { %3908 = vmatpush.bf16.msra.mxu2 %v6108_v52  ;;  %v2567_v19 = vpop.f32.mrf.mxu0  ;;  %v2580_v23 = vpop.f32.mrf.mxu1  ;;  %v6363_v52 = vor.u32 %v6790_v27, %v6362_v24  ;;  %v6767_v24 = vld [vmem:[%s7691_s29 + $0x9c8] sm:$0xf0]  ;;  %v6797_v27 = vld [vmem:[%s7691_s29 + $0xabc] sm:$0xf] }
 0x2c7   : > { %3921 = vmatpush.bf16.msra.mxu3 %v6112_v32  ;;  %3882 = vmatpush.bf16.msra.mxu0 %v6100_v43  ;;  %v6160_v32 = vor.u32 %v6750_v18, %v6159_v49  ;;  %v6318_v43 = vld [vmem:[%s7691_s29 + $0xa00] sm:$0xf]  ;;  %v6071_v19 = vld [vmem:[%s7691_s29 + $0x868] sm:$0xf]  ;;  %v6803_v18 = vld [vmem:[%s7691_s29 + $0xae8] sm:$0xf0] }
 0x2c8   : > { %3895 = vmatpush.bf16.msra.mxu1 %v6104_v47  ;;  %v6319_v46 = vor.u32 %v6779_v51, %v6318_v43  ;;  %v6416_v49 = vld [vmem:[%s7691_s29 + $0xae4] sm:$0xf0]  ;;  %v6422_v23 = vld [vmem:[%s7691_s29 + $0xac0] sm:$0xf] }
 0x2c9   : > { %v6419_v15 = vor.u32 %v6797_v27, %v6416_v49  ;;  %v6423_v0 = vor.u32 %v6803_v18, %v6422_v23  ;;  %v6775_v27 = vld [vmem:[%s7691_s29 + $0xa0c] sm:$0xf]  ;;  %v6328_v49 = vld [vmem:[%s7691_s29 + $0xa34] sm:$0xf0]  ;;  %v6334_v18 = vld [vmem:[%s7691_s29 + $0xa10] sm:$0xf] }
 0x2ca   : > { %3909 = vmatpush.bf16.msra.mxu2 %v6064_v13  ;;  %v2593_v47 = vpop.f32.mrf.mxu2 }
 0x2cb   : > { %3922 = vmatpush.bf16.msra.mxu3 %v6068_v1  ;;  %3883 = vmatpush.bf16.msra.mxu0 %v6056_v7  ;;  %v2606_v53 = vpop.f32.mrf.mxu3  ;;  %v6274_v7 = vld [vmem:[%s7691_s29 + $0x9a8] sm:$0xf] }
 0x2cc   : > { %3896 = vmatpush.bf16.msra.mxu1 %v6060_v22  ;;  %v6768_v22 = vld [vmem:[%s7691_s29 + $0x9d0] sm:$0xf0]  ;;  %v6786_v53 = vld [vmem:[%s7691_s29 + $0xa64] sm:$0xf] }
 0x2ce   : > { %4242 = vmatpush.bf16.msrb.mxu2 %v6403_v10  ;;  %v8636_v63 = vpop.f32.mrf.mxu0  ;;  %v8641_v1 = vpop.f32.mrf.mxu1  ;;  %v6861_v10 = vmov 0  }
 0x2cf   : > { %4255 = vmatpush.bf16.msrb.mxu3 %v6407_v50  ;;  %3932 = vmatpush.bf16.msrb.mxu0 %v6204_v45  ;;  %v2667_v13 = vmax.f32 %v8472_v28, %v8636_v63  ;;  %v2668_v50 = vmax.f32 %v8497_v59, %v8641_v1  ;;  %v6728_v45 = vld [vmem:[%s7691_s29 + $0x890] sm:$0xf0] }
 0x2d0   : > { %4229 = vmatpush.bf16.msrb.mxu1 %v6399_v54  ;;  %6833 = vset.pattern.permute.xlu0 %v6861_v10  ;;  %v6266_v54 = vld [vmem:[%s7691_s29 + $0x9a0] sm:$0xf]  ;;  %v6072_v38 = vor.u32 %v6728_v45, %v6071_v19  ;;  %v6364_v10 = vld [vmem:[%s7691_s29 + $0xa84] sm:$0xf0]  ;;  %v6375_v19 = vor.u32 %v6786_v53, %v6372_v60  ;;  %v6331_v53 = vor.u32 %v6775_v27, %v6328_v49 }
 0x2d1   : > { %4382 = vperm.xlu0 %6833, %v4379_v48   ;;  %6211 = vmatmul.msk.bf16.vlgmr.msra.gmra.mxu0 %vm1243_vm0, %v8415_v11  ;;  %v6267_v43 = vor.u32 %v6767_v24, %v6266_v54 }
 0x2d2   : > { %4243 = vmatpush.bf16.msrb.mxu2 %v6359_v40  ;;  %6212 = vmatmul.msk.bf16.vlgmr.msra.gmra.mxu1 %vm1243_vm0, %v8415_v11  ;;  %v6275_v40 = vor.u32 %v6768_v22, %v6274_v7  ;;  %v8668_v35 = vpop.f32.mrf.mxu2  ;;  %v6785_v7 = vld [vmem:[%s7691_s29 + $0xa5c] sm:$0xf] }
 0x2d3   : > { %4256 = vmatpush.bf16.msrb.mxu3 %v6363_v52  ;;  %3933 = vmatpush.bf16.msrb.mxu0 %v6160_v32  ;;  %v6408_v52 = vld [vmem:[%s7691_s29 + $0xadc] sm:$0xf0]  ;;  %v6414_v32 = vld [vmem:[%s7691_s29 + $0xab8] sm:$0xf]  ;;  %v2669_v47 = vmax.f32 %v8504_v34, %v8668_v35  ;;  %v8672_v51 = vpop.f32.mrf.mxu3  ;;  %v6367_v54 = vor.u32 %v6785_v7, %v6364_v10  ;;  %v6282_v7 = vld [vmem:[%s7691_s29 + $0x9b0] sm:$0xf] }
 0x2d4   : > { %4230 = vmatpush.bf16.msrb.mxu1 %v6355_v33  ;;  %6213 = vmatmul.msk.bf16.vlgmr.msra.gmra.mxu2 %vm1243_vm0, %v8415_v11  ;;  %v6802_v33 = vld [vmem:[%s7691_s29 + $0xae0] sm:$0xf0]  ;;  %v2670_v17 = vmax.f32 %v8524_v41, %v8672_v51  ;;  %v6411_v12 = vor.u32 %v6796_v21, %v6408_v52  ;;  %v6781_v21 = vld [vmem:[%s7691_s29 + $0xa38] sm:$0xf0]  ;;  %v6320_v52 = vld [vmem:[%s7691_s29 + $0xa2c] sm:$0xf0] }
 0x2d5   : > { %6214 = vmatmul.msk.bf16.vlgmr.msra.gmra.mxu3 %vm1243_vm0, %v8415_v11  ;;  %v6335_v60 = vor.u32 %v6781_v21, %v6334_v18  ;;  %v6799_v10 = vld [vmem:[%s7691_s29 + $0xacc] sm:$0xf] }
 0x2d6   : > { %4244 = vmatpush.bf16.msrb.mxu2 %v6315_v2  ;;  %v2619_v48 = vpop.f32.mrf.mxu0  ;;  %v6415_v2 = vor.u32 %v6802_v33, %v6414_v32  ;;  %v2632_v22 = vpop.f32.mrf.mxu1  ;;  %v6326_v32 = vld [vmem:[%s7691_s29 + $0xa08] sm:$0xf]  ;;  %v6780_v33 = vld [vmem:[%s7691_s29 + $0xa30] sm:$0xf0] }
 0x2d7   : > { %4257 = vmatpush.bf16.msrb.mxu3 %v6319_v46  ;;  %3934 = vmatpush.bf16.msrb.mxu0 %v6116_v55  ;;  %v6378_v46 = vld [vmem:[%s7691_s29 + $0xa68] sm:$0xf]  ;;  %v6370_v55 = vld [vmem:[%s7691_s29 + $0xa60] sm:$0xf]  ;;  %v6327_v37 = vor.u32 %v6780_v33, %v6326_v32  ;;  %v6769_v22 = vld [vmem:[%s7691_s29 + $0x9d8] sm:$0xf0] }
 0x2d8   : > { %4231 = vmatpush.bf16.msrb.mxu1 %v6311_v58  ;;  %v6791_v58 = vld [vmem:[%s7691_s29 + $0xa88] sm:$0xf0]  ;;  %v6379_v45 = vor.u32 %v6792_v14, %v6378_v46  ;;  %v6284_v48 = vld [vmem:[%s7691_s29 + $0x9dc] sm:$0xf0]  ;;  %v6276_v14 = vld [vmem:[%s7691_s29 + $0x9d4] sm:$0xf0] }
 0x2d9   : > { %v6371_v24 = vor.u32 %v6791_v58, %v6370_v55  ;;  %v6798_v55 = vld [vmem:[%s7691_s29 + $0xac4] sm:$0xf]  ;;  %v6388_v32 = vld [vmem:[%s7691_s29 + $0xa9c] sm:$0xf0] }
 0x2da   : > { %4245 = vmatpush.bf16.msrb.mxu2 %v6271_v31  ;;  %v2645_v23 = vpop.f32.mrf.mxu2  ;;  %v6774_v31 = vld [vmem:[%s7691_s29 + $0xa04] sm:$0xf] }
 0x2db   : > { %4258 = vmatpush.bf16.msrb.mxu3 %v6275_v40  ;;  %3935 = vmatpush.bf16.msrb.mxu0 %v6072_v38  ;;  %v2658_v40 = vpop.f32.mrf.mxu3  ;;  %v6323_v62 = vor.u32 %v6774_v31, %v6320_v52  ;;  %v6283_v23 = vor.u32 %v6769_v22, %v6282_v7  ;;  %v6435_v31 = vor.u32 %v6799_v10, %v6432_v6  ;;  %v6788_v52 = vld [vmem:[%s7691_s29 + $0xa74] sm:$0xf]  ;;  %v6783_v7 = vld [vmem:[%s7691_s29 + $0xa48] sm:$0xf0]  ;;  %v6336_v6 = vld [vmem:[%s7691_s29 + $0xa3c] sm:$0xf0] }
 0x2dc   : > { %4232 = vmatpush.bf16.msrb.mxu1 %v6267_v43  ;;  %v6764_v43 = vld [vmem:[%s7691_s29 + $0x9b4] sm:$0xf]  ;;  %v6391_v3 = vor.u32 %v6788_v52, %v6388_v32  ;;  %v6765_v52 = vld [vmem:[%s7691_s29 + $0x9bc] sm:$0xf] }
 0x2dd   : > { %v6287_v58 = vor.u32 %v6764_v43, %v6284_v48  ;;  %v6386_v48 = vld [vmem:[%s7691_s29 + $0xa70] sm:$0xf]  ;;  %v6776_v22 = vld [vmem:[%s7691_s29 + $0xa14] sm:$0xf]  ;;  %v6295_v32 = vor.u32 %v6765_v52, %v6292_v30 }
 0x2de   : > { %4294 = vmatpush.bf16.msra.mxu2 %v6419_v15  ;;  %v2953_v38 = vpop.f32.mrf.mxu0 }
 0x2df   : > { %4307 = vmatpush.bf16.msra.mxu3 %v6423_v0  ;;  %4268 = vmatpush.bf16.msra.mxu0 %v6411_v12  ;;  %v8696_v15 = vmax.f32 %v2660_v44, %v2953_v38  ;;  %v2966_v0 = vpop.f32.mrf.mxu1  ;;  %v6290_v12 = vld [vmem:[%s7691_s29 + $0x9b8] sm:$0xf]  ;;  %v6763_v44 = vld [vmem:[%s7691_s29 + $0x9ac] sm:$0xf] }
 0x2e0   : > { %4281 = vmatpush.bf16.msra.mxu1 %v6415_v2  ;;  %v6770_v2 = vld [vmem:[%s7691_s29 + $0x9e0] sm:$0xf0]  ;;  %v8704_v46 = vmax.f32 %v2661_v36, %v2966_v0  ;;  %v6805_v36 = vld [vmem:[%s7691_s29 + $0xaf8] sm:$0xf0]  ;;  %v6279_v49 = vor.u32 %v6763_v44, %v6276_v14  ;;  %v6350_v14 = vld [vmem:[%s7691_s29 + $0xa20] sm:$0xf] }
 0x2e1   : > { %6215 = vmatmul.msk.bf16.vlgmr.msrb.gmra.mxu0 %vm1243_vm0, %v8415_v11  ;;  %v6439_v40 = vor.u32 %v6805_v36, %v6438_v56  ;;  %v6342_v56 = vld [vmem:[%s7691_s29 + $0xa18] sm:$0xf]  ;;  %v6782_v36 = vld [vmem:[%s7691_s29 + $0xa40] sm:$0xf0] }
 0x2e2   : > { %4295 = vmatpush.bf16.msra.mxu2 %v6375_v19  ;;  %6440 = vmatmul.msk.bf16.vlgmr.msrb.gmra.mxu1 %vm1243_vm0, %v8415_v11  ;;  %v6291_v19 = vor.u32 %v6770_v2, %v6290_v12  ;;  %v2979_v27 = vpop.f32.mrf.mxu2  ;;  %v6793_v12 = vld [vmem:[%s7691_s29 + $0xa98] sm:$0xf0] }
 0x2e3   : > { %4308 = vmatpush.bf16.msra.mxu3 %v6379_v45  ;;  %4269 = vmatpush.bf16.msra.mxu0 %v6367_v54  ;;  %v6424_v45 = vld [vmem:[%s7691_s29 + $0xaec] sm:$0xf0]  ;;  %v6430_v54 = vld [vmem:[%s7691_s29 + $0xac8] sm:$0xf]  ;;  %v8729_v18 = vmax.f32 %v2662_v26, %v2979_v27  ;;  %v2992_v21 = vpop.f32.mrf.mxu3  ;;  %v6387_v2 = vor.u32 %v6793_v12, %v6386_v48 }
 0x2e4   : > { %4282 = vmatpush.bf16.msra.mxu1 %v6371_v24  ;;  %6441 = vmatmul.msk.bf16.vlgmr.msrb.gmra.mxu2 %vm1243_vm0, %v8415_v11  ;;  %v6804_v24 = vld [vmem:[%s7691_s29 + $0xaf0] sm:$0xf0]  ;;  %v8736_v33 = vmax.f32 %v2663_v8, %v2992_v21  ;;  %v6427_v43 = vor.u32 %v6798_v55, %v6424_v45  ;;  %v6300_v27 = vld [vmem:[%s7691_s29 + $0x9ec] sm:$0xf0]  ;;  %v6343_v21 = vor.u32 %v6782_v36, %v6342_v56 }
 0x2e5   : > { %6442 = vmatmul.msk.bf16.vlgmr.msrb.gmra.mxu3 %vm1243_vm0, %v8415_v11  ;;  %v6431_v0 = vor.u32 %v6804_v24, %v6430_v54  ;;  %v6351_v54 = vor.u32 %v6783_v7, %v6350_v14  ;;  %v6766_v24 = vld [vmem:[%s7691_s29 + $0x9c4] sm:$0xf] }
 0x2e6   : > { %4296 = vmatpush.bf16.msra.mxu2 %v6331_v53  ;;  %v2955_v38 = vpop.f32.mrf.mxu0  ;;  %v6394_v53 = vld [vmem:[%s7691_s29 + $0xa78] sm:$0xf]  ;;  %v6303_v39 = vor.u32 %v6766_v24, %v6300_v27 }
 0x2e7   : > { %4309 = vmatpush.bf16.msra.mxu3 %v6335_v60  ;;  %4270 = vmatpush.bf16.msra.mxu0 %v6323_v62  ;;  %v2968_v26 = vpop.f32.mrf.mxu1  ;;  %v6380_v60 = vld [vmem:[%s7691_s29 + $0xa94] sm:$0xf0]  ;;  %v6395_v9 = vor.u32 %v6794_v57, %v6394_v53  ;;  %v6777_v62 = vld [vmem:[%s7691_s29 + $0xa1c] sm:$0xf] }
 0x2e8   : > { %4283 = vmatpush.bf16.msra.mxu1 %v6327_v37  ;;  %v6383_v8 = vor.u32 %v6787_v61, %v6380_v60  ;;  %v6344_v37 = vld [vmem:[%s7691_s29 + $0xa44] sm:$0xf0] }
 0x2e9   : > { %v6347_v45 = vor.u32 %v6777_v62, %v6344_v37 }
 0x2ea   : > { %4297 = vmatpush.bf16.msra.mxu2 %v6287_v58  ;;  %v2981_v44 = vpop.f32.mrf.mxu2 }
 0x2eb   : > { %4310 = vmatpush.bf16.msra.mxu3 %v6291_v19  ;;  %4271 = vmatpush.bf16.msra.mxu0 %v6279_v49  ;;  %v2994_v10 = vpop.f32.mrf.mxu3 }
 0x2ec   : > { %4284 = vmatpush.bf16.msra.mxu1 %v6283_v23  ;;  %v6339_v23 = vor.u32 %v6776_v22, %v6336_v6 }
 0x2ee   : > { %4346 = vmatpush.bf16.msrb.mxu2 %v6435_v31  ;;  %v3005_v55 = vpop.f32.mrf.mxu0  ;;  %v6306_v31 = vld [vmem:[%s7691_s29 + $0x9c8] sm:$0xf] }
 0x2ef   : > { %4359 = vmatpush.bf16.msrb.mxu3 %v6439_v40  ;;  %4320 = vmatpush.bf16.msrb.mxu0 %v6427_v43  ;;  %v8755_v58 = vmax.f32 %v2664_v42, %v3005_v55  ;;  %v3018_v19 = vpop.f32.mrf.mxu1  ;;  %v6772_v40 = vld [vmem:[%s7691_s29 + $0x9f0] sm:$0xf0]  ;;  %v6771_v42 = vld [vmem:[%s7691_s29 + $0x9e8] sm:$0xf0] }
 0x2f0   : > { %4333 = vmatpush.bf16.msrb.mxu1 %v6431_v0  ;;  %v8762_v49 = vmax.f32 %v2665_v29, %v3018_v19  ;;  %v6307_v5 = vor.u32 %v6772_v40, %v6306_v31  ;;  %v6299_v38 = vor.u32 %v6771_v42, %v6298_v25 }
 0x2f1   : > { %6443 = vmatmul.msk.bf16.vlgmr.msra.gmra.mxu0 %vm1243_vm0, %v8415_v11 }
 0x2f2   : > { %4347 = vmatpush.bf16.msrb.mxu2 %v6391_v3  ;;  %6444 = vmatmul.msk.bf16.vlgmr.msra.gmra.mxu1 %vm1243_vm0, %v8415_v11  ;;  %v3031_v29 = vpop.f32.mrf.mxu2 }
 0x2f3   : > { %4360 = vmatpush.bf16.msrb.mxu3 %v6395_v9  ;;  %4321 = vmatpush.bf16.msrb.mxu0 %v6383_v8  ;;  %v8781_v43 = vmax.f32 %v2666_v20, %v3031_v29  ;;  %v3044_v0 = vpop.f32.mrf.mxu3  ;;  %v6836_v20 = vld [vmem:[%s8923_s1] sm:$0xf] }
 0x2f4   : > { %4334 = vmatpush.bf16.msrb.mxu1 %v6387_v2  ;;  %6445 = vmatmul.msk.bf16.vlgmr.msra.gmra.mxu2 %vm1243_vm0, %v8415_v11  ;;  %v8786_v53 = vmax.f32 %v2667_v13, %v3044_v0 }
 0x2f5   : > { %6446 = vmatmul.msk.bf16.vlgmr.msra.gmra.mxu3 %vm1243_vm0, %v8415_v11 }
 0x2f6   : > { %4348 = vmatpush.bf16.msrb.mxu2 %v6347_v45  ;;  %v3007_v11 = vpop.f32.mrf.mxu0 }
 0x2f7   : > { %4361 = vmatpush.bf16.msrb.mxu3 %v6351_v54  ;;  %4322 = vmatpush.bf16.msrb.mxu0 %v6339_v23  ;;  %v3020_v57 = vpop.f32.mrf.mxu1 }
 0x2f8   : > { %4335 = vmatpush.bf16.msrb.mxu1 %v6343_v21 }
 0x2fa   : > { %4349 = vmatpush.bf16.msrb.mxu2 %v6303_v39  ;;  %v3033_v61 = vpop.f32.mrf.mxu2 }
 0x2fb   : > { %4362 = vmatpush.bf16.msrb.mxu3 %v6307_v5  ;;  %4323 = vmatpush.bf16.msrb.mxu0 %v6295_v32  ;;  %v3046_v26 = vpop.f32.mrf.mxu3 }
 0x2fc   : > { %4336 = vmatpush.bf16.msrb.mxu1 %v6299_v38 }
 0x2fe   : > { %v3057_v60 = vpop.f32.mrf.mxu0 }
 0x2ff   : > { %v8791_v16 = vmax.f32 %v2668_v50, %v3057_v60  ;;  %v3070_v4 = vpop.f32.mrf.mxu1 }
 0x300   : > { %v8796_v28 = vmax.f32 %v2669_v47, %v3070_v4 }
 0x301   : > { %6447 = vmatmul.msk.bf16.vlgmr.msrb.gmra.mxu0 %vm1243_vm0, %v6836_v20 }
 0x302   : > { %6448 = vmatmul.msk.bf16.vlgmr.msrb.gmra.mxu1 %vm1243_vm0, %v6836_v20  ;;  %v3083_v59 = vpop.f32.mrf.mxu2 }
 0x303   : > { %v8808_v63 = vmax.f32 %v2670_v17, %v3083_v59  ;;  %v3380_v34 = vpop.f32.mrf.mxu3 }
 0x304   : > { %6449 = vmatmul.msk.bf16.vlgmr.msrb.gmra.mxu2 %vm1243_vm0, %v6836_v20  ;;  %v3514_v13 = vmax.f32 %v8696_v15, %v3380_v34 }
 0x305   : > { %6450 = vmatmul.msk.bf16.vlgmr.msrb.gmra.mxu3 %vm1243_vm0, %v6836_v20 }
 0x306   : > { %v3059_v1 = vpop.f32.mrf.mxu0 }
 0x307   : > { %v3072_v50 = vpop.f32.mrf.mxu1 }
 0x30a   : > { %v3085_v35 = vpop.f32.mrf.mxu2 }
 0x30b   : > { %v3382_v47 = vpop.f32.mrf.mxu3 }
 0x30e   : > { %v3393_v48 = vpop.f32.mrf.mxu0 }
 0x30f   : > { %v3515_v12 = vmax.f32 %v8704_v46, %v3393_v48  ;;  %v3406_v3 = vpop.f32.mrf.mxu1 }
 0x310   : > { %v3516_v9 = vmax.f32 %v8729_v18, %v3406_v3 }
 0x314   : > { %v8813_v8 = vpop.f32.mrf.mxu2 }
 0x315   : > { %v3517_v41 = vmax.f32 %v8736_v33, %v8813_v8  ;;  %v8817_v51 = vpop.f32.mrf.mxu3 }
 0x316   : > { %v3518_v17 = vmax.f32 %v8755_v58, %v8817_v51  ;;  %v3395_v15 = vpop.f32.mrf.mxu0 }
 0x317   : > { %v3408_v2 = vpop.f32.mrf.mxu1 }
 0x31c   : > { %v3421_v62 = vpop.f32.mrf.mxu2 }
 0x31d   : > { %v3434_v37 = vpop.f32.mrf.mxu3 }
 0x31e   : > { %v8821_v44 = vpop.f32.mrf.mxu0 }
 0x31f   : > { %v3519_v46 = vmax.f32 %v8762_v49, %v8821_v44  ;;  %v8825_v18 = vpop.f32.mrf.mxu1 }
 0x320   : > { %v3520_v14 = vmax.f32 %v8781_v43, %v8825_v18 }
 0x324   : > { %v8829_v7 = vpop.f32.mrf.mxu2 }
 0x325   : > { %v3521_v22 = vmax.f32 %v8786_v53, %v8829_v7  ;;  %v8833_v10 = vpop.f32.mrf.mxu3 }
 0x326   : > { %v3522_v6 = vmax.f32 %v8791_v16, %v8833_v10  ;;  %v3447_v56 = vpop.f32.mrf.mxu0 }
 0x327   : > { %v3460_v36 = vpop.f32.mrf.mxu1 }
 0x32c   : > { %v3473_v55 = vpop.f32.mrf.mxu2 }
 0x32d   : > { %v3486_v19 = vpop.f32.mrf.mxu3 }
 0x32e   : > { %v8837_v45 = vpop.f32.mrf.mxu0 }
 0x32f   : > { %v3523_v54 = vmax.f32 %v8796_v28, %v8837_v45  ;;  %v8841_v24 = vpop.f32.mrf.mxu1 }
 0x330   : > { %v3524_v27 = vmax.f32 %v8808_v63, %v8841_v24 }
 0x334   : > { %v3807_v23 = vpop.f32.mrf.mxu2 }
 0x335   : > { %v3820_v21 = vpop.f32.mrf.mxu3  ;;  %v3941_v34 = vmax.f32 %v3514_v13, %v3807_v23 }
 0x336   : > { %v3499_v31 = vpop.f32.mrf.mxu0  ;;  %v3942_v3 = vmax.f32 %v3515_v12, %v3820_v21 }
 0x337   : > { %v3512_v40 = vpop.f32.mrf.mxu1 }
 0x33c   : > { %v3809_v52 = vpop.f32.mrf.mxu2 }
 0x33d   : > { %v3822_v30 = vpop.f32.mrf.mxu3 }
 0x33e   : > { %v3833_v25 = vpop.f32.mrf.mxu0 }
 0x33f   : > { %v3846_v42 = vpop.f32.mrf.mxu1  ;;  %v3943_v15 = vmax.f32 %v3516_v9, %v3833_v25 }
 0x340   : > { %v3944_v9 = vmax.f32 %v3517_v41, %v3846_v42 }
 0x343   : > { %v8855_v35 = vpop.permute.xlu0 %4382 }
 0x344   : > { %v3859_v39 = vpop.f32.mrf.mxu2 }
 0x345   : > { %v3872_v5 = vpop.f32.mrf.mxu3  ;;  %v3945_v52 = vmax.f32 %v3518_v17, %v3859_v39 }
 0x346   : > { %v3835_v29 = vpop.f32.mrf.mxu0 }
 0x347   : > { %v3848_v32 = vpop.f32.mrf.mxu1 }
 0x34c   : > { %v3861_v38 = vpop.f32.mrf.mxu2 }
 0x34d   : > { %v3874_v0 = vpop.f32.mrf.mxu3 }
 0x34e   : > { %v3885_v11 = vpop.f32.mrf.mxu0 }
 0x34f   : > { %v8845_v57 = vpop.f32.mrf.mxu1  ;;  %v3947_v58 = vmax.f32 %v3520_v14, %v3885_v11 }
 0x350   : > { %v3948_v18 = vmax.f32 %v3521_v22, %v8845_v57 }
 0x356   : > { %v3887_v60 = vpop.f32.mrf.mxu0 }
 0x357   : > { %v8847_v61 = vpop.f32.mrf.mxu2  ;;  %v3900_v4 = vpop.f32.mrf.mxu1  ;;  %v3946_v60 = vmax.f32 %v3519_v46, %v3872_v5 }
 0x358   : > { %v8851_v26 = vpop.f32.mrf.mxu3  ;;  %v3949_v5 = vmax.f32 %v3522_v6, %v8847_v61 }
 0x359   : > { %v3950_v53 = vmax.f32 %v3523_v54, %v8851_v26 }
 0x35e   : > { %v8853_v1 = vpop.f32.mrf.mxu0 }
 0x35f   : > { %v3913_v20 = vpop.f32.mrf.mxu2  ;;  %v4234_v50 = vpop.f32.mrf.mxu1  ;;  %v3951_v16 = vmax.f32 %v3524_v27, %v8853_v1 }
 0x360   : > { %v3926_v59 = vpop.f32.mrf.mxu3  ;;  %v4368_v47 = vmax.f32 %v3941_v34, %v4234_v50 }
 0x362   : > { %v4385_v48 = vadd.f32 %v8855_v35, %v4368_v47 }
 0x364   : > { %v4396_v13 = vmax.f32 %v4385_v48, 0.0 }
 0x366   : > { %4407 = vst [vmem:[%s8861_s20] sm:$0xff] %v4396_v13  ;;  %v3939_v36 = vpop.f32.mrf.mxu0 }
 0x367   : > { %v4247_v2 = vpop.f32.mrf.mxu2  ;;  %v4236_v19 = vpop.f32.mrf.mxu1 }
 0x368   : > { %v4369_v62 = vmax.f32 %v3942_v3, %v4247_v2  ;;  %v4260_v37 = vpop.f32.mrf.mxu3 }
 0x369   : > { %v4370_v56 = vmax.f32 %v3943_v15, %v4260_v37 }
 0x36a   : > { %v4386_v55 = vadd.f32 %v8855_v35, %v4369_v62 }
 0x36b   : > { %v4387_v12 = vadd.f32 %v8855_v35, %v4370_v56 }
 0x36c   : > { %v4397_v23 = vmax.f32 %v4386_v55, 0.0 }
 0x36d   : > { %v4398_v21 = vmax.f32 %v4387_v12, 0.0 }
 0x36e   : > { %4408 = vst [vmem:[%s8861_s20 + $0x8] sm:$0xff] %v4397_v23  ;;  %v4273_v30 = vpop.f32.mrf.mxu0 }
 0x36f   : > { %4409 = vst [vmem:[%s8861_s20 + $0x10] sm:$0xff] %v4398_v21  ;;  %v4249_v31 = vpop.f32.mrf.mxu2  ;;  %v4371_v25 = vmax.f32 %v3944_v9, %v4273_v30  ;;  %v4286_v29 = vpop.f32.mrf.mxu1 }
 0x370   : > { %v4262_v40 = vpop.f32.mrf.mxu3  ;;  %v4372_v32 = vmax.f32 %v3945_v52, %v4286_v29 }
 0x371   : > { %v4388_v38 = vadd.f32 %v8855_v35, %v4371_v25 }
 0x372   : > { %v4389_v0 = vadd.f32 %v8855_v35, %v4372_v32 }
 0x373   : > { %v4399_v33 = vmax.f32 %v4388_v38, 0.0 }
 0x374   : > { %v4400_v8 = vmax.f32 %v4389_v0, 0.0 }
 0x375   : > { %4410 = vst [vmem:[%s8861_s20 + $0x18] sm:$0xff] %v4399_v33 }
 0x376   : > { %4411 = vst [vmem:[%s8861_s20 + $0x20] sm:$0xff] %v4400_v8  ;;  %v4275_v39 = vpop.f32.mrf.mxu0 }
 0x377   : > { %v4299_v41 = vpop.f32.mrf.mxu2  ;;  %v4288_v20 = vpop.f32.mrf.mxu1 }
 0x378   : > { %v4373_v51 = vmax.f32 %v3946_v60, %v4299_v41  ;;  %v4312_v17 = vpop.f32.mrf.mxu3 }
 0x379   : > { %v4374_v42 = vmax.f32 %v3947_v58, %v4312_v17 }
 0x37a   : > { %v4390_v4 = vadd.f32 %v8855_v35, %v4373_v51 }
 0x37b   : > { %v4391_v49 = vadd.f32 %v8855_v35, %v4374_v42 }
 0x37c   : > { %v4401_v44 = vmax.f32 %v4390_v4, 0.0 }
 0x37d   : > { %v4402_v46 = vmax.f32 %v4391_v49, 0.0 }
 0x37e   : > { %4412 = vst [vmem:[%s8861_s20 + $0x28] sm:$0xff] %v4401_v44  ;;  %v4325_v11 = vpop.f32.mrf.mxu0 }
 0x37f   : > { %4413 = vst [vmem:[%s8861_s20 + $0x30] sm:$0xff] %v4402_v46  ;;  %v4301_v43 = vpop.f32.mrf.mxu2  ;;  %v4375_v59 = vmax.f32 %v3948_v18, %v4325_v11  ;;  %v4338_v34 = vpop.f32.mrf.mxu1 }
 0x380   : > { %v4314_v14 = vpop.f32.mrf.mxu3  ;;  %v4376_v50 = vmax.f32 %v3949_v5, %v4338_v34 }
 0x381   : > { %v4392_v47 = vadd.f32 %v8855_v35, %v4375_v59 }
 0x382   : > { %v4393_v48 = vadd.f32 %v8855_v35, %v4376_v50 }
 0x383   : > { %v4403_v7 = vmax.f32 %v4392_v47, 0.0 }
 0x384   : > { %v4404_v22 = vmax.f32 %v4393_v48, 0.0 }
 0x385   : > { %4414 = vst [vmem:[%s8861_s20 + $0x38] sm:$0xff] %v4403_v7 }
 0x386   : > { %4415 = vst [vmem:[%s8861_s20 + $0x40] sm:$0xff] %v4404_v22  ;;  %v4327_v3 = vpop.f32.mrf.mxu0 }
 0x387   : > { %v4351_v10 = vpop.f32.mrf.mxu2  ;;  %v4340_v28 = vpop.f32.mrf.mxu1 }
 0x388   : > { %v4377_v6 = vmax.f32 %v3950_v53, %v4351_v10  ;;  %v4364_v57 = vpop.f32.mrf.mxu3 }
 0x389   : > { %v4378_v61 = vmax.f32 %v3951_v16, %v4364_v57 }
 0x38a   : > { %v4394_v15 = vadd.f32 %v8855_v35, %v4377_v6 }
 0x38b   : > { %v4395_v45 = vadd.f32 %v8855_v35, %v4378_v61 }
 0x38c   : > { %v4405_v54 = vmax.f32 %v4394_v15, 0.0 }
 0x38d   : > { %v4406_v26 = vmax.f32 %v4395_v45, 0.0 }
 0x38e   : > { %4416 = vst [vmem:[%s8861_s20 + $0x48] sm:$0xff] %v4405_v54 }
 0x38f   : > { %4417 = vst [vmem:[%s8861_s20 + $0x50] sm:$0xff] %v4406_v26  ;;  %v4353_v63 = vpop.f32.mrf.mxu2 }
 0x390   : > { %v4366_v24 = vpop.f32.mrf.mxu3 }
 0x391 PF: > { %p10_p9 = scmp.ge.s32.totalorder %s6899_s16, 4   ;;  %s8926_s12 = smov %s6855_s13 }
 0x392   : > { %s8927_s13 = smov %s6908_s19  ;;  %s8928_s14 = smov %s6899_s16 }
 0x393   :  { %12 = sbr.rel (!%p10_p9) target bundleno = 2 (0x2), region = 106 }

// kernel: regressor_net_forward.4
= control target key start
LH: loop header
LB: loop body
LE: loop exit
PB: predicated region body
PF: predicated region fallthrough
CT: control target
= control target key end

     0   :  { %vm44_vm0 = vcmask 1043456   ;;  %vm40_vm1 = vcmask 195584   ;;  %s842_s0 = inlined_call_operand.vmem [shape: bf16[8,24,256], index: 0, kind: input, shape index: {}]   ;;  %s843_s1 = inlined_call_operand.vmem [shape: bf16[16,24], index: 1, kind: input, shape index: {}]   ;;  %s844_s2 = inlined_call_operand.vmem [shape: f32[16,1], index: 2, kind: input, shape index: {}]   ;;  %s845_s3 = inlined_call_operand.vmem [shape: f32[16,256], index: 3, kind: output, shape index: {}]  }
   0x1   :  { %v19_v0 = vld [vmem:[%s842_s0 + $0x10] sm:$0xff]  ;;  %v522_v1 = vld [vmem:[%s842_s0 + $0x28] sm:$0xff]  ;;  %v512_v2 = vld [vmem:[%s842_s0] sm:$0xf] }
   0x2   :  { %v32_v3 = vunpack.c.l.b16 %v19_v0  ;;  %v33_v4 = vunpack.c.h.b16 %v19_v0  ;;  %v90_v5 = vunpack.c.l.b16 %v522_v1  ;;  %v91_v6 = vunpack.c.h.b16 %v522_v1  ;;  %v613_v7 = vld [vmem:[%s842_s0 + $0x4] sm:$0xf0]  ;;  %v612_v8 = vld [vmem:[%s842_s0 + $0x4] sm:$0xf]  ;;  %v514_v9 = vld [vmem:[%s842_s0 + $0x8] sm:$0xf0] }
   0x3   :  { %v525_v14 = vld [vmem:[%s842_s0 + $0x18] sm:$0xf]  ;;  %v615_v15 = vld [vmem:[%s842_s0 + $0x1c] sm:$0xf0]  ;;  %v513_v17 = vor.u32 %v613_v7, %v512_v2  ;;  %v517_v18 = vor.u32 %v612_v8, %v514_v9  ;;  %v614_v19 = vld [vmem:[%s842_s0 + $0x1c] sm:$0xf] }
   0x4   :  { %v36_v10 = vpack.c.b16 %v32_v3, %v32_v3  ;;  %v37_v11 = vpack.c.b16 %v33_v4, %v33_v4  ;;  %v94_v12 = vpack.c.b16 %v90_v5, %v90_v5  ;;  %v95_v13 = vpack.c.b16 %v91_v6, %v91_v6  ;;  %v548_v16 = vld [vmem:[%s842_s0 + $0x58] sm:$0xff]  ;;  %v527_v20 = vld [vmem:[%s842_s0 + $0x20] sm:$0xf0]  ;;  %v574_v34 = vld [vmem:[%s842_s0 + $0x88] sm:$0xff] }
   0x5   :  { %v204_v21 = vunpack.c.l.b16 %v548_v16  ;;  %v205_v22 = vunpack.c.h.b16 %v548_v16  ;;  %v535_v23 = vld [vmem:[%s842_s0 + $0x40] sm:$0xff]  ;;  %v526_v32 = vor.u32 %v615_v15, %v525_v14  ;;  %v530_v33 = vor.u32 %v614_v19, %v527_v20  ;;  %v551_v38 = vld [vmem:[%s842_s0 + $0x48] sm:$0xf]  ;;  %v619_v39 = vld [vmem:[%s842_s0 + $0x4c] sm:$0xf0] }
   0x6   :  { %v46_v24 = vsel %vm44_vm0, %v36_v10, 0  ;;  %v49_v25 = vsel %vm44_vm0, %v37_v11, 0  ;;  %v99_v26 = vsel %vm44_vm0, %v94_v12, 0  ;;  %v102_v27 = vsel %vm44_vm0, %v95_v13, 0  ;;  %v561_v40 = vld [vmem:[%s842_s0 + $0x70] sm:$0xff]  ;;  %v707_v41 = vld [vmem:[%s843_s1] sm:$0xff] }
   0x7   :  { %57 = vmatpush.bf16.msra.mxu0 %v46_v24  ;;  %71 = vmatpush.bf16.msra.mxu1 %v49_v25  ;;  %v208_v28 = vpack.c.b16 %v204_v21, %v204_v21  ;;  %v209_v29 = vpack.c.b16 %v205_v22, %v205_v22  ;;  %v147_v30 = vunpack.c.l.b16 %v535_v23  ;;  %v148_v31 = vunpack.c.h.b16 %v535_v23  ;;  %v618_v43 = vld [vmem:[%s842_s0 + $0x4c] sm:$0xf]  ;;  %v553_v44 = vld [vmem:[%s842_s0 + $0x50] sm:$0xf0]  ;;  %v538_v49 = vld [vmem:[%s842_s0 + $0x30] sm:$0xf] }
   0x8   :  { %110 = vmatpush.bf16.msra.mxu2 %v99_v26  ;;  %124 = vmatpush.bf16.msra.mxu3 %v102_v27  ;;  %v318_v45 = vunpack.c.l.b16 %v574_v34  ;;  %v319_v46 = vunpack.c.h.b16 %v574_v34  ;;  %v261_v47 = vunpack.c.l.b16 %v561_v40  ;;  %v262_v48 = vunpack.c.h.b16 %v561_v40  ;;  %v617_v50 = vld [vmem:[%s842_s0 + $0x34] sm:$0xf0]  ;;  %v616_v57 = vld [vmem:[%s842_s0 + $0x34] sm:$0xf]  ;;  %v540_v58 = vld [vmem:[%s842_s0 + $0x38] sm:$0xf0] }
   0x9   :  { %v213_v35 = vsel %vm44_vm0, %v208_v28, 0  ;;  %v151_v36 = vpack.c.b16 %v147_v30, %v147_v30  ;;  %v152_v37 = vpack.c.b16 %v148_v31, %v148_v31  ;;  %v216_v42 = vsel %vm44_vm0, %v209_v29, 0  ;;  %v577_v61 = vld [vmem:[%s842_s0 + $0x78] sm:$0xf]  ;;  %v623_v62 = vld [vmem:[%s842_s0 + $0x7c] sm:$0xf0] }
   0xa   :  { %v322_v51 = vpack.c.b16 %v318_v45, %v318_v45  ;;  %v323_v52 = vpack.c.b16 %v319_v46, %v319_v46  ;;  %v552_v55 = vor.u32 %v619_v39, %v551_v38  ;;  %v556_v56 = vor.u32 %v618_v43, %v553_v44  ;;  %v622_v1 = vld [vmem:[%s842_s0 + $0x7c] sm:$0xf]  ;;  %v579_v2 = vld [vmem:[%s842_s0 + $0x80] sm:$0xf0]  ;;  %v564_v5 = vld [vmem:[%s842_s0 + $0x60] sm:$0xf] }
   0xb   :  { %58 = vmatpush.bf16.msra.mxu0 %v513_v17  ;;  %72 = vmatpush.bf16.msra.mxu1 %v517_v18  ;;  %v156_v53 = vsel %vm44_vm0, %v151_v36, 0  ;;  %v159_v54 = vsel %vm44_vm0, %v152_v37, 0  ;;  %v265_v59 = vpack.c.b16 %v261_v47, %v261_v47  ;;  %v266_v60 = vpack.c.b16 %v262_v48, %v262_v48  ;;  %v621_v6 = vld [vmem:[%s842_s0 + $0x64] sm:$0xf0]  ;;  %v620_v7 = vld [vmem:[%s842_s0 + $0x64] sm:$0xf] }
   0xc   :  { %111 = vmatpush.bf16.msra.mxu2 %v526_v32  ;;  %125 = vmatpush.bf16.msra.mxu3 %v530_v33  ;;  %v327_v63 = vsel %vm44_vm0, %v322_v51, 0  ;;  %v330_v0 = vsel %vm44_vm0, %v323_v52, 0  ;;  %v539_v3 = vor.u32 %v617_v50, %v538_v49  ;;  %v543_v4 = vor.u32 %v616_v57, %v540_v58  ;;  %v566_v12 = vld [vmem:[%s842_s0 + $0x68] sm:$0xf0]  ;;  %v600_v13 = vld [vmem:[%s842_s0 + $0xb8] sm:$0xff]  ;;  %v587_v14 = vld [vmem:[%s842_s0 + $0xa0] sm:$0xff] }
   0xd   :  { %v270_v8 = vsel %vm44_vm0, %v265_v59, 0  ;;  %v273_v9 = vsel %vm44_vm0, %v266_v60, 0  ;;  %v578_v10 = vor.u32 %v623_v62, %v577_v61  ;;  %v582_v11 = vor.u32 %v622_v1, %v579_v2  ;;  %v603_v25 = vld [vmem:[%s842_s0 + $0xa8] sm:$0xf]  ;;  %v627_v26 = vld [vmem:[%s842_s0 + $0xac] sm:$0xf0] }
   0xe   :  { %518 = vmatmul.msk.bf16.vlgmr.msra.gmra.mxu0 %vm40_vm1, %v707_v41  ;;  %519 = vmatmul.msk.bf16.vlgmr.msra.gmra.mxu1 %vm40_vm1, %v707_v41  ;;  %v565_v15 = vor.u32 %v621_v6, %v564_v5  ;;  %v569_v16 = vor.u32 %v620_v7, %v566_v12  ;;  %v432_v17 = vunpack.c.l.b16 %v600_v13  ;;  %v433_v18 = vunpack.c.h.b16 %v600_v13  ;;  %v626_v27 = vld [vmem:[%s842_s0 + $0xac] sm:$0xf]  ;;  %v605_v28 = vld [vmem:[%s842_s0 + $0xb0] sm:$0xf0]  ;;  %v590_v31 = vld [vmem:[%s842_s0 + $0x90] sm:$0xf] }
   0xf   :  { %531 = vmatmul.msk.bf16.vlgmr.msra.gmra.mxu2 %vm40_vm1, %v707_v41  ;;  %532 = vmatmul.msk.bf16.vlgmr.msra.gmra.mxu3 %vm40_vm1, %v707_v41  ;;  %v375_v19 = vunpack.c.l.b16 %v587_v14  ;;  %v376_v20 = vunpack.c.h.b16 %v587_v14  ;;  %v625_v32 = vld [vmem:[%s842_s0 + $0x94] sm:$0xf0]  ;;  %v592_v36 = vld [vmem:[%s842_s0 + $0x98] sm:$0xf0]  ;;  %v604_v37 = vor.u32 %v627_v26, %v603_v25  ;;  %v608_v38 = vor.u32 %v626_v27, %v605_v28  ;;  %v478_v39 = vld [vmem:[%s844_s2] sm:$0xff] }
  0x10   :  { %224 = vmatpush.bf16.msrb.mxu2 %v213_v35  ;;  %238 = vmatpush.bf16.msrb.mxu3 %v216_v42  ;;  %v436_v21 = vpack.c.b16 %v432_v17, %v432_v17  ;;  %v437_v22 = vpack.c.b16 %v433_v18, %v433_v18  ;;  %v624_v35 = vld [vmem:[%s842_s0 + $0x94] sm:$0xf]  ;;  %v591_v40 = vor.u32 %v625_v32, %v590_v31  ;;  %v630_v43 = vmov 0   ;;  %v479_v44 = vld [vmem:[%s844_s2 + $0x8] sm:$0xff] }
  0x11   :  { %167 = vmatpush.bf16.msrb.mxu0 %v156_v53  ;;  %181 = vmatpush.bf16.msrb.mxu1 %v159_v54  ;;  %v379_v23 = vpack.c.b16 %v375_v19, %v375_v19  ;;  %v380_v24 = vpack.c.b16 %v376_v20, %v376_v20  ;;  %v595_v42 = vor.u32 %v624_v35, %v592_v36 }
  0x12   :  { %v441_v29 = vsel %vm44_vm0, %v436_v21, 0  ;;  %v444_v30 = vsel %vm44_vm0, %v437_v22, 0  ;;  %629 = vset.pattern.permute.xlu0 %v630_v43 }
  0x13   :  { %v384_v33 = vsel %vm44_vm0, %v379_v23, 0  ;;  %v387_v34 = vsel %vm44_vm0, %v380_v24, 0  ;;  %482 = vperm.xlu0 %629, %v478_v39  }
  0x14   :  { %225 = vmatpush.bf16.msrb.mxu2 %v552_v55  ;;  %239 = vmatpush.bf16.msrb.mxu3 %v556_v56 }
  0x15   :  { %168 = vmatpush.bf16.msrb.mxu0 %v539_v3  ;;  %182 = vmatpush.bf16.msrb.mxu1 %v543_v4 }
  0x18   :  { %338 = vmatpush.bf16.msra.mxu2 %v327_v63  ;;  %352 = vmatpush.bf16.msra.mxu3 %v330_v0 }
  0x19   :  { %281 = vmatpush.bf16.msra.mxu0 %v270_v8  ;;  %295 = vmatpush.bf16.msra.mxu1 %v273_v9 }
  0x1b   :  { %487 = vperm.xlu0 %629, %v479_v44  }
  0x1c   :  { %339 = vmatpush.bf16.msra.mxu2 %v578_v10  ;;  %353 = vmatpush.bf16.msra.mxu3 %v582_v11 }
  0x1d   :  { %282 = vmatpush.bf16.msra.mxu0 %v565_v15  ;;  %296 = vmatpush.bf16.msra.mxu1 %v569_v16 }
  0x1e   :  { %544 = vmatmul.msk.bf16.vlgmr.msrb.gmra.mxu0 %vm40_vm1, %v707_v41  ;;  %545 = vmatmul.msk.bf16.vlgmr.msrb.gmra.mxu1 %vm40_vm1, %v707_v41 }
  0x1f   :  { %557 = vmatmul.msk.bf16.vlgmr.msrb.gmra.mxu2 %vm40_vm1, %v707_v41  ;;  %558 = vmatmul.msk.bf16.vlgmr.msrb.gmra.mxu3 %vm40_vm1, %v707_v41 }
  0x20   :  { %452 = vmatpush.bf16.msrb.mxu2 %v441_v29  ;;  %466 = vmatpush.bf16.msrb.mxu3 %v444_v30 }
  0x21   :  { %395 = vmatpush.bf16.msrb.mxu0 %v384_v33  ;;  %409 = vmatpush.bf16.msrb.mxu1 %v387_v34 }
  0x24   :  { %453 = vmatpush.bf16.msrb.mxu2 %v604_v37  ;;  %467 = vmatpush.bf16.msrb.mxu3 %v608_v38 }
  0x25   :  { %396 = vmatpush.bf16.msrb.mxu0 %v591_v40  ;;  %410 = vmatpush.bf16.msrb.mxu1 %v595_v42 }
  0x2e   :  { %570 = vmatmul.msk.bf16.vlgmr.msra.gmra.mxu0 %vm40_vm1, %v707_v41  ;;  %571 = vmatmul.msk.bf16.vlgmr.msra.gmra.mxu1 %vm40_vm1, %v707_v41 }
  0x2f   :  { %583 = vmatmul.msk.bf16.vlgmr.msra.gmra.mxu2 %vm40_vm1, %v707_v41  ;;  %584 = vmatmul.msk.bf16.vlgmr.msra.gmra.mxu3 %vm40_vm1, %v707_v41 }
  0x3e   :  { %596 = vmatmul.msk.bf16.vlgmr.msrb.gmra.mxu0 %vm40_vm1, %v707_v41  ;;  %597 = vmatmul.msk.bf16.vlgmr.msrb.gmra.mxu1 %vm40_vm1, %v707_v41 }
  0x3f   :  { %609 = vmatmul.msk.bf16.vlgmr.msrb.gmra.mxu2 %vm40_vm1, %v707_v41  ;;  %610 = vmatmul.msk.bf16.vlgmr.msrb.gmra.mxu3 %vm40_vm1, %v707_v41 }
  0x85   :  { %v483_v20 = vpop.permute.xlu0 %482 }
  0x8b   :  { %v60_v45 = vpop.f32.mrf.mxu0  ;;  %v74_v46 = vpop.f32.mrf.mxu1 }
  0x92   :  { %v113_v47 = vpop.f32.mrf.mxu2  ;;  %v127_v48 = vpop.f32.mrf.mxu3 }
  0x93   :  { %v62_v49 = vpop.f32.mrf.mxu0  ;;  %v76_v50 = vpop.f32.mrf.mxu1  ;;  %v132_v2 = vmax.f32 %v60_v45, %v113_v47  ;;  %v133_v3 = vmax.f32 %v74_v46, %v127_v48 }
  0x94   :  { %v488_v46 = vpop.permute.xlu0 %487 }
  0x9a   :  { %v115_v51 = vpop.f32.mrf.mxu2  ;;  %v129_v52 = vpop.f32.mrf.mxu3 }
  0x9b   :  { %v170_v53 = vpop.f32.mrf.mxu0  ;;  %v184_v54 = vpop.f32.mrf.mxu1  ;;  %v134_v14 = vmax.f32 %v62_v49, %v115_v51  ;;  %v135_v15 = vmax.f32 %v76_v50, %v129_v52 }
  0x9c   :  { %v189_v4 = vmax.f32 %v132_v2, %v170_v53  ;;  %v190_v5 = vmax.f32 %v133_v3, %v184_v54 }
  0xa2   :  { %v227_v55 = vpop.f32.mrf.mxu2  ;;  %v241_v56 = vpop.f32.mrf.mxu3 }
  0xa3   :  { %v172_v57 = vpop.f32.mrf.mxu0  ;;  %v186_v58 = vpop.f32.mrf.mxu1  ;;  %v246_v8 = vmax.f32 %v189_v4, %v227_v55  ;;  %v247_v9 = vmax.f32 %v190_v5, %v241_v56 }
  0xa4   :  { %v191_v18 = vmax.f32 %v134_v14, %v172_v57  ;;  %v192_v19 = vmax.f32 %v135_v15, %v186_v58 }
  0xaa   :  { %v229_v59 = vpop.f32.mrf.mxu2  ;;  %v243_v60 = vpop.f32.mrf.mxu3 }
  0xab   :  { %v284_v61 = vpop.f32.mrf.mxu0  ;;  %v298_v62 = vpop.f32.mrf.mxu1  ;;  %v248_v25 = vmax.f32 %v191_v18, %v229_v59  ;;  %v249_v26 = vmax.f32 %v192_v19, %v243_v60 }
  0xac   :  { %v303_v12 = vmax.f32 %v246_v8, %v284_v61  ;;  %v304_v13 = vmax.f32 %v247_v9, %v298_v62 }
  0xb2   :  { %v341_v63 = vpop.f32.mrf.mxu2  ;;  %v355_v41 = vpop.f32.mrf.mxu3 }
  0xb3   :  { %v286_v0 = vpop.f32.mrf.mxu0  ;;  %v300_v1 = vpop.f32.mrf.mxu1  ;;  %v360_v16 = vmax.f32 %v303_v12, %v341_v63  ;;  %v361_v17 = vmax.f32 %v304_v13, %v355_v41 }
  0xb4   :  { %v305_v29 = vmax.f32 %v248_v25, %v286_v0  ;;  %v306_v30 = vmax.f32 %v249_v26, %v300_v1 }
  0xba   :  { %v343_v6 = vpop.f32.mrf.mxu2  ;;  %v357_v7 = vpop.f32.mrf.mxu3 }
  0xbb   :  { %v398_v10 = vpop.f32.mrf.mxu0  ;;  %v412_v11 = vpop.f32.mrf.mxu1  ;;  %v362_v35 = vmax.f32 %v305_v29, %v343_v6  ;;  %v363_v36 = vmax.f32 %v306_v30, %v357_v7 }
  0xbc   :  { %v417_v21 = vmax.f32 %v360_v16, %v398_v10  ;;  %v418_v22 = vmax.f32 %v361_v17, %v412_v11 }
  0xc2   :  { %v455_v23 = vpop.f32.mrf.mxu2  ;;  %v469_v24 = vpop.f32.mrf.mxu3 }
  0xc3   :  { %v474_v27 = vmax.f32 %v417_v21, %v455_v23  ;;  %v475_v28 = vmax.f32 %v418_v22, %v469_v24  ;;  %v400_v33 = vpop.f32.mrf.mxu0  ;;  %v414_v34 = vpop.f32.mrf.mxu1 }
  0xc4   :  { %v419_v39 = vmax.f32 %v362_v35, %v400_v33  ;;  %v420_v40 = vmax.f32 %v363_v36, %v414_v34 }
  0xc5   :  { %v490_v31 = vadd.f32 %v483_v20, %v474_v27  ;;  %v491_v32 = vadd.f32 %v483_v20, %v475_v28 }
  0xc7   :  { %v494_v37 = vmax.f32 %v490_v31, 0.0  ;;  %v495_v38 = vmax.f32 %v491_v32, 0.0 }
  0xc9   :  { %498 = vst [vmem:[%s845_s3] sm:$0xff] %v494_v37 }
  0xca   :  { %499 = vst [vmem:[%s845_s3 + $0x8] sm:$0xff] %v495_v38  ;;  %v457_v42 = vpop.f32.mrf.mxu2  ;;  %v471_v43 = vpop.f32.mrf.mxu3 }
  0xcb   :  { %v476_v44 = vmax.f32 %v419_v39, %v457_v42  ;;  %v477_v45 = vmax.f32 %v420_v40, %v471_v43 }
  0xcd   :  { %v492_v47 = vadd.f32 %v488_v46, %v476_v44  ;;  %v493_v48 = vadd.f32 %v488_v46, %v477_v45 }
  0xcf   :  { %v496_v49 = vmax.f32 %v492_v47, 0.0  ;;  %v497_v50 = vmax.f32 %v493_v48, 0.0 }
  0xd1   :  { %500 = vst [vmem:[%s845_s3 + $0x10] sm:$0xff] %v496_v49 }
  0xd2   :  { %501 = vst [vmem:[%s845_s3 + $0x18] sm:$0xff] %v497_v50 }

// kernel: regressor_net_forward.5
= control target key start
LH: loop header
LB: loop body
LE: loop exit
PB: predicated region body
PF: predicated region fallthrough
CT: control target
= control target key end

     0   :  { %s4853_s15 = smov 0   ;;  %s4855_s16 = smov 0   ;;  %s6103_s0 = inlined_call_operand.vmem [shape: bf16[2,5120], index: 0, kind: input, shape index: {}]   ;;  %s6104_s1 = inlined_call_operand.vmem [shape: bf16[5120,1024], index: 1, kind: input, shape index: {}]   ;;  %s6105_s2 = inlined_call_operand.vmem [shape: f32[1,1024], index: 2, kind: input, shape index: {}]   ;;  %s6106_s3 = inlined_call_operand.vmem [shape: bf16[1024,1], index: 3, kind: input, shape index: {}]   ;;  %s6107_s4 = inlined_call_operand.vmem [shape: f32[2,2,1], index: 4, kind: output, shape index: {}]  }
   0x1   :  { %s4857_s17 = smov 0   ;;  %s4859_s18 = smov 0  }
   0x2   :  { %s4861_s19 = smov 0   ;;  %s4863_s20 = smov 0  }
   0x3   :  { %s4865_s21 = smov 0  }
   0x4 LB: > { %s23_s22 = sadd.s32 1, %s4817_s19  ;;  %s26_s23 = sadd.s32 1, %s4821_s20  ;;  %s4825_s21 = sphi %s4865_s21, %s14_s21   ;;  %s4821_s20 = sphi %s4863_s20, %s6113_s20   ;;  %s4817_s19 = sphi %s4861_s19, %s6112_s19   ;;  %s4813_s18 = sphi %s4859_s18, %s6111_s18   ;;  %s4809_s17 = sphi %s4857_s17, %s6110_s17   ;;  %s4805_s16 = sphi %s4855_s16, %s6109_s16   ;;  %s4801_s15 = sphi %s4853_s15, %s6108_s15  }
   0x5   : > { %p24_p0 = scmp.ge.s32.totalorder %s23_s22, 5  ;;  %p68_p1 = scmp.ne.s32.totalorder %s4805_s16, %s4801_s15 }
   0x6   : > { %p69_p2 = scmp.eq.s32.totalorder %s4825_s21, 0  ;;  %s61_s27 = sadd.s32 1, %s4805_s16 }
   0x7   : > { %s6115_s22 = smov (%p24_p0, %s23_s22), 0  ;;  %s6117_s23 = smov (!%p24_p0, %s26_s23), %s4821_s20 }
   0x8   : > { %p70_p3 = por %p69_p2, %p68_p1  ;;  %p28_p4 = scmp.ge.s32.totalorder %s6117_s23, 2 }
   0x9   : > { %s56_s24 = ssub.s32 %s4817_s19, %s6115_s22  ;;  %p3248_p6 = scmp.ge.s32.totalorder %s4825_s21, 10 }
   0xa   : > { %s6119_s23 = smov (%p28_p4, %s6117_s23), 0 }
   0xb   : > { %s57_s25 = ssub.s32 %s4821_s20, %s6119_s23  ;;  %172 = sbr.rel (%p3248_p6) target bundleno = 279 (0x117), region = 16 }
   0xc   : > { %s58_s26 = sor.u32 %s57_s25, %s56_s24 }
   0xd   : > { %p59_p5 = scmp.eq.s32.totalorder %s58_s26, 0 }
   0xf   : > { %s4904_s28 = scalar_select %p59_p5, %s4805_s16, %s61_s27  }
  0x10   : > { %183 = sbr.rel (!%p70_p3) target bundleno = 279 (0x117), region = 24  ;;  %s185_s29 = sand.u32 (%p70_p3), 1, %s4805_s16  }
  0x11   : > { %s3251_s30 = sshll.u32 (%p70_p3), %s4821_s20, 2  ;;  %s3249_s5 = sshll.u32 (%p70_p3), %s185_s29, 11 }
  0x12   : > { %s4417_s6 = sshll.u32 (%p70_p3), %s4817_s19, 10  ;;  %s4918_s12 = scalar_lea.vmem (%p70_p3), [#allocation3], %s3249_s5 }
  0x13   : > { %s191_s7 = sadd.s32 (%p70_p3), %s4417_s6, %s3251_s30 }
  0x14   : > { %s3253_s8 = sshll.u32 (%p70_p3), %s191_s7, 2 }
  0x15   : > { %s4913_s11 = scalar_lea.vmem %s6104_s1, %s3253_s8 }
  0x16   : > { %v206_v0 = vld [vmem:[%s4913_s11] sm:$0xff]  ;;  %v208_v1 = vld [vmem:[%s4913_s11 + $0x8] sm:$0xff] }
  0x17   : > { %v210_v2 = vld [vmem:[%s4913_s11 + $0x20] sm:$0xff]  ;;  %207 = vst [vmem:[%s4918_s12] sm:$0xff] %v206_v0  ;;  %v212_v3 = vld [vmem:[%s4913_s11 + $0x28] sm:$0xff] }
  0x18   : > { %209 = vst [vmem:[%s4918_s12 + $0x8] sm:$0xff] %v208_v1  ;;  %v214_v4 = vld [vmem:[%s4913_s11 + $0x40] sm:$0xff]  ;;  %v216_v5 = vld [vmem:[%s4913_s11 + $0x48] sm:$0xff] }
  0x19   : > { %211 = vst [vmem:[%s4918_s12 + $0x10] sm:$0xff] %v210_v2  ;;  %v218_v6 = vld [vmem:[%s4913_s11 + $0x60] sm:$0xff]  ;;  %v220_v7 = vld [vmem:[%s4913_s11 + $0x68] sm:$0xff] }
  0x1a   : > { %213 = vst [vmem:[%s4918_s12 + $0x18] sm:$0xff] %v212_v3  ;;  %v222_v8 = vld [vmem:[%s4913_s11 + $0x80] sm:$0xff]  ;;  %v224_v9 = vld [vmem:[%s4913_s11 + $0x88] sm:$0xff] }
  0x1b   : > { %215 = vst [vmem:[%s4918_s12 + $0x20] sm:$0xff] %v214_v4  ;;  %v226_v10 = vld [vmem:[%s4913_s11 + $0xa0] sm:$0xff]  ;;  %v228_v11 = vld [vmem:[%s4913_s11 + $0xa8] sm:$0xff] }
  0x1c   : > { %217 = vst [vmem:[%s4918_s12 + $0x28] sm:$0xff] %v216_v5  ;;  %v230_v12 = vld [vmem:[%s4913_s11 + $0xc0] sm:$0xff]  ;;  %v232_v13 = vld [vmem:[%s4913_s11 + $0xc8] sm:$0xff] }
  0x1d   : > { %219 = vst [vmem:[%s4918_s12 + $0x30] sm:$0xff] %v218_v6  ;;  %v234_v14 = vld [vmem:[%s4913_s11 + $0xe0] sm:$0xff]  ;;  %v236_v15 = vld [vmem:[%s4913_s11 + $0xe8] sm:$0xff] }
  0x1e   : > { %221 = vst [vmem:[%s4918_s12 + $0x38] sm:$0xff] %v220_v7  ;;  %v238_v16 = vld [vmem:[%s4913_s11 + $0x100] sm:$0xff]  ;;  %v240_v17 = vld [vmem:[%s4913_s11 + $0x108] sm:$0xff] }
  0x1f   : > { %223 = vst [vmem:[%s4918_s12 + $0x40] sm:$0xff] %v222_v8  ;;  %v242_v18 = vld [vmem:[%s4913_s11 + $0x120] sm:$0xff]  ;;  %v244_v19 = vld [vmem:[%s4913_s11 + $0x128] sm:$0xff] }
  0x20   : > { %225 = vst [vmem:[%s4918_s12 + $0x48] sm:$0xff] %v224_v9  ;;  %v246_v20 = vld [vmem:[%s4913_s11 + $0x140] sm:$0xff]  ;;  %v248_v21 = vld [vmem:[%s4913_s11 + $0x148] sm:$0xff] }
  0x21   : > { %227 = vst [vmem:[%s4918_s12 + $0x50] sm:$0xff] %v226_v10  ;;  %v250_v22 = vld [vmem:[%s4913_s11 + $0x160] sm:$0xff]  ;;  %v252_v23 = vld [vmem:[%s4913_s11 + $0x168] sm:$0xff] }
  0x22   : > { %229 = vst [vmem:[%s4918_s12 + $0x58] sm:$0xff] %v228_v11  ;;  %v254_v24 = vld [vmem:[%s4913_s11 + $0x180] sm:$0xff]  ;;  %v256_v25 = vld [vmem:[%s4913_s11 + $0x188] sm:$0xff] }
  0x23   : > { %231 = vst [vmem:[%s4918_s12 + $0x60] sm:$0xff] %v230_v12  ;;  %v258_v26 = vld [vmem:[%s4913_s11 + $0x1a0] sm:$0xff]  ;;  %v260_v27 = vld [vmem:[%s4913_s11 + $0x1a8] sm:$0xff] }
  0x24   : > { %233 = vst [vmem:[%s4918_s12 + $0x68] sm:$0xff] %v232_v13  ;;  %v262_v28 = vld [vmem:[%s4913_s11 + $0x1c0] sm:$0xff]  ;;  %v264_v29 = vld [vmem:[%s4913_s11 + $0x1c8] sm:$0xff] }
  0x25   : > { %235 = vst [vmem:[%s4918_s12 + $0x70] sm:$0xff] %v234_v14  ;;  %v266_v30 = vld [vmem:[%s4913_s11 + $0x1e0] sm:$0xff]  ;;  %v268_v31 = vld [vmem:[%s4913_s11 + $0x1e8] sm:$0xff] }
  0x26   : > { %237 = vst [vmem:[%s4918_s12 + $0x78] sm:$0xff] %v236_v15  ;;  %v270_v32 = vld [vmem:[%s4913_s11 + $0x200] sm:$0xff]  ;;  %v272_v33 = vld [vmem:[%s4913_s11 + $0x208] sm:$0xff] }
  0x27   : > { %239 = vst [vmem:[%s4918_s12 + $0x80] sm:$0xff] %v238_v16  ;;  %v274_v34 = vld [vmem:[%s4913_s11 + $0x220] sm:$0xff]  ;;  %v276_v35 = vld [vmem:[%s4913_s11 + $0x228] sm:$0xff] }
  0x28   : > { %241 = vst [vmem:[%s4918_s12 + $0x88] sm:$0xff] %v240_v17  ;;  %v278_v36 = vld [vmem:[%s4913_s11 + $0x240] sm:$0xff]  ;;  %v280_v37 = vld [vmem:[%s4913_s11 + $0x248] sm:$0xff] }
  0x29   : > { %243 = vst [vmem:[%s4918_s12 + $0x90] sm:$0xff] %v242_v18  ;;  %v282_v38 = vld [vmem:[%s4913_s11 + $0x260] sm:$0xff]  ;;  %v284_v39 = vld [vmem:[%s4913_s11 + $0x268] sm:$0xff] }
  0x2a   : > { %245 = vst [vmem:[%s4918_s12 + $0x98] sm:$0xff] %v244_v19  ;;  %v286_v40 = vld [vmem:[%s4913_s11 + $0x280] sm:$0xff]  ;;  %v288_v41 = vld [vmem:[%s4913_s11 + $0x288] sm:$0xff] }
  0x2b   : > { %247 = vst [vmem:[%s4918_s12 + $0xa0] sm:$0xff] %v246_v20  ;;  %v290_v42 = vld [vmem:[%s4913_s11 + $0x2a0] sm:$0xff]  ;;  %v292_v43 = vld [vmem:[%s4913_s11 + $0x2a8] sm:$0xff] }
  0x2c   : > { %249 = vst [vmem:[%s4918_s12 + $0xa8] sm:$0xff] %v248_v21  ;;  %v294_v44 = vld [vmem:[%s4913_s11 + $0x2c0] sm:$0xff]  ;;  %v296_v45 = vld [vmem:[%s4913_s11 + $0x2c8] sm:$0xff] }
  0x2d   : > { %251 = vst [vmem:[%s4918_s12 + $0xb0] sm:$0xff] %v250_v22  ;;  %v298_v46 = vld [vmem:[%s4913_s11 + $0x2e0] sm:$0xff]  ;;  %v300_v47 = vld [vmem:[%s4913_s11 + $0x2e8] sm:$0xff] }
  0x2e   : > { %253 = vst [vmem:[%s4918_s12 + $0xb8] sm:$0xff] %v252_v23  ;;  %v302_v48 = vld [vmem:[%s4913_s11 + $0x300] sm:$0xff]  ;;  %v304_v49 = vld [vmem:[%s4913_s11 + $0x308] sm:$0xff] }
  0x2f   : > { %255 = vst [vmem:[%s4918_s12 + $0xc0] sm:$0xff] %v254_v24  ;;  %v306_v50 = vld [vmem:[%s4913_s11 + $0x320] sm:$0xff]  ;;  %v308_v51 = vld [vmem:[%s4913_s11 + $0x328] sm:$0xff] }
  0x30   : > { %257 = vst [vmem:[%s4918_s12 + $0xc8] sm:$0xff] %v256_v25  ;;  %v310_v52 = vld [vmem:[%s4913_s11 + $0x340] sm:$0xff]  ;;  %v312_v53 = vld [vmem:[%s4913_s11 + $0x348] sm:$0xff] }
  0x31   : > { %259 = vst [vmem:[%s4918_s12 + $0xd0] sm:$0xff] %v258_v26  ;;  %v314_v54 = vld [vmem:[%s4913_s11 + $0x360] sm:$0xff]  ;;  %v316_v55 = vld [vmem:[%s4913_s11 + $0x368] sm:$0xff] }
  0x32   : > { %261 = vst [vmem:[%s4918_s12 + $0xd8] sm:$0xff] %v260_v27  ;;  %v318_v56 = vld [vmem:[%s4913_s11 + $0x380] sm:$0xff]  ;;  %v320_v57 = vld [vmem:[%s4913_s11 + $0x388] sm:$0xff] }
  0x33   : > { %263 = vst [vmem:[%s4918_s12 + $0xe0] sm:$0xff] %v262_v28  ;;  %v322_v58 = vld [vmem:[%s4913_s11 + $0x3a0] sm:$0xff]  ;;  %v324_v59 = vld [vmem:[%s4913_s11 + $0x3a8] sm:$0xff] }
  0x34   : > { %265 = vst [vmem:[%s4918_s12 + $0xe8] sm:$0xff] %v264_v29  ;;  %v326_v60 = vld [vmem:[%s4913_s11 + $0x3c0] sm:$0xff]  ;;  %v328_v61 = vld [vmem:[%s4913_s11 + $0x3c8] sm:$0xff] }
  0x35   : > { %267 = vst [vmem:[%s4918_s12 + $0xf0] sm:$0xff] %v266_v30  ;;  %v330_v62 = vld [vmem:[%s4913_s11 + $0x3e0] sm:$0xff]  ;;  %v332_v63 = vld [vmem:[%s4913_s11 + $0x3e8] sm:$0xff] }
  0x36   : > { %269 = vst [vmem:[%s4918_s12 + $0xf8] sm:$0xff] %v268_v31  ;;  %v334_v0 = vld [vmem:[%s4913_s11 + $0x400] sm:$0xff]  ;;  %v336_v1 = vld [vmem:[%s4913_s11 + $0x408] sm:$0xff] }
  0x37   : > { %271 = vst [vmem:[%s4918_s12 + $0x100] sm:$0xff] %v270_v32  ;;  %v338_v2 = vld [vmem:[%s4913_s11 + $0x420] sm:$0xff]  ;;  %v340_v3 = vld [vmem:[%s4913_s11 + $0x428] sm:$0xff] }
  0x38   : > { %273 = vst [vmem:[%s4918_s12 + $0x108] sm:$0xff] %v272_v33  ;;  %v342_v4 = vld [vmem:[%s4913_s11 + $0x440] sm:$0xff]  ;;  %v344_v5 = vld [vmem:[%s4913_s11 + $0x448] sm:$0xff] }
  0x39   : > { %275 = vst [vmem:[%s4918_s12 + $0x110] sm:$0xff] %v274_v34  ;;  %v346_v6 = vld [vmem:[%s4913_s11 + $0x460] sm:$0xff]  ;;  %v348_v7 = vld [vmem:[%s4913_s11 + $0x468] sm:$0xff] }
  0x3a   : > { %277 = vst [vmem:[%s4918_s12 + $0x118] sm:$0xff] %v276_v35  ;;  %v350_v8 = vld [vmem:[%s4913_s11 + $0x480] sm:$0xff]  ;;  %v352_v9 = vld [vmem:[%s4913_s11 + $0x488] sm:$0xff] }
  0x3b   : > { %279 = vst [vmem:[%s4918_s12 + $0x120] sm:$0xff] %v278_v36  ;;  %v354_v10 = vld [vmem:[%s4913_s11 + $0x4a0] sm:$0xff]  ;;  %v356_v11 = vld [vmem:[%s4913_s11 + $0x4a8] sm:$0xff] }
  0x3c   : > { %281 = vst [vmem:[%s4918_s12 + $0x128] sm:$0xff] %v280_v37  ;;  %v358_v12 = vld [vmem:[%s4913_s11 + $0x4c0] sm:$0xff]  ;;  %v360_v13 = vld [vmem:[%s4913_s11 + $0x4c8] sm:$0xff] }
  0x3d   : > { %283 = vst [vmem:[%s4918_s12 + $0x130] sm:$0xff] %v282_v38  ;;  %v362_v14 = vld [vmem:[%s4913_s11 + $0x4e0] sm:$0xff]  ;;  %v364_v15 = vld [vmem:[%s4913_s11 + $0x4e8] sm:$0xff] }
  0x3e   : > { %285 = vst [vmem:[%s4918_s12 + $0x138] sm:$0xff] %v284_v39  ;;  %v366_v16 = vld [vmem:[%s4913_s11 + $0x500] sm:$0xff]  ;;  %v368_v17 = vld [vmem:[%s4913_s11 + $0x508] sm:$0xff] }
  0x3f   : > { %287 = vst [vmem:[%s4918_s12 + $0x140] sm:$0xff] %v286_v40  ;;  %v370_v18 = vld [vmem:[%s4913_s11 + $0x520] sm:$0xff]  ;;  %v372_v19 = vld [vmem:[%s4913_s11 + $0x528] sm:$0xff] }
  0x40   : > { %289 = vst [vmem:[%s4918_s12 + $0x148] sm:$0xff] %v288_v41  ;;  %v374_v20 = vld [vmem:[%s4913_s11 + $0x540] sm:$0xff]  ;;  %v376_v21 = vld [vmem:[%s4913_s11 + $0x548] sm:$0xff] }
  0x41   : > { %291 = vst [vmem:[%s4918_s12 + $0x150] sm:$0xff] %v290_v42  ;;  %v378_v22 = vld [vmem:[%s4913_s11 + $0x560] sm:$0xff]  ;;  %v380_v23 = vld [vmem:[%s4913_s11 + $0x568] sm:$0xff] }
  0x42   : > { %293 = vst [vmem:[%s4918_s12 + $0x158] sm:$0xff] %v292_v43  ;;  %v382_v24 = vld [vmem:[%s4913_s11 + $0x580] sm:$0xff]  ;;  %v384_v25 = vld [vmem:[%s4913_s11 + $0x588] sm:$0xff] }
  0x43   : > { %295 = vst [vmem:[%s4918_s12 + $0x160] sm:$0xff] %v294_v44  ;;  %v386_v26 = vld [vmem:[%s4913_s11 + $0x5a0] sm:$0xff]  ;;  %v388_v27 = vld [vmem:[%s4913_s11 + $0x5a8] sm:$0xff] }
  0x44   : > { %297 = vst [vmem:[%s4918_s12 + $0x168] sm:$0xff] %v296_v45  ;;  %v390_v28 = vld [vmem:[%s4913_s11 + $0x5c0] sm:$0xff]  ;;  %v392_v29 = vld [vmem:[%s4913_s11 + $0x5c8] sm:$0xff] }
  0x45   : > { %299 = vst [vmem:[%s4918_s12 + $0x170] sm:$0xff] %v298_v46  ;;  %v394_v30 = vld [vmem:[%s4913_s11 + $0x5e0] sm:$0xff]  ;;  %v396_v31 = vld [vmem:[%s4913_s11 + $0x5e8] sm:$0xff] }
  0x46   : > { %301 = vst [vmem:[%s4918_s12 + $0x178] sm:$0xff] %v300_v47  ;;  %v398_v32 = vld [vmem:[%s4913_s11 + $0x600] sm:$0xff]  ;;  %v400_v33 = vld [vmem:[%s4913_s11 + $0x608] sm:$0xff] }
  0x47   : > { %303 = vst [vmem:[%s4918_s12 + $0x180] sm:$0xff] %v302_v48  ;;  %v402_v34 = vld [vmem:[%s4913_s11 + $0x620] sm:$0xff]  ;;  %v404_v35 = vld [vmem:[%s4913_s11 + $0x628] sm:$0xff] }
  0x48   : > { %305 = vst [vmem:[%s4918_s12 + $0x188] sm:$0xff] %v304_v49  ;;  %v406_v36 = vld [vmem:[%s4913_s11 + $0x640] sm:$0xff]  ;;  %v408_v37 = vld [vmem:[%s4913_s11 + $0x648] sm:$0xff] }
  0x49   : > { %307 = vst [vmem:[%s4918_s12 + $0x190] sm:$0xff] %v306_v50  ;;  %v410_v38 = vld [vmem:[%s4913_s11 + $0x660] sm:$0xff]  ;;  %v412_v39 = vld [vmem:[%s4913_s11 + $0x668] sm:$0xff] }
  0x4a   : > { %309 = vst [vmem:[%s4918_s12 + $0x198] sm:$0xff] %v308_v51  ;;  %v414_v40 = vld [vmem:[%s4913_s11 + $0x680] sm:$0xff]  ;;  %v416_v41 = vld [vmem:[%s4913_s11 + $0x688] sm:$0xff] }
  0x4b   : > { %311 = vst [vmem:[%s4918_s12 + $0x1a0] sm:$0xff] %v310_v52  ;;  %v418_v42 = vld [vmem:[%s4913_s11 + $0x6a0] sm:$0xff]  ;;  %v420_v43 = vld [vmem:[%s4913_s11 + $0x6a8] sm:$0xff] }
  0x4c   : > { %313 = vst [vmem:[%s4918_s12 + $0x1a8] sm:$0xff] %v312_v53  ;;  %v422_v44 = vld [vmem:[%s4913_s11 + $0x6c0] sm:$0xff]  ;;  %v424_v45 = vld [vmem:[%s4913_s11 + $0x6c8] sm:$0xff] }
  0x4d   : > { %315 = vst [vmem:[%s4918_s12 + $0x1b0] sm:$0xff] %v314_v54  ;;  %v426_v46 = vld [vmem:[%s4913_s11 + $0x6e0] sm:$0xff]  ;;  %v428_v47 = vld [vmem:[%s4913_s11 + $0x6e8] sm:$0xff] }
  0x4e   : > { %317 = vst [vmem:[%s4918_s12 + $0x1b8] sm:$0xff] %v316_v55  ;;  %v430_v48 = vld [vmem:[%s4913_s11 + $0x700] sm:$0xff]  ;;  %v432_v49 = vld [vmem:[%s4913_s11 + $0x708] sm:$0xff] }
  0x4f   : > { %319 = vst [vmem:[%s4918_s12 + $0x1c0] sm:$0xff] %v318_v56  ;;  %v434_v50 = vld [vmem:[%s4913_s11 + $0x720] sm:$0xff]  ;;  %v436_v51 = vld [vmem:[%s4913_s11 + $0x728] sm:$0xff] }
  0x50   : > { %321 = vst [vmem:[%s4918_s12 + $0x1c8] sm:$0xff] %v320_v57  ;;  %v438_v52 = vld [vmem:[%s4913_s11 + $0x740] sm:$0xff]  ;;  %v440_v53 = vld [vmem:[%s4913_s11 + $0x748] sm:$0xff] }
  0x51   : > { %323 = vst [vmem:[%s4918_s12 + $0x1d0] sm:$0xff] %v322_v58  ;;  %v442_v54 = vld [vmem:[%s4913_s11 + $0x760] sm:$0xff]  ;;  %v444_v55 = vld [vmem:[%s4913_s11 + $0x768] sm:$0xff] }
  0x52   : > { %325 = vst [vmem:[%s4918_s12 + $0x1d8] sm:$0xff] %v324_v59  ;;  %v446_v56 = vld [vmem:[%s4913_s11 + $0x780] sm:$0xff]  ;;  %v448_v57 = vld [vmem:[%s4913_s11 + $0x788] sm:$0xff] }
  0x53   : > { %327 = vst [vmem:[%s4918_s12 + $0x1e0] sm:$0xff] %v326_v60  ;;  %v450_v58 = vld [vmem:[%s4913_s11 + $0x7a0] sm:$0xff]  ;;  %v452_v59 = vld [vmem:[%s4913_s11 + $0x7a8] sm:$0xff] }
  0x54   : > { %329 = vst [vmem:[%s4918_s12 + $0x1e8] sm:$0xff] %v328_v61  ;;  %v454_v60 = vld [vmem:[%s4913_s11 + $0x7c0] sm:$0xff]  ;;  %v456_v61 = vld [vmem:[%s4913_s11 + $0x7c8] sm:$0xff] }
  0x55   : > { %331 = vst [vmem:[%s4918_s12 + $0x1f0] sm:$0xff] %v330_v62  ;;  %v458_v62 = vld [vmem:[%s4913_s11 + $0x7e0] sm:$0xff] }
  0x56   : > { %333 = vst [vmem:[%s4918_s12 + $0x1f8] sm:$0xff] %v332_v63  ;;  %v460_v63 = vld [vmem:[%s4913_s11 + $0x7e8] sm:$0xff] }
  0x57   : > { %335 = vst [vmem:[%s4918_s12 + $0x200] sm:$0xff] %v334_v0  ;;  %v462_v0 = vld [vmem:[%s4913_s11 + $0x800] sm:$0xff] }
  0x58   : > { %337 = vst [vmem:[%s4918_s12 + $0x208] sm:$0xff] %v336_v1  ;;  %v464_v1 = vld [vmem:[%s4913_s11 + $0x808] sm:$0xff] }
  0x59   : > { %339 = vst [vmem:[%s4918_s12 + $0x210] sm:$0xff] %v338_v2  ;;  %v466_v2 = vld [vmem:[%s4913_s11 + $0x820] sm:$0xff] }
  0x5a   : > { %341 = vst [vmem:[%s4918_s12 + $0x218] sm:$0xff] %v340_v3  ;;  %v468_v3 = vld [vmem:[%s4913_s11 + $0x828] sm:$0xff] }
  0x5b   : > { %343 = vst [vmem:[%s4918_s12 + $0x220] sm:$0xff] %v342_v4  ;;  %v470_v4 = vld [vmem:[%s4913_s11 + $0x840] sm:$0xff] }
  0x5c   : > { %345 = vst [vmem:[%s4918_s12 + $0x228] sm:$0xff] %v344_v5  ;;  %v472_v5 = vld [vmem:[%s4913_s11 + $0x848] sm:$0xff] }
  0x5d   : > { %347 = vst [vmem:[%s4918_s12 + $0x230] sm:$0xff] %v346_v6  ;;  %v474_v6 = vld [vmem:[%s4913_s11 + $0x860] sm:$0xff] }
  0x5e   : > { %349 = vst [vmem:[%s4918_s12 + $0x238] sm:$0xff] %v348_v7  ;;  %v476_v7 = vld [vmem:[%s4913_s11 + $0x868] sm:$0xff] }
  0x5f   : > { %351 = vst [vmem:[%s4918_s12 + $0x240] sm:$0xff] %v350_v8  ;;  %v478_v8 = vld [vmem:[%s4913_s11 + $0x880] sm:$0xff] }
  0x60   : > { %353 = vst [vmem:[%s4918_s12 + $0x248] sm:$0xff] %v352_v9  ;;  %v480_v9 = vld [vmem:[%s4913_s11 + $0x888] sm:$0xff] }
  0x61   : > { %355 = vst [vmem:[%s4918_s12 + $0x250] sm:$0xff] %v354_v10  ;;  %v482_v10 = vld [vmem:[%s4913_s11 + $0x8a0] sm:$0xff] }
  0x62   : > { %357 = vst [vmem:[%s4918_s12 + $0x258] sm:$0xff] %v356_v11  ;;  %v484_v11 = vld [vmem:[%s4913_s11 + $0x8a8] sm:$0xff] }
  0x63   : > { %359 = vst [vmem:[%s4918_s12 + $0x260] sm:$0xff] %v358_v12  ;;  %v486_v12 = vld [vmem:[%s4913_s11 + $0x8c0] sm:$0xff] }
  0x64   : > { %361 = vst [vmem:[%s4918_s12 + $0x268] sm:$0xff] %v360_v13  ;;  %v488_v13 = vld [vmem:[%s4913_s11 + $0x8c8] sm:$0xff] }
  0x65   : > { %363 = vst [vmem:[%s4918_s12 + $0x270] sm:$0xff] %v362_v14  ;;  %v490_v14 = vld [vmem:[%s4913_s11 + $0x8e0] sm:$0xff] }
  0x66   : > { %365 = vst [vmem:[%s4918_s12 + $0x278] sm:$0xff] %v364_v15  ;;  %v492_v15 = vld [vmem:[%s4913_s11 + $0x8e8] sm:$0xff] }
  0x67   : > { %367 = vst [vmem:[%s4918_s12 + $0x280] sm:$0xff] %v366_v16  ;;  %v494_v16 = vld [vmem:[%s4913_s11 + $0x900] sm:$0xff] }
  0x68   : > { %369 = vst [vmem:[%s4918_s12 + $0x288] sm:$0xff] %v368_v17  ;;  %v496_v17 = vld [vmem:[%s4913_s11 + $0x908] sm:$0xff] }
  0x69   : > { %371 = vst [vmem:[%s4918_s12 + $0x290] sm:$0xff] %v370_v18  ;;  %v498_v18 = vld [vmem:[%s4913_s11 + $0x920] sm:$0xff] }
  0x6a   : > { %373 = vst [vmem:[%s4918_s12 + $0x298] sm:$0xff] %v372_v19  ;;  %v500_v19 = vld [vmem:[%s4913_s11 + $0x928] sm:$0xff] }
  0x6b   : > { %375 = vst [vmem:[%s4918_s12 + $0x2a0] sm:$0xff] %v374_v20  ;;  %v502_v20 = vld [vmem:[%s4913_s11 + $0x940] sm:$0xff] }
  0x6c   : > { %377 = vst [vmem:[%s4918_s12 + $0x2a8] sm:$0xff] %v376_v21  ;;  %v504_v21 = vld [vmem:[%s4913_s11 + $0x948] sm:$0xff] }
  0x6d   : > { %379 = vst [vmem:[%s4918_s12 + $0x2b0] sm:$0xff] %v378_v22  ;;  %v506_v22 = vld [vmem:[%s4913_s11 + $0x960] sm:$0xff] }
  0x6e   : > { %381 = vst [vmem:[%s4918_s12 + $0x2b8] sm:$0xff] %v380_v23  ;;  %v508_v23 = vld [vmem:[%s4913_s11 + $0x968] sm:$0xff] }
  0x6f   : > { %383 = vst [vmem:[%s4918_s12 + $0x2c0] sm:$0xff] %v382_v24  ;;  %v510_v24 = vld [vmem:[%s4913_s11 + $0x980] sm:$0xff] }
  0x70   : > { %385 = vst [vmem:[%s4918_s12 + $0x2c8] sm:$0xff] %v384_v25  ;;  %v512_v25 = vld [vmem:[%s4913_s11 + $0x988] sm:$0xff] }
  0x71   : > { %387 = vst [vmem:[%s4918_s12 + $0x2d0] sm:$0xff] %v386_v26  ;;  %v514_v26 = vld [vmem:[%s4913_s11 + $0x9a0] sm:$0xff] }
  0x72   : > { %389 = vst [vmem:[%s4918_s12 + $0x2d8] sm:$0xff] %v388_v27  ;;  %v516_v27 = vld [vmem:[%s4913_s11 + $0x9a8] sm:$0xff] }
  0x73   : > { %391 = vst [vmem:[%s4918_s12 + $0x2e0] sm:$0xff] %v390_v28  ;;  %v518_v28 = vld [vmem:[%s4913_s11 + $0x9c0] sm:$0xff] }
  0x74   : > { %393 = vst [vmem:[%s4918_s12 + $0x2e8] sm:$0xff] %v392_v29  ;;  %v520_v29 = vld [vmem:[%s4913_s11 + $0x9c8] sm:$0xff] }
  0x75   : > { %395 = vst [vmem:[%s4918_s12 + $0x2f0] sm:$0xff] %v394_v30  ;;  %v522_v30 = vld [vmem:[%s4913_s11 + $0x9e0] sm:$0xff] }
  0x76   : > { %397 = vst [vmem:[%s4918_s12 + $0x2f8] sm:$0xff] %v396_v31  ;;  %v524_v31 = vld [vmem:[%s4913_s11 + $0x9e8] sm:$0xff] }
  0x77   : > { %399 = vst [vmem:[%s4918_s12 + $0x300] sm:$0xff] %v398_v32  ;;  %v526_v32 = vld [vmem:[%s4913_s11 + $0xa00] sm:$0xff] }
  0x78   : > { %401 = vst [vmem:[%s4918_s12 + $0x308] sm:$0xff] %v400_v33  ;;  %v528_v33 = vld [vmem:[%s4913_s11 + $0xa08] sm:$0xff] }
  0x79   : > { %403 = vst [vmem:[%s4918_s12 + $0x310] sm:$0xff] %v402_v34  ;;  %v530_v34 = vld [vmem:[%s4913_s11 + $0xa20] sm:$0xff] }
  0x7a   : > { %405 = vst [vmem:[%s4918_s12 + $0x318] sm:$0xff] %v404_v35  ;;  %v532_v35 = vld [vmem:[%s4913_s11 + $0xa28] sm:$0xff] }
  0x7b   : > { %407 = vst [vmem:[%s4918_s12 + $0x320] sm:$0xff] %v406_v36  ;;  %v534_v36 = vld [vmem:[%s4913_s11 + $0xa40] sm:$0xff] }
  0x7c   : > { %409 = vst [vmem:[%s4918_s12 + $0x328] sm:$0xff] %v408_v37  ;;  %v536_v37 = vld [vmem:[%s4913_s11 + $0xa48] sm:$0xff] }
  0x7d   : > { %411 = vst [vmem:[%s4918_s12 + $0x330] sm:$0xff] %v410_v38  ;;  %v538_v38 = vld [vmem:[%s4913_s11 + $0xa60] sm:$0xff] }
  0x7e   : > { %413 = vst [vmem:[%s4918_s12 + $0x338] sm:$0xff] %v412_v39  ;;  %v540_v39 = vld [vmem:[%s4913_s11 + $0xa68] sm:$0xff] }
  0x7f   : > { %415 = vst [vmem:[%s4918_s12 + $0x340] sm:$0xff] %v414_v40  ;;  %v542_v40 = vld [vmem:[%s4913_s11 + $0xa80] sm:$0xff] }
  0x80   : > { %417 = vst [vmem:[%s4918_s12 + $0x348] sm:$0xff] %v416_v41  ;;  %v544_v41 = vld [vmem:[%s4913_s11 + $0xa88] sm:$0xff] }
  0x81   : > { %419 = vst [vmem:[%s4918_s12 + $0x350] sm:$0xff] %v418_v42  ;;  %v546_v42 = vld [vmem:[%s4913_s11 + $0xaa0] sm:$0xff] }
  0x82   : > { %421 = vst [vmem:[%s4918_s12 + $0x358] sm:$0xff] %v420_v43  ;;  %v548_v43 = vld [vmem:[%s4913_s11 + $0xaa8] sm:$0xff] }
  0x83   : > { %423 = vst [vmem:[%s4918_s12 + $0x360] sm:$0xff] %v422_v44  ;;  %v550_v44 = vld [vmem:[%s4913_s11 + $0xac0] sm:$0xff] }
  0x84   : > { %425 = vst [vmem:[%s4918_s12 + $0x368] sm:$0xff] %v424_v45  ;;  %v552_v45 = vld [vmem:[%s4913_s11 + $0xac8] sm:$0xff] }
  0x85   : > { %427 = vst [vmem:[%s4918_s12 + $0x370] sm:$0xff] %v426_v46  ;;  %v554_v46 = vld [vmem:[%s4913_s11 + $0xae0] sm:$0xff] }
  0x86   : > { %429 = vst [vmem:[%s4918_s12 + $0x378] sm:$0xff] %v428_v47  ;;  %v556_v47 = vld [vmem:[%s4913_s11 + $0xae8] sm:$0xff] }
  0x87   : > { %431 = vst [vmem:[%s4918_s12 + $0x380] sm:$0xff] %v430_v48  ;;  %v558_v48 = vld [vmem:[%s4913_s11 + $0xb00] sm:$0xff] }
  0x88   : > { %433 = vst [vmem:[%s4918_s12 + $0x388] sm:$0xff] %v432_v49  ;;  %v560_v49 = vld [vmem:[%s4913_s11 + $0xb08] sm:$0xff] }
  0x89   : > { %435 = vst [vmem:[%s4918_s12 + $0x390] sm:$0xff] %v434_v50  ;;  %v562_v50 = vld [vmem:[%s4913_s11 + $0xb20] sm:$0xff] }
  0x8a   : > { %437 = vst [vmem:[%s4918_s12 + $0x398] sm:$0xff] %v436_v51  ;;  %v564_v51 = vld [vmem:[%s4913_s11 + $0xb28] sm:$0xff] }
  0x8b   : > { %439 = vst [vmem:[%s4918_s12 + $0x3a0] sm:$0xff] %v438_v52  ;;  %v566_v52 = vld [vmem:[%s4913_s11 + $0xb40] sm:$0xff] }
  0x8c   : > { %441 = vst [vmem:[%s4918_s12 + $0x3a8] sm:$0xff] %v440_v53  ;;  %v568_v53 = vld [vmem:[%s4913_s11 + $0xb48] sm:$0xff] }
  0x8d   : > { %443 = vst [vmem:[%s4918_s12 + $0x3b0] sm:$0xff] %v442_v54  ;;  %v570_v54 = vld [vmem:[%s4913_s11 + $0xb60] sm:$0xff] }
  0x8e   : > { %445 = vst [vmem:[%s4918_s12 + $0x3b8] sm:$0xff] %v444_v55  ;;  %v572_v55 = vld [vmem:[%s4913_s11 + $0xb68] sm:$0xff] }
  0x8f   : > { %447 = vst [vmem:[%s4918_s12 + $0x3c0] sm:$0xff] %v446_v56  ;;  %v574_v56 = vld [vmem:[%s4913_s11 + $0xb80] sm:$0xff] }
  0x90   : > { %449 = vst [vmem:[%s4918_s12 + $0x3c8] sm:$0xff] %v448_v57  ;;  %v576_v57 = vld [vmem:[%s4913_s11 + $0xb88] sm:$0xff] }
  0x91   : > { %451 = vst [vmem:[%s4918_s12 + $0x3d0] sm:$0xff] %v450_v58  ;;  %v578_v58 = vld [vmem:[%s4913_s11 + $0xba0] sm:$0xff] }
  0x92   : > { %453 = vst [vmem:[%s4918_s12 + $0x3d8] sm:$0xff] %v452_v59  ;;  %v580_v59 = vld [vmem:[%s4913_s11 + $0xba8] sm:$0xff] }
  0x93   : > { %455 = vst [vmem:[%s4918_s12 + $0x3e0] sm:$0xff] %v454_v60  ;;  %v582_v60 = vld [vmem:[%s4913_s11 + $0xbc0] sm:$0xff] }
  0x94   : > { %457 = vst [vmem:[%s4918_s12 + $0x3e8] sm:$0xff] %v456_v61  ;;  %v584_v61 = vld [vmem:[%s4913_s11 + $0xbc8] sm:$0xff] }
  0x95   : > { %459 = vst [vmem:[%s4918_s12 + $0x3f0] sm:$0xff] %v458_v62  ;;  %v586_v62 = vld [vmem:[%s4913_s11 + $0xbe0] sm:$0xff] }
  0x96   : > { %461 = vst [vmem:[%s4918_s12 + $0x3f8] sm:$0xff] %v460_v63  ;;  %v588_v63 = vld [vmem:[%s4913_s11 + $0xbe8] sm:$0xff] }
  0x97   : > { %463 = vst [vmem:[%s4918_s12 + $0x400] sm:$0xff] %v462_v0  ;;  %v590_v0 = vld [vmem:[%s4913_s11 + $0xc00] sm:$0xff] }
  0x98   : > { %465 = vst [vmem:[%s4918_s12 + $0x408] sm:$0xff] %v464_v1  ;;  %v592_v1 = vld [vmem:[%s4913_s11 + $0xc08] sm:$0xff] }
  0x99   : > { %467 = vst [vmem:[%s4918_s12 + $0x410] sm:$0xff] %v466_v2  ;;  %v594_v2 = vld [vmem:[%s4913_s11 + $0xc20] sm:$0xff] }
  0x9a   : > { %469 = vst [vmem:[%s4918_s12 + $0x418] sm:$0xff] %v468_v3  ;;  %v596_v3 = vld [vmem:[%s4913_s11 + $0xc28] sm:$0xff] }
  0x9b   : > { %471 = vst [vmem:[%s4918_s12 + $0x420] sm:$0xff] %v470_v4  ;;  %v598_v4 = vld [vmem:[%s4913_s11 + $0xc40] sm:$0xff] }
  0x9c   : > { %473 = vst [vmem:[%s4918_s12 + $0x428] sm:$0xff] %v472_v5  ;;  %v600_v5 = vld [vmem:[%s4913_s11 + $0xc48] sm:$0xff] }
  0x9d   : > { %475 = vst [vmem:[%s4918_s12 + $0x430] sm:$0xff] %v474_v6  ;;  %v602_v6 = vld [vmem:[%s4913_s11 + $0xc60] sm:$0xff] }
  0x9e   : > { %477 = vst [vmem:[%s4918_s12 + $0x438] sm:$0xff] %v476_v7  ;;  %v604_v7 = vld [vmem:[%s4913_s11 + $0xc68] sm:$0xff] }
  0x9f   : > { %479 = vst [vmem:[%s4918_s12 + $0x440] sm:$0xff] %v478_v8  ;;  %v606_v8 = vld [vmem:[%s4913_s11 + $0xc80] sm:$0xff] }
  0xa0   : > { %481 = vst [vmem:[%s4918_s12 + $0x448] sm:$0xff] %v480_v9  ;;  %v608_v9 = vld [vmem:[%s4913_s11 + $0xc88] sm:$0xff] }
  0xa1   : > { %483 = vst [vmem:[%s4918_s12 + $0x450] sm:$0xff] %v482_v10  ;;  %v610_v10 = vld [vmem:[%s4913_s11 + $0xca0] sm:$0xff] }
  0xa2   : > { %485 = vst [vmem:[%s4918_s12 + $0x458] sm:$0xff] %v484_v11  ;;  %v612_v11 = vld [vmem:[%s4913_s11 + $0xca8] sm:$0xff] }
  0xa3   : > { %487 = vst [vmem:[%s4918_s12 + $0x460] sm:$0xff] %v486_v12  ;;  %v614_v12 = vld [vmem:[%s4913_s11 + $0xcc0] sm:$0xff] }
  0xa4   : > { %489 = vst [vmem:[%s4918_s12 + $0x468] sm:$0xff] %v488_v13  ;;  %v616_v13 = vld [vmem:[%s4913_s11 + $0xcc8] sm:$0xff] }
  0xa5   : > { %491 = vst [vmem:[%s4918_s12 + $0x470] sm:$0xff] %v490_v14  ;;  %v618_v14 = vld [vmem:[%s4913_s11 + $0xce0] sm:$0xff] }
  0xa6   : > { %493 = vst [vmem:[%s4918_s12 + $0x478] sm:$0xff] %v492_v15  ;;  %v620_v15 = vld [vmem:[%s4913_s11 + $0xce8] sm:$0xff] }
  0xa7   : > { %495 = vst [vmem:[%s4918_s12 + $0x480] sm:$0xff] %v494_v16  ;;  %v622_v16 = vld [vmem:[%s4913_s11 + $0xd00] sm:$0xff] }
  0xa8   : > { %497 = vst [vmem:[%s4918_s12 + $0x488] sm:$0xff] %v496_v17  ;;  %v624_v17 = vld [vmem:[%s4913_s11 + $0xd08] sm:$0xff] }
  0xa9   : > { %499 = vst [vmem:[%s4918_s12 + $0x490] sm:$0xff] %v498_v18  ;;  %v626_v18 = vld [vmem:[%s4913_s11 + $0xd20] sm:$0xff] }
  0xaa   : > { %501 = vst [vmem:[%s4918_s12 + $0x498] sm:$0xff] %v500_v19  ;;  %v628_v19 = vld [vmem:[%s4913_s11 + $0xd28] sm:$0xff] }
  0xab   : > { %503 = vst [vmem:[%s4918_s12 + $0x4a0] sm:$0xff] %v502_v20  ;;  %v630_v20 = vld [vmem:[%s4913_s11 + $0xd40] sm:$0xff] }
  0xac   : > { %505 = vst [vmem:[%s4918_s12 + $0x4a8] sm:$0xff] %v504_v21  ;;  %v632_v21 = vld [vmem:[%s4913_s11 + $0xd48] sm:$0xff] }
  0xad   : > { %507 = vst [vmem:[%s4918_s12 + $0x4b0] sm:$0xff] %v506_v22  ;;  %v634_v22 = vld [vmem:[%s4913_s11 + $0xd60] sm:$0xff] }
  0xae   : > { %509 = vst [vmem:[%s4918_s12 + $0x4b8] sm:$0xff] %v508_v23  ;;  %v636_v23 = vld [vmem:[%s4913_s11 + $0xd68] sm:$0xff] }
  0xaf   : > { %511 = vst [vmem:[%s4918_s12 + $0x4c0] sm:$0xff] %v510_v24  ;;  %v638_v24 = vld [vmem:[%s4913_s11 + $0xd80] sm:$0xff] }
  0xb0   : > { %513 = vst [vmem:[%s4918_s12 + $0x4c8] sm:$0xff] %v512_v25  ;;  %v640_v25 = vld [vmem:[%s4913_s11 + $0xd88] sm:$0xff] }
  0xb1   : > { %515 = vst [vmem:[%s4918_s12 + $0x4d0] sm:$0xff] %v514_v26  ;;  %v642_v26 = vld [vmem:[%s4913_s11 + $0xda0] sm:$0xff] }
  0xb2   : > { %517 = vst [vmem:[%s4918_s12 + $0x4d8] sm:$0xff] %v516_v27  ;;  %v644_v27 = vld [vmem:[%s4913_s11 + $0xda8] sm:$0xff] }
  0xb3   : > { %519 = vst [vmem:[%s4918_s12 + $0x4e0] sm:$0xff] %v518_v28  ;;  %v646_v28 = vld [vmem:[%s4913_s11 + $0xdc0] sm:$0xff] }
  0xb4   : > { %521 = vst [vmem:[%s4918_s12 + $0x4e8] sm:$0xff] %v520_v29  ;;  %v648_v29 = vld [vmem:[%s4913_s11 + $0xdc8] sm:$0xff] }
  0xb5   : > { %523 = vst [vmem:[%s4918_s12 + $0x4f0] sm:$0xff] %v522_v30  ;;  %v650_v30 = vld [vmem:[%s4913_s11 + $0xde0] sm:$0xff] }
  0xb6   : > { %525 = vst [vmem:[%s4918_s12 + $0x4f8] sm:$0xff] %v524_v31  ;;  %v652_v31 = vld [vmem:[%s4913_s11 + $0xde8] sm:$0xff] }
  0xb7   : > { %527 = vst [vmem:[%s4918_s12 + $0x500] sm:$0xff] %v526_v32  ;;  %v654_v32 = vld [vmem:[%s4913_s11 + $0xe00] sm:$0xff] }
  0xb8   : > { %529 = vst [vmem:[%s4918_s12 + $0x508] sm:$0xff] %v528_v33  ;;  %v656_v33 = vld [vmem:[%s4913_s11 + $0xe08] sm:$0xff] }
  0xb9   : > { %531 = vst [vmem:[%s4918_s12 + $0x510] sm:$0xff] %v530_v34  ;;  %v658_v34 = vld [vmem:[%s4913_s11 + $0xe20] sm:$0xff] }
  0xba   : > { %533 = vst [vmem:[%s4918_s12 + $0x518] sm:$0xff] %v532_v35  ;;  %v660_v35 = vld [vmem:[%s4913_s11 + $0xe28] sm:$0xff] }
  0xbb   : > { %535 = vst [vmem:[%s4918_s12 + $0x520] sm:$0xff] %v534_v36  ;;  %v662_v36 = vld [vmem:[%s4913_s11 + $0xe40] sm:$0xff] }
  0xbc   : > { %537 = vst [vmem:[%s4918_s12 + $0x528] sm:$0xff] %v536_v37  ;;  %v664_v37 = vld [vmem:[%s4913_s11 + $0xe48] sm:$0xff] }
  0xbd   : > { %539 = vst [vmem:[%s4918_s12 + $0x530] sm:$0xff] %v538_v38  ;;  %v666_v38 = vld [vmem:[%s4913_s11 + $0xe60] sm:$0xff] }
  0xbe   : > { %541 = vst [vmem:[%s4918_s12 + $0x538] sm:$0xff] %v540_v39  ;;  %v668_v39 = vld [vmem:[%s4913_s11 + $0xe68] sm:$0xff] }
  0xbf   : > { %543 = vst [vmem:[%s4918_s12 + $0x540] sm:$0xff] %v542_v40  ;;  %v670_v40 = vld [vmem:[%s4913_s11 + $0xe80] sm:$0xff] }
  0xc0   : > { %545 = vst [vmem:[%s4918_s12 + $0x548] sm:$0xff] %v544_v41  ;;  %v672_v41 = vld [vmem:[%s4913_s11 + $0xe88] sm:$0xff] }
  0xc1   : > { %547 = vst [vmem:[%s4918_s12 + $0x550] sm:$0xff] %v546_v42  ;;  %v674_v42 = vld [vmem:[%s4913_s11 + $0xea0] sm:$0xff] }
  0xc2   : > { %549 = vst [vmem:[%s4918_s12 + $0x558] sm:$0xff] %v548_v43  ;;  %v676_v43 = vld [vmem:[%s4913_s11 + $0xea8] sm:$0xff] }
  0xc3   : > { %551 = vst [vmem:[%s4918_s12 + $0x560] sm:$0xff] %v550_v44  ;;  %v678_v44 = vld [vmem:[%s4913_s11 + $0xec0] sm:$0xff] }
  0xc4   : > { %553 = vst [vmem:[%s4918_s12 + $0x568] sm:$0xff] %v552_v45  ;;  %v680_v45 = vld [vmem:[%s4913_s11 + $0xec8] sm:$0xff] }
  0xc5   : > { %555 = vst [vmem:[%s4918_s12 + $0x570] sm:$0xff] %v554_v46  ;;  %v682_v46 = vld [vmem:[%s4913_s11 + $0xee0] sm:$0xff] }
  0xc6   : > { %557 = vst [vmem:[%s4918_s12 + $0x578] sm:$0xff] %v556_v47  ;;  %v684_v47 = vld [vmem:[%s4913_s11 + $0xee8] sm:$0xff] }
  0xc7   : > { %559 = vst [vmem:[%s4918_s12 + $0x580] sm:$0xff] %v558_v48  ;;  %v686_v48 = vld [vmem:[%s4913_s11 + $0xf00] sm:$0xff] }
  0xc8   : > { %561 = vst [vmem:[%s4918_s12 + $0x588] sm:$0xff] %v560_v49  ;;  %v688_v49 = vld [vmem:[%s4913_s11 + $0xf08] sm:$0xff] }
  0xc9   : > { %563 = vst [vmem:[%s4918_s12 + $0x590] sm:$0xff] %v562_v50  ;;  %v690_v50 = vld [vmem:[%s4913_s11 + $0xf20] sm:$0xff] }
  0xca   : > { %565 = vst [vmem:[%s4918_s12 + $0x598] sm:$0xff] %v564_v51  ;;  %v692_v51 = vld [vmem:[%s4913_s11 + $0xf28] sm:$0xff] }
  0xcb   : > { %567 = vst [vmem:[%s4918_s12 + $0x5a0] sm:$0xff] %v566_v52  ;;  %v694_v52 = vld [vmem:[%s4913_s11 + $0xf40] sm:$0xff] }
  0xcc   : > { %569 = vst [vmem:[%s4918_s12 + $0x5a8] sm:$0xff] %v568_v53  ;;  %v696_v53 = vld [vmem:[%s4913_s11 + $0xf48] sm:$0xff] }
  0xcd   : > { %571 = vst [vmem:[%s4918_s12 + $0x5b0] sm:$0xff] %v570_v54  ;;  %v698_v54 = vld [vmem:[%s4913_s11 + $0xf60] sm:$0xff] }
  0xce   : > { %573 = vst [vmem:[%s4918_s12 + $0x5b8] sm:$0xff] %v572_v55  ;;  %v700_v55 = vld [vmem:[%s4913_s11 + $0xf68] sm:$0xff] }
  0xcf   : > { %575 = vst [vmem:[%s4918_s12 + $0x5c0] sm:$0xff] %v574_v56  ;;  %v702_v56 = vld [vmem:[%s4913_s11 + $0xf80] sm:$0xff] }
  0xd0   : > { %577 = vst [vmem:[%s4918_s12 + $0x5c8] sm:$0xff] %v576_v57  ;;  %v704_v57 = vld [vmem:[%s4913_s11 + $0xf88] sm:$0xff] }
  0xd1   : > { %579 = vst [vmem:[%s4918_s12 + $0x5d0] sm:$0xff] %v578_v58  ;;  %v706_v58 = vld [vmem:[%s4913_s11 + $0xfa0] sm:$0xff] }
  0xd2   : > { %581 = vst [vmem:[%s4918_s12 + $0x5d8] sm:$0xff] %v580_v59  ;;  %v708_v59 = vld [vmem:[%s4913_s11 + $0xfa8] sm:$0xff] }
  0xd3   : > { %583 = vst [vmem:[%s4918_s12 + $0x5e0] sm:$0xff] %v582_v60  ;;  %v710_v60 = vld [vmem:[%s4913_s11 + $0xfc0] sm:$0xff] }
  0xd4   : > { %585 = vst [vmem:[%s4918_s12 + $0x5e8] sm:$0xff] %v584_v61  ;;  %v712_v61 = vld [vmem:[%s4913_s11 + $0xfc8] sm:$0xff] }
  0xd5   : > { %587 = vst [vmem:[%s4918_s12 + $0x5f0] sm:$0xff] %v586_v62  ;;  %v714_v62 = vld [vmem:[%s4913_s11 + $0xfe0] sm:$0xff] }
  0xd6   : > { %589 = vst [vmem:[%s4918_s12 + $0x5f8] sm:$0xff] %v588_v63  ;;  %v716_v63 = vld [vmem:[%s4913_s11 + $0xfe8] sm:$0xff] }
  0xd7   : > { %591 = vst [vmem:[%s4918_s12 + $0x600] sm:$0xff] %v590_v0 }
  0xd8   : > { %593 = vst [vmem:[%s4918_s12 + $0x608] sm:$0xff] %v592_v1 }
  0xd9   : > { %595 = vst [vmem:[%s4918_s12 + $0x610] sm:$0xff] %v594_v2 }
  0xda   : > { %597 = vst [vmem:[%s4918_s12 + $0x618] sm:$0xff] %v596_v3 }
  0xdb   : > { %599 = vst [vmem:[%s4918_s12 + $0x620] sm:$0xff] %v598_v4 }
  0xdc   : > { %601 = vst [vmem:[%s4918_s12 + $0x628] sm:$0xff] %v600_v5 }
  0xdd   : > { %603 = vst [vmem:[%s4918_s12 + $0x630] sm:$0xff] %v602_v6 }
  0xde   : > { %605 = vst [vmem:[%s4918_s12 + $0x638] sm:$0xff] %v604_v7 }
  0xdf   : > { %607 = vst [vmem:[%s4918_s12 + $0x640] sm:$0xff] %v606_v8 }
  0xe0   : > { %609 = vst [vmem:[%s4918_s12 + $0x648] sm:$0xff] %v608_v9 }
  0xe1   : > { %611 = vst [vmem:[%s4918_s12 + $0x650] sm:$0xff] %v610_v10 }
  0xe2   : > { %613 = vst [vmem:[%s4918_s12 + $0x658] sm:$0xff] %v612_v11 }
  0xe3   : > { %615 = vst [vmem:[%s4918_s12 + $0x660] sm:$0xff] %v614_v12 }
  0xe4   : > { %617 = vst [vmem:[%s4918_s12 + $0x668] sm:$0xff] %v616_v13 }
  0xe5   : > { %619 = vst [vmem:[%s4918_s12 + $0x670] sm:$0xff] %v618_v14 }
  0xe6   : > { %621 = vst [vmem:[%s4918_s12 + $0x678] sm:$0xff] %v620_v15 }
  0xe7   : > { %623 = vst [vmem:[%s4918_s12 + $0x680] sm:$0xff] %v622_v16 }
  0xe8   : > { %625 = vst [vmem:[%s4918_s12 + $0x688] sm:$0xff] %v624_v17 }
  0xe9   : > { %627 = vst [vmem:[%s4918_s12 + $0x690] sm:$0xff] %v626_v18 }
  0xea   : > { %629 = vst [vmem:[%s4918_s12 + $0x698] sm:$0xff] %v628_v19 }
  0xeb   : > { %631 = vst [vmem:[%s4918_s12 + $0x6a0] sm:$0xff] %v630_v20 }
  0xec   : > { %633 = vst [vmem:[%s4918_s12 + $0x6a8] sm:$0xff] %v632_v21 }
  0xed   : > { %635 = vst [vmem:[%s4918_s12 + $0x6b0] sm:$0xff] %v634_v22 }
  0xee   : > { %637 = vst [vmem:[%s4918_s12 + $0x6b8] sm:$0xff] %v636_v23 }
  0xef   : > { %639 = vst [vmem:[%s4918_s12 + $0x6c0] sm:$0xff] %v638_v24 }
  0xf0   : > { %641 = vst [vmem:[%s4918_s12 + $0x6c8] sm:$0xff] %v640_v25 }
  0xf1   : > { %643 = vst [vmem:[%s4918_s12 + $0x6d0] sm:$0xff] %v642_v26 }
  0xf2   : > { %645 = vst [vmem:[%s4918_s12 + $0x6d8] sm:$0xff] %v644_v27 }
  0xf3   : > { %647 = vst [vmem:[%s4918_s12 + $0x6e0] sm:$0xff] %v646_v28 }
  0xf4   : > { %649 = vst [vmem:[%s4918_s12 + $0x6e8] sm:$0xff] %v648_v29 }
  0xf5   : > { %651 = vst [vmem:[%s4918_s12 + $0x6f0] sm:$0xff] %v650_v30 }
  0xf6   : > { %653 = vst [vmem:[%s4918_s12 + $0x6f8] sm:$0xff] %v652_v31 }
  0xf7   : > { %655 = vst [vmem:[%s4918_s12 + $0x700] sm:$0xff] %v654_v32 }
  0xf8   : > { %657 = vst [vmem:[%s4918_s12 + $0x708] sm:$0xff] %v656_v33 }
  0xf9   : > { %659 = vst [vmem:[%s4918_s12 + $0x710] sm:$0xff] %v658_v34 }
  0xfa   : > { %661 = vst [vmem:[%s4918_s12 + $0x718] sm:$0xff] %v660_v35 }
  0xfb   : > { %663 = vst [vmem:[%s4918_s12 + $0x720] sm:$0xff] %v662_v36 }
  0xfc   : > { %665 = vst [vmem:[%s4918_s12 + $0x728] sm:$0xff] %v664_v37 }
  0xfd   : > { %667 = vst [vmem:[%s4918_s12 + $0x730] sm:$0xff] %v666_v38 }
  0xfe   : > { %669 = vst [vmem:[%s4918_s12 + $0x738] sm:$0xff] %v668_v39 }
  0xff   : > { %671 = vst [vmem:[%s4918_s12 + $0x740] sm:$0xff] %v670_v40 }
 0x100   : > { %673 = vst [vmem:[%s4918_s12 + $0x748] sm:$0xff] %v672_v41 }
 0x101   : > { %675 = vst [vmem:[%s4918_s12 + $0x750] sm:$0xff] %v674_v42 }
 0x102   : > { %677 = vst [vmem:[%s4918_s12 + $0x758] sm:$0xff] %v676_v43 }
 0x103   : > { %679 = vst [vmem:[%s4918_s12 + $0x760] sm:$0xff] %v678_v44 }
 0x104   : > { %681 = vst [vmem:[%s4918_s12 + $0x768] sm:$0xff] %v680_v45 }
 0x105   : > { %683 = vst [vmem:[%s4918_s12 + $0x770] sm:$0xff] %v682_v46 }
 0x106   : > { %685 = vst [vmem:[%s4918_s12 + $0x778] sm:$0xff] %v684_v47 }
 0x107   : > { %687 = vst [vmem:[%s4918_s12 + $0x780] sm:$0xff] %v686_v48 }
 0x108   : > { %689 = vst [vmem:[%s4918_s12 + $0x788] sm:$0xff] %v688_v49 }
 0x109   : > { %691 = vst [vmem:[%s4918_s12 + $0x790] sm:$0xff] %v690_v50 }
 0x10a   : > { %693 = vst [vmem:[%s4918_s12 + $0x798] sm:$0xff] %v692_v51 }
 0x10b   : > { %695 = vst [vmem:[%s4918_s12 + $0x7a0] sm:$0xff] %v694_v52 }
 0x10c   : > { %697 = vst [vmem:[%s4918_s12 + $0x7a8] sm:$0xff] %v696_v53 }
 0x10d   : > { %699 = vst [vmem:[%s4918_s12 + $0x7b0] sm:$0xff] %v698_v54 }
 0x10e   : > { %701 = vst [vmem:[%s4918_s12 + $0x7b8] sm:$0xff] %v700_v55 }
 0x10f   : > { %703 = vst [vmem:[%s4918_s12 + $0x7c0] sm:$0xff] %v702_v56 }
 0x110   : > { %705 = vst [vmem:[%s4918_s12 + $0x7c8] sm:$0xff] %v704_v57 }
 0x111   : > { %707 = vst [vmem:[%s4918_s12 + $0x7d0] sm:$0xff] %v706_v58 }
 0x112   : > { %709 = vst [vmem:[%s4918_s12 + $0x7d8] sm:$0xff] %v708_v59 }
 0x113   : > { %711 = vst [vmem:[%s4918_s12 + $0x7e0] sm:$0xff] %v710_v60 }
 0x114   : > { %713 = vst [vmem:[%s4918_s12 + $0x7e8] sm:$0xff] %v712_v61 }
 0x115   : > { %715 = vst [vmem:[%s4918_s12 + $0x7f0] sm:$0xff] %v714_v62 }
 0x116   : > { %717 = vst [vmem:[%s4918_s12 + $0x7f8] sm:$0xff] %v716_v63 }
 0x117 PF: > { %p3254_p7 = scmp.ge.s32.totalorder %s4825_s21, 1  ;;  %p739_p8 = scmp.lt.s32.totalorder %s4825_s21, 11 }
 0x119   : > { %p740_p9 = pnand %p3254_p7, %p739_p8 }
 0x11a   : > { %s746_s13 = sand.u32 (!%p740_p9), 1, %s4801_s15   ;;  %s3256_s14 = sshll.u32 (!%p740_p9), %s4809_s17, 3 }
 0x11b   : > { %743 = sbr.rel (%p740_p9) target bundleno = 880 (0x370), region = 55  ;;  %s3255_s24 = sshll.u32 (!%p740_p9), %s746_s13, 11 }
 0x11c   : > { %p784_p10 = scmp.lt.s32.totalorder (!%p740_p9), %s3256_s14, 39  ;;  %s3257_s25 = sshll.u32 (!%p740_p9), %s4813_s18, 2 }
 0x11d   : > { %p791_p11 = scmp.lt.s32.totalorder (!%p740_p9), %s3257_s25, 7  ;;  %s3258_s26 = sshll.u32 (!%p740_p9), %s4813_s18, 6 }
 0x11e   : > { %p796_p12 = scmp.lt.s32.totalorder (!%p740_p9), %s3258_s26, 127  ;;  %p801_p13 = scmp.lt.s32.totalorder (!%p740_p9), %s4813_s18, 1 }
 0x11f   : > { %s5459_s29 = scalar_lea.vmem (!%p740_p9), [#allocation3], %s3255_s24  ;;  %p3261_p0 = scmp.ne.s32.totalorder (!%p740_p9), %s4809_s17, 0 }
 0x120   : > { %s6121_s14 = smov (!%p784_p10, %s3256_s14), 39  ;;  %s6123_s25 = smov (!%p791_p11, %s3257_s25), 7 }
 0x121   : > { %s786_s30 = scalar_lea.vmem %s6103_s0, %s6121_s14  ;;  %s6125_s26 = smov (!%p796_p12, %s3258_s26), 127 }
 0x122   : > { %s793_s6 = scalar_lea.vmem %s6105_s2, %s6123_s25  ;;  %s3259_s7 = sshll.u32 %s6125_s26, 2 }
 0x123   : > { %s5451_s10 = scalar_lea.vmem %s6106_s3, %s3259_s7  ;;  %s6127_s18 = smov (!%p801_p13, %s4813_s18), 1 }
 0x124   : > { %s3260_s11 = sshll.u32 %s6127_s18, 1  ;;  %808 = sbr.rel (%p3261_p0) target bundleno = 299 (0x12b), region = 63 }
 0x125   : > { %s5457_s27 = scalar_lea.vmem %s6107_s4, %s3260_s11 }
 0x129   : > { %v4827_v0 = vmov 0.0  }
 0x12a   : > { %809 = vst [vmem:[#allocation2] sm:$0xff] %v4827_v0 }
 0x12b PF: > { %v3376_v1 = vld [vmem:[%s5459_s29 + $0xe0] sm:$0xf]  ;;  %v4448_v2 = vld [vmem:[%s5459_s29 + $0xec] sm:$0xf0]  ;;  %vm2789_vm0 = vcmask 1041408   ;;  %vm2791_vm1 = vcmask 1045508  }
 0x12c   : > { %v3504_v3 = vld [vmem:[%s5459_s29 + $0x1e0] sm:$0xf]  ;;  %v3377_v4 = vor.u32 %v4448_v2, %v3376_v1  ;;  %v4480_v5 = vld [vmem:[%s5459_s29 + $0x1ec] sm:$0xf0]  ;;  %vm2793_vm2 = vcmask 1043456   ;;  %p4286_p1 = scmp.ne.s32.totalorder %s4809_s17, 4 }
 0x12d   : > { %v3632_v6 = vld [vmem:[%s5459_s29 + $0x2e0] sm:$0xf]  ;;  %v4512_v7 = vld [vmem:[%s5459_s29 + $0x2ec] sm:$0xf0]  ;;  %v3505_v8 = vor.u32 %v4480_v5, %v3504_v3 }
 0x12e   : > { %v3633_v9 = vor.u32 %v4512_v7, %v3632_v6  ;;  %v3760_v10 = vld [vmem:[%s5459_s29 + $0x3e0] sm:$0xf]  ;;  %v4544_v11 = vld [vmem:[%s5459_s29 + $0x3ec] sm:$0xf0]  ;;  %2366 = vmatpush.bf16.msra.mxu0 %v3377_v4 }
 0x12f   : > { %v3360_v12 = vld [vmem:[%s5459_s29 + $0xc0] sm:$0xf]  ;;  %v3761_v13 = vor.u32 %v4544_v11, %v3760_v10  ;;  %v4444_v14 = vld [vmem:[%s5459_s29 + $0xcc] sm:$0xf0]  ;;  %2379 = vmatpush.bf16.msra.mxu1 %v3505_v8 }
 0x130   : > { %v3488_v15 = vld [vmem:[%s5459_s29 + $0x1c0] sm:$0xf]  ;;  %v4476_v16 = vld [vmem:[%s5459_s29 + $0x1cc] sm:$0xf0]  ;;  %2392 = vmatpush.bf16.msra.mxu2 %v3633_v9  ;;  %v3361_v17 = vor.u32 %v4444_v14, %v3360_v12 }
 0x131   : > { %v3489_v18 = vor.u32 %v4476_v16, %v3488_v15  ;;  %v3616_v19 = vld [vmem:[%s5459_s29 + $0x2c0] sm:$0xf]  ;;  %v4508_v20 = vld [vmem:[%s5459_s29 + $0x2cc] sm:$0xf0]  ;;  %2405 = vmatpush.bf16.msra.mxu3 %v3761_v13 }
 0x132   : > { %v3744_v21 = vld [vmem:[%s5459_s29 + $0x3c0] sm:$0xf]  ;;  %v3617_v22 = vor.u32 %v4508_v20, %v3616_v19  ;;  %v4540_v23 = vld [vmem:[%s5459_s29 + $0x3cc] sm:$0xf0]  ;;  %2367 = vmatpush.bf16.msra.mxu0 %v3361_v17 }
 0x133   : > { %v3344_v24 = vld [vmem:[%s5459_s29 + $0xa0] sm:$0xf]  ;;  %v4440_v25 = vld [vmem:[%s5459_s29 + $0xac] sm:$0xf0]  ;;  %v3745_v26 = vor.u32 %v4540_v23, %v3744_v21  ;;  %2380 = vmatpush.bf16.msra.mxu1 %v3489_v18 }
 0x134   : > { %v3472_v27 = vld [vmem:[%s5459_s29 + $0x1a0] sm:$0xf]  ;;  %v4472_v28 = vld [vmem:[%s5459_s29 + $0x1ac] sm:$0xf0]  ;;  %v3345_v30 = vor.u32 %v4440_v25, %v3344_v24  ;;  %2393 = vmatpush.bf16.msra.mxu2 %v3617_v22 }
 0x135   : > { %v3600_v29 = vld [vmem:[%s5459_s29 + $0x2a0] sm:$0xf]  ;;  %v4504_v31 = vld [vmem:[%s5459_s29 + $0x2ac] sm:$0xf0]  ;;  %v3473_v34 = vor.u32 %v4472_v28, %v3472_v27  ;;  %2406 = vmatpush.bf16.msra.mxu3 %v3745_v26 }
 0x136   : > { %v3728_v32 = vld [vmem:[%s5459_s29 + $0x3a0] sm:$0xf]  ;;  %v4536_v33 = vld [vmem:[%s5459_s29 + $0x3ac] sm:$0xf0]  ;;  %v3601_v35 = vor.u32 %v4504_v31, %v3600_v29  ;;  %2368 = vmatpush.bf16.msra.mxu0 %v3345_v30 }
 0x137   : > { %v3328_v36 = vld [vmem:[%s5459_s29 + $0x80] sm:$0xf]  ;;  %v4436_v37 = vld [vmem:[%s5459_s29 + $0x8c] sm:$0xf0]  ;;  %v3729_v39 = vor.u32 %v4536_v33, %v3728_v32  ;;  %2381 = vmatpush.bf16.msra.mxu1 %v3473_v34 }
 0x138   : > { %v3456_v38 = vld [vmem:[%s5459_s29 + $0x180] sm:$0xf]  ;;  %v4468_v40 = vld [vmem:[%s5459_s29 + $0x18c] sm:$0xf0]  ;;  %v3329_v45 = vor.u32 %v4436_v37, %v3328_v36  ;;  %2394 = vmatpush.bf16.msra.mxu2 %v3601_v35 }
 0x139   : > { %v3584_v41 = vld [vmem:[%s5459_s29 + $0x280] sm:$0xf]  ;;  %v4500_v42 = vld [vmem:[%s5459_s29 + $0x28c] sm:$0xf0]  ;;  %v3457_v46 = vor.u32 %v4468_v40, %v3456_v38  ;;  %2407 = vmatpush.bf16.msra.mxu3 %v3729_v39 }
 0x13a   : > { %v3712_v43 = vld [vmem:[%s5459_s29 + $0x380] sm:$0xf]  ;;  %v4532_v44 = vld [vmem:[%s5459_s29 + $0x38c] sm:$0xf0]  ;;  %v3585_v47 = vor.u32 %v4500_v42, %v3584_v41  ;;  %2369 = vmatpush.bf16.msra.mxu0 %v3329_v45 }
 0x13b   : > { %v3312_v48 = vld [vmem:[%s5459_s29 + $0x60] sm:$0xf]  ;;  %v4432_v49 = vld [vmem:[%s5459_s29 + $0x6c] sm:$0xf0]  ;;  %v3713_v51 = vor.u32 %v4532_v44, %v3712_v43  ;;  %2382 = vmatpush.bf16.msra.mxu1 %v3457_v46 }
 0x13c   : > { %v3440_v50 = vld [vmem:[%s5459_s29 + $0x160] sm:$0xf]  ;;  %v4464_v52 = vld [vmem:[%s5459_s29 + $0x16c] sm:$0xf0]  ;;  %v3313_v57 = vor.u32 %v4432_v49, %v3312_v48  ;;  %2395 = vmatpush.bf16.msra.mxu2 %v3585_v47 }
 0x13d   : > { %v3568_v53 = vld [vmem:[%s5459_s29 + $0x260] sm:$0xf]  ;;  %v4496_v54 = vld [vmem:[%s5459_s29 + $0x26c] sm:$0xf0]  ;;  %v3441_v58 = vor.u32 %v4464_v52, %v3440_v50  ;;  %2408 = vmatpush.bf16.msra.mxu3 %v3713_v51 }
 0x13e   : > { %v3696_v55 = vld [vmem:[%s5459_s29 + $0x360] sm:$0xf]  ;;  %v4528_v56 = vld [vmem:[%s5459_s29 + $0x36c] sm:$0xf0]  ;;  %v3569_v59 = vor.u32 %v4496_v54, %v3568_v53  ;;  %2370 = vmatpush.bf16.msra.mxu0 %v3313_v57 }
 0x13f   : > { %v3296_v60 = vld [vmem:[%s5459_s29 + $0x40] sm:$0xf]  ;;  %v4428_v61 = vld [vmem:[%s5459_s29 + $0x4c] sm:$0xf0]  ;;  %v3697_v63 = vor.u32 %v4528_v56, %v3696_v55  ;;  %2383 = vmatpush.bf16.msra.mxu1 %v3441_v58 }
 0x140   : > { %v3424_v62 = vld [vmem:[%s5459_s29 + $0x140] sm:$0xf]  ;;  %v4460_v0 = vld [vmem:[%s5459_s29 + $0x14c] sm:$0xf0]  ;;  %v3297_v5 = vor.u32 %v4428_v61, %v3296_v60  ;;  %2396 = vmatpush.bf16.msra.mxu2 %v3569_v59 }
 0x141   : > { %v3552_v1 = vld [vmem:[%s5459_s29 + $0x240] sm:$0xf]  ;;  %v4492_v2 = vld [vmem:[%s5459_s29 + $0x24c] sm:$0xf0]  ;;  %v3425_v6 = vor.u32 %v4460_v0, %v3424_v62  ;;  %2409 = vmatpush.bf16.msra.mxu3 %v3697_v63 }
 0x142   : > { %v3680_v3 = vld [vmem:[%s5459_s29 + $0x340] sm:$0xf]  ;;  %v4524_v4 = vld [vmem:[%s5459_s29 + $0x34c] sm:$0xf0]  ;;  %v3553_v7 = vor.u32 %v4492_v2, %v3552_v1  ;;  %2371 = vmatpush.bf16.msra.mxu0 %v3297_v5 }
 0x143   : > { %v3280_v8 = vld [vmem:[%s5459_s29 + $0x20] sm:$0xf]  ;;  %v4424_v9 = vld [vmem:[%s5459_s29 + $0x2c] sm:$0xf0]  ;;  %v3681_v11 = vor.u32 %v4524_v4, %v3680_v3  ;;  %2384 = vmatpush.bf16.msra.mxu1 %v3425_v6 }
 0x144   : > { %v3408_v10 = vld [vmem:[%s5459_s29 + $0x120] sm:$0xf]  ;;  %v4456_v12 = vld [vmem:[%s5459_s29 + $0x12c] sm:$0xf0]  ;;  %v3281_v17 = vor.u32 %v4424_v9, %v3280_v8  ;;  %2397 = vmatpush.bf16.msra.mxu2 %v3553_v7 }
 0x145   : > { %v3536_v13 = vld [vmem:[%s5459_s29 + $0x220] sm:$0xf]  ;;  %v4488_v14 = vld [vmem:[%s5459_s29 + $0x22c] sm:$0xf0]  ;;  %v3409_v20 = vor.u32 %v4456_v12, %v3408_v10  ;;  %2410 = vmatpush.bf16.msra.mxu3 %v3681_v11 }
 0x146   : > { %v3664_v15 = vld [vmem:[%s5459_s29 + $0x320] sm:$0xf]  ;;  %v4520_v16 = vld [vmem:[%s5459_s29 + $0x32c] sm:$0xf0]  ;;  %v3537_v21 = vor.u32 %v4488_v14, %v3536_v13  ;;  %2372 = vmatpush.bf16.msra.mxu0 %v3281_v17 }
 0x147   : > { %v3264_v18 = vld [vmem:[%s5459_s29] sm:$0xf]  ;;  %v4420_v19 = vld [vmem:[%s5459_s29 + $0xc] sm:$0xf0]  ;;  %v3665_v25 = vor.u32 %v4520_v16, %v3664_v15  ;;  %2385 = vmatpush.bf16.msra.mxu1 %v3409_v20 }
 0x148   : > { %v3392_v22 = vld [vmem:[%s5459_s29 + $0x100] sm:$0xf]  ;;  %v4452_v23 = vld [vmem:[%s5459_s29 + $0x10c] sm:$0xf0]  ;;  %v3265_v32 = vor.u32 %v4420_v19, %v3264_v18  ;;  %2398 = vmatpush.bf16.msra.mxu2 %v3537_v21 }
 0x149   : > { %v3520_v24 = vld [vmem:[%s5459_s29 + $0x200] sm:$0xf]  ;;  %v4484_v26 = vld [vmem:[%s5459_s29 + $0x20c] sm:$0xf0]  ;;  %v3393_v36 = vor.u32 %v4452_v23, %v3392_v22  ;;  %2411 = vmatpush.bf16.msra.mxu3 %v3665_v25 }
 0x14a   : > { %v3648_v27 = vld [vmem:[%s5459_s29 + $0x300] sm:$0xf]  ;;  %v4516_v28 = vld [vmem:[%s5459_s29 + $0x30c] sm:$0xf0]  ;;  %v3521_v37 = vor.u32 %v4484_v26, %v3520_v24  ;;  %2373 = vmatpush.bf16.msra.mxu0 %v3265_v32 }
 0x14b   : > { %v3888_v29 = vld [vmem:[%s5459_s29 + $0x4e0] sm:$0xf]  ;;  %v4576_v30 = vld [vmem:[%s5459_s29 + $0x4ec] sm:$0xf0]  ;;  %v3649_v40 = vor.u32 %v4516_v28, %v3648_v27  ;;  %2386 = vmatpush.bf16.msra.mxu1 %v3393_v36 }
 0x14c   : > { %v4016_v31 = vld [vmem:[%s5459_s29 + $0x5e0] sm:$0xf]  ;;  %v4608_v33 = vld [vmem:[%s5459_s29 + $0x5ec] sm:$0xf0]  ;;  %v3889_v41 = vor.u32 %v4576_v30, %v3888_v29  ;;  %2399 = vmatpush.bf16.msra.mxu2 %v3521_v37 }
 0x14d   : > { %v4144_v34 = vld [vmem:[%s5459_s29 + $0x6e0] sm:$0xf]  ;;  %v4640_v35 = vld [vmem:[%s5459_s29 + $0x6ec] sm:$0xf0]  ;;  %v4017_v42 = vor.u32 %v4608_v33, %v4016_v31  ;;  %2412 = vmatpush.bf16.msra.mxu3 %v3649_v40 }
 0x14e   : > { %v4272_v38 = vld [vmem:[%s5459_s29 + $0x7e0] sm:$0xf]  ;;  %v4672_v39 = vld [vmem:[%s5459_s29 + $0x7ec] sm:$0xf0]  ;;  %v4145_v43 = vor.u32 %v4640_v35, %v4144_v34  ;;  %2418 = vmatpush.bf16.msrb.mxu0 %v3889_v41 }
 0x14f   : > { %v3872_v44 = vld [vmem:[%s5459_s29 + $0x4c0] sm:$0xf]  ;;  %v4572_v45 = vld [vmem:[%s5459_s29 + $0x4cc] sm:$0xf0]  ;;  %v4273_v47 = vor.u32 %v4672_v39, %v4272_v38  ;;  %2431 = vmatpush.bf16.msrb.mxu1 %v4017_v42 }
 0x150   : > { %v4000_v46 = vld [vmem:[%s5459_s29 + $0x5c0] sm:$0xf]  ;;  %v4604_v48 = vld [vmem:[%s5459_s29 + $0x5cc] sm:$0xf0]  ;;  %v3873_v53 = vor.u32 %v4572_v45, %v3872_v44  ;;  %2444 = vmatpush.bf16.msrb.mxu2 %v4145_v43 }
 0x151   : > { %v4128_v49 = vld [vmem:[%s5459_s29 + $0x6c0] sm:$0xf]  ;;  %v4636_v50 = vld [vmem:[%s5459_s29 + $0x6cc] sm:$0xf0]  ;;  %v4001_v56 = vor.u32 %v4604_v48, %v4000_v46  ;;  %2457 = vmatpush.bf16.msrb.mxu3 %v4273_v47 }
 0x152   : > { %v4256_v51 = vld [vmem:[%s5459_s29 + $0x7c0] sm:$0xf]  ;;  %v4668_v52 = vld [vmem:[%s5459_s29 + $0x7cc] sm:$0xf0]  ;;  %v4129_v57 = vor.u32 %v4636_v50, %v4128_v49  ;;  %2419 = vmatpush.bf16.msrb.mxu0 %v3873_v53 }
 0x153   : > { %v3856_v54 = vld [vmem:[%s5459_s29 + $0x4a0] sm:$0xf]  ;;  %v4568_v55 = vld [vmem:[%s5459_s29 + $0x4ac] sm:$0xf0]  ;;  %v4257_v61 = vor.u32 %v4668_v52, %v4256_v51  ;;  %2432 = vmatpush.bf16.msrb.mxu1 %v4001_v56 }
 0x154   : > { %v3984_v58 = vld [vmem:[%s5459_s29 + $0x5a0] sm:$0xf]  ;;  %v4600_v59 = vld [vmem:[%s5459_s29 + $0x5ac] sm:$0xf0]  ;;  %v3857_v2 = vor.u32 %v4568_v55, %v3856_v54  ;;  %2445 = vmatpush.bf16.msrb.mxu2 %v4129_v57 }
 0x155   : > { %v811_v60 = vld [vmem:[%s786_s30] sm:$0xff]  ;;  %v4112_v62 = vld [vmem:[%s5459_s29 + $0x6a0] sm:$0xf]  ;;  %v3985_v3 = vor.u32 %v4600_v59, %v3984_v58  ;;  %2458 = vmatpush.bf16.msrb.mxu3 %v4257_v61 }
 0x156   : > { %v4632_v63 = vld [vmem:[%s5459_s29 + $0x6ac] sm:$0xf0]  ;;  %1069 = vst [vmem:[#allocation1] ss:$9 sm:$0xff] %v811_v60  ;;  %v4240_v0 = vld [vmem:[%s5459_s29 + $0x7a0] sm:$0xf]  ;;  %2420 = vmatpush.bf16.msrb.mxu0 %v3857_v2 }
 0x157   : > { %v4664_v1 = vld [vmem:[%s5459_s29 + $0x7ac] sm:$0xf0]  ;;  %v4113_v4 = vor.u32 %v4632_v63, %v4112_v62  ;;  %v3840_v5 = vld [vmem:[%s5459_s29 + $0x480] sm:$0xf]  ;;  %2433 = vmatpush.bf16.msrb.mxu1 %v3985_v3  ;;  %v4446_v2 = vld [vmem:[%s5459_s29 + $0xe4] sm:$0xf] }
 0x158   : > { %v4564_v6 = vld [vmem:[%s5459_s29 + $0x48c] sm:$0xf0]  ;;  %v3968_v7 = vld [vmem:[%s5459_s29 + $0x580] sm:$0xf]  ;;  %v4241_v8 = vor.u32 %v4664_v1, %v4240_v0  ;;  %v3378_v3 = vld [vmem:[%s5459_s29 + $0xf0] sm:$0xf0] }
 0x159   : > { %v4596_v9 = vld [vmem:[%s5459_s29 + $0x58c] sm:$0xf0]  ;;  %v4096_v10 = vld [vmem:[%s5459_s29 + $0x680] sm:$0xf]  ;;  %v3841_v15 = vor.u32 %v4564_v6, %v3840_v5  ;;  %2446 = vmatpush.bf16.msrb.mxu2 %v4113_v4  ;;  %v4478_v4 = vld [vmem:[%s5459_s29 + $0x1e4] sm:$0xf] }
 0x15a   : > { %v4628_v11 = vld [vmem:[%s5459_s29 + $0x68c] sm:$0xf0]  ;;  %v4224_v12 = vld [vmem:[%s5459_s29 + $0x780] sm:$0xf]  ;;  %v3969_v19 = vor.u32 %v4596_v9, %v3968_v7  ;;  %2459 = vmatpush.bf16.msrb.mxu3 %v4241_v8  ;;  %v3506_v6 = vld [vmem:[%s5459_s29 + $0x1f0] sm:$0xf0] }
 0x15b   : > { %v4660_v13 = vld [vmem:[%s5459_s29 + $0x78c] sm:$0xf0]  ;;  %v3824_v14 = vld [vmem:[%s5459_s29 + $0x460] sm:$0xf]  ;;  %v4097_v20 = vor.u32 %v4628_v11, %v4096_v10  ;;  %2421 = vmatpush.bf16.msrb.mxu0 %v3841_v15  ;;  %v4510_v7 = vld [vmem:[%s5459_s29 + $0x2e4] sm:$0xf]  ;;  %v3509_v15 = vor.u32 %v4478_v4, %v3506_v6 }
 0x15c   : > { %v4560_v16 = vld [vmem:[%s5459_s29 + $0x46c] sm:$0xf0]  ;;  %v3952_v17 = vld [vmem:[%s5459_s29 + $0x560] sm:$0xf]  ;;  %v4225_v24 = vor.u32 %v4660_v13, %v4224_v12  ;;  %2434 = vmatpush.bf16.msrb.mxu1 %v3969_v19  ;;  %v3634_v8 = vld [vmem:[%s5459_s29 + $0x2f0] sm:$0xf0] }
 0x15d   : > { %v4592_v18 = vld [vmem:[%s5459_s29 + $0x56c] sm:$0xf0]  ;;  %v5567_v21 = vld [vmem:[#allocation1 + $0x12] sm:$0xff]  ;;  %v5576_v27 = vld [vmem:[#allocation1 + $0x9] sm:$0xff]  ;;  %v3825_v30 = vor.u32 %v4560_v16, %v3824_v14  ;;  %2447 = vmatpush.bf16.msrb.mxu2 %v4097_v20  ;;  %v3381_v14 = vor.u32 %v4446_v2, %v3378_v3  ;;  %v3637_v16 = vor.u32 %v4510_v7, %v3634_v8 }
 0x15e   : > { %v5569_v22 = vld [vmem:[#allocation1] sm:$0xff]  ;;  %v4080_v25 = vld [vmem:[%s5459_s29 + $0x660] sm:$0xf]  ;;  %2400 = vmatmul.bf16.vlgmr.msra.gmra.mxu2 %v5567_v21  ;;  %2387 = vmatmul.bf16.vlgmr.msra.gmra.mxu1 %v5576_v27  ;;  %v3953_v31 = vor.u32 %v4592_v18, %v3952_v17  ;;  %v4542_v11 = vld [vmem:[%s5459_s29 + $0x3e4] sm:$0xf] }
 0x15f   : > { %v5571_v23 = vld [vmem:[#allocation1 + $0x1b] sm:$0xff]  ;;  %v4208_v28 = vld [vmem:[%s5459_s29 + $0x760] sm:$0xf]  ;;  %2374 = vmatmul.bf16.vlgmr.msra.gmra.mxu0 %v5569_v22  ;;  %2460 = vmatpush.bf16.msrb.mxu3 %v4225_v24  ;;  %v3762_v12 = vld [vmem:[%s5459_s29 + $0x3f0] sm:$0xf0] }
 0x160   : > { %v4624_v26 = vld [vmem:[%s5459_s29 + $0x66c] sm:$0xf0]  ;;  %2413 = vmatmul.bf16.vlgmr.msra.gmra.mxu3 %v5571_v23  ;;  %v3808_v33 = vld [vmem:[%s5459_s29 + $0x440] sm:$0xf]  ;;  %2422 = vmatpush.bf16.msrb.mxu0 %v3825_v30  ;;  %v4442_v17 = vld [vmem:[%s5459_s29 + $0xc4] sm:$0xf]  ;;  %v3765_v20 = vor.u32 %v4542_v11, %v3762_v12 }
 0x161   : > { %v4656_v29 = vld [vmem:[%s5459_s29 + $0x76c] sm:$0xf0]  ;;  %v4081_v32 = vor.u32 %v4624_v26, %v4080_v25  ;;  %v3936_v35 = vld [vmem:[%s5459_s29 + $0x540] sm:$0xf]  ;;  %2435 = vmatpush.bf16.msrb.mxu1 %v3953_v31  ;;  %v3362_v18 = vld [vmem:[%s5459_s29 + $0xd0] sm:$0xf0] }
 0x162   : > { %v4556_v34 = vld [vmem:[%s5459_s29 + $0x44c] sm:$0xf0]  ;;  %v4209_v36 = vor.u32 %v4656_v29, %v4208_v28  ;;  %v4064_v38 = vld [vmem:[%s5459_s29 + $0x640] sm:$0xf]  ;;  %v4474_v19 = vld [vmem:[%s5459_s29 + $0x1c4] sm:$0xf]  ;;  %v3365_v31 = vor.u32 %v4442_v17, %v3362_v18 }
 0x163   : > { %v4588_v37 = vld [vmem:[%s5459_s29 + $0x54c] sm:$0xf0]  ;;  %v4192_v40 = vld [vmem:[%s5459_s29 + $0x740] sm:$0xf]  ;;  %v3809_v42 = vor.u32 %v4556_v34, %v3808_v33  ;;  %2448 = vmatpush.bf16.msrb.mxu2 %v4081_v32  ;;  %v3490_v24 = vld [vmem:[%s5459_s29 + $0x1d0] sm:$0xf0] }
 0x164   : > { %v4620_v39 = vld [vmem:[%s5459_s29 + $0x64c] sm:$0xf0]  ;;  %v3937_v43 = vor.u32 %v4588_v37, %v3936_v35  ;;  %v3792_v45 = vld [vmem:[%s5459_s29 + $0x420] sm:$0xf]  ;;  %2461 = vmatpush.bf16.msrb.mxu3 %v4209_v36  ;;  %v4506_v25 = vld [vmem:[%s5459_s29 + $0x2c4] sm:$0xf]  ;;  %v3493_v35 = vor.u32 %v4474_v19, %v3490_v24 }
 0x165   : > { %v4652_v41 = vld [vmem:[%s5459_s29 + $0x74c] sm:$0xf0]  ;;  %v4065_v44 = vor.u32 %v4620_v39, %v4064_v38  ;;  %v3920_v47 = vld [vmem:[%s5459_s29 + $0x520] sm:$0xf]  ;;  %2423 = vmatpush.bf16.msrb.mxu0 %v3809_v42  ;;  %v3618_v26 = vld [vmem:[%s5459_s29 + $0x2d0] sm:$0xf0] }
 0x166   : > { %v4552_v46 = vld [vmem:[%s5459_s29 + $0x42c] sm:$0xf0]  ;;  %v4193_v48 = vor.u32 %v4652_v41, %v4192_v40  ;;  %v4048_v50 = vld [vmem:[%s5459_s29 + $0x620] sm:$0xf]  ;;  %2436 = vmatpush.bf16.msrb.mxu1 %v3937_v43  ;;  %v4538_v28 = vld [vmem:[%s5459_s29 + $0x3c4] sm:$0xf]  ;;  %v3621_v36 = vor.u32 %v4506_v25, %v3618_v26 }
 0x167   : > { %v4584_v49 = vld [vmem:[%s5459_s29 + $0x52c] sm:$0xf0]  ;;  %v4176_v52 = vld [vmem:[%s5459_s29 + $0x720] sm:$0xf]  ;;  %v3793_v54 = vor.u32 %v4552_v46, %v3792_v45  ;;  %2449 = vmatpush.bf16.msrb.mxu2 %v4065_v44  ;;  %v3746_v29 = vld [vmem:[%s5459_s29 + $0x3d0] sm:$0xf0] }
 0x168   : > { %v4616_v51 = vld [vmem:[%s5459_s29 + $0x62c] sm:$0xf0]  ;;  %v3776_v55 = vld [vmem:[%s5459_s29 + $0x400] sm:$0xf]  ;;  %v3921_v57 = vor.u32 %v4584_v49, %v3920_v47  ;;  %2462 = vmatpush.bf16.msrb.mxu3 %v4193_v48  ;;  %v5623_v30 = vld [vmem:[#allocation1 + $0x36] sm:$0xff]  ;;  %v3749_v40 = vor.u32 %v4538_v28, %v3746_v29 }
 0x169   : > { %v4648_v53 = vld [vmem:[%s5459_s29 + $0x72c] sm:$0xf0]  ;;  %v4049_v58 = vor.u32 %v4616_v51, %v4048_v50  ;;  %v3904_v59 = vld [vmem:[%s5459_s29 + $0x500] sm:$0xf]  ;;  %2424 = vmatpush.bf16.msrb.mxu0 %v3793_v54  ;;  %v5625_v32 = vld [vmem:[#allocation1 + $0x24] sm:$0xff] }
 0x16a   : > { %v4548_v56 = vld [vmem:[%s5459_s29 + $0x40c] sm:$0xf0]  ;;  %v4032_v61 = vld [vmem:[%s5459_s29 + $0x600] sm:$0xf]  ;;  %v4177_v62 = vor.u32 %v4648_v53, %v4176_v52  ;;  %2437 = vmatpush.bf16.msrb.mxu1 %v3921_v57  ;;  %v4438_v34 = vld [vmem:[%s5459_s29 + $0xa4] sm:$0xf] }
 0x16b   : > { %v4580_v60 = vld [vmem:[%s5459_s29 + $0x50c] sm:$0xf0]  ;;  %v4160_v0 = vld [vmem:[%s5459_s29 + $0x700] sm:$0xf]  ;;  %v3777_v5 = vor.u32 %v4548_v56, %v3776_v55  ;;  %2450 = vmatpush.bf16.msrb.mxu2 %v4049_v58  ;;  %v3346_v37 = vld [vmem:[%s5459_s29 + $0xb0] sm:$0xf0] }
 0x16c   : > { %v4612_v63 = vld [vmem:[%s5459_s29 + $0x60c] sm:$0xf0]  ;;  %v3905_v9 = vor.u32 %v4580_v60, %v3904_v59  ;;  %2463 = vmatpush.bf16.msrb.mxu3 %v4177_v62  ;;  %v4470_v38 = vld [vmem:[%s5459_s29 + $0x1a4] sm:$0xf]  ;;  %v3474_v41 = vld [vmem:[%s5459_s29 + $0x1b0] sm:$0xf0]  ;;  %v3349_v46 = vor.u32 %v4438_v34, %v3346_v37 }
 0x16d   : > { %v4644_v1 = vld [vmem:[%s5459_s29 + $0x70c] sm:$0xf0]  ;;  %v4033_v10 = vor.u32 %v4612_v63, %v4032_v61  ;;  %2425 = vmatpush.bf16.msrb.mxu0 %v3777_v5  ;;  %v5632_v39 = vld [vmem:[#allocation1 + $0x2d] sm:$0xff]  ;;  %v3602_v43 = vld [vmem:[%s5459_s29 + $0x2b0] sm:$0xf0]  ;;  %v3477_v47 = vor.u32 %v4470_v38, %v3474_v41 }
 0x16e   : > { %v4161_v13 = vor.u32 %v4644_v1, %v4160_v0  ;;  %2438 = vmatpush.bf16.msrb.mxu1 %v3905_v9  ;;  %v5627_v33 = vld [vmem:[#allocation1 + $0x3f] sm:$0xff]  ;;  %v4502_v42 = vld [vmem:[%s5459_s29 + $0x2a4] sm:$0xf] }
 0x16f   : > { %2451 = vmatpush.bf16.msrb.mxu2 %v4033_v10  ;;  %v4534_v44 = vld [vmem:[%s5459_s29 + $0x3a4] sm:$0xf]  ;;  %v3730_v45 = vld [vmem:[%s5459_s29 + $0x3b0] sm:$0xf0]  ;;  %v3605_v48 = vor.u32 %v4502_v42, %v3602_v43 }
 0x170   : > { %2464 = vmatpush.bf16.msrb.mxu3 %v4161_v13  ;;  %2426 = vmatmul.bf16.vlgmr.msrb.gmra.mxu0 %v5625_v32  ;;  %v4434_v49 = vld [vmem:[%s5459_s29 + $0x84] sm:$0xf]  ;;  %v3330_v50 = vld [vmem:[%s5459_s29 + $0x90] sm:$0xf0]  ;;  %v3733_v52 = vor.u32 %v4534_v44, %v3730_v45 }
 0x171   : > { %2470 = vmatpush.bf16.msra.mxu0 %v3381_v14  ;;  %2439 = vmatmul.bf16.vlgmr.msrb.gmra.mxu1 %v5632_v39  ;;  %v4466_v51 = vld [vmem:[%s5459_s29 + $0x184] sm:$0xf]  ;;  %v3458_v53 = vld [vmem:[%s5459_s29 + $0x190] sm:$0xf0]  ;;  %v3333_v58 = vor.u32 %v4434_v49, %v3330_v50 }
 0x172   : > { %2483 = vmatpush.bf16.msra.mxu1 %v3509_v15  ;;  %2452 = vmatmul.bf16.vlgmr.msrb.gmra.mxu2 %v5623_v30  ;;  %v4498_v54 = vld [vmem:[%s5459_s29 + $0x284] sm:$0xf]  ;;  %v3586_v55 = vld [vmem:[%s5459_s29 + $0x290] sm:$0xf0]  ;;  %v3461_v59 = vor.u32 %v4466_v51, %v3458_v53 }
 0x173   : > { %2496 = vmatpush.bf16.msra.mxu2 %v3637_v16  ;;  %2465 = vmatmul.bf16.vlgmr.msrb.gmra.mxu3 %v5627_v33  ;;  %v4530_v56 = vld [vmem:[%s5459_s29 + $0x384] sm:$0xf]  ;;  %v3714_v57 = vld [vmem:[%s5459_s29 + $0x390] sm:$0xf0]  ;;  %v3589_v60 = vor.u32 %v4498_v54, %v3586_v55 }
 0x174   : > { %2509 = vmatpush.bf16.msra.mxu3 %v3765_v20  ;;  %v4430_v61 = vld [vmem:[%s5459_s29 + $0x64] sm:$0xf]  ;;  %v3314_v62 = vld [vmem:[%s5459_s29 + $0x70] sm:$0xf0]  ;;  %v3717_v0 = vor.u32 %v4530_v56, %v3714_v57 }
 0x175   : > { %2471 = vmatpush.bf16.msra.mxu0 %v3365_v31  ;;  %v4462_v63 = vld [vmem:[%s5459_s29 + $0x164] sm:$0xf]  ;;  %v3442_v1 = vld [vmem:[%s5459_s29 + $0x170] sm:$0xf0]  ;;  %v3317_v6 = vor.u32 %v4430_v61, %v3314_v62 }
 0x176   : > { %2484 = vmatpush.bf16.msra.mxu1 %v3493_v35  ;;  %v4494_v2 = vld [vmem:[%s5459_s29 + $0x264] sm:$0xf]  ;;  %v3570_v3 = vld [vmem:[%s5459_s29 + $0x270] sm:$0xf0]  ;;  %v3445_v7 = vor.u32 %v4462_v63, %v3442_v1 }
 0x177   : > { %2497 = vmatpush.bf16.msra.mxu2 %v3621_v36  ;;  %v4526_v4 = vld [vmem:[%s5459_s29 + $0x364] sm:$0xf]  ;;  %v3698_v5 = vld [vmem:[%s5459_s29 + $0x370] sm:$0xf0]  ;;  %v3573_v8 = vor.u32 %v4494_v2, %v3570_v3 }
 0x178   : > { %2510 = vmatpush.bf16.msra.mxu3 %v3749_v40  ;;  %v4426_v9 = vld [vmem:[%s5459_s29 + $0x44] sm:$0xf]  ;;  %v3298_v10 = vld [vmem:[%s5459_s29 + $0x50] sm:$0xf0]  ;;  %v3701_v12 = vor.u32 %v4526_v4, %v3698_v5 }
 0x179   : > { %2472 = vmatpush.bf16.msra.mxu0 %v3349_v46  ;;  %v4458_v11 = vld [vmem:[%s5459_s29 + $0x144] sm:$0xf]  ;;  %v3426_v13 = vld [vmem:[%s5459_s29 + $0x150] sm:$0xf0]  ;;  %v3301_v18 = vor.u32 %v4426_v9, %v3298_v10 }
 0x17a   : > { %2485 = vmatpush.bf16.msra.mxu1 %v3477_v47  ;;  %v4490_v14 = vld [vmem:[%s5459_s29 + $0x244] sm:$0xf]  ;;  %v3554_v15 = vld [vmem:[%s5459_s29 + $0x250] sm:$0xf0]  ;;  %v3429_v19 = vor.u32 %v4458_v11, %v3426_v13 }
 0x17b   : > { %2498 = vmatpush.bf16.msra.mxu2 %v3605_v48  ;;  %v4522_v16 = vld [vmem:[%s5459_s29 + $0x344] sm:$0xf]  ;;  %v3682_v17 = vld [vmem:[%s5459_s29 + $0x350] sm:$0xf0]  ;;  %v3557_v20 = vor.u32 %v4490_v14, %v3554_v15 }
 0x17c   : > { %2511 = vmatpush.bf16.msra.mxu3 %v3733_v52  ;;  %v4422_v24 = vld [vmem:[%s5459_s29 + $0x24] sm:$0xf]  ;;  %v3282_v25 = vld [vmem:[%s5459_s29 + $0x30] sm:$0xf0]  ;;  %v3685_v28 = vor.u32 %v4522_v16, %v3682_v17 }
 0x17d   : > { %2473 = vmatpush.bf16.msra.mxu0 %v3333_v58  ;;  %v4454_v26 = vld [vmem:[%s5459_s29 + $0x124] sm:$0xf]  ;;  %v3410_v29 = vld [vmem:[%s5459_s29 + $0x130] sm:$0xf0]  ;;  %v3285_v37 = vor.u32 %v4422_v24, %v3282_v25 }
 0x17e   : > { %2486 = vmatpush.bf16.msra.mxu1 %v3461_v59  ;;  %v4486_v31 = vld [vmem:[%s5459_s29 + $0x224] sm:$0xf]  ;;  %v3538_v34 = vld [vmem:[%s5459_s29 + $0x230] sm:$0xf0]  ;;  %v3413_v41 = vor.u32 %v4454_v26, %v3410_v29 }
 0x17f   : > { %2499 = vmatpush.bf16.msra.mxu2 %v3589_v60  ;;  %v4518_v35 = vld [vmem:[%s5459_s29 + $0x324] sm:$0xf]  ;;  %v3666_v36 = vld [vmem:[%s5459_s29 + $0x330] sm:$0xf0]  ;;  %v3541_v42 = vor.u32 %v4486_v31, %v3538_v34 }
 0x180   : > { %2512 = vmatpush.bf16.msra.mxu3 %v3717_v0  ;;  %v4418_v38 = vld [vmem:[%s5459_s29 + $0x4] sm:$0xf]  ;;  %v3266_v40 = vld [vmem:[%s5459_s29 + $0x10] sm:$0xf0]  ;;  %v3669_v46 = vor.u32 %v4518_v35, %v3666_v36 }
 0x181   : > { %2474 = vmatpush.bf16.msra.mxu0 %v3317_v6  ;;  %v4450_v43 = vld [vmem:[%s5459_s29 + $0x104] sm:$0xf]  ;;  %v3394_v44 = vld [vmem:[%s5459_s29 + $0x110] sm:$0xf0]  ;;  %v3269_v53 = vor.u32 %v4418_v38, %v3266_v40 }
 0x182   : > { %2487 = vmatpush.bf16.msra.mxu1 %v3445_v7  ;;  %v4482_v45 = vld [vmem:[%s5459_s29 + $0x204] sm:$0xf]  ;;  %v3522_v47 = vld [vmem:[%s5459_s29 + $0x210] sm:$0xf0]  ;;  %v3397_v57 = vor.u32 %v4450_v43, %v3394_v44 }
 0x183   : > { %2500 = vmatpush.bf16.msra.mxu2 %v3573_v8  ;;  %v4514_v48 = vld [vmem:[%s5459_s29 + $0x304] sm:$0xf]  ;;  %v3650_v49 = vld [vmem:[%s5459_s29 + $0x310] sm:$0xf0]  ;;  %v3525_v58 = vor.u32 %v4482_v45, %v3522_v47 }
 0x184   : > { %2513 = vmatpush.bf16.msra.mxu3 %v3701_v12  ;;  %v4574_v50 = vld [vmem:[%s5459_s29 + $0x4e4] sm:$0xf]  ;;  %v3890_v51 = vld [vmem:[%s5459_s29 + $0x4f0] sm:$0xf0]  ;;  %v3653_v61 = vor.u32 %v4514_v48, %v3650_v49 }
 0x185   : > { %2475 = vmatpush.bf16.msra.mxu0 %v3301_v18  ;;  %v4606_v52 = vld [vmem:[%s5459_s29 + $0x5e4] sm:$0xf]  ;;  %v4018_v54 = vld [vmem:[%s5459_s29 + $0x5f0] sm:$0xf0]  ;;  %v3893_v62 = vor.u32 %v4574_v50, %v3890_v51 }
 0x186   : > { %2488 = vmatpush.bf16.msra.mxu1 %v3429_v19  ;;  %v4638_v55 = vld [vmem:[%s5459_s29 + $0x6e4] sm:$0xf]  ;;  %v4146_v56 = vld [vmem:[%s5459_s29 + $0x6f0] sm:$0xf0]  ;;  %v4021_v63 = vor.u32 %v4606_v52, %v4018_v54 }
 0x187   : > { %2501 = vmatpush.bf16.msra.mxu2 %v3557_v20  ;;  %v4670_v59 = vld [vmem:[%s5459_s29 + $0x7e4] sm:$0xf]  ;;  %v4274_v60 = vld [vmem:[%s5459_s29 + $0x7f0] sm:$0xf0]  ;;  %v4149_v0 = vor.u32 %v4638_v55, %v4146_v56 }
 0x188   : > { %2514 = vmatpush.bf16.msra.mxu3 %v3685_v28  ;;  %v4570_v1 = vld [vmem:[%s5459_s29 + $0x4c4] sm:$0xf]  ;;  %v3874_v2 = vld [vmem:[%s5459_s29 + $0x4d0] sm:$0xf0]  ;;  %v4277_v4 = vor.u32 %v4670_v59, %v4274_v60 }
 0x189   : > { %2476 = vmatpush.bf16.msra.mxu0 %v3285_v37  ;;  %v4602_v3 = vld [vmem:[%s5459_s29 + $0x5c4] sm:$0xf]  ;;  %v4002_v5 = vld [vmem:[%s5459_s29 + $0x5d0] sm:$0xf0]  ;;  %v3877_v10 = vor.u32 %v4570_v1, %v3874_v2 }
 0x18a   : > { %2489 = vmatpush.bf16.msra.mxu1 %v3413_v41  ;;  %v4634_v6 = vld [vmem:[%s5459_s29 + $0x6c4] sm:$0xf]  ;;  %v4130_v7 = vld [vmem:[%s5459_s29 + $0x6d0] sm:$0xf0]  ;;  %v4005_v11 = vor.u32 %v4602_v3, %v4002_v5 }
 0x18b   : > { %2502 = vmatpush.bf16.msra.mxu2 %v3541_v42  ;;  %v4666_v8 = vld [vmem:[%s5459_s29 + $0x7c4] sm:$0xf]  ;;  %v4258_v9 = vld [vmem:[%s5459_s29 + $0x7d0] sm:$0xf0]  ;;  %v4133_v12 = vor.u32 %v4634_v6, %v4130_v7 }
 0x18c   : > { %2515 = vmatpush.bf16.msra.mxu3 %v3669_v46  ;;  %v4566_v13 = vld [vmem:[%s5459_s29 + $0x4a4] sm:$0xf]  ;;  %v3858_v14 = vld [vmem:[%s5459_s29 + $0x4b0] sm:$0xf0]  ;;  %v4261_v16 = vor.u32 %v4666_v8, %v4258_v9 }
 0x18d   : > { %2477 = vmatpush.bf16.msra.mxu0 %v3269_v53  ;;  %v4598_v15 = vld [vmem:[%s5459_s29 + $0x5a4] sm:$0xf]  ;;  %v3986_v17 = vld [vmem:[%s5459_s29 + $0x5b0] sm:$0xf0]  ;;  %v3861_v25 = vor.u32 %v4566_v13, %v3858_v14 }
 0x18e   : > { %2490 = vmatpush.bf16.msra.mxu1 %v3397_v57  ;;  %v4630_v18 = vld [vmem:[%s5459_s29 + $0x6a4] sm:$0xf]  ;;  %v4114_v19 = vld [vmem:[%s5459_s29 + $0x6b0] sm:$0xf0]  ;;  %v3989_v26 = vor.u32 %v4598_v15, %v3986_v17 }
 0x18f   : > { %2503 = vmatpush.bf16.msra.mxu2 %v3525_v58  ;;  %v4662_v20 = vld [vmem:[%s5459_s29 + $0x7a4] sm:$0xf]  ;;  %v4242_v24 = vld [vmem:[%s5459_s29 + $0x7b0] sm:$0xf0]  ;;  %v4117_v28 = vor.u32 %v4630_v18, %v4114_v19 }
 0x190   : > { %2516 = vmatpush.bf16.msra.mxu3 %v3653_v61  ;;  %2478 = vmatmul.bf16.vlgmr.msra.gmra.mxu0 %v5569_v22  ;;  %v4562_v29 = vld [vmem:[%s5459_s29 + $0x484] sm:$0xf]  ;;  %v3842_v31 = vld [vmem:[%s5459_s29 + $0x490] sm:$0xf0]  ;;  %v4245_v35 = vor.u32 %v4662_v20, %v4242_v24 }
 0x191   : > { %2522 = vmatpush.bf16.msrb.mxu0 %v3893_v62  ;;  %2491 = vmatmul.bf16.vlgmr.msra.gmra.mxu1 %v5576_v27  ;;  %v4594_v34 = vld [vmem:[%s5459_s29 + $0x584] sm:$0xf]  ;;  %v3970_v36 = vld [vmem:[%s5459_s29 + $0x590] sm:$0xf0]  ;;  %v3845_v42 = vor.u32 %v4562_v29, %v3842_v31  ;;  %v3384_v31 = vld [vmem:[%s5459_s29 + $0xe8] sm:$0xf] }
 0x192   : > { %2535 = vmatpush.bf16.msrb.mxu1 %v4021_v63  ;;  %2504 = vmatmul.bf16.vlgmr.msra.gmra.mxu2 %v5567_v21  ;;  %v4626_v37 = vld [vmem:[%s5459_s29 + $0x684] sm:$0xf]  ;;  %v4098_v38 = vld [vmem:[%s5459_s29 + $0x690] sm:$0xf0]  ;;  %v3973_v43 = vor.u32 %v4594_v34, %v3970_v36  ;;  %v4449_v34 = vld [vmem:[%s5459_s29 + $0xf4] sm:$0xf0] }
 0x193   : > { %2548 = vmatpush.bf16.msrb.mxu2 %v4149_v0  ;;  %2517 = vmatmul.bf16.vlgmr.msra.gmra.mxu3 %v5571_v23  ;;  %v4658_v40 = vld [vmem:[%s5459_s29 + $0x784] sm:$0xf]  ;;  %v4226_v41 = vld [vmem:[%s5459_s29 + $0x790] sm:$0xf0]  ;;  %v4101_v44 = vor.u32 %v4626_v37, %v4098_v38  ;;  %v4481_v37 = vld [vmem:[%s5459_s29 + $0x1f4] sm:$0xf0] }
 0x194   : > { %2561 = vmatpush.bf16.msrb.mxu3 %v4277_v4  ;;  %v4558_v45 = vld [vmem:[%s5459_s29 + $0x464] sm:$0xf]  ;;  %v3826_v46 = vld [vmem:[%s5459_s29 + $0x470] sm:$0xf0]  ;;  %v4229_v48 = vor.u32 %v4658_v40, %v4226_v41  ;;  %v3640_v38 = vld [vmem:[%s5459_s29 + $0x2e8] sm:$0xf] }
 0x195   : > { %2523 = vmatpush.bf16.msrb.mxu0 %v3877_v10  ;;  %v4590_v47 = vld [vmem:[%s5459_s29 + $0x564] sm:$0xf]  ;;  %v3954_v49 = vld [vmem:[%s5459_s29 + $0x570] sm:$0xf0]  ;;  %v3829_v54 = vor.u32 %v4558_v45, %v3826_v46  ;;  %v4513_v40 = vld [vmem:[%s5459_s29 + $0x2f4] sm:$0xf0]  ;;  %v3385_v46 = vor.u32 %v4449_v34, %v3384_v31 }
 0x196   : > { %2536 = vmatpush.bf16.msrb.mxu1 %v4005_v11  ;;  %v4622_v50 = vld [vmem:[%s5459_s29 + $0x664] sm:$0xf]  ;;  %v4082_v51 = vld [vmem:[%s5459_s29 + $0x670] sm:$0xf0]  ;;  %v3957_v55 = vor.u32 %v4590_v47, %v3954_v49  ;;  %v3368_v49 = vld [vmem:[%s5459_s29 + $0xc8] sm:$0xf] }
 0x197   : > { %2549 = vmatpush.bf16.msrb.mxu2 %v4133_v12  ;;  %v4654_v52 = vld [vmem:[%s5459_s29 + $0x764] sm:$0xf]  ;;  %v4210_v53 = vld [vmem:[%s5459_s29 + $0x770] sm:$0xf0]  ;;  %v4085_v56 = vor.u32 %v4622_v50, %v4082_v51  ;;  %v4445_v50 = vld [vmem:[%s5459_s29 + $0xd4] sm:$0xf0] }
 0x198   : > { %2562 = vmatpush.bf16.msrb.mxu3 %v4261_v16  ;;  %v4554_v57 = vld [vmem:[%s5459_s29 + $0x444] sm:$0xf]  ;;  %v3810_v58 = vld [vmem:[%s5459_s29 + $0x450] sm:$0xf0]  ;;  %v4213_v60 = vor.u32 %v4654_v52, %v4210_v53  ;;  %v3496_v51 = vld [vmem:[%s5459_s29 + $0x1c8] sm:$0xf] }
 0x199   : > { %2524 = vmatpush.bf16.msrb.mxu0 %v3861_v25  ;;  %v4586_v59 = vld [vmem:[%s5459_s29 + $0x544] sm:$0xf]  ;;  %v3938_v61 = vld [vmem:[%s5459_s29 + $0x550] sm:$0xf0]  ;;  %v3813_v2 = vor.u32 %v4554_v57, %v3810_v58  ;;  %v4477_v53 = vld [vmem:[%s5459_s29 + $0x1d4] sm:$0xf0]  ;;  %v3369_v58 = vor.u32 %v4445_v50, %v3368_v49 }
 0x19a   : > { %2537 = vmatpush.bf16.msrb.mxu1 %v3989_v26  ;;  %v4618_v62 = vld [vmem:[%s5459_s29 + $0x644] sm:$0xf]  ;;  %v4066_v63 = vld [vmem:[%s5459_s29 + $0x650] sm:$0xf0]  ;;  %v3941_v3 = vor.u32 %v4586_v59, %v3938_v61  ;;  %v4541_v57 = vld [vmem:[%s5459_s29 + $0x3d4] sm:$0xf0]  ;;  %v3497_v59 = vor.u32 %v4477_v53, %v3496_v51 }
 0x19b   : > { %2550 = vmatpush.bf16.msrb.mxu2 %v4117_v28  ;;  %v4650_v0 = vld [vmem:[%s5459_s29 + $0x744] sm:$0xf]  ;;  %v4194_v1 = vld [vmem:[%s5459_s29 + $0x750] sm:$0xf0]  ;;  %v4069_v4 = vor.u32 %v4618_v62, %v4066_v63  ;;  %v3352_v61 = vld [vmem:[%s5459_s29 + $0xa8] sm:$0xf] }
 0x19c   : > { %2563 = vmatpush.bf16.msrb.mxu3 %v4245_v35  ;;  %v4550_v5 = vld [vmem:[%s5459_s29 + $0x424] sm:$0xf]  ;;  %v3794_v6 = vld [vmem:[%s5459_s29 + $0x430] sm:$0xf0]  ;;  %v4197_v8 = vor.u32 %v4650_v0, %v4194_v1  ;;  %v3512_v35 = vld [vmem:[%s5459_s29 + $0x1e8] sm:$0xf] }
 0x19d   : > { %2525 = vmatpush.bf16.msrb.mxu0 %v3845_v42  ;;  %v4582_v7 = vld [vmem:[%s5459_s29 + $0x524] sm:$0xf]  ;;  %v3922_v9 = vld [vmem:[%s5459_s29 + $0x530] sm:$0xf0]  ;;  %v3797_v14 = vor.u32 %v4550_v5, %v3794_v6  ;;  %v3513_v47 = vor.u32 %v4481_v37, %v3512_v35  ;;  %v4441_v62 = vld [vmem:[%s5459_s29 + $0xb4] sm:$0xf0] }
 0x19e   : > { %2538 = vmatpush.bf16.msrb.mxu1 %v3973_v43  ;;  %v4614_v10 = vld [vmem:[%s5459_s29 + $0x624] sm:$0xf]  ;;  %v4050_v11 = vld [vmem:[%s5459_s29 + $0x630] sm:$0xf0]  ;;  %v3925_v17 = vor.u32 %v4582_v7, %v3922_v9  ;;  %v3768_v43 = vld [vmem:[%s5459_s29 + $0x3e8] sm:$0xf] }
 0x19f   : > { %2551 = vmatpush.bf16.msrb.mxu2 %v4101_v44  ;;  %v4646_v12 = vld [vmem:[%s5459_s29 + $0x724] sm:$0xf]  ;;  %v4178_v13 = vld [vmem:[%s5459_s29 + $0x730] sm:$0xf0]  ;;  %v4053_v18 = vor.u32 %v4614_v10, %v4050_v11  ;;  %v4545_v44 = vld [vmem:[%s5459_s29 + $0x3f4] sm:$0xf0] }
 0x1a0   : > { %2564 = vmatpush.bf16.msrb.mxu3 %v4229_v48  ;;  %v4546_v15 = vld [vmem:[%s5459_s29 + $0x404] sm:$0xf]  ;;  %v3778_v16 = vld [vmem:[%s5459_s29 + $0x410] sm:$0xf0]  ;;  %v4181_v25 = vor.u32 %v4646_v12, %v4178_v13  ;;  %v3641_v48 = vor.u32 %v4513_v40, %v3640_v38  ;;  %v3769_v52 = vor.u32 %v4545_v44, %v3768_v43  ;;  %v3480_v63 = vld [vmem:[%s5459_s29 + $0x1a8] sm:$0xf] }
 0x1a1   : > { %2526 = vmatpush.bf16.msrb.mxu0 %v3829_v54  ;;  %v4578_v19 = vld [vmem:[%s5459_s29 + $0x504] sm:$0xf]  ;;  %v3906_v20 = vld [vmem:[%s5459_s29 + $0x510] sm:$0xf0]  ;;  %v3781_v36 = vor.u32 %v4546_v15, %v3778_v16  ;;  %v3624_v54 = vld [vmem:[%s5459_s29 + $0x2c8] sm:$0xf] }
 0x1a2   : > { %2539 = vmatpush.bf16.msrb.mxu1 %v3957_v55  ;;  %v4610_v24 = vld [vmem:[%s5459_s29 + $0x604] sm:$0xf]  ;;  %v4034_v26 = vld [vmem:[%s5459_s29 + $0x610] sm:$0xf0]  ;;  %v3909_v41 = vor.u32 %v4578_v19, %v3906_v20  ;;  %v4509_v55 = vld [vmem:[%s5459_s29 + $0x2d4] sm:$0xf0] }
 0x1a3   : > { %2552 = vmatpush.bf16.msrb.mxu2 %v4085_v56  ;;  %v4642_v28 = vld [vmem:[%s5459_s29 + $0x704] sm:$0xf]  ;;  %v4162_v29 = vld [vmem:[%s5459_s29 + $0x710] sm:$0xf0]  ;;  %v4037_v42 = vor.u32 %v4610_v24, %v4034_v26  ;;  %v3752_v56 = vld [vmem:[%s5459_s29 + $0x3c8] sm:$0xf] }
 0x1a4   : > { %2565 = vmatpush.bf16.msrb.mxu3 %v4213_v60  ;;  %v4165_v45 = vor.u32 %v4642_v28, %v4162_v29  ;;  %v3625_v60 = vor.u32 %v4509_v55, %v3624_v54  ;;  %v3753_v0 = vor.u32 %v4541_v57, %v3752_v56  ;;  %v4473_v1 = vld [vmem:[%s5459_s29 + $0x1b4] sm:$0xf0]  ;;  %v3464_v9 = vld [vmem:[%s5459_s29 + $0x188] sm:$0xf] }
 0x1a5   : > { %2527 = vmatpush.bf16.msrb.mxu0 %v3813_v2  ;;  %v3608_v2 = vld [vmem:[%s5459_s29 + $0x2a8] sm:$0xf]  ;;  %v4537_v5 = vld [vmem:[%s5459_s29 + $0x3b4] sm:$0xf0]  ;;  %v3481_v6 = vor.u32 %v4473_v1, %v3480_v63 }
 0x1a6   : > { %2540 = vmatpush.bf16.msrb.mxu1 %v3941_v3  ;;  %v4505_v3 = vld [vmem:[%s5459_s29 + $0x2b4] sm:$0xf0]  ;;  %v3592_v11 = vld [vmem:[%s5459_s29 + $0x288] sm:$0xf] }
 0x1a7   : > { %2553 = vmatpush.bf16.msrb.mxu2 %v4069_v4  ;;  %v3736_v4 = vld [vmem:[%s5459_s29 + $0x3a8] sm:$0xf]  ;;  %v3609_v7 = vor.u32 %v4505_v3, %v3608_v2  ;;  %v4469_v10 = vld [vmem:[%s5459_s29 + $0x194] sm:$0xf0] }
 0x1a8   : > { %2566 = vmatpush.bf16.msrb.mxu3 %v4197_v8  ;;  %v3336_v8 = vld [vmem:[%s5459_s29 + $0x88] sm:$0xf]  ;;  %v4501_v12 = vld [vmem:[%s5459_s29 + $0x294] sm:$0xf0]  ;;  %v3465_v15 = vor.u32 %v4469_v10, %v3464_v9 }
 0x1a9   : > { %2528 = vmatpush.bf16.msrb.mxu0 %v3797_v14  ;;  %v4533_v13 = vld [vmem:[%s5459_s29 + $0x394] sm:$0xf0]  ;;  %v3593_v16 = vor.u32 %v4501_v12, %v3592_v11  ;;  %v3448_v19 = vld [vmem:[%s5459_s29 + $0x168] sm:$0xf] }
 0x1aa   : > { %2541 = vmatpush.bf16.msrb.mxu1 %v3925_v17  ;;  %v3320_v17 = vld [vmem:[%s5459_s29 + $0x68] sm:$0xf]  ;;  %v4465_v24 = vld [vmem:[%s5459_s29 + $0x174] sm:$0xf0] }
 0x1ab   : > { %2554 = vmatpush.bf16.msrb.mxu2 %v4053_v18  ;;  %v4433_v18 = vld [vmem:[%s5459_s29 + $0x74] sm:$0xf0]  ;;  %v3704_v28 = vld [vmem:[%s5459_s29 + $0x368] sm:$0xf]  ;;  %v3449_v34 = vor.u32 %v4465_v24, %v3448_v19 }
 0x1ac   : > { %2567 = vmatpush.bf16.msrb.mxu3 %v4181_v25  ;;  %v3576_v25 = vld [vmem:[%s5459_s29 + $0x268] sm:$0xf]  ;;  %v4497_v26 = vld [vmem:[%s5459_s29 + $0x274] sm:$0xf0]  ;;  %v3321_v31 = vor.u32 %v4433_v18, %v3320_v17 }
 0x1ad   : > { %2529 = vmatpush.bf16.msrb.mxu0 %v3781_v36  ;;  %v4529_v29 = vld [vmem:[%s5459_s29 + $0x374] sm:$0xf0]  ;;  %v3577_v35 = vor.u32 %v4497_v26, %v3576_v25  ;;  %v3304_v36 = vld [vmem:[%s5459_s29 + $0x48] sm:$0xf] }
 0x1ae   : > { %2542 = vmatpush.bf16.msrb.mxu1 %v3909_v41  ;;  %v4429_v37 = vld [vmem:[%s5459_s29 + $0x54] sm:$0xf0]  ;;  %v3432_v38 = vld [vmem:[%s5459_s29 + $0x148] sm:$0xf]  ;;  %v3705_v40 = vor.u32 %v4529_v29, %v3704_v28 }
 0x1af   : > { %2555 = vmatpush.bf16.msrb.mxu2 %v4037_v42  ;;  %v4461_v41 = vld [vmem:[%s5459_s29 + $0x154] sm:$0xf0]  ;;  %v3560_v42 = vld [vmem:[%s5459_s29 + $0x248] sm:$0xf] }
 0x1b0   : > { %2568 = vmatpush.bf16.msrb.mxu3 %v4165_v45  ;;  %2530 = vmatmul.bf16.vlgmr.msrb.gmra.mxu0 %v5625_v32  ;;  %v4437_v32 = vld [vmem:[%s5459_s29 + $0x94] sm:$0xf0]  ;;  %v3688_v44 = vld [vmem:[%s5459_s29 + $0x348] sm:$0xf] }
 0x1b1   : > { %2574 = vmatpush.bf16.msra.mxu0 %v3385_v46  ;;  %2543 = vmatmul.bf16.vlgmr.msrb.gmra.mxu1 %v5632_v39  ;;  %v3720_v39 = vld [vmem:[%s5459_s29 + $0x388] sm:$0xf]  ;;  %v3337_v14 = vor.u32 %v4437_v32, %v3336_v8  ;;  %v4493_v43 = vld [vmem:[%s5459_s29 + $0x254] sm:$0xf0]  ;;  %v3305_v46 = vor.u32 %v4429_v37, %v3304_v36 }
 0x1b2   : > { %2587 = vmatpush.bf16.msra.mxu1 %v3513_v47  ;;  %2556 = vmatmul.bf16.vlgmr.msrb.gmra.mxu2 %v5623_v30  ;;  %v3353_v30 = vor.u32 %v4441_v62, %v3352_v61  ;;  %v3721_v20 = vor.u32 %v4533_v13, %v3720_v39  ;;  %v4525_v45 = vld [vmem:[%s5459_s29 + $0x354] sm:$0xf0]  ;;  %v3433_v47 = vor.u32 %v4461_v41, %v3432_v38  ;;  %v3288_v49 = vld [vmem:[%s5459_s29 + $0x28] sm:$0xf] }
 0x1b3   : > { %2600 = vmatpush.bf16.msra.mxu2 %v3641_v48  ;;  %2569 = vmatmul.bf16.vlgmr.msrb.gmra.mxu3 %v5627_v33  ;;  %v3737_v33 = vor.u32 %v4537_v5, %v3736_v4  ;;  %v3561_v48 = vor.u32 %v4493_v43, %v3560_v42  ;;  %v4425_v50 = vld [vmem:[%s5459_s29 + $0x34] sm:$0xf0]  ;;  %v3416_v51 = vld [vmem:[%s5459_s29 + $0x128] sm:$0xf] }
 0x1b4   : > { %2613 = vmatpush.bf16.msra.mxu3 %v3769_v52  ;;  %v3689_v52 = vor.u32 %v4525_v45, %v3688_v44  ;;  %v4457_v53 = vld [vmem:[%s5459_s29 + $0x134] sm:$0xf0]  ;;  %v3544_v54 = vld [vmem:[%s5459_s29 + $0x228] sm:$0xf] }
 0x1b5   : > { %2575 = vmatpush.bf16.msra.mxu0 %v3369_v58  ;;  %v4489_v55 = vld [vmem:[%s5459_s29 + $0x234] sm:$0xf0]  ;;  %v3672_v56 = vld [vmem:[%s5459_s29 + $0x328] sm:$0xf]  ;;  %v3289_v58 = vor.u32 %v4425_v50, %v3288_v49  ;;  %v3417_v61 = vor.u32 %v4457_v53, %v3416_v51 }
 0x1b6   : > { %2588 = vmatpush.bf16.msra.mxu1 %v3497_v59  ;;  %v4521_v57 = vld [vmem:[%s5459_s29 + $0x334] sm:$0xf0]  ;;  %v3272_v59 = vld [vmem:[%s5459_s29 + $0x8] sm:$0xf]  ;;  %v3545_v62 = vor.u32 %v4489_v55, %v3544_v54 }
 0x1b7   : > { %2601 = vmatpush.bf16.msra.mxu2 %v3625_v60  ;;  %v4421_v60 = vld [vmem:[%s5459_s29 + $0x14] sm:$0xf0]  ;;  %v3400_v63 = vld [vmem:[%s5459_s29 + $0x108] sm:$0xf]  ;;  %v3673_v2 = vor.u32 %v4521_v57, %v3672_v56 }
 0x1b8   : > { %2614 = vmatpush.bf16.msra.mxu3 %v3753_v0  ;;  %v4453_v0 = vld [vmem:[%s5459_s29 + $0x114] sm:$0xf0]  ;;  %v3528_v1 = vld [vmem:[%s5459_s29 + $0x208] sm:$0xf]  ;;  %v3273_v8 = vor.u32 %v4421_v60, %v3272_v59 }
 0x1b9   : > { %2576 = vmatpush.bf16.msra.mxu0 %v3353_v30  ;;  %v4485_v3 = vld [vmem:[%s5459_s29 + $0x214] sm:$0xf0]  ;;  %v3656_v4 = vld [vmem:[%s5459_s29 + $0x308] sm:$0xf]  ;;  %v3401_v10 = vor.u32 %v4453_v0, %v3400_v63 }
 0x1ba   : > { %2589 = vmatpush.bf16.msra.mxu1 %v3481_v6  ;;  %v4517_v5 = vld [vmem:[%s5459_s29 + $0x314] sm:$0xf0]  ;;  %v3896_v30 = vld [vmem:[%s5459_s29 + $0x4e8] sm:$0xf]  ;;  %v3529_v11 = vor.u32 %v4485_v3, %v3528_v1 }
 0x1bb   : > { %2602 = vmatpush.bf16.msra.mxu2 %v3609_v7  ;;  %v4577_v6 = vld [vmem:[%s5459_s29 + $0x4f4] sm:$0xf0]  ;;  %v4024_v7 = vld [vmem:[%s5459_s29 + $0x5e8] sm:$0xf]  ;;  %v3657_v13 = vor.u32 %v4517_v5, %v3656_v4 }
 0x1bc   : > { %2615 = vmatpush.bf16.msra.mxu3 %v3737_v33  ;;  %v4609_v32 = vld [vmem:[%s5459_s29 + $0x5f4] sm:$0xf0]  ;;  %v4152_v9 = vld [vmem:[%s5459_s29 + $0x6e8] sm:$0xf] }
 0x1bd   : > { %2577 = vmatpush.bf16.msra.mxu0 %v3337_v14  ;;  %v4641_v33 = vld [vmem:[%s5459_s29 + $0x6f4] sm:$0xf0]  ;;  %v4280_v12 = vld [vmem:[%s5459_s29 + $0x7e8] sm:$0xf]  ;;  %v3897_v14 = vor.u32 %v4577_v6, %v3896_v30 }
 0x1be   : > { %2590 = vmatpush.bf16.msra.mxu1 %v3465_v15  ;;  %v4673_v39 = vld [vmem:[%s5459_s29 + $0x7f4] sm:$0xf0]  ;;  %v4025_v15 = vor.u32 %v4609_v32, %v4024_v7  ;;  %v3880_v17 = vld [vmem:[%s5459_s29 + $0x4c8] sm:$0xf] }
 0x1bf   : > { %2603 = vmatpush.bf16.msra.mxu2 %v3593_v16  ;;  %v4153_v16 = vor.u32 %v4641_v33, %v4152_v9  ;;  %v4573_v18 = vld [vmem:[%s5459_s29 + $0x4d4] sm:$0xf0]  ;;  %v4008_v19 = vld [vmem:[%s5459_s29 + $0x5c8] sm:$0xf] }
 0x1c0   : > { %2616 = vmatpush.bf16.msra.mxu3 %v3721_v20  ;;  %v4281_v20 = vor.u32 %v4673_v39, %v4280_v12  ;;  %v4605_v24 = vld [vmem:[%s5459_s29 + $0x5d4] sm:$0xf0]  ;;  %v4136_v25 = vld [vmem:[%s5459_s29 + $0x6c8] sm:$0xf] }
 0x1c1   : > { %2578 = vmatpush.bf16.msra.mxu0 %v3321_v31  ;;  %v4637_v26 = vld [vmem:[%s5459_s29 + $0x6d4] sm:$0xf0]  ;;  %v4264_v28 = vld [vmem:[%s5459_s29 + $0x7c8] sm:$0xf]  ;;  %v3881_v31 = vor.u32 %v4573_v18, %v3880_v17 }
 0x1c2   : > { %2591 = vmatpush.bf16.msra.mxu1 %v3449_v34  ;;  %v4669_v29 = vld [vmem:[%s5459_s29 + $0x7d4] sm:$0xf0]  ;;  %v4009_v34 = vor.u32 %v4605_v24, %v4008_v19  ;;  %v3864_v36 = vld [vmem:[%s5459_s29 + $0x4a8] sm:$0xf] }
 0x1c3   : > { %2604 = vmatpush.bf16.msra.mxu2 %v3577_v35  ;;  %v4137_v35 = vor.u32 %v4637_v26, %v4136_v25  ;;  %v4569_v37 = vld [vmem:[%s5459_s29 + $0x4b4] sm:$0xf0]  ;;  %v3992_v38 = vld [vmem:[%s5459_s29 + $0x5a8] sm:$0xf] }
 0x1c4   : > { %2617 = vmatpush.bf16.msra.mxu3 %v3705_v40  ;;  %v4265_v40 = vor.u32 %v4669_v29, %v4264_v28  ;;  %v4601_v41 = vld [vmem:[%s5459_s29 + $0x5b4] sm:$0xf0]  ;;  %v4120_v42 = vld [vmem:[%s5459_s29 + $0x6a8] sm:$0xf] }
 0x1c5   : > { %2579 = vmatpush.bf16.msra.mxu0 %v3305_v46  ;;  %v4633_v43 = vld [vmem:[%s5459_s29 + $0x6b4] sm:$0xf0]  ;;  %v4248_v44 = vld [vmem:[%s5459_s29 + $0x7a8] sm:$0xf]  ;;  %v3865_v46 = vor.u32 %v4569_v37, %v3864_v36 }
 0x1c6   : > { %2592 = vmatpush.bf16.msra.mxu1 %v3433_v47  ;;  %v4665_v45 = vld [vmem:[%s5459_s29 + $0x7b4] sm:$0xf0]  ;;  %v3993_v47 = vor.u32 %v4601_v41, %v3992_v38  ;;  %v3976_v50 = vld [vmem:[%s5459_s29 + $0x588] sm:$0xf] }
 0x1c7   : > { %2605 = vmatpush.bf16.msra.mxu2 %v3561_v48  ;;  %v4121_v48 = vor.u32 %v4633_v43, %v4120_v42  ;;  %v4565_v49 = vld [vmem:[%s5459_s29 + $0x494] sm:$0xf0]  ;;  %v4232_v53 = vld [vmem:[%s5459_s29 + $0x788] sm:$0xf] }
 0x1c8   : > { %2618 = vmatpush.bf16.msra.mxu3 %v3689_v52  ;;  %v4597_v51 = vld [vmem:[%s5459_s29 + $0x594] sm:$0xf0]  ;;  %v3832_v57 = vld [vmem:[%s5459_s29 + $0x468] sm:$0xf] }
 0x1c9   : > { %2580 = vmatpush.bf16.msra.mxu0 %v3289_v58  ;;  %v4629_v52 = vld [vmem:[%s5459_s29 + $0x694] sm:$0xf0]  ;;  %v3977_v55 = vor.u32 %v4597_v51, %v3976_v50  ;;  %v3960_v59 = vld [vmem:[%s5459_s29 + $0x568] sm:$0xf]  ;;  %v4511_v51 = vld [vmem:[%s5459_s29 + $0x2ec] sm:$0xf] }
 0x1ca   : > { %2593 = vmatpush.bf16.msra.mxu1 %v3417_v61  ;;  %v4561_v58 = vld [vmem:[%s5459_s29 + $0x474] sm:$0xf0]  ;;  %v4216_v0 = vld [vmem:[%s5459_s29 + $0x768] sm:$0xf] }
 0x1cb   : > { %2606 = vmatpush.bf16.msra.mxu2 %v3545_v62  ;;  %v4593_v61 = vld [vmem:[%s5459_s29 + $0x574] sm:$0xf0]  ;;  %v4088_v62 = vld [vmem:[%s5459_s29 + $0x668] sm:$0xf] }
 0x1cc   : > { %2619 = vmatpush.bf16.msra.mxu3 %v3673_v2  ;;  %v4625_v63 = vld [vmem:[%s5459_s29 + $0x674] sm:$0xf0]  ;;  %v3833_v2 = vor.u32 %v4561_v58, %v3832_v57  ;;  %v3961_v3 = vor.u32 %v4593_v61, %v3960_v59  ;;  %v3816_v5 = vld [vmem:[%s5459_s29 + $0x448] sm:$0xf] }
 0x1cd   : > { %2581 = vmatpush.bf16.msra.mxu0 %v3273_v8  ;;  %v4657_v1 = vld [vmem:[%s5459_s29 + $0x774] sm:$0xf0]  ;;  %v4089_v4 = vor.u32 %v4625_v63, %v4088_v62  ;;  %v3944_v6 = vld [vmem:[%s5459_s29 + $0x548] sm:$0xf]  ;;  %v4443_v62 = vld [vmem:[%s5459_s29 + $0xcc] sm:$0xf] }
 0x1ce   : > { %2594 = vmatpush.bf16.msra.mxu1 %v3401_v10  ;;  %v4557_v30 = vld [vmem:[%s5459_s29 + $0x454] sm:$0xf0]  ;;  %v4217_v7 = vor.u32 %v4657_v1, %v4216_v0  ;;  %v4072_v32 = vld [vmem:[%s5459_s29 + $0x648] sm:$0xf]  ;;  %v3370_v63 = vld [vmem:[%s5459_s29 + $0xd8] sm:$0xf0] }
 0x1cf   : > { %2607 = vmatpush.bf16.msra.mxu2 %v3529_v11  ;;  %v4589_v8 = vld [vmem:[%s5459_s29 + $0x554] sm:$0xf0]  ;;  %v4200_v33 = vld [vmem:[%s5459_s29 + $0x748] sm:$0xf]  ;;  %v3817_v11 = vor.u32 %v4557_v30, %v3816_v5  ;;  %v4475_v0 = vld [vmem:[%s5459_s29 + $0x1cc] sm:$0xf] }
 0x1d0   : > { %2620 = vmatpush.bf16.msra.mxu3 %v3657_v13  ;;  %2582 = vmatmul.bf16.vlgmr.msra.gmra.mxu0 %v5569_v22  ;;  %v4249_v22 = vor.u32 %v4665_v45, %v4248_v44  ;;  %v4621_v9 = vld [vmem:[%s5459_s29 + $0x654] sm:$0xf0]  ;;  %v3945_v39 = vor.u32 %v4589_v8, %v3944_v6  ;;  %v4184_v26 = vld [vmem:[%s5459_s29 + $0x728] sm:$0xf]  ;;  %v4539_v5 = vld [vmem:[%s5459_s29 + $0x3cc] sm:$0xf] }
 0x1d1   : > { %2626 = vmatpush.bf16.msrb.mxu0 %v3897_v14  ;;  %2595 = vmatmul.bf16.vlgmr.msra.gmra.mxu1 %v5576_v27  ;;  %v4661_v27 = vld [vmem:[%s5459_s29 + $0x794] sm:$0xf0]  ;;  %v4073_v13 = vor.u32 %v4621_v9, %v4072_v32  ;;  %v3800_v14 = vld [vmem:[%s5459_s29 + $0x428] sm:$0xf]  ;;  %v3754_v30 = vld [vmem:[%s5459_s29 + $0x3d8] sm:$0xf0] }
 0x1d2   : > { %2639 = vmatpush.bf16.msrb.mxu1 %v4025_v15  ;;  %2608 = vmatmul.bf16.vlgmr.msra.gmra.mxu2 %v5567_v21  ;;  %v3848_v21 = vld [vmem:[%s5459_s29 + $0x488] sm:$0xf]  ;;  %v4233_v60 = vor.u32 %v4661_v27, %v4232_v53  ;;  %v4653_v10 = vld [vmem:[%s5459_s29 + $0x754] sm:$0xf0] }
 0x1d3   : > { %2652 = vmatpush.bf16.msrb.mxu2 %v4153_v16  ;;  %2621 = vmatmul.bf16.vlgmr.msra.gmra.mxu3 %v5571_v23  ;;  %v4104_v23 = vld [vmem:[%s5459_s29 + $0x688] sm:$0xf]  ;;  %v3849_v54 = vor.u32 %v4565_v49, %v3848_v21  ;;  %v4553_v15 = vld [vmem:[%s5459_s29 + $0x434] sm:$0xf0]  ;;  %v4201_v18 = vor.u32 %v4653_v10, %v4200_v33  ;;  %v3386_v21 = vld [vmem:[%s5459_s29 + $0xf8] sm:$0xf0] }
 0x1d4   : > { %2665 = vmatpush.bf16.msrb.mxu3 %v4281_v20  ;;  %v4105_v56 = vor.u32 %v4629_v52, %v4104_v23  ;;  %v3928_v16 = vld [vmem:[%s5459_s29 + $0x528] sm:$0xf]  ;;  %v4585_v19 = vld [vmem:[%s5459_s29 + $0x534] sm:$0xf0]  ;;  %v3801_v29 = vor.u32 %v4553_v15, %v3800_v14  ;;  %v4479_v49 = vld [vmem:[%s5459_s29 + $0x1ec] sm:$0xf] }
 0x1d5   : > { %2627 = vmatpush.bf16.msrb.mxu0 %v3881_v31  ;;  %v4056_v20 = vld [vmem:[%s5459_s29 + $0x628] sm:$0xf]  ;;  %v4617_v24 = vld [vmem:[%s5459_s29 + $0x634] sm:$0xf0]  ;;  %v3642_v23 = vld [vmem:[%s5459_s29 + $0x2f8] sm:$0xf0] }
 0x1d6   : > { %2640 = vmatpush.bf16.msrb.mxu1 %v4009_v34  ;;  %v4649_v28 = vld [vmem:[%s5459_s29 + $0x734] sm:$0xf0]  ;;  %v3784_v31 = vld [vmem:[%s5459_s29 + $0x408] sm:$0xf]  ;;  %v4057_v36 = vor.u32 %v4617_v24, %v4056_v20  ;;  %v3645_v61 = vor.u32 %v4511_v51, %v3642_v23  ;;  %v4439_v33 = vld [vmem:[%s5459_s29 + $0xac] sm:$0xf] }
 0x1d7   : > { %2653 = vmatpush.bf16.msrb.mxu2 %v4137_v35  ;;  %v4549_v34 = vld [vmem:[%s5459_s29 + $0x414] sm:$0xf0]  ;;  %v3929_v35 = vor.u32 %v4585_v19, %v3928_v16  ;;  %v3912_v37 = vld [vmem:[%s5459_s29 + $0x508] sm:$0xf]  ;;  %v4185_v42 = vor.u32 %v4649_v28, %v4184_v26  ;;  %v3354_v10 = vld [vmem:[%s5459_s29 + $0xb8] sm:$0xf0] }
 0x1d8   : > { %2666 = vmatpush.bf16.msrb.mxu3 %v4265_v40  ;;  %v4581_v38 = vld [vmem:[%s5459_s29 + $0x514] sm:$0xf0]  ;;  %v4040_v40 = vld [vmem:[%s5459_s29 + $0x608] sm:$0xf]  ;;  %v3785_v50 = vor.u32 %v4549_v34, %v3784_v31  ;;  %v4503_v14 = vld [vmem:[%s5459_s29 + $0x2ac] sm:$0xf]  ;;  %v3357_v20 = vor.u32 %v4439_v33, %v3354_v10 }
 0x1d9   : > { %2628 = vmatpush.bf16.msrb.mxu0 %v3865_v46  ;;  %v4613_v43 = vld [vmem:[%s5459_s29 + $0x614] sm:$0xf0]  ;;  %v4168_v44 = vld [vmem:[%s5459_s29 + $0x708] sm:$0xf]  ;;  %v3913_v27 = vor.u32 %v4581_v38, %v3912_v37  ;;  %v3610_v15 = vld [vmem:[%s5459_s29 + $0x2b8] sm:$0xf0] }
 0x1da   : > { %2641 = vmatpush.bf16.msrb.mxu1 %v3993_v47  ;;  %v4645_v45 = vld [vmem:[%s5459_s29 + $0x714] sm:$0xf0]  ;;  %v3738_v19 = vld [vmem:[%s5459_s29 + $0x3b8] sm:$0xf0]  ;;  %v3613_v26 = vor.u32 %v4503_v14, %v3610_v15  ;;  %v4435_v28 = vld [vmem:[%s5459_s29 + $0x8c] sm:$0xf] }
 0x1db   : > { %2654 = vmatpush.bf16.msrb.mxu2 %v4121_v48  ;;  %v2388_v17 = vpop.f32.mrf.mxu1  ;;  %v4447_v48 = vld [vmem:[%s5459_s29 + $0xec] sm:$0xf]  ;;  %v4169_v58 = vor.u32 %v4645_v45, %v4168_v44  ;;  %v5914_v16 = vld [vmem:[#allocation1 + $0x24] sm:$0xff]  ;;  %v5922_v24 = vld [vmem:[#allocation1 + $0x2d] sm:$0xff] }
 0x1dc   : > { %2667 = vmatpush.bf16.msrb.mxu3 %v4249_v22  ;;  %v2375_v12 = vpop.f32.mrf.mxu0  ;;  %v3514_v22 = vld [vmem:[%s5459_s29 + $0x1f8] sm:$0xf0]  ;;  %v3389_v59 = vor.u32 %v4447_v48, %v3386_v21  ;;  %v4467_v31 = vld [vmem:[%s5459_s29 + $0x18c] sm:$0xf] }
 0x1dd   : > { %2629 = vmatpush.bf16.msrb.mxu0 %v3849_v54  ;;  %v2389_v25 = vadd.f32 %v2388_v17, %v2375_v12  ;;  %v4041_v54 = vor.u32 %v4613_v43, %v4040_v40  ;;  %v3757_v12 = vor.u32 %v4539_v5, %v3754_v30  ;;  %v5917_v17 = vld [vmem:[#allocation1 + $0x3f] sm:$0xff]  ;;  %v3594_v37 = vld [vmem:[%s5459_s29 + $0x298] sm:$0xf0] }
 0x1de   : > { %2642 = vmatpush.bf16.msrb.mxu1 %v3977_v55  ;;  %v4543_v55 = vld [vmem:[%s5459_s29 + $0x3ec] sm:$0xf]  ;;  %v3722_v40 = vld [vmem:[%s5459_s29 + $0x398] sm:$0xf0] }
 0x1df   : > { %2655 = vmatpush.bf16.msrb.mxu2 %v4105_v56  ;;  %v3770_v56 = vld [vmem:[%s5459_s29 + $0x3f8] sm:$0xf0]  ;;  %v4531_v38 = vld [vmem:[%s5459_s29 + $0x38c] sm:$0xf] }
 0x1e0   : > { %2668 = vmatpush.bf16.msrb.mxu3 %v4233_v60  ;;  %v3517_v60 = vor.u32 %v4479_v49, %v3514_v22  ;;  %v3773_v1 = vor.u32 %v4543_v55, %v3770_v56  ;;  %v4431_v45 = vld [vmem:[%s5459_s29 + $0x6c] sm:$0xf]  ;;  %v3725_v49 = vor.u32 %v4531_v38, %v3722_v40  ;;  %v3578_v51 = vld [vmem:[%s5459_s29 + $0x278] sm:$0xf0] }
 0x1e1   : > { %2630 = vmatpush.bf16.msrb.mxu0 %v3833_v2  ;;  %v2401_v41 = vpop.f32.mrf.mxu2  ;;  %v3498_v2 = vld [vmem:[%s5459_s29 + $0x1d8] sm:$0xf0]  ;;  %v4495_v22 = vld [vmem:[%s5459_s29 + $0x26c] sm:$0xf] }
 0x1e2   : > { %2643 = vmatpush.bf16.msrb.mxu1 %v3961_v3  ;;  %v2402_v46 = vadd.f32 %v2401_v41, %v2389_v25  ;;  %v4507_v3 = vld [vmem:[%s5459_s29 + $0x2cc] sm:$0xf]  ;;  %v3501_v32 = vor.u32 %v4475_v0, %v3498_v2  ;;  %v3581_v55 = vor.u32 %v4495_v22, %v3578_v51  ;;  %v3674_v15 = vld [vmem:[%s5459_s29 + $0x338] sm:$0xf0] }
 0x1e3   : > { %2656 = vmatpush.bf16.msrb.mxu2 %v4089_v4  ;;  %v2414_v47 = vpop.f32.mrf.mxu3  ;;  %v2390_v57 = vpop.f32.mrf.mxu1  ;;  %v3626_v4 = vld [vmem:[%s5459_s29 + $0x2d8] sm:$0xf0]  ;;  %v4527_v23 = vld [vmem:[%s5459_s29 + $0x36c] sm:$0xf] }
 0x1e4   : > { %2669 = vmatpush.bf16.msrb.mxu3 %v4217_v7  ;;  %v5893_v52 = vadd.f32 %v2414_v47, %v2402_v46  ;;  %v2377_v53 = vpop.f32.mrf.mxu0  ;;  %v3373_v7 = vor.u32 %v4443_v62, %v3370_v63  ;;  %v3629_v9 = vor.u32 %v4507_v3, %v3626_v4  ;;  %v3322_v46 = vld [vmem:[%s5459_s29 + $0x78] sm:$0xf0]  ;;  %v4463_v47 = vld [vmem:[%s5459_s29 + $0x16c] sm:$0xf] }
 0x1e5   : > { %2631 = vmatpush.bf16.msrb.mxu0 %v3817_v11  ;;  %v4471_v11 = vld [vmem:[%s5459_s29 + $0x1ac] sm:$0xf]  ;;  %v3706_v53 = vld [vmem:[%s5459_s29 + $0x378] sm:$0xf0] }
 0x1e6   : > { %2644 = vmatpush.bf16.msrb.mxu1 %v3945_v39  ;;  %v5908_v39 = vld [vmem:[#allocation1 + $0x36] sm:$0xff]  ;;  %v3306_v57 = vld [vmem:[%s5459_s29 + $0x58] sm:$0xf0] }
 0x1e7   : > { %2657 = vmatpush.bf16.msrb.mxu2 %v4073_v13  ;;  %v3482_v13 = vld [vmem:[%s5459_s29 + $0x1b8] sm:$0xf0]  ;;  %v4427_v56 = vld [vmem:[%s5459_s29 + $0x4c] sm:$0xf] }
 0x1e8   : > { %2670 = vmatpush.bf16.msrb.mxu3 %v4201_v18  ;;  %v4535_v18 = vld [vmem:[%s5459_s29 + $0x3ac] sm:$0xf]  ;;  %v3485_v25 = vor.u32 %v4471_v11, %v3482_v13  ;;  %v3562_v63 = vld [vmem:[%s5459_s29 + $0x258] sm:$0xf0]  ;;  %v3309_v4 = vor.u32 %v4427_v56, %v3306_v57 }
 0x1e9   : > { %2632 = vmatpush.bf16.msrb.mxu0 %v3801_v29  ;;  %v2403_v6 = vpop.f32.mrf.mxu2  ;;  %v3338_v29 = vld [vmem:[%s5459_s29 + $0x98] sm:$0xf0]  ;;  %v3741_v34 = vor.u32 %v4535_v18, %v3738_v19  ;;  %v4491_v62 = vld [vmem:[%s5459_s29 + $0x24c] sm:$0xf] }
 0x1ea   : > { %2645 = vmatpush.bf16.msrb.mxu1 %v3929_v35  ;;  %v3466_v35 = vld [vmem:[%s5459_s29 + $0x198] sm:$0xf0]  ;;  %v3341_v41 = vor.u32 %v4435_v28, %v3338_v29  ;;  %v4523_v2 = vld [vmem:[%s5459_s29 + $0x34c] sm:$0xf] }
 0x1eb   : > { %2658 = vmatpush.bf16.msrb.mxu2 %v4057_v36  ;;  %v2416_v8 = vpop.f32.mrf.mxu3  ;;  %v4499_v36 = vld [vmem:[%s5459_s29 + $0x28c] sm:$0xf]  ;;  %v3469_v43 = vor.u32 %v4467_v31, %v3466_v35  ;;  %v3690_v3 = vld [vmem:[%s5459_s29 + $0x358] sm:$0xf0] }
 0x1ec   : > { %2671 = vmatpush.bf16.msrb.mxu3 %v4185_v42  ;;  %v3597_v44 = vor.u32 %v4499_v36, %v3594_v37  ;;  %v4423_v8 = vld [vmem:[%s5459_s29 + $0x2c] sm:$0xf]  ;;  %v3693_v10 = vor.u32 %v4523_v2, %v3690_v3  ;;  %v3418_v11 = vld [vmem:[%s5459_s29 + $0x138] sm:$0xf0] }
 0x1ed   : > { %2633 = vmatpush.bf16.msrb.mxu0 %v3785_v50  ;;  %v2427_v42 = vpop.f32.mrf.mxu0  ;;  %v3450_v50 = vld [vmem:[%s5459_s29 + $0x178] sm:$0xf0]  ;;  %v4519_v14 = vld [vmem:[%s5459_s29 + $0x32c] sm:$0xf] }
 0x1ee   : > { %2646 = vmatpush.bf16.msrb.mxu1 %v3913_v27  ;;  %v2428_v48 = vadd.f32 %v2427_v42, %v5893_v52  ;;  %v2440_v21 = vpop.f32.mrf.mxu1  ;;  %v3453_v52 = vor.u32 %v4463_v47, %v3450_v50  ;;  %v3546_v13 = vld [vmem:[%s5459_s29 + $0x238] sm:$0xf0]  ;;  %v4419_v19 = vld [vmem:[%s5459_s29 + $0xc] sm:$0xf]  ;;  %v3677_v35 = vor.u32 %v4519_v14, %v3674_v15 }
 0x1ef   : > { %2659 = vmatpush.bf16.msrb.mxu2 %v4041_v54  ;;  %v3325_v54 = vor.u32 %v4431_v45, %v3322_v46  ;;  %v4451_v28 = vld [vmem:[%s5459_s29 + $0x10c] sm:$0xf]  ;;  %v3402_v29 = vld [vmem:[%s5459_s29 + $0x118] sm:$0xf0] }
 0x1f0   : > { %2672 = vmatpush.bf16.msrb.mxu3 %v4169_v58  ;;  %2634 = vmatmul.bf16.vlgmr.msrb.gmra.mxu0 %v5914_v16  ;;  %v2441_v27 = vadd.f32 %v2440_v21, %v2428_v48  ;;  %v4459_v58 = vld [vmem:[%s5459_s29 + $0x14c] sm:$0xf]  ;;  %v3530_v36 = vld [vmem:[%s5459_s29 + $0x218] sm:$0xf0]  ;;  %v3405_v48 = vor.u32 %v4451_v28, %v3402_v29 }
 0x1f1   : > { %2678 = vmatpush.bf16.msra.mxu0 %v3389_v59  ;;  %2647 = vmatmul.bf16.vlgmr.msrb.gmra.mxu1 %v5922_v24  ;;  %v4483_v31 = vld [vmem:[%s5459_s29 + $0x20c] sm:$0xf]  ;;  %v3658_v38 = vld [vmem:[%s5459_s29 + $0x318] sm:$0xf0] }
 0x1f2   : > { %2691 = vmatpush.bf16.msra.mxu1 %v3517_v60  ;;  %2660 = vmatmul.bf16.vlgmr.msrb.gmra.mxu2 %v5908_v39  ;;  %v3709_v60 = vor.u32 %v4527_v23, %v3706_v53  ;;  %v4515_v37 = vld [vmem:[%s5459_s29 + $0x30c] sm:$0xf]  ;;  %v3898_v42 = vld [vmem:[%s5459_s29 + $0x4f8] sm:$0xf0]  ;;  %v3533_v21 = vor.u32 %v4483_v31, %v3530_v36 }
 0x1f3   : > { %2704 = vmatpush.bf16.msra.mxu2 %v3645_v61  ;;  %2673 = vmatmul.bf16.vlgmr.msrb.gmra.mxu3 %v5917_v17  ;;  %v3434_v61 = vld [vmem:[%s5459_s29 + $0x158] sm:$0xf0]  ;;  %v4639_v46 = vld [vmem:[%s5459_s29 + $0x6ec] sm:$0xf]  ;;  %v3661_v22 = vor.u32 %v4515_v37, %v3658_v38 }
 0x1f4   : > { %2717 = vmatpush.bf16.msra.mxu3 %v3773_v1  ;;  %v3437_v6 = vor.u32 %v4459_v58, %v3434_v61  ;;  %v4026_v45 = vld [vmem:[%s5459_s29 + $0x5f8] sm:$0xf0]  ;;  %v4635_v57 = vld [vmem:[%s5459_s29 + $0x6cc] sm:$0xf] }
 0x1f5   : > { %2679 = vmatpush.bf16.msra.mxu0 %v3373_v7  ;;  %v2453_v59 = vpop.f32.mrf.mxu2  ;;  %v2429_v30 = vpop.f32.mrf.mxu0  ;;  %v3565_v7 = vor.u32 %v4491_v62, %v3562_v63  ;;  %v4154_v47 = vld [vmem:[%s5459_s29 + $0x6f8] sm:$0xf0]  ;;  %v4599_v2 = vld [vmem:[%s5459_s29 + $0x5ac] sm:$0xf] }
 0x1f6   : > { %2692 = vmatpush.bf16.msra.mxu1 %v3501_v32  ;;  %v2454_v0 = vadd.f32 %v2453_v59, %v2441_v27  ;;  %v2466_v1 = vpop.f32.mrf.mxu3  ;;  %v3290_v32 = vld [vmem:[%s5459_s29 + $0x38] sm:$0xf0]  ;;  %v2442_v33 = vpop.f32.mrf.mxu1  ;;  %v4157_v53 = vor.u32 %v4639_v46, %v4154_v47  ;;  %v4571_v27 = vld [vmem:[%s5459_s29 + $0x4cc] sm:$0xf] }
 0x1f7   : > { %2705 = vmatpush.bf16.msra.mxu2 %v3629_v9  ;;  %v4455_v9 = vld [vmem:[%s5459_s29 + $0x12c] sm:$0xf]  ;;  %v3293_v18 = vor.u32 %v4423_v8, %v3290_v32  ;;  %v4282_v50 = vld [vmem:[%s5459_s29 + $0x7f8] sm:$0xf0] }
 0x1f8   : > { %2718 = vmatpush.bf16.msra.mxu3 %v3757_v12  ;;  %v5950_v5 = vadd.f32 %v2466_v1, %v2454_v0  ;;  %v4487_v12 = vld [vmem:[%s5459_s29 + $0x22c] sm:$0xf]  ;;  %v4010_v56 = vld [vmem:[%s5459_s29 + $0x5d8] sm:$0xf0] }
 0x1f9   : > { %2680 = vmatpush.bf16.msra.mxu0 %v3357_v20  ;;  %v3274_v20 = vld [vmem:[%s5459_s29 + $0x18] sm:$0xf0]  ;;  %v4667_v59 = vld [vmem:[%s5459_s29 + $0x7cc] sm:$0xf] }
 0x1fa   : > { %2693 = vmatpush.bf16.msra.mxu1 %v3485_v25  ;;  %v3421_v25 = vor.u32 %v4455_v9, %v3418_v11  ;;  %v4138_v58 = vld [vmem:[%s5459_s29 + $0x6d8] sm:$0xf0]  ;;  %v4567_v0 = vld [vmem:[%s5459_s29 + $0x4ac] sm:$0xf]  ;;  %v4768_v9 = vld [vmem:[#allocation1] sm:$0xff] }
 0x1fb   : > { %2706 = vmatpush.bf16.msra.mxu2 %v3613_v26  ;;  %v3549_v26 = vor.u32 %v4487_v12, %v3546_v13  ;;  %v4141_v63 = vor.u32 %v4635_v57, %v4138_v58  ;;  %v3866_v1 = vld [vmem:[%s5459_s29 + $0x4b8] sm:$0xf0]  ;;  %v4663_v8 = vld [vmem:[%s5459_s29 + $0x7ac] sm:$0xf] }
 0x1fc   : > { %2719 = vmatpush.bf16.msra.mxu3 %v3741_v34  ;;  %v3994_v30 = vld [vmem:[%s5459_s29 + $0x5b8] sm:$0xf0]  ;;  %v4769_v33 = vld [vmem:[#allocation1 + $0x1b] sm:$0xff] }
 0x1fd   : > { %2681 = vmatpush.bf16.msra.mxu0 %v3341_v41  ;;  %v2455_v34 = vpop.f32.mrf.mxu2  ;;  %v4575_v41 = vld [vmem:[%s5459_s29 + $0x4ec] sm:$0xf]  ;;  %v4250_v32 = vld [vmem:[%s5459_s29 + $0x7b8] sm:$0xf0]  ;;  %v3997_v12 = vor.u32 %v4599_v2, %v3994_v30 }
 0x1fe   : > { %2694 = vmatpush.bf16.msra.mxu1 %v3469_v43  ;;  %v2468_v40 = vpop.f32.mrf.mxu3  ;;  %v4607_v43 = vld [vmem:[%s5459_s29 + $0x5ec] sm:$0xf]  ;;  %v3901_v51 = vor.u32 %v4575_v41, %v3898_v42  ;;  %v4770_v11 = vld [vmem:[#allocation1 + $0x9] sm:$0xff] }
 0x1ff   : > { %2707 = vmatpush.bf16.msra.mxu2 %v3597_v44  ;;  %v3277_v44 = vor.u32 %v4419_v19, %v3274_v20  ;;  %v4029_v23 = vor.u32 %v4607_v43, %v4026_v45  ;;  %v4563_v14 = vld [vmem:[%s5459_s29 + $0x48c] sm:$0xf]  ;;  %v3850_v15 = vld [vmem:[%s5459_s29 + $0x498] sm:$0xf0]  ;;  %v4253_v19 = vor.u32 %v4663_v8, %v4250_v32 }
 0x200   : > { %2720 = vmatpush.bf16.msra.mxu3 %v3725_v49  ;;  %v4671_v49 = vld [vmem:[%s5459_s29 + $0x7ec] sm:$0xf]  ;;  %v3978_v20 = vld [vmem:[%s5459_s29 + $0x598] sm:$0xf0]  ;;  %v3853_v31 = vor.u32 %v4563_v14, %v3850_v15 }
 0x201   : > { %2682 = vmatpush.bf16.msra.mxu0 %v3325_v54  ;;  %v3882_v54 = vld [vmem:[%s5459_s29 + $0x4d8] sm:$0xf0]  ;;  %v4659_v28 = vld [vmem:[%s5459_s29 + $0x78c] sm:$0xf] }
 0x202   : > { %2695 = vmatpush.bf16.msra.mxu1 %v3453_v52  ;;  %v4603_v52 = vld [vmem:[%s5459_s29 + $0x5cc] sm:$0xf]  ;;  %v3885_v61 = vor.u32 %v4571_v27, %v3882_v54  ;;  %v4234_v29 = vld [vmem:[%s5459_s29 + $0x798] sm:$0xf0] }
 0x203   : > { %2708 = vmatpush.bf16.msra.mxu2 %v3581_v55  ;;  %v4285_v55 = vor.u32 %v4671_v49, %v4282_v50  ;;  %v4013_v62 = vor.u32 %v4603_v52, %v4010_v56  ;;  %v4559_v37 = vld [vmem:[%s5459_s29 + $0x46c] sm:$0xf]  ;;  %v3834_v38 = vld [vmem:[%s5459_s29 + $0x478] sm:$0xf0]  ;;  %v4237_v42 = vor.u32 %v4659_v28, %v4234_v29 }
 0x204   : > { %2721 = vmatpush.bf16.msra.mxu3 %v3709_v60  ;;  %v4266_v60 = vld [vmem:[%s5459_s29 + $0x7d8] sm:$0xf0]  ;;  %v4591_v40 = vld [vmem:[%s5459_s29 + $0x56c] sm:$0xf] }
 0x205   : > { %2683 = vmatpush.bf16.msra.mxu0 %v3309_v4  ;;  %v4269_v3 = vor.u32 %v4667_v59, %v4266_v60  ;;  %v4767_v4 = vld [vmem:[#allocation1 + $0x12] sm:$0xff]  ;;  %v3962_v43 = vld [vmem:[%s5459_s29 + $0x578] sm:$0xf0]  ;;  %v4655_v47 = vld [vmem:[%s5459_s29 + $0x76c] sm:$0xf] }
 0x206   : > { %2696 = vmatpush.bf16.msra.mxu1 %v3437_v6  ;;  %v4631_v6 = vld [vmem:[%s5459_s29 + $0x6ac] sm:$0xf]  ;;  %v4090_v45 = vld [vmem:[%s5459_s29 + $0x678] sm:$0xf0]  ;;  %v3965_v49 = vor.u32 %v4591_v40, %v3962_v43 }
 0x207   : > { %2709 = vmatpush.bf16.msra.mxu2 %v3565_v7  ;;  %v4122_v7 = vld [vmem:[%s5459_s29 + $0x6b8] sm:$0xf0]  ;;  %v4619_v52 = vld [vmem:[%s5459_s29 + $0x64c] sm:$0xf] }
 0x208   : > { %2722 = vmatpush.bf16.msra.mxu3 %v3693_v10  ;;  %v3869_v10 = vor.u32 %v4567_v0, %v3866_v1  ;;  %v4125_v13 = vor.u32 %v4631_v6, %v4122_v7  ;;  %v3946_v54 = vld [vmem:[%s5459_s29 + $0x558] sm:$0xf0]  ;;  %v4651_v58 = vld [vmem:[%s5459_s29 + $0x74c] sm:$0xf] }
 0x209   : > { %2684 = vmatpush.bf16.msra.mxu0 %v3293_v18  ;;  %v4595_v18 = vld [vmem:[%s5459_s29 + $0x58c] sm:$0xf]  ;;  %v4202_v59 = vld [vmem:[%s5459_s29 + $0x758] sm:$0xf0] }
 0x20a   : > { %2697 = vmatpush.bf16.msra.mxu1 %v3421_v25  ;;  %v4627_v25 = vld [vmem:[%s5459_s29 + $0x68c] sm:$0xf]  ;;  %v3802_v2 = vld [vmem:[%s5459_s29 + $0x438] sm:$0xf0]  ;;  %v4205_v30 = vor.u32 %v4651_v58, %v4202_v59 }
 0x20b   : > { %2710 = vmatpush.bf16.msra.mxu2 %v3549_v26  ;;  %v4106_v26 = vld [vmem:[%s5459_s29 + $0x698] sm:$0xf0]  ;;  %v4551_v1 = vld [vmem:[%s5459_s29 + $0x42c] sm:$0xf] }
 0x20c   : > { %2723 = vmatpush.bf16.msra.mxu3 %v3677_v35  ;;  %v3981_v35 = vor.u32 %v4595_v18, %v3978_v20  ;;  %v4109_v36 = vor.u32 %v4627_v25, %v4106_v26  ;;  %v3930_v6 = vld [vmem:[%s5459_s29 + $0x538] sm:$0xf0]  ;;  %v4615_v7 = vld [vmem:[%s5459_s29 + $0x62c] sm:$0xf] }
 0x20d   : > { %2685 = vmatpush.bf16.msra.mxu0 %v3277_v44  ;;  %v2479_v34 = vpop.f32.mrf.mxu0  ;;  %v4623_v44 = vld [vmem:[%s5459_s29 + $0x66c] sm:$0xf]  ;;  %v4058_v8 = vld [vmem:[%s5459_s29 + $0x638] sm:$0xf0] }
 0x20e   : > { %2698 = vmatpush.bf16.msra.mxu1 %v3405_v48  ;;  %v2492_v41 = vpop.f32.mrf.mxu1  ;;  %v4218_v48 = vld [vmem:[%s5459_s29 + $0x778] sm:$0xf0]  ;;  %v4093_v50 = vor.u32 %v4623_v44, %v4090_v45  ;;  %v4647_v32 = vld [vmem:[%s5459_s29 + $0x72c] sm:$0xf] }
 0x20f   : > { %2711 = vmatpush.bf16.msra.mxu2 %v3533_v21  ;;  %v2493_v46 = vadd.f32 %v2492_v41, %v2479_v34  ;;  %v3837_v21 = vor.u32 %v4559_v37, %v3834_v38  ;;  %v4221_v27 = vor.u32 %v4655_v47, %v4218_v48  ;;  %v4579_v14 = vld [vmem:[%s5459_s29 + $0x50c] sm:$0xf]  ;;  %v4042_v25 = vld [vmem:[%s5459_s29 + $0x618] sm:$0xf0] }
 0x210   : > { %2724 = vmatpush.bf16.msra.mxu3 %v3661_v22  ;;  %2686 = vmatmul.bf16.vlgmr.msra.gmra.mxu0 %v4768_v9  ;;  %v4555_v22 = vld [vmem:[%s5459_s29 + $0x44c] sm:$0xf]  ;;  %v4186_v9 = vld [vmem:[%s5459_s29 + $0x738] sm:$0xf0] }
 0x211   : > { %2730 = vmatpush.bf16.msrb.mxu0 %v3901_v51  ;;  %2699 = vmatmul.bf16.vlgmr.msra.gmra.mxu1 %v4770_v11  ;;  %v3818_v51 = vld [vmem:[%s5459_s29 + $0x458] sm:$0xf0]  ;;  %v4061_v11 = vor.u32 %v4615_v7, %v4058_v8  ;;  %v4189_v18 = vor.u32 %v4647_v32, %v4186_v9  ;;  %v4611_v20 = vld [vmem:[%s5459_s29 + $0x60c] sm:$0xf] }
 0x212   : > { %2743 = vmatpush.bf16.msrb.mxu1 %v4029_v23  ;;  %2712 = vmatmul.bf16.vlgmr.msra.gmra.mxu2 %v4767_v4  ;;  %v4587_v23 = vld [vmem:[%s5459_s29 + $0x54c] sm:$0xf]  ;;  %v3821_v60 = vor.u32 %v4555_v22, %v3818_v51  ;;  %v4170_v29 = vld [vmem:[%s5459_s29 + $0x718] sm:$0xf0] }
 0x213   : > { %2756 = vmatpush.bf16.msrb.mxu2 %v4157_v53  ;;  %2725 = vmatmul.bf16.vlgmr.msra.gmra.mxu3 %v4769_v33  ;;  %v3805_v33 = vor.u32 %v4551_v1, %v3802_v2  ;;  %v4643_v28 = vld [vmem:[%s5459_s29 + $0x70c] sm:$0xf] }
 0x214   : > { %2769 = vmatpush.bf16.msrb.mxu3 %v4285_v55  ;;  %v4074_v55 = vld [vmem:[%s5459_s29 + $0x658] sm:$0xf0] }
 0x215   : > { %2731 = vmatpush.bf16.msrb.mxu0 %v3885_v61  ;;  %v2505_v53 = vpop.f32.mrf.mxu2  ;;  %v4077_v0 = vor.u32 %v4619_v52, %v4074_v55 }
 0x216   : > { %2744 = vmatpush.bf16.msrb.mxu1 %v4013_v62  ;;  %v2506_v56 = vadd.f32 %v2505_v53, %v2493_v46  ;;  %v2518_v57 = vpop.f32.mrf.mxu3  ;;  %v2481_v62 = vpop.f32.mrf.mxu0 }
 0x217   : > { %2757 = vmatpush.bf16.msrb.mxu2 %v4141_v63  ;;  %v3949_v63 = vor.u32 %v4587_v23, %v3946_v54  ;;  %v2494_v4 = vpop.f32.mrf.mxu1 }
 0x218   : > { %2770 = vmatpush.bf16.msrb.mxu3 %v4269_v3  ;;  %v2519_v61 = vadd.f32 %v2518_v57, %v2506_v56  ;;  %v4583_v3 = vld [vmem:[%s5459_s29 + $0x52c] sm:$0xf] }
 0x219   : > { %2732 = vmatpush.bf16.msrb.mxu0 %v3869_v10  ;;  %v3933_v10 = vor.u32 %v4583_v3, %v3930_v6 }
 0x21a   : > { %2745 = vmatpush.bf16.msrb.mxu1 %v3997_v12  ;;  %v4547_v12 = vld [vmem:[%s5459_s29 + $0x40c] sm:$0xf] }
 0x21b   : > { %2758 = vmatpush.bf16.msrb.mxu2 %v4125_v13  ;;  %v3786_v13 = vld [vmem:[%s5459_s29 + $0x418] sm:$0xf0] }
 0x21c   : > { %2771 = vmatpush.bf16.msrb.mxu3 %v4253_v19  ;;  %v3914_v19 = vld [vmem:[%s5459_s29 + $0x518] sm:$0xf0] }
 0x21d   : > { %2733 = vmatpush.bf16.msrb.mxu0 %v3853_v31  ;;  %v2507_v15 = vpop.f32.mrf.mxu2  ;;  %v3789_v31 = vor.u32 %v4547_v12, %v3786_v13  ;;  %v3917_v34 = vor.u32 %v4579_v14, %v3914_v19 }
 0x21e   : > { %2746 = vmatpush.bf16.msrb.mxu1 %v3981_v35  ;;  %v2520_v26 = vpop.f32.mrf.mxu3  ;;  %v4045_v35 = vor.u32 %v4611_v20, %v4042_v25 }
 0x21f   : > { %2759 = vmatpush.bf16.msrb.mxu2 %v4109_v36  ;;  %v4173_v36 = vor.u32 %v4643_v28, %v4170_v29 }
 0x220   : > { %2772 = vmatpush.bf16.msrb.mxu3 %v4237_v42 }
 0x221   : > { %2734 = vmatpush.bf16.msrb.mxu0 %v3837_v21 }
 0x222   : > { %2747 = vmatpush.bf16.msrb.mxu1 %v3965_v49 }
 0x223   : > { %2760 = vmatpush.bf16.msrb.mxu2 %v4093_v50 }
 0x224   : > { %2773 = vmatpush.bf16.msrb.mxu3 %v4221_v27 }
 0x225   : > { %2735 = vmatpush.bf16.msrb.mxu0 %v3821_v60 }
 0x226   : > { %2748 = vmatpush.bf16.msrb.mxu1 %v3949_v63 }
 0x227   : > { %2761 = vmatpush.bf16.msrb.mxu2 %v4077_v0 }
 0x228   : > { %2774 = vmatpush.bf16.msrb.mxu3 %v4205_v30 }
 0x229   : > { %2736 = vmatpush.bf16.msrb.mxu0 %v3805_v33 }
 0x22a   : > { %2749 = vmatpush.bf16.msrb.mxu1 %v3933_v10 }
 0x22b   : > { %2762 = vmatpush.bf16.msrb.mxu2 %v4061_v11 }
 0x22c   : > { %2775 = vmatpush.bf16.msrb.mxu3 %v4189_v18 }
 0x22d   : > { %2737 = vmatpush.bf16.msrb.mxu0 %v3789_v31  ;;  %v2531_v37 = vpop.f32.mrf.mxu0  ;;  %v810_v31 = vld [vmem:[#allocation2] sm:$0xff] }
 0x22e   : > { %2750 = vmatpush.bf16.msrb.mxu1 %v3917_v34  ;;  %v2532_v38 = vadd.f32 %v2531_v37, %v2519_v61  ;;  %v2544_v40 = vpop.f32.mrf.mxu1 }
 0x22f   : > { %2763 = vmatpush.bf16.msrb.mxu2 %v4045_v35 }
 0x230   : > { %2776 = vmatpush.bf16.msrb.mxu3 %v4173_v36  ;;  %2738 = vmatmul.bf16.vlgmr.msrb.gmra.mxu0 %v5914_v16  ;;  %v2545_v41 = vadd.f32 %v2544_v40, %v2532_v38 }
 0x231   : > { %2751 = vmatmul.bf16.vlgmr.msrb.gmra.mxu1 %v5922_v24 }
 0x232   : > { %2764 = vmatmul.bf16.vlgmr.msrb.gmra.mxu2 %v5908_v39 }
 0x233   : > { %2777 = vmatmul.bf16.vlgmr.msrb.gmra.mxu3 %v5917_v17 }
 0x235   : > { %v2557_v42 = vpop.f32.mrf.mxu2  ;;  %v2533_v46 = vpop.f32.mrf.mxu0 }
 0x236   : > { %v2558_v43 = vadd.f32 %v2557_v42, %v2545_v41  ;;  %v2570_v44 = vpop.f32.mrf.mxu3  ;;  %v2546_v47 = vpop.f32.mrf.mxu1 }
 0x238   : > { %v2571_v45 = vadd.f32 %v2570_v44, %v2558_v43 }
 0x23a   : > { %v2786_v48 = vrot.slane %v2571_v45, 6 }
 0x23c   : > { %v2790_v16 = vsel %vm2789_vm0, %v5950_v5, %v2786_v48 }
 0x23d   : > { %v2559_v24 = vpop.f32.mrf.mxu2 }
 0x23e   : > { %v2572_v21 = vpop.f32.mrf.mxu3 }
 0x24d   : > { %v2583_v39 = vpop.f32.mrf.mxu0 }
 0x24e   : > { %v2596_v49 = vpop.f32.mrf.mxu1 }
 0x24f   : > { %v2597_v17 = vadd.f32 %v2596_v49, %v2583_v39 }
 0x255   : > { %v2609_v50 = vpop.f32.mrf.mxu2  ;;  %v2585_v53 = vpop.f32.mrf.mxu0 }
 0x256   : > { %v2610_v22 = vadd.f32 %v2609_v50, %v2597_v17  ;;  %v2622_v51 = vpop.f32.mrf.mxu3  ;;  %v2598_v27 = vpop.f32.mrf.mxu1 }
 0x258   : > { %v2623_v23 = vadd.f32 %v2622_v51, %v2610_v22 }
 0x25d   : > { %v2611_v54 = vpop.f32.mrf.mxu2 }
 0x25e   : > { %v2624_v52 = vpop.f32.mrf.mxu3 }
 0x26d   : > { %v2635_v55 = vpop.f32.mrf.mxu0 }
 0x26e   : > { %v2648_v56 = vpop.f32.mrf.mxu1  ;;  %v2636_v7 = vadd.f32 %v2635_v55, %v2623_v23 }
 0x270   : > { %v2649_v32 = vadd.f32 %v2648_v56, %v2636_v7 }
 0x275   : > { %v2661_v57 = vpop.f32.mrf.mxu2  ;;  %v2637_v59 = vpop.f32.mrf.mxu0 }
 0x276   : > { %v2674_v58 = vpop.f32.mrf.mxu3  ;;  %v2650_v60 = vpop.f32.mrf.mxu1  ;;  %v2662_v12 = vadd.f32 %v2661_v57, %v2649_v32 }
 0x278   : > { %v2675_v15 = vadd.f32 %v2674_v58, %v2662_v12 }
 0x27a   : > { %v2787_v28 = vrot.slane %v2675_v15, 4 }
 0x27d   : > { %v2663_v5 = vpop.f32.mrf.mxu2 }
 0x27e   : > { %v2676_v61 = vpop.f32.mrf.mxu3 }
 0x28d   : > { %v2687_v62 = vpop.f32.mrf.mxu0 }
 0x28e   : > { %v2700_v63 = vpop.f32.mrf.mxu1 }
 0x28f   : > { %v2701_v6 = vadd.f32 %v2700_v63, %v2687_v62 }
 0x295   : > { %v2713_v0 = vpop.f32.mrf.mxu2  ;;  %v2689_v2 = vpop.f32.mrf.mxu0 }
 0x296   : > { %v2726_v1 = vpop.f32.mrf.mxu3  ;;  %v2702_v3 = vpop.f32.mrf.mxu1  ;;  %v2714_v8 = vadd.f32 %v2713_v0, %v2701_v6 }
 0x298   : > { %v2727_v9 = vadd.f32 %v2726_v1, %v2714_v8 }
 0x29d   : > { %v2715_v4 = vpop.f32.mrf.mxu2 }
 0x29e   : > { %v2728_v30 = vpop.f32.mrf.mxu3 }
 0x2ad   : > { %v2739_v33 = vpop.f32.mrf.mxu0 }
 0x2ae   : > { %v2752_v10 = vpop.f32.mrf.mxu1  ;;  %v2740_v11 = vadd.f32 %v2739_v33, %v2727_v9 }
 0x2b0   : > { %v2753_v13 = vadd.f32 %v2752_v10, %v2740_v11 }
 0x2b5   : > { %v2765_v14 = vpop.f32.mrf.mxu2  ;;  %v2741_v20 = vpop.f32.mrf.mxu0 }
 0x2b6   : > { %v2766_v18 = vadd.f32 %v2765_v14, %v2753_v13  ;;  %v2778_v19 = vpop.f32.mrf.mxu3  ;;  %v2754_v25 = vpop.f32.mrf.mxu1 }
 0x2b8   : > { %v2779_v26 = vadd.f32 %v2778_v19, %v2766_v18 }
 0x2ba   : > { %v2788_v29 = vrot.slane %v2779_v26, 2 }
 0x2bc   : > { %v2792_v34 = vsel %vm2791_vm1, %v2787_v28, %v2788_v29  ;;  %2801 = sbr.rel (%p4286_p1) target bundleno = 880 (0x370), region = 67 }
 0x2bd   : > { %v2794_v35 = vsel %vm2793_vm2, %v2790_v16, %v2792_v34  ;;  %v2767_v36 = vpop.f32.mrf.mxu2 }
 0x2be   : > { %v2796_v37 = vadd.f32 %v2794_v35, %v810_v31  ;;  %v2780_v38 = vpop.f32.mrf.mxu3 }
 0x2c0   : > { %2797 = vst [vmem:[#allocation2] sm:$0xff] %v2796_v37 }
 0x2c1   : > { %v4681_v40 = vld [vmem:[%s5451_s10 + $0x38] sm:$0xff]  ;;  %v4680_v44 = vld [vmem:[%s5451_s10 + $0x30] sm:$0xff]  ;;  %v4679_v48 = vld [vmem:[%s5451_s10 + $0x28] sm:$0xff]  ;;  %vm3140_vm3 = vcmask 1024  }
 0x2c2   : > { %v4689_v41 = vld [vmem:[%s5451_s10 + $0x78] sm:$0xff]  ;;  %3088 = vmatpush.bf16.msra.mxu0 %v4681_v40  ;;  %v4688_v45 = vld [vmem:[%s5451_s10 + $0x70] sm:$0xff]  ;;  %v4687_v16 = vld [vmem:[%s5451_s10 + $0x68] sm:$0xff] }
 0x2c3   : > { %v4697_v42 = vld [vmem:[%s5451_s10 + $0xb8] sm:$0xff]  ;;  %3101 = vmatpush.bf16.msra.mxu1 %v4689_v41  ;;  %v4696_v46 = vld [vmem:[%s5451_s10 + $0xb0] sm:$0xff]  ;;  %v4695_v24 = vld [vmem:[%s5451_s10 + $0xa8] sm:$0xff] }
 0x2c4   : > { %v4705_v43 = vld [vmem:[%s5451_s10 + $0xf8] sm:$0xff]  ;;  %3114 = vmatpush.bf16.msra.mxu2 %v4697_v42  ;;  %v4704_v47 = vld [vmem:[%s5451_s10 + $0xf0] sm:$0xff]  ;;  %v4703_v21 = vld [vmem:[%s5451_s10 + $0xe8] sm:$0xff] }
 0x2c5   : > { %3127 = vmatpush.bf16.msra.mxu3 %v4705_v43  ;;  %v4678_v39 = vld [vmem:[%s5451_s10 + $0x20] sm:$0xff]  ;;  %v4677_v54 = vld [vmem:[%s5451_s10 + $0x18] sm:$0xff]  ;;  %v4676_v63 = vld [vmem:[%s5451_s10 + $0x10] sm:$0xff] }
 0x2c6   : > { %3089 = vmatpush.bf16.msra.mxu0 %v4680_v44  ;;  %v4686_v49 = vld [vmem:[%s5451_s10 + $0x60] sm:$0xff]  ;;  %v4685_v52 = vld [vmem:[%s5451_s10 + $0x58] sm:$0xff]  ;;  %v4684_v0 = vld [vmem:[%s5451_s10 + $0x50] sm:$0xff] }
 0x2c7   : > { %3102 = vmatpush.bf16.msra.mxu1 %v4688_v45  ;;  %v4694_v17 = vld [vmem:[%s5451_s10 + $0xa0] sm:$0xff]  ;;  %v4693_v58 = vld [vmem:[%s5451_s10 + $0x98] sm:$0xff]  ;;  %v2802_v60 = vld [vmem:[#allocation2] sm:$0xff] }
 0x2c8   : > { %3115 = vmatpush.bf16.msra.mxu2 %v4696_v46  ;;  %v4702_v50 = vld [vmem:[%s5451_s10 + $0xe0] sm:$0xff]  ;;  %v4701_v59 = vld [vmem:[%s5451_s10 + $0xd8] sm:$0xff]  ;;  %v4692_v2 = vld [vmem:[%s5451_s10 + $0x90] sm:$0xff] }
 0x2c9   : > { %3128 = vmatpush.bf16.msra.mxu3 %v4704_v47  ;;  %v2803_v22 = vld [vmem:[%s793_s6] sm:$0xf]  ;;  %v4700_v3 = vld [vmem:[%s5451_s10 + $0xd0] sm:$0xff]  ;;  %v4675_v30 = vld [vmem:[%s5451_s10 + $0x8] sm:$0xff] }
 0x2ca   : > { %3090 = vmatpush.bf16.msra.mxu0 %v4679_v48  ;;  %v2805_v51 = vperm.slane %v2803_v22, 0  ;;  %v2806_v23 = vperm.slane %v2803_v22, 1  ;;  %v2807_v53 = vperm.slane %v2803_v22, 2  ;;  %v2808_v27 = vperm.slane %v2803_v22, 3  ;;  %v4683_v6 = vld [vmem:[%s5451_s10 + $0x48] sm:$0xff]  ;;  %v4674_v32 = vld [vmem:[%s5451_s10] sm:$0xff] }
 0x2cb   : > { %3103 = vmatpush.bf16.msra.mxu1 %v4687_v16  ;;  %v4691_v7 = vld [vmem:[%s5451_s10 + $0x88] sm:$0xff]  ;;  %v4682_v9 = vld [vmem:[%s5451_s10 + $0x40] sm:$0xff] }
 0x2cc   : > { %3116 = vmatpush.bf16.msra.mxu2 %v4695_v24  ;;  %v2809_v55 = vrot.slane %v2806_v23, 6  ;;  %v2810_v56 = vrot.slane %v2807_v53, 4  ;;  %v2811_v57 = vrot.slane %v2808_v27, 2  ;;  %v4699_v8 = vld [vmem:[%s5451_s10 + $0xc8] sm:$0xff]  ;;  %v4690_v33 = vld [vmem:[%s5451_s10 + $0x80] sm:$0xff] }
 0x2cd   : > { %3129 = vmatpush.bf16.msra.mxu3 %v4703_v21  ;;  %v4698_v10 = vld [vmem:[%s5451_s10 + $0xc0] sm:$0xff] }
 0x2ce   : > { %3091 = vmatpush.bf16.msra.mxu0 %v4678_v39  ;;  %v2812_v5 = vsel %vm2789_vm0, %v2805_v51, %v2809_v55  ;;  %v2813_v61 = vsel %vm2791_vm1, %v2810_v56, %v2811_v57 }
 0x2cf   : > { %3104 = vmatpush.bf16.msra.mxu1 %v4686_v49  ;;  %v2814_v62 = vsel %vm2793_vm2, %v2812_v5, %v2813_v61 }
 0x2d0   : > { %3117 = vmatpush.bf16.msra.mxu2 %v4694_v17  ;;  %v2816_v1 = vadd.f32 %v2814_v62, %v2802_v60 }
 0x2d1   : > { %3130 = vmatpush.bf16.msra.mxu3 %v4702_v50 }
 0x2d2   : > { %3092 = vmatpush.bf16.msra.mxu0 %v4677_v54  ;;  %v2817_v4 = vmax.f32 %v2816_v1, 0.0 }
 0x2d3   : > { %3105 = vmatpush.bf16.msra.mxu1 %v4685_v52 }
 0x2d4   : > { %3118 = vmatpush.bf16.msra.mxu2 %v4693_v58  ;;  %2819 = vst [vmem:[#allocation1] ss:$4 sm:$0xff] %v2817_v4 }
 0x2d5   : > { %3131 = vmatpush.bf16.msra.mxu3 %v4701_v59 }
 0x2d6   : > { %3093 = vmatpush.bf16.msra.mxu0 %v4676_v63 }
 0x2d7   : > { %3106 = vmatpush.bf16.msra.mxu1 %v4684_v0 }
 0x2d8   : > { %3119 = vmatpush.bf16.msra.mxu2 %v4692_v2 }
 0x2d9   : > { %3132 = vmatpush.bf16.msra.mxu3 %v4700_v3 }
 0x2da   : > { %3094 = vmatpush.bf16.msra.mxu0 %v4675_v30 }
 0x2db   : > { %3107 = vmatpush.bf16.msra.mxu1 %v4683_v6  ;;  %v2820_v11 = vld.sshfl [vmem:[#allocation1] sm:$0xff pattern:$0x73625140]  ;;  %v2821_v12 = vld.sshfl [vmem:[#allocation1 + $0x8] sm:$0xff pattern:$0x73625140] }
 0x2dc   : > { %3120 = vmatpush.bf16.msra.mxu2 %v4691_v7  ;;  %v2828_v13 = vpack.c.bf16 %v2820_v11, %v2820_v11  ;;  %v2829_v14 = vpack.c.bf16 %v2821_v12, %v2821_v12  ;;  %v2822_v15 = vld.sshfl [vmem:[#allocation1 + $0x10] sm:$0xff pattern:$0x73625140]  ;;  %v2823_v18 = vld.sshfl [vmem:[#allocation1 + $0x18] sm:$0xff pattern:$0x73625140] }
 0x2dd   : > { %3133 = vmatpush.bf16.msra.mxu3 %v4699_v8  ;;  %v2830_v19 = vpack.c.bf16 %v2822_v15, %v2822_v15  ;;  %v2831_v20 = vpack.c.bf16 %v2823_v18, %v2823_v18 }
 0x2de   : > { %3095 = vmatpush.bf16.msra.mxu0 %v4674_v32 }
 0x2df   : > { %3108 = vmatpush.bf16.msra.mxu1 %v4682_v9 }
 0x2e0   : > { %3121 = vmatpush.bf16.msra.mxu2 %v4690_v33 }
 0x2e1   : > { %3134 = vmatpush.bf16.msra.mxu3 %v4698_v10  ;;  %3096 = vmatmul.bf16.vlgmr.msra.gmra.mxu0 %v2828_v13 }
 0x2e2   : > { %3109 = vmatmul.bf16.vlgmr.msra.gmra.mxu1 %v2829_v14 }
 0x2e3   : > { %3122 = vmatmul.bf16.vlgmr.msra.gmra.mxu2 %v2830_v19 }
 0x2e4   : > { %3135 = vmatmul.bf16.vlgmr.msra.gmra.mxu3 %v2831_v20 }
 0x35e   : > { %v3097_v25 = vpop.f32.mrf.mxu0 }
 0x35f   : > { %v3110_v26 = vpop.f32.mrf.mxu1 }
 0x360   : > { %v3111_v28 = vadd.f32 %v3110_v26, %v3097_v25 }
 0x366   : > { %v3123_v29 = vpop.f32.mrf.mxu2  ;;  %v3099_v35 = vpop.f32.mrf.mxu0 }
 0x367   : > { %v3136_v31 = vpop.f32.mrf.mxu3  ;;  %v3124_v34 = vadd.f32 %v3123_v29, %v3111_v28  ;;  %v3112_v36 = vpop.f32.mrf.mxu1 }
 0x369   : > { %v3137_v37 = vadd.f32 %v3136_v31, %v3124_v34 }
 0x36b   : > { %3141 = vst.msk [vmem:[%s5457_s27] sm:$0x3] %vm3140_vm3, %v3137_v37 }
 0x36e   : > { %v3125_v38 = vpop.f32.mrf.mxu2 }
 0x36f   : > { %v3138_v40 = vpop.f32.mrf.mxu3 }
 0x370 PF: > { %s14_s21 = sadd.s32 1, %s4825_s21   ;;  %s6108_s15 = smov %s4805_s16 }
 0x371   : > { %p11_p2 = scmp.ge.s32.totalorder %s14_s21, 12   ;;  %s6109_s16 = smov %s4904_s28 }
 0x372   : > { %s6110_s17 = smov %s4817_s19  ;;  %s6111_s18 = smov %s4821_s20 }
 0x373   : > { %s6112_s19 = smov %s6115_s22  ;;  %s6113_s20 = smov %s6119_s23 }
 0x374   :  { %13 = sbr.rel (!%p11_p2) target bundleno = 4 (0x4), region = 111 }

</bundles_post_ra>
